<compile_context>
chip_gen: v7x
topology: tpu7x:2x2x1
jax: 0.10.0
libtpu: 0.0.40
codegen_flags: <defaults>
</compile_context>

<pallas_src>
import functools

import jax
import jax.numpy as jnp
import numpy as np
from jax import lax
from jax.experimental import pallas as pl
from jax.experimental.pallas import tpu as pltpu

EPS = 1e-5          # BatchNorm2d default eps
OUT_CHANNELS = 2080  # fixed by the module; residual add forces in_channels == 2080


# ----------------------------------------------------------------------------
# Helpers
# ----------------------------------------------------------------------------
def _round_up(x, m):
    return ((x + m - 1) // m) * m


def _split(dim, cap, base=128):
    """Pick a tile size (multiple of `base`, <= cap) and the padded extent."""
    dp = _round_up(dim, base)
    n = -(-dp // cap)                       # number of tiles
    t = _round_up(-(-dp // n), base)        # even split, rounded to base
    return t, n * t


# ----------------------------------------------------------------------------
# Pallas kernels: tiled matmul with fused bias (+ optional residual/scale) + ReLU
# ----------------------------------------------------------------------------
def _mm_kernel(x_ref, w_ref, b_ref, o_ref, acc_ref, *, relu):
    @pl.when(pl.program_id(2) == 0)
    def _():
        acc_ref[...] = jnp.zeros_like(acc_ref)

    acc_ref[...] += jnp.dot(x_ref[...], w_ref[...],
                            preferred_element_type=jnp.float32)

    @pl.when(pl.program_id(2) == pl.num_programs(2) - 1)
    def _():
        y = acc_ref[...] + b_ref[...]
        if relu:
            y = jnp.maximum(y, 0.0)
        o_ref[...] = y.astype(o_ref.dtype)


def _mm_res_kernel(x_ref, w_ref, b_ref, r_ref, o_ref, acc_ref, *, relu, scale):
    @pl.when(pl.program_id(2) == 0)
    def _():
        acc_ref[...] = jnp.zeros_like(acc_ref)

    acc_ref[...] += jnp.dot(x_ref[...], w_ref[...],
                            preferred_element_type=jnp.float32)

    @pl.when(pl.program_id(2) == pl.num_programs(2) - 1)
    def _():
        y = r_ref[...] + scale * (acc_ref[...] + b_ref[...])
        if relu:
            y = jnp.maximum(y, 0.0)
        o_ref[...] = y.astype(o_ref.dtype)


def matmul_bias_act(x, w, b, *, relu=True, residual=None, scale=1.0,
                    out_dtype=jnp.bfloat16,
                    tm_cap=256, tn_cap=768, tk_cap=768):
    """(M, K) @ (K, N) + b, optionally  residual + scale * (.)  and ReLU.

    bf16 inputs / f32 accumulation; M/N/K padded to tile multiples inside.
    """
    M, K = x.shape
    Kw, N = w.shape
    assert K == Kw and b.shape == (N,)

    tm, Mp = _split(M, tm_cap, base=8)
    tn, Np = _split(N, tn_cap, base=128)
    tk, Kp = _split(K, tk_cap, base=128)

    xp = jnp.pad(x.astype(jnp.bfloat16), ((0, Mp - M), (0, Kp - K)))
    wp = jnp.pad(w.astype(jnp.bfloat16), ((0, Kp - K), (0, Np - N)))
    bp = jnp.pad(b.astype(jnp.float32), ((0, Np - N),)).reshape(1, Np)

    grid = (Mp // tm, Np // tn, Kp // tk)

    in_specs = [
        pl.BlockSpec((tm, tk), lambda i, j, k: (i, k)),
        pl.BlockSpec((tk, tn), lambda i, j, k: (k, j)),
        pl.BlockSpec((1, tn), lambda i, j, k: (0, j)),
    ]
    args = [xp, wp, bp]

    if residual is None:
        kernel = functools.partial(_mm_kernel, relu=relu)
    else:
        rp = jnp.pad(residual.astype(jnp.float32), ((0, Mp - M), (0, Np - N)))
        in_specs.append(pl.BlockSpec((tm, tn), lambda i, j, k: (i, j)))
        args.append(rp)
        kernel = functools.partial(_mm_res_kernel, relu=relu, scale=scale)

    out = pl.pallas_call(
        kernel,
        out_shape=jax.ShapeDtypeStruct((Mp, Np), out_dtype),
        grid_spec=pltpu.PrefetchScalarGridSpec(
            num_scalar_prefetch=0,
            grid=grid,
            in_specs=in_specs,
            out_specs=pl.BlockSpec((tm, tn), lambda i, j, k: (i, j)),
            scratch_shapes=[pltpu.VMEM((tm, tn), jnp.float32)],
        ),
        compiler_params=pltpu.CompilerParams(
            dimension_semantics=("parallel", "parallel", "arbitrary"),
            vmem_limit_bytes=64 * 1024 * 1024,
        ),
    )(*args)
    return out[:M, :N]


# ----------------------------------------------------------------------------
# Conv wrappers
# ----------------------------------------------------------------------------
def conv1d_same(x_nhwc, p, *, axis, relu=True):
    """3-tap 'same' conv along `axis` (2 -> kernel (1,3); 1 -> kernel (3,1))."""
    N, H, W, C = x_nhwc.shape
    pad_cfg = [(0, 0)] * 4
    pad_cfg[axis] = (1, 1)
    xp = jnp.pad(x_nhwc, pad_cfg)
    # 3-tap gather only (tiny tensor); matches weight layout (kh, kw, cin).
    taps = [lax.slice_in_dim(xp, t, t + x_nhwc.shape[axis], axis=axis)
            for t in range(3)]
    patches = jnp.stack(taps, axis=3)                    # (N, H, W, 3, C)
    pm = patches.reshape(N * H * W, 3 * C)
    out = matmul_bias_act(pm, p["w_mat"], p["b"], relu=relu)
    return out.reshape(N, H, W, -1)


# ----------------------------------------------------------------------------
# Parameters (deterministic, BN folded into conv; weights stored as bf16)
# ----------------------------------------------------------------------------
def make_cnnblock_params(key, cin, cout, kh, kw):
    kw_, kg, kb, km, kv = jax.random.split(key, 5)
    w = jax.random.normal(kw_, (cout, cin, kh, kw), jnp.float32) / np.sqrt(cin * kh * kw)
    gamma = 1.0 + 0.1 * jax.random.normal(kg, (cout,), jnp.float32)
    beta = 0.1 * jax.random.normal(kb, (cout,), jnp.float32)
    mean = 0.1 * jax.random.normal(km, (cout,), jnp.float32)
    var = 1.0 + 0.1 * jax.random.uniform(kv, (cout,), jnp.float32)
    s = gamma / jnp.sqrt(var + EPS)
    w_eff = w * s[:, None, None, None]
    b_eff = beta - mean * s
    # (O, Cin, KH, KW) -> (KH, KW, Cin, O) -> (KH*KW*Cin, O)  (matches patch ordering)
    w_mat = jnp.transpose(w_eff, (2, 3, 1, 0)).reshape(kh * kw * cin, cout)
    return {"w_mat": w_mat.astype(jnp.bfloat16), "b": b_eff,
            "kh": kh, "kw": kw, "cin": cin, "cout": cout}


def make_outconv_params(key, cin, cout):
    kw_, kb = jax.random.split(key)
    w = jax.random.normal(kw_, (cout, cin, 1, 1), jnp.float32) / np.sqrt(cin)
    b = 0.1 * jax.random.normal(kb, (cout,), jnp.float32)
    w_mat = jnp.transpose(w, (2, 3, 1, 0)).reshape(cin, cout)
    return {"w_mat": w_mat.astype(jnp.bfloat16), "b": b,
            "kh": 1, "kw": 1, "cin": cin, "cout": cout}


def make_params(key, in_channels=OUT_CHANNELS):
    keys = jax.random.split(key, 5)
    p = {
        "branch_1":   make_cnnblock_params(keys[0], in_channels, 192, 1, 1),
        "branch_2_0": make_cnnblock_params(keys[1], in_channels, 192, 1, 1),
        "branch_2_1": make_cnnblock_params(keys[2], 192, 224, 1, 3),
        "branch_2_2": make_cnnblock_params(keys[3], 224, 256, 3, 1),
        "out_conv":   make_outconv_params(keys[4], 192 + 256, OUT_CHANNELS),
    }
    # Fused 1x1 head: branch_1 (192) + branch_2[0] (192) share the same input
    # -> one lane-dense N=384 matmul, input read from HBM once.
    p["head_w"] = jnp.concatenate([p["branch_1"]["w_mat"],
                                   p["branch_2_0"]["w_mat"]], axis=1)
    p["head_b"] = jnp.concatenate([p["branch_1"]["b"], p["branch_2_0"]["b"]])
    return p


# ----------------------------------------------------------------------------
# Forward pass (Pallas path) — 4 pallas_call launches total
# ----------------------------------------------------------------------------
def inception_resnet_c_forward(x_nchw, params, *, scale=0.2, last_relu=True):
    x = jnp.transpose(x_nchw, (0, 2, 3, 1))          # NCHW -> NHWC
    N, H, W, C = x.shape
    M = N * H * W
    xm = x.reshape(M, C)

    # 1) fused 1x1 heads (branch_1 + branch_2[0]); 1x1 conv needs no im2col.
    head = matmul_bias_act(xm, params["head_w"], params["head_b"], relu=True)
    b1 = head[:, :192]
    b2 = head[:, 192:]

    # 2) branch_2: (1,3) then (3,1) 'same' convs.
    b2 = conv1d_same(b2.reshape(N, H, W, 192), params["branch_2_1"], axis=2)
    b2 = conv1d_same(b2, params["branch_2_2"], axis=1)

    # 3) concat heads -> (M, 448)
    cat = jnp.concatenate([b1, b2.reshape(M, 256)], axis=1)

    # 4) out_conv (1x1 with bias, no BN/ReLU) fused with residual add + scale + ReLU.
    out = matmul_bias_act(cat, params["out_conv"]["w_mat"], params["out_conv"]["b"],
                          relu=last_relu, residual=xm, scale=scale,
                          out_dtype=jnp.float32)
    out = out.reshape(N, H, W, OUT_CHANNELS)
    return jnp.transpose(out, (0, 3, 1, 2))           # NHWC -> NCHW


# ----------------------------------------------------------------------------
# Pure-JAX reference (same bf16 activation/weight rounding points, f32 math)
# ----------------------------------------------------------------------------
def _ref_block(x, p, relu=True):
    kh, kw, cin, cout = p["kh"], p["kw"], p["cin"], p["cout"]
    w = p["w_mat"].astype(jnp.float32).reshape(kh, kw, cin, cout)
    y = lax.conv_general_dilated(
        x.astype(jnp.bfloat16).astype(jnp.float32), w, (1, 1),
        ((kh // 2, kh // 2), (kw // 2, kw // 2)),
        dimension_numbers=("NHWC", "HWIO", "NHWC"),
        precision=lax.Precision.HIGHEST) + p["b"]
    if relu:
        y = jnp.maximum(y, 0.0)
    return y.astype(jnp.bfloat16).astype(jnp.float32)


def inception_resnet_c_reference(x_nchw, params, *, scale=0.2, last_relu=True):
    x = jnp.transpose(x_nchw, (0, 2, 3, 1))
    b1 = _ref_block(x, params["branch_1"])
    b2 = _ref_block(x, params["branch_2_0"])
    b2 = _ref_block(b2, params["branch_2_1"])
    b2 = _ref_block(b2, params["branch_2_2"])
    cat = jnp.concatenate([b1, b2], axis=-1)
    oc = params["out_conv"]
    w = oc["w_mat"].astype(jnp.float32).reshape(1, 1, oc["cin"], oc["cout"])
    y = lax.conv_general_dilated(
        cat.astype(jnp.bfloat16).astype(jnp.float32), w, (1, 1), ((0, 0), (0, 0)),
        dimension_numbers=("NHWC", "HWIO", "NHWC"),
        precision=lax.Precision.HIGHEST) + oc["b"]
    y = x + scale * y
    if last_relu:
        y = jnp.maximum(y, 0.0)
    return jnp.transpose(y, (0, 3, 1, 2))


# ----------------------------------------------------------------------------
if __name__ == "__main__":
    key = jax.random.PRNGKey(0)
    k_params, k_x = jax.random.split(key)

    # Residual add forces in_channels == out_channels == 2080; keep spatial small.
    in_channels = OUT_CHANNELS
    N, H, W = 2, 8, 8
    scale, last_relu = 0.2, True

    params = make_params(k_params, in_channels)
    x = jax.random.normal(k_x, (N, in_channels, H, W), jnp.float32)

    fwd = jax.jit(functools.partial(inception_resnet_c_forward,
                                    scale=scale, last_relu=last_relu))
    out = jax.block_until_ready(fwd(x, params))
    assert out.shape == (N, OUT_CHANNELS, H, W), out.shape

    ref = jax.block_until_ready(
        inception_resnet_c_reference(x, params, scale=scale, last_relu=last_relu))
    if not np.allclose(np.asarray(out), np.asarray(ref), atol=2e-2, rtol=2e-2):
        err = float(np.max(np.abs(np.asarray(out) - np.asarray(ref))))
        raise AssertionError(f"Pallas output does not match JAX reference (max err {err})")

    print("KERNEL_OK")
</pallas_src>

<mosaic_0001>
module attributes {stable_mosaic.version = 11 : i64} {
  func.func @_mm_kernel(%arg0: i32, %arg1: i32, %arg2: i32, %arg3: memref<128x768xbf16, #tpu.memory_space<vmem>>, %arg4: memref<768x384xbf16, #tpu.memory_space<vmem>>, %arg5: memref<1x384xf32, #tpu.memory_space<vmem>>, %arg6: memref<128x384xbf16, #tpu.memory_space<vmem>>, %arg7: memref<128x384xf32, #tpu.memory_space<vmem>>) attributes {dimension_semantics = [#tpu.dimension_semantics<parallel>, #tpu.dimension_semantics<parallel>, #tpu.dimension_semantics<arbitrary>], iteration_bounds = array<i64: 1, 1, 3>, scalar_prefetch = 0 : i64, scratch_operands = 1 : i64, tpu.core_type = #tpu.core_type<tc>, window_params = [{transform_indices = @transform_0, window_bounds = array<i64: 128, 768>}, {transform_indices = @transform_1, window_bounds = array<i64: 768, 384>}, {transform_indices = @transform_2, window_bounds = array<i64: 1, 384>}, {transform_indices = @transform_3, window_bounds = array<i64: 128, 384>}]} {
    %c0_i32 = arith.constant 0 : i32
    %0 = arith.cmpi eq, %arg2, %c0_i32 : i32
    %1 = arith.extui %0 : i1 to i32
    %c0_i32_0 = arith.constant 0 : i32
    %2 = arith.cmpi ne, %1, %c0_i32_0 : i32
    scf.if %2 {
      %cst_9 = arith.constant 0.000000e+00 : f32
      %12 = vector.broadcast %cst_9 : f32 to vector<128x384xf32>
      %c0_10 = arith.constant 0 : index
      %c0_11 = arith.constant 0 : index
      %13 = vector.load %arg7[%c0_10, %c0_11] : memref<128x384xf32, #tpu.memory_space<vmem>>, vector<128x384xf32>
      tpu.vector_store %arg7[%c0_10, %c0_11], %12 {strides = array<i32>} : memref<128x384xf32, #tpu.memory_space<vmem>>, vector<128x384xf32>,
    } else {
    }
    %c0 = arith.constant 0 : index
    %c0_1 = arith.constant 0 : index
    %3 = vector.load %arg7[%c0, %c0_1] : memref<128x384xf32, #tpu.memory_space<vmem>>, vector<128x384xf32>
    %c0_2 = arith.constant 0 : index
    %c0_3 = arith.constant 0 : index
    %4 = vector.load %arg3[%c0_2, %c0_3] : memref<128x768xbf16, #tpu.memory_space<vmem>>, vector<128x768xbf16>
    %c0_4 = arith.constant 0 : index
    %c0_5 = arith.constant 0 : index
    %5 = vector.load %arg4[%c0_4, %c0_5] : memref<768x384xbf16, #tpu.memory_space<vmem>>, vector<768x384xbf16>
    %cst = arith.constant dense<0.000000e+00> : vector<128x384xf32>
    %6 = tpu.matmul %4, %5, %cst {dimension_numbers = #tpu.dot_dimension_numbers<[1], [0], [0], [1], [0, 0, 1, 1], [], []>} : vector<128x768xbf16>, vector<768x384xbf16>, vector<128x384xf32> -> vector<128x384xf32>
    %7 = arith.addf %3, %6 : vector<128x384xf32>
    %c0_6 = arith.constant 0 : index
    %c0_7 = arith.constant 0 : index
    %8 = vector.load %arg7[%c0_6, %c0_7] : memref<128x384xf32, #tpu.memory_space<vmem>>, vector<128x384xf32>
    tpu.vector_store %arg7[%c0_6, %c0_7], %7 {strides = array<i32>} : memref<128x384xf32, #tpu.memory_space<vmem>>, vector<128x384xf32>,
    %c2_i32 = arith.constant 2 : i32
    %9 = arith.cmpi eq, %arg2, %c2_i32 : i32
    %10 = arith.extui %9 : i1 to i32
    %c0_i32_8 = arith.constant 0 : i32
    %11 = arith.cmpi ne, %10, %c0_i32_8 : i32
    scf.if %11 {
      %c0_9 = arith.constant 0 : index
      %c0_10 = arith.constant 0 : index
      %12 = vector.load %arg7[%c0_9, %c0_10] : memref<128x384xf32, #tpu.memory_space<vmem>>, vector<128x384xf32>
      %c0_11 = arith.constant 0 : index
      %c0_12 = arith.constant 0 : index
      %13 = vector.load %arg5[%c0_11, %c0_12] : memref<1x384xf32, #tpu.memory_space<vmem>>, vector<1x384xf32>
      %14 = vector.broadcast %13 : vector<1x384xf32> to vector<128x384xf32>
      %15 = arith.addf %12, %14 : vector<128x384xf32>
      %cst_13 = arith.constant 0.000000e+00 : f32
      %16 = vector.broadcast %cst_13 : f32 to vector<128x384xf32>
      %17 = arith.maximumf %15, %16 : vector<128x384xf32>
      %18 = arith.truncf %17 : vector<128x384xf32> to vector<128x384xbf16>
      %c0_14 = arith.constant 0 : index
      %c0_15 = arith.constant 0 : index
      %19 = vector.load %arg6[%c0_14, %c0_15] : memref<128x384xbf16, #tpu.memory_space<vmem>>, vector<128x384xbf16>
      tpu.vector_store %arg6[%c0_14, %c0_15], %18 {strides = array<i32>} : memref<128x384xbf16, #tpu.memory_space<vmem>>, vector<128x384xbf16>,
    } else {
    }
    return
  }
  func.func @transform_0(%arg0: i32, %arg1: i32, %arg2: i32) -> (i32, i32) {
    %c0_i32 = arith.constant 0 : i32
    return %arg0, %arg2 : i32, i32
  }
  func.func @transform_1(%arg0: i32, %arg1: i32, %arg2: i32) -> (i32, i32) {
    %c0_i32 = arith.constant 0 : i32
    return %arg2, %arg1 : i32, i32
  }
  func.func @transform_2(%arg0: i32, %arg1: i32, %arg2: i32) -> (i32, i32) {
    %c0_i32 = arith.constant 0 : i32
    %c0_i32_0 = arith.constant 0 : i32
    return %c0_i32, %arg1 : i32, i32
  }
  func.func @transform_3(%arg0: i32, %arg1: i32, %arg2: i32) -> (i32, i32) {
    %c0_i32 = arith.constant 0 : i32
    return %arg0, %arg1 : i32, i32
  }
}

module attributes {stable_mosaic.version = 11 : i64} {
  func.func @_mm_kernel(%arg0: i32, %arg1: i32, %arg2: i32, %arg3: memref<128x640xbf16, #tpu.memory_space<vmem>>, %arg4: memref<640x256xbf16, #tpu.memory_space<vmem>>, %arg5: memref<1x256xf32, #tpu.memory_space<vmem>>, %arg6: memref<128x256xbf16, #tpu.memory_space<vmem>>, %arg7: memref<128x256xf32, #tpu.memory_space<vmem>>) attributes {dimension_semantics = [#tpu.dimension_semantics<parallel>, #tpu.dimension_semantics<parallel>, #tpu.dimension_semantics<arbitrary>], iteration_bounds = array<i64: 1, 1, 1>, scalar_prefetch = 0 : i64, scratch_operands = 1 : i64, tpu.core_type = #tpu.core_type<tc>, window_params = [{transform_indices = @transform_0, window_bounds = array<i64: 128, 640>}, {transform_indices = @transform_1, window_bounds = array<i64: 640, 256>}, {transform_indices = @transform_2, window_bounds = array<i64: 1, 256>}, {transform_indices = @transform_3, window_bounds = array<i64: 128, 256>}]} {
    %c0_i32 = arith.constant 0 : i32
    %0 = arith.cmpi eq, %arg2, %c0_i32 : i32
    %1 = arith.extui %0 : i1 to i32
    %c0_i32_0 = arith.constant 0 : i32
    %2 = arith.cmpi ne, %1, %c0_i32_0 : i32
    scf.if %2 {
      %cst_10 = arith.constant 0.000000e+00 : f32
      %12 = vector.broadcast %cst_10 : f32 to vector<128x256xf32>
      %c0_11 = arith.constant 0 : index
      %c0_12 = arith.constant 0 : index
      %13 = vector.load %arg7[%c0_11, %c0_12] : memref<128x256xf32, #tpu.memory_space<vmem>>, vector<128x256xf32>
      tpu.vector_store %arg7[%c0_11, %c0_12], %12 {strides = array<i32>} : memref<128x256xf32, #tpu.memory_space<vmem>>, vector<128x256xf32>,
    } else {
    }
    %c0 = arith.constant 0 : index
    %c0_1 = arith.constant 0 : index
    %3 = vector.load %arg7[%c0, %c0_1] : memref<128x256xf32, #tpu.memory_space<vmem>>, vector<128x256xf32>
    %c0_2 = arith.constant 0 : index
    %c0_3 = arith.constant 0 : index
    %4 = vector.load %arg3[%c0_2, %c0_3] : memref<128x640xbf16, #tpu.memory_space<vmem>>, vector<128x640xbf16>
    %c0_4 = arith.constant 0 : index
    %c0_5 = arith.constant 0 : index
    %5 = vector.load %arg4[%c0_4, %c0_5] : memref<640x256xbf16, #tpu.memory_space<vmem>>, vector<640x256xbf16>
    %cst = arith.constant dense<0.000000e+00> : vector<128x256xf32>
    %6 = tpu.matmul %4, %5, %cst {dimension_numbers = #tpu.dot_dimension_numbers<[1], [0], [0], [1], [0, 0, 1, 1], [], []>} : vector<128x640xbf16>, vector<640x256xbf16>, vector<128x256xf32> -> vector<128x256xf32>
    %7 = arith.addf %3, %6 : vector<128x256xf32>
    %c0_6 = arith.constant 0 : index
    %c0_7 = arith.constant 0 : index
    %8 = vector.load %arg7[%c0_6, %c0_7] : memref<128x256xf32, #tpu.memory_space<vmem>>, vector<128x256xf32>
    tpu.vector_store %arg7[%c0_6, %c0_7], %7 {strides = array<i32>} : memref<128x256xf32, #tpu.memory_space<vmem>>, vector<128x256xf32>,
    %c0_i32_8 = arith.constant 0 : i32
    %9 = arith.cmpi eq, %arg2, %c0_i32_8 : i32
    %10 = arith.extui %9 : i1 to i32
    %c0_i32_9 = arith.constant 0 : i32
    %11 = arith.cmpi ne, %10, %c0_i32_9 : i32
    scf.if %11 {
      %c0_10 = arith.constant 0 : index
      %c0_11 = arith.constant 0 : index
      %12 = vector.load %arg7[%c0_10, %c0_11] : memref<128x256xf32, #tpu.memory_space<vmem>>, vector<128x256xf32>
      %c0_12 = arith.constant 0 : index
      %c0_13 = arith.constant 0 : index
      %13 = vector.load %arg5[%c0_12, %c0_13] : memref<1x256xf32, #tpu.memory_space<vmem>>, vector<1x256xf32>
      %14 = vector.broadcast %13 : vector<1x256xf32> to vector<128x256xf32>
      %15 = arith.addf %12, %14 : vector<128x256xf32>
      %cst_14 = arith.constant 0.000000e+00 : f32
      %16 = vector.broadcast %cst_14 : f32 to vector<128x256xf32>
      %17 = arith.maximumf %15, %16 : vector<128x256xf32>
      %18 = arith.truncf %17 : vector<128x256xf32> to vector<128x256xbf16>
      %c0_15 = arith.constant 0 : index
      %c0_16 = arith.constant 0 : index
      %19 = vector.load %arg6[%c0_15, %c0_16] : memref<128x256xbf16, #tpu.memory_space<vmem>>, vector<128x256xbf16>
      tpu.vector_store %arg6[%c0_15, %c0_16], %18 {strides = array<i32>} : memref<128x256xbf16, #tpu.memory_space<vmem>>, vector<128x256xbf16>,
    } else {
    }
    return
  }
  func.func @transform_0(%arg0: i32, %arg1: i32, %arg2: i32) -> (i32, i32) {
    %c0_i32 = arith.constant 0 : i32
    return %arg0, %arg2 : i32, i32
  }
  func.func @transform_1(%arg0: i32, %arg1: i32, %arg2: i32) -> (i32, i32) {
    %c0_i32 = arith.constant 0 : i32
    return %arg2, %arg1 : i32, i32
  }
  func.func @transform_2(%arg0: i32, %arg1: i32, %arg2: i32) -> (i32, i32) {
    %c0_i32 = arith.constant 0 : i32
    %c0_i32_0 = arith.constant 0 : i32
    return %c0_i32, %arg1 : i32, i32
  }
  func.func @transform_3(%arg0: i32, %arg1: i32, %arg2: i32) -> (i32, i32) {
    %c0_i32 = arith.constant 0 : i32
    return %arg0, %arg1 : i32, i32
  }
}

module attributes {stable_mosaic.version = 11 : i64} {
  func.func @_mm_kernel(%arg0: i32, %arg1: i32, %arg2: i32, %arg3: memref<128x768xbf16, #tpu.memory_space<vmem>>, %arg4: memref<768x256xbf16, #tpu.memory_space<vmem>>, %arg5: memref<1x256xf32, #tpu.memory_space<vmem>>, %arg6: memref<128x256xbf16, #tpu.memory_space<vmem>>, %arg7: memref<128x256xf32, #tpu.memory_space<vmem>>) attributes {dimension_semantics = [#tpu.dimension_semantics<parallel>, #tpu.dimension_semantics<parallel>, #tpu.dimension_semantics<arbitrary>], iteration_bounds = array<i64: 1, 1, 1>, scalar_prefetch = 0 : i64, scratch_operands = 1 : i64, tpu.core_type = #tpu.core_type<tc>, window_params = [{transform_indices = @transform_0, window_bounds = array<i64: 128, 768>}, {transform_indices = @transform_1, window_bounds = array<i64: 768, 256>}, {transform_indices = @transform_2, window_bounds = array<i64: 1, 256>}, {transform_indices = @transform_3, window_bounds = array<i64: 128, 256>}]} {
    %c0_i32 = arith.constant 0 : i32
    %0 = arith.cmpi eq, %arg2, %c0_i32 : i32
    %1 = arith.extui %0 : i1 to i32
    %c0_i32_0 = arith.constant 0 : i32
    %2 = arith.cmpi ne, %1, %c0_i32_0 : i32
    scf.if %2 {
      %cst_10 = arith.constant 0.000000e+00 : f32
      %12 = vector.broadcast %cst_10 : f32 to vector<128x256xf32>
      %c0_11 = arith.constant 0 : index
      %c0_12 = arith.constant 0 : index
      %13 = vector.load %arg7[%c0_11, %c0_12] : memref<128x256xf32, #tpu.memory_space<vmem>>, vector<128x256xf32>
      tpu.vector_store %arg7[%c0_11, %c0_12], %12 {strides = array<i32>} : memref<128x256xf32, #tpu.memory_space<vmem>>, vector<128x256xf32>,
    } else {
    }
    %c0 = arith.constant 0 : index
    %c0_1 = arith.constant 0 : index
    %3 = vector.load %arg7[%c0, %c0_1] : memref<128x256xf32, #tpu.memory_space<vmem>>, vector<128x256xf32>
    %c0_2 = arith.constant 0 : index
    %c0_3 = arith.constant 0 : index
    %4 = vector.load %arg3[%c0_2, %c0_3] : memref<128x768xbf16, #tpu.memory_space<vmem>>, vector<128x768xbf16>
    %c0_4 = arith.constant 0 : index
    %c0_5 = arith.constant 0 : index
    %5 = vector.load %arg4[%c0_4, %c0_5] : memref<768x256xbf16, #tpu.memory_space<vmem>>, vector<768x256xbf16>
    %cst = arith.constant dense<0.000000e+00> : vector<128x256xf32>
    %6 = tpu.matmul %4, %5, %cst {dimension_numbers = #tpu.dot_dimension_numbers<[1], [0], [0], [1], [0, 0, 1, 1], [], []>} : vector<128x768xbf16>, vector<768x256xbf16>, vector<128x256xf32> -> vector<128x256xf32>
    %7 = arith.addf %3, %6 : vector<128x256xf32>
    %c0_6 = arith.constant 0 : index
    %c0_7 = arith.constant 0 : index
    %8 = vector.load %arg7[%c0_6, %c0_7] : memref<128x256xf32, #tpu.memory_space<vmem>>, vector<128x256xf32>
    tpu.vector_store %arg7[%c0_6, %c0_7], %7 {strides = array<i32>} : memref<128x256xf32, #tpu.memory_space<vmem>>, vector<128x256xf32>,
    %c0_i32_8 = arith.constant 0 : i32
    %9 = arith.cmpi eq, %arg2, %c0_i32_8 : i32
    %10 = arith.extui %9 : i1 to i32
    %c0_i32_9 = arith.constant 0 : i32
    %11 = arith.cmpi ne, %10, %c0_i32_9 : i32
    scf.if %11 {
      %c0_10 = arith.constant 0 : index
      %c0_11 = arith.constant 0 : index
      %12 = vector.load %arg7[%c0_10, %c0_11] : memref<128x256xf32, #tpu.memory_space<vmem>>, vector<128x256xf32>
      %c0_12 = arith.constant 0 : index
      %c0_13 = arith.constant 0 : index
      %13 = vector.load %arg5[%c0_12, %c0_13] : memref<1x256xf32, #tpu.memory_space<vmem>>, vector<1x256xf32>
      %14 = vector.broadcast %13 : vector<1x256xf32> to vector<128x256xf32>
      %15 = arith.addf %12, %14 : vector<128x256xf32>
      %cst_14 = arith.constant 0.000000e+00 : f32
      %16 = vector.broadcast %cst_14 : f32 to vector<128x256xf32>
      %17 = arith.maximumf %15, %16 : vector<128x256xf32>
      %18 = arith.truncf %17 : vector<128x256xf32> to vector<128x256xbf16>
      %c0_15 = arith.constant 0 : index
      %c0_16 = arith.constant 0 : index
      %19 = vector.load %arg6[%c0_15, %c0_16] : memref<128x256xbf16, #tpu.memory_space<vmem>>, vector<128x256xbf16>
      tpu.vector_store %arg6[%c0_15, %c0_16], %18 {strides = array<i32>} : memref<128x256xbf16, #tpu.memory_space<vmem>>, vector<128x256xbf16>,
    } else {
    }
    return
  }
  func.func @transform_0(%arg0: i32, %arg1: i32, %arg2: i32) -> (i32, i32) {
    %c0_i32 = arith.constant 0 : i32
    return %arg0, %arg2 : i32, i32
  }
  func.func @transform_1(%arg0: i32, %arg1: i32, %arg2: i32) -> (i32, i32) {
    %c0_i32 = arith.constant 0 : i32
    return %arg2, %arg1 : i32, i32
  }
  func.func @transform_2(%arg0: i32, %arg1: i32, %arg2: i32) -> (i32, i32) {
    %c0_i32 = arith.constant 0 : i32
    %c0_i32_0 = arith.constant 0 : i32
    return %c0_i32, %arg1 : i32, i32
  }
  func.func @transform_3(%arg0: i32, %arg1: i32, %arg2: i32) -> (i32, i32) {
    %c0_i32 = arith.constant 0 : i32
    return %arg0, %arg1 : i32, i32
  }
}

module attributes {stable_mosaic.version = 11 : i64} {
  func.func @_mm_res_kernel(%arg0: i32, %arg1: i32, %arg2: i32, %arg3: memref<128x512xbf16, #tpu.memory_space<vmem>>, %arg4: memref<512x768xbf16, #tpu.memory_space<vmem>>, %arg5: memref<1x768xf32, #tpu.memory_space<vmem>>, %arg6: memref<128x768xf32, #tpu.memory_space<vmem>>, %arg7: memref<128x768xf32, #tpu.memory_space<vmem>>, %arg8: memref<128x768xf32, #tpu.memory_space<vmem>>) attributes {dimension_semantics = [#tpu.dimension_semantics<parallel>, #tpu.dimension_semantics<parallel>, #tpu.dimension_semantics<arbitrary>], iteration_bounds = array<i64: 1, 3, 1>, scalar_prefetch = 0 : i64, scratch_operands = 1 : i64, tpu.core_type = #tpu.core_type<tc>, window_params = [{transform_indices = @transform_0, window_bounds = array<i64: 128, 512>}, {transform_indices = @transform_1, window_bounds = array<i64: 512, 768>}, {transform_indices = @transform_2, window_bounds = array<i64: 1, 768>}, {transform_indices = @transform_3, window_bounds = array<i64: 128, 768>}, {transform_indices = @transform_4, window_bounds = array<i64: 128, 768>}]} {
    %c0_i32 = arith.constant 0 : i32
    %0 = arith.cmpi eq, %arg2, %c0_i32 : i32
    %1 = arith.extui %0 : i1 to i32
    %c0_i32_0 = arith.constant 0 : i32
    %2 = arith.cmpi ne, %1, %c0_i32_0 : i32
    scf.if %2 {
      %cst_10 = arith.constant 0.000000e+00 : f32
      %12 = vector.broadcast %cst_10 : f32 to vector<128x768xf32>
      %c0_11 = arith.constant 0 : index
      %c0_12 = arith.constant 0 : index
      %13 = vector.load %arg8[%c0_11, %c0_12] : memref<128x768xf32, #tpu.memory_space<vmem>>, vector<128x768xf32>
      tpu.vector_store %arg8[%c0_11, %c0_12], %12 {strides = array<i32>} : memref<128x768xf32, #tpu.memory_space<vmem>>, vector<128x768xf32>,
    } else {
    }
    %c0 = arith.constant 0 : index
    %c0_1 = arith.constant 0 : index
    %3 = vector.load %arg8[%c0, %c0_1] : memref<128x768xf32, #tpu.memory_space<vmem>>, vector<128x768xf32>
    %c0_2 = arith.constant 0 : index
    %c0_3 = arith.constant 0 : index
    %4 = vector.load %arg3[%c0_2, %c0_3] : memref<128x512xbf16, #tpu.memory_space<vmem>>, vector<128x512xbf16>
    %c0_4 = arith.constant 0 : index
    %c0_5 = arith.constant 0 : index
    %5 = vector.load %arg4[%c0_4, %c0_5] : memref<512x768xbf16, #tpu.memory_space<vmem>>, vector<512x768xbf16>
    %cst = arith.constant dense<0.000000e+00> : vector<128x768xf32>
    %6 = tpu.matmul %4, %5, %cst {dimension_numbers = #tpu.dot_dimension_numbers<[1], [0], [0], [1], [0, 0, 1, 1], [], []>} : vector<128x512xbf16>, vector<512x768xbf16>, vector<128x768xf32> -> vector<128x768xf32>
    %7 = arith.addf %3, %6 : vector<128x768xf32>
    %c0_6 = arith.constant 0 : index
    %c0_7 = arith.constant 0 : index
    %8 = vector.load %arg8[%c0_6, %c0_7] : memref<128x768xf32, #tpu.memory_space<vmem>>, vector<128x768xf32>
    tpu.vector_store %arg8[%c0_6, %c0_7], %7 {strides = array<i32>} : memref<128x768xf32, #tpu.memory_space<vmem>>, vector<128x768xf32>,
    %c0_i32_8 = arith.constant 0 : i32
    %9 = arith.cmpi eq, %arg2, %c0_i32_8 : i32
    %10 = arith.extui %9 : i1 to i32
    %c0_i32_9 = arith.constant 0 : i32
    %11 = arith.cmpi ne, %10, %c0_i32_9 : i32
    scf.if %11 {
      %c0_10 = arith.constant 0 : index
      %c0_11 = arith.constant 0 : index
      %12 = vector.load %arg6[%c0_10, %c0_11] : memref<128x768xf32, #tpu.memory_space<vmem>>, vector<128x768xf32>
      %c0_12 = arith.constant 0 : index
      %c0_13 = arith.constant 0 : index
      %13 = vector.load %arg8[%c0_12, %c0_13] : memref<128x768xf32, #tpu.memory_space<vmem>>, vector<128x768xf32>
      %c0_14 = arith.constant 0 : index
      %c0_15 = arith.constant 0 : index
      %14 = vector.load %arg5[%c0_14, %c0_15] : memref<1x768xf32, #tpu.memory_space<vmem>>, vector<1x768xf32>
      %15 = vector.broadcast %14 : vector<1x768xf32> to vector<128x768xf32>
      %16 = arith.addf %13, %15 : vector<128x768xf32>
      %cst_16 = arith.constant 2.000000e-01 : f32
      %17 = vector.broadcast %cst_16 : f32 to vector<128x768xf32>
      %18 = arith.mulf %17, %16 : vector<128x768xf32>
      %19 = arith.addf %12, %18 : vector<128x768xf32>
      %cst_17 = arith.constant 0.000000e+00 : f32
      %20 = vector.broadcast %cst_17 : f32 to vector<128x768xf32>
      %21 = arith.maximumf %19, %20 : vector<128x768xf32>
      %c0_18 = arith.constant 0 : index
      %c0_19 = arith.constant 0 : index
      %22 = vector.load %arg7[%c0_18, %c0_19] : memref<128x768xf32, #tpu.memory_space<vmem>>, vector<128x768xf32>
      tpu.vector_store %arg7[%c0_18, %c0_19], %21 {strides = array<i32>} : memref<128x768xf32, #tpu.memory_space<vmem>>, vector<128x768xf32>,
    } else {
    }
    return
  }
  func.func @transform_0(%arg0: i32, %arg1: i32, %arg2: i32) -> (i32, i32) {
    %c0_i32 = arith.constant 0 : i32
    return %arg0, %arg2 : i32, i32
  }
  func.func @transform_1(%arg0: i32, %arg1: i32, %arg2: i32) -> (i32, i32) {
    %c0_i32 = arith.constant 0 : i32
    return %arg2, %arg1 : i32, i32
  }
  func.func @transform_2(%arg0: i32, %arg1: i32, %arg2: i32) -> (i32, i32) {
    %c0_i32 = arith.constant 0 : i32
    %c0_i32_0 = arith.constant 0 : i32
    return %c0_i32, %arg1 : i32, i32
  }
  func.func @transform_3(%arg0: i32, %arg1: i32, %arg2: i32) -> (i32, i32) {
    %c0_i32 = arith.constant 0 : i32
    return %arg0, %arg1 : i32, i32
  }
  func.func @transform_4(%arg0: i32, %arg1: i32, %arg2: i32) -> (i32, i32) {
    %c0_i32 = arith.constant 0 : i32
    return %arg0, %arg1 : i32, i32
  }
}

</mosaic_0001>

<bundles_post_ra>
// kernel: inception_resnet_c_forward.4
= control target key start
LH: loop header
LB: loop body
LE: loop exit
PB: predicated region body
PF: predicated region fallthrough
CT: control target
= control target key end

     0   :  { %s4557_s0 = inlined_call_operand.hbm [shape: bf16[128,2304], index: 0, kind: input, shape index: {}]   ;;  %s4558_s1 = inlined_call_operand.hbm [shape: bf16[2304,384], index: 1, kind: input, shape index: {}]   ;;  %s4559_s2 = inlined_call_operand.hbm [shape: f32[1,384], index: 2, kind: input, shape index: {}]   ;;  %s4560_s3 = inlined_call_operand.hbm [shape: bf16[128,384], index: 3, kind: output, shape index: {}]  }
   0x1   :  { %4565 = sst [smem:[#allocation14_spill]] %s4557_s0 }
   0x2   :  { %8 = vsyncpa [#allocation4], 0 }
   0x3   :  { %10 = vsyncpa [#allocation4 + $0x1], 0 }
   0x4   :  { %11 = vsyncpa [#allocation7], 0 }
   0x5   :  { %13 = vsyncpa [#allocation7 + $0x1], 0 }
   0x6   :  { %14 = vsyncpa [#allocation5], 0  ;;  %s3927_s12 = smov 0   ;;  %s3929_s13 = smov 0  }
   0x7   :  { %s3931_s14 = smov 0   ;;  %s3933_s15 = smov 0  }
   0x8   :  { %s3935_s16 = smov 0   ;;  %s3937_s17 = smov 0  }
   0x9 LB: > { %s3956_s18 = sadd.s32 4294967295, %s3893_s17   ;;  %s32_s19 = sadd.s32 1, %s3889_s16  ;;  %s3893_s17 = sphi %s3937_s17, %s20_s17   ;;  %s3889_s16 = sphi %s3935_s16, %s4581_s16   ;;  %s3885_s15 = sphi %s3933_s15, %s4580_s15   ;;  %s3881_s14 = sphi %s3931_s14, %s4579_s14   ;;  %s3877_s13 = sphi %s3929_s13, %s4578_s13   ;;  %s3873_s12 = sphi %s3927_s12, %s4577_s12  }
   0xa   : > { %p33_p0 = scmp.ge.s32.totalorder %s32_s19, 3  ;;  %s48_s20 = sadd.s32 1, %s3881_s14 }
   0xb   : > { %p55_p1 = scmp.ne.s32.totalorder %s3881_s14, %s3877_s13  ;;  %p56_p2 = scmp.eq.s32.totalorder %s3893_s17, 0 }
   0xc   : > { %s4583_s19 = smov (%p33_p0, %s32_s19), 0  ;;  %p61_p4 = scmp.ne.s32.totalorder %s3877_s13, %s3873_s12 }
   0xd   : > { %p3965_p3 = por %p56_p2, %p55_p1  ;;  %s44_s22 = ssub.s32 %s3889_s16, %s4583_s19 }
   0xe   : > { %p4561_p5 = scmp.eq.s32.totalorder %s3956_s18, 0  ;;  %p46_p6 = scmp.eq.s32.totalorder %s44_s22, 0 }
   0xf   : > { %p2835_p7 = scmp.ge.s32.totalorder %s3893_s17, 1  ;;  %p154_p9 = scmp.lt.s32.totalorder %s3893_s17, 4 }
  0x10   : > { %p3976_p8 = por %p4561_p5, %p61_p4  ;;  %s3895_s26 = smov [#allocation8]  }
  0x11   : > { %s3982_s24 = scalar_select %p46_p6, %s3881_s14, %s48_s20  }
  0x12   : > { %s4567_s23 = scalar_select %p3976_p8, 1, 0 }
  0x13   : > { %p3984_p10 = pnand %p2835_p7, %p154_p9  ;;  %s170_s27 = sshll.u32 %s3895_s26, 4  ;;  %s171_s27 = int_to_ptr.vmem [resolvable:$true] %s170_s27 }
  0x14   : > { %p3390_p12 = scmp.lt.s32.totalorder %s3893_s17, 3  ;;  %s4004_s30 = sand.u32 1, %s3881_s14  }
  0x15   : > { %s4568_s25 = scalar_select %p3984_p10, 1, 0 }
  0x16   : > { %p3378_p11 = pneg %p3984_p10  ;;  %p3999_p0 = pnand %p3390_p12, %p3965_p3 }
  0x17   : > { %s3717_s6 = scalar_lea.hbm %s4559_s2, 48 }
  0x18   : > { %p3993_p13 = pnand %p3378_p11, %p4561_p5  ;;  %p3718_p1 = scmp.ne.s32.totalorder %s4559_s2, %s3717_s6 }
  0x19   : > { %s4570_s29 = scalar_select %p3999_p0, 1, 0 }
  0x1a   : > { %p3719_p2 = pneg %p3993_p13  ;;  %p3724_p3 = scmp.lt.u32.totalorder %s3717_s6, %s4559_s2 }
  0x1c   : > { %p3720_p4 = pnand %p3719_p2, %p3718_p1 }
  0x1e   : > { %p3721_p6 = pneg %p3720_p4 }
  0x20   : > { %p3726_p7 = pnand %p3724_p3, %p3721_p6 }
  0x22   : > { %3729 = shalt.err (!%p3726_p7)
}
  0x23   : > { %s3730_s11 = scalar_lea.vmem %s171_s27, 48  ;;  %s3737_s12 = scalar_lea.vmem %s171_s27, 64 }
  0x24   : > { %p3731_p9 = scmp.ne.s32.totalorder %s171_s27, %s3730_s11  ;;  %p3738_p5 = scmp.lt.s32.totalorder %s171_s27, %s171_s27 }
  0x25   : > { %p3739_p8 = scmp.lt.s32.totalorder %s3737_s12, %s3730_s11 }
  0x26   : > { %p3733_p11 = pnand %p3731_p9, %p3719_p2 }
  0x27   : > { %p3740_p10 = por %p3739_p8, %p3738_p5 }
  0x28   : > { %p3734_p12 = pneg %p3733_p11 }
  0x2a   : > { %p3741_p0 = pnand %p3740_p10, %p3734_p12 }
  0x2c   : > { %3744 = shalt.err (!%p3741_p0)
}
  0x2d   : > { %3381 = dma.hbm_to_vmem [thread:$0]  (!%p3993_p13), %s4559_s2, 48, %s171_s27, [#allocation7]  }
  0x2e   : > { %s3361_s22 = smul.u32 384, %s4004_s30  ;;  %s4571_s0 = sld [smem:[#allocation14_spill]] }
  0x2f   : > { %s3072_s26 = smul.u32 384, %s3889_s16  ;;  %s182_s8 = scalar_lea.sflag [#allocation4], %s4004_s30 }
  0x30   : > { %s185_s28 = scalar_lea.vmem [#allocation3], %s3361_s22  ;;  %p4572_p8 = scmp.ne.s32.totalorder %s4570_s29, 0 }
  0x31   : > { %s195_s7 = sshll.u32 %s185_s28, 4  ;;  %s4029_s7 = int_to_ptr.vmem [resolvable:$true] %s195_s7 }
  0x32   : > { %p3747_p10 = pneg %p4572_p8 }
  0x34   : > { %s4027_s6 = scalar_lea.hbm %s4571_s0, %s3072_s26  ;;  %s3750_s11 = scalar_lea.hbm %s4571_s0, 18432 }
  0x35   : > { %s3745_s9 = scalar_lea.hbm %s4027_s6, 6144  ;;  %p3751_p1 = scmp.lt.u32.totalorder %s4027_s6, %s4571_s0 }
  0x36   : > { %p3746_p5 = scmp.ne.s32.totalorder %s4027_s6, %s3745_s9  ;;  %p3752_p2 = scmp.lt.u32.totalorder %s3750_s11, %s3745_s9 }
  0x37   : > { %p3754_p6 = scmp.lt.u32.totalorder %s3745_s9, %s4027_s6 }
  0x38   : > { %p3748_p13 = pnand %p3747_p10, %p3746_p5  ;;  %p3753_p4 = por %p3752_p2, %p3751_p1 }
  0x3a   : > { %p3749_p0 = pneg %p3748_p13  ;;  %p3755_p3 = por %p3754_p6, %p3753_p4 }
  0x3c   : > { %p3756_p7 = pnand %p3755_p3, %p3749_p0 }
  0x3e   : > { %3759 = shalt.err (!%p3756_p7)
}
  0x3f   : > { %s3760_s21 = scalar_lea.vmem %s4029_s7, 6144  ;;  %s3896_s22 = smov [#allocation3]  }
  0x40   : > { %p3761_p9 = scmp.ne.s32.totalorder %s4029_s7, %s3760_s21  ;;  %s3765_s26 = sshll.u32 %s3896_s22, 4  ;;  %s3766_s26 = int_to_ptr.vmem [resolvable:$false] %s3765_s26 }
  0x41   : > { %s3767_s4 = scalar_lea.vmem %s3766_s26, 12288  ;;  %p3768_p5 = scmp.lt.s32.totalorder %s4029_s7, %s3766_s26 }
  0x42   : > { %p3763_p11 = pnand %p3761_p9, %p3747_p10  ;;  %p3769_p13 = scmp.lt.s32.totalorder %s3767_s4, %s3760_s21 }
  0x44   : > { %p3764_p12 = pneg %p3763_p11  ;;  %p3770_p1 = por %p3769_p13, %p3768_p5 }
  0x46   : > { %p3771_p2 = pnand %p3770_p1, %p3764_p12 }
  0x48   : > { %3774 = shalt.err (!%p3771_p2)
}
  0x49   : > { %s3897_s5 = smov 1152   ;;  %s3898_s28 = smov 384  }
  0x4a   : > { %s3899_s9 = smov 24   ;;  %s205_s27 = sand.u32 1, %s3893_s17  }
  0x4b   : > { %3385 = dma.hbm_to_vmem [thread:$0]  (!%p4572_p8), %s4027_s6, 6144, %s4029_s7, %s182_s8, %s3897_s5, %s3898_s28, %s3899_s9  }
  0x4c   : > { %s3362_s10 = smul.u32 1152, %s4004_s30  ;;  %s4069_s4 = scalar_lea.sflag [#allocation7], %s205_s27 }
  0x4d   : > { %s3391_s11 = smul.u32 18432, %s3889_s16  ;;  %s3780_s7 = scalar_lea.hbm %s4558_s1, 55296 }
  0x4e   : > { %s209_s22 = scalar_lea.vmem [#allocation6], %s3362_s10 }
  0x4f   : > { %s4065_s21 = scalar_lea.hbm %s4558_s1, %s3391_s11  ;;  %s219_s26 = sshll.u32 %s209_s22, 4  ;;  %s4067_s26 = int_to_ptr.vmem [resolvable:$true] %s219_s26 }
  0x50   : > { %s3775_s0 = scalar_lea.hbm %s4065_s21, 18432  ;;  %p3781_p3 = scmp.lt.u32.totalorder %s4065_s21, %s4558_s1 }
  0x51   : > { %p3776_p0 = scmp.ne.s32.totalorder %s4065_s21, %s3775_s0  ;;  %p3782_p7 = scmp.lt.u32.totalorder %s3780_s7, %s3775_s0 }
  0x52   : > { %p3784_p11 = scmp.lt.u32.totalorder %s3775_s0, %s4065_s21 }
  0x53   : > { %p3778_p4 = pnand %p3776_p0, %p3747_p10  ;;  %p3783_p9 = por %p3782_p7, %p3781_p3 }
  0x55   : > { %p3779_p6 = pneg %p3778_p4  ;;  %p3785_p12 = por %p3784_p11, %p3783_p9 }
  0x57   : > { %p3786_p5 = pnand %p3785_p12, %p3779_p6 }
  0x59   : > { %3789 = shalt.err (!%p3786_p5)
}
  0x5a   : > { %s3790_s28 = scalar_lea.vmem %s4067_s26, 18432  ;;  %s3900_s9 = smov [#allocation6]  }
  0x5b   : > { %p3791_p13 = scmp.ne.s32.totalorder %s4067_s26, %s3790_s28  ;;  %s3795_s27 = sshll.u32 %s3900_s9, 4  ;;  %s3796_s27 = int_to_ptr.vmem [resolvable:$false] %s3795_s27 }
  0x5c   : > { %s3797_s10 = scalar_lea.vmem %s3796_s27, 36864  ;;  %p3798_p0 = scmp.lt.s32.totalorder %s4067_s26, %s3796_s27 }
  0x5d   : > { %p3793_p1 = pnand %p3791_p13, %p3747_p10  ;;  %p3799_p4 = scmp.lt.s32.totalorder %s3797_s10, %s3790_s28 }
  0x5f   : > { %p3794_p2 = pneg %p3793_p1  ;;  %p3800_p3 = por %p3799_p4, %p3798_p0 }
  0x61   : > { %p3801_p7 = pnand %p3800_p3, %p3794_p2 }
  0x63   : > { %3804 = shalt.err (!%p3801_p7)
}
  0x64   : > { %s3901_s0 = smov 192   ;;  %s3902_s11 = smov 12  }
  0x65   : > { %3388 = dma.hbm_to_vmem [thread:$0]  (!%p4572_p8), %s4065_s21, 18432, %s4067_s26, %s4069_s4, %s3901_s0, %s3901_s0, %s3902_s11  }
  0x66   : > { %p4573_p10 = scmp.ne.s32.totalorder %s4568_s25, 0 }
  0x67   : > { %s233_s12 = sand.u32 (!%p4573_p10), 1, %s3877_s13   ;;  %p4574_p6 = scmp.ne.s32.totalorder (!%p4573_p10), %s4567_s23, 0 }
  0x68   : > { %231 = sbr.rel (%p4573_p10) target bundleno = 660 (0x294), region = 32  ;;  %s234_s22 = scalar_lea.sflag (!%p4573_p10), [#allocation4], %s233_s12 }
  0x69   : > { %s3364_s20 = smul.u32 (!%p4573_p10), 384, %s233_s12 }
  0x6b   : > { %s4098_s30 = scalar_lea.vmem (!%p4573_p10), [#allocation3], %s3364_s20 }
  0x6f   : > { %3856 = dma.done.wait (%p4574_p6), %s234_s22, 6144  }
  0x70   : > { %3858 = vsyncadd (%p4574_p6), %s234_s22, 4294961152  ;;  %s242_s6 = sand.u32 1, %s3956_s18   ;;  %s3365_s29 = smul.u32 1152, %s233_s12 }
  0x71   : > { %s243_s21 = scalar_lea.sflag [#allocation7], %s242_s6 }
  0x72   : > { %s4105_s26 = scalar_lea.vmem [#allocation6], %s3365_s29 }
  0x73   : > { %3860 = dma.done.wait (%p4574_p6), %s243_s21, 18432  }
  0x74   : > { %3862 = vsyncadd (%p4574_p6), %s243_s21, 4294948864  ;;  %p4575_p8 = scmp.eq.s32.totalorder %s3956_s18, 0 }
  0x76   : > { %3864 = dma.done.wait (%p4575_p8), [#allocation7], 48   ;;  %p4576_p9 = pmov %p4575_p8 }
  0x77   : > { %p2842_p11 = scmp.ne.s32.totalorder %s3885_s15, 0 }
  0x78   : > { %3866 = vsyncadd (%p4576_p9), [#allocation7], 4294967248  ;;  %v3903_v0 = vmov (!%p2842_p11), 0.0  }
  0x79   : > { %284 = sbr.rel (%p2842_p11) target bundleno = 145 (0x91), region = 48  ;;  %285 = vst [vmem:[#allocation2] sm:$0xff] (!%p2842_p11), %v3903_v0  ;;  %286 = vst [vmem:[#allocation2 + $0x8] sm:$0xff] (!%p2842_p11), %v3903_v0 }
  0x7a   : > { %287 = vst [vmem:[#allocation2 + $0x10] sm:$0xff] (!%p2842_p11), %v3903_v0  ;;  %288 = vst [vmem:[#allocation2 + $0x18] sm:$0xff] (!%p2842_p11), %v3903_v0 }
  0x7b   : > { %289 = vst [vmem:[#allocation2 + $0x20] sm:$0xff] (!%p2842_p11), %v3903_v0  ;;  %290 = vst [vmem:[#allocation2 + $0x28] sm:$0xff] (!%p2842_p11), %v3903_v0 }
  0x7c   : > { %291 = vst [vmem:[#allocation2 + $0x30] sm:$0xff] (!%p2842_p11), %v3903_v0  ;;  %292 = vst [vmem:[#allocation2 + $0x38] sm:$0xff] (!%p2842_p11), %v3903_v0 }
  0x7d   : > { %293 = vst [vmem:[#allocation2 + $0x40] sm:$0xff] (!%p2842_p11), %v3903_v0  ;;  %294 = vst [vmem:[#allocation2 + $0x48] sm:$0xff] (!%p2842_p11), %v3903_v0 }
  0x7e   : > { %295 = vst [vmem:[#allocation2 + $0x50] sm:$0xff] (!%p2842_p11), %v3903_v0  ;;  %296 = vst [vmem:[#allocation2 + $0x58] sm:$0xff] (!%p2842_p11), %v3903_v0 }
  0x7f   : > { %297 = vst [vmem:[#allocation2 + $0x60] sm:$0xff] (!%p2842_p11), %v3903_v0  ;;  %298 = vst [vmem:[#allocation2 + $0x68] sm:$0xff] (!%p2842_p11), %v3903_v0 }
  0x80   : > { %299 = vst [vmem:[#allocation2 + $0x70] sm:$0xff] %v3903_v0  ;;  %300 = vst [vmem:[#allocation2 + $0x78] sm:$0xff] %v3903_v0 }
  0x81   : > { %301 = vst [vmem:[#allocation2 + $0x80] sm:$0xff] %v3903_v0  ;;  %302 = vst [vmem:[#allocation2 + $0x88] sm:$0xff] %v3903_v0 }
  0x82   : > { %303 = vst [vmem:[#allocation2 + $0x90] sm:$0xff] %v3903_v0  ;;  %304 = vst [vmem:[#allocation2 + $0x98] sm:$0xff] %v3903_v0 }
  0x83   : > { %305 = vst [vmem:[#allocation2 + $0xa0] sm:$0xff] %v3903_v0  ;;  %306 = vst [vmem:[#allocation2 + $0xa8] sm:$0xff] %v3903_v0 }
  0x84   : > { %307 = vst [vmem:[#allocation2 + $0xb0] sm:$0xff] %v3903_v0  ;;  %308 = vst [vmem:[#allocation2 + $0xb8] sm:$0xff] %v3903_v0 }
  0x85   : > { %309 = vst [vmem:[#allocation2 + $0xc0] sm:$0xff] %v3903_v0  ;;  %310 = vst [vmem:[#allocation2 + $0xc8] sm:$0xff] %v3903_v0 }
  0x86   : > { %311 = vst [vmem:[#allocation2 + $0xd0] sm:$0xff] %v3903_v0  ;;  %312 = vst [vmem:[#allocation2 + $0xd8] sm:$0xff] %v3903_v0 }
  0x87   : > { %313 = vst [vmem:[#allocation2 + $0xe0] sm:$0xff] %v3903_v0  ;;  %314 = vst [vmem:[#allocation2 + $0xe8] sm:$0xff] %v3903_v0 }
  0x88   : > { %315 = vst [vmem:[#allocation2 + $0xf0] sm:$0xff] %v3903_v0  ;;  %316 = vst [vmem:[#allocation2 + $0xf8] sm:$0xff] %v3903_v0 }
  0x89   : > { %317 = vst [vmem:[#allocation2 + $0x100] sm:$0xff] %v3903_v0  ;;  %318 = vst [vmem:[#allocation2 + $0x108] sm:$0xff] %v3903_v0 }
  0x8a   : > { %319 = vst [vmem:[#allocation2 + $0x110] sm:$0xff] %v3903_v0  ;;  %320 = vst [vmem:[#allocation2 + $0x118] sm:$0xff] %v3903_v0 }
  0x8b   : > { %321 = vst [vmem:[#allocation2 + $0x120] sm:$0xff] %v3903_v0  ;;  %322 = vst [vmem:[#allocation2 + $0x128] sm:$0xff] %v3903_v0 }
  0x8c   : > { %323 = vst [vmem:[#allocation2 + $0x130] sm:$0xff] %v3903_v0  ;;  %324 = vst [vmem:[#allocation2 + $0x138] sm:$0xff] %v3903_v0 }
  0x8d   : > { %325 = vst [vmem:[#allocation2 + $0x140] sm:$0xff] %v3903_v0  ;;  %326 = vst [vmem:[#allocation2 + $0x148] sm:$0xff] %v3903_v0 }
  0x8e   : > { %327 = vst [vmem:[#allocation2 + $0x150] sm:$0xff] %v3903_v0  ;;  %328 = vst [vmem:[#allocation2 + $0x158] sm:$0xff] %v3903_v0 }
  0x8f   : > { %329 = vst [vmem:[#allocation2 + $0x160] sm:$0xff] %v3903_v0  ;;  %330 = vst [vmem:[#allocation2 + $0x168] sm:$0xff] %v3903_v0 }
  0x90   : > { %331 = vst [vmem:[#allocation2 + $0x170] sm:$0xff] %v3903_v0  ;;  %332 = vst [vmem:[#allocation2 + $0x178] sm:$0xff] %v3903_v0 }
  0x91 PF: > { %v3453_v1 = vld [vmem:[%s4105_s26 + $0x4] ss:$12 sps:$4 sm:$0xff]   ;;  %v3455_v2 = vld [vmem:[%s4105_s26 + $0xc8] ss:$12 sps:$4 sm:$0xff]   ;;  %v3456_v3 = vld [vmem:[%s4105_s26] ss:$12 sps:$4 sm:$0xff]  }
  0x92   : > { %1629 = vmatprep.subr.bf16.mxu0 %v3453_v1  ;;  %3105 = vmatprep.subr.bf16.mxu1 %v3455_v2  ;;  %v3457_v4 = vld [vmem:[%s4105_s26 + $0x8] ss:$12 sps:$4 sm:$0xff]   ;;  %v3460_v6 = vld [vmem:[%s4105_s26 + $0xe0] ss:$12 sps:$4 sm:$0xff]   ;;  %v3461_v7 = vld [vmem:[%s4105_s26 + $0x18] ss:$12 sps:$4 sm:$0xff]  }
  0x93   : > { %1630 = vmatpush1.bf16.msra.mxu0 %v3456_v3  ;;  %v3458_v5 = vld [vmem:[%s4105_s26 + $0x1c] ss:$12 sps:$4 sm:$0xff]   ;;  %3106 = vmatpush3.bf16.msra.mxu1 %v3457_v4  ;;  %v3462_v8 = vld [vmem:[%s4105_s26 + $0x20] ss:$12 sps:$4 sm:$0xff]   ;;  %v3465_v10 = vld [vmem:[%s4105_s26 + $0xf8] ss:$12 sps:$4 sm:$0xff]  }
  0x94   : > { %1631 = vmatprep.subr.bf16.mxu0 %v3458_v5  ;;  %3107 = vmatprep.subr.bf16.mxu1 %v3460_v6  ;;  %v3463_v9 = vld [vmem:[%s4105_s26 + $0x34] ss:$12 sps:$4 sm:$0xff]   ;;  %v3466_v11 = vld [vmem:[%s4105_s26 + $0x30] ss:$12 sps:$4 sm:$0xff]   ;;  %v3467_v12 = vld [vmem:[%s4105_s26 + $0x38] ss:$12 sps:$4 sm:$0xff]  }
  0x95   : > { %v3468_v13 = vld [vmem:[%s4105_s26 + $0x4c] ss:$12 sps:$4 sm:$0xff]   ;;  %v3470_v14 = vld [vmem:[%s4105_s26 + $0x110] ss:$12 sps:$4 sm:$0xff]   ;;  %v3471_v15 = vld [vmem:[%s4105_s26 + $0x48] ss:$12 sps:$4 sm:$0xff]  }
  0x96   : > { %v3472_v16 = vld [vmem:[%s4105_s26 + $0x50] ss:$12 sps:$4 sm:$0xff]   ;;  %v3475_v18 = vld [vmem:[%s4105_s26 + $0x128] ss:$12 sps:$4 sm:$0xff]   ;;  %v3476_v19 = vld [vmem:[%s4105_s26 + $0x60] ss:$12 sps:$4 sm:$0xff]  }
  0x97   : > { %1632 = vmatpush1.bf16.msra.mxu0 %v3461_v7  ;;  %3108 = vmatpush3.bf16.msra.mxu1 %v3462_v8  ;;  %v3473_v17 = vld [vmem:[%s4105_s26 + $0x64] ss:$12 sps:$4 sm:$0xff]   ;;  %v3477_v20 = vld [vmem:[%s4105_s26 + $0x68] ss:$12 sps:$4 sm:$0xff]   ;;  %v3480_v22 = vld [vmem:[%s4105_s26 + $0x140] ss:$12 sps:$4 sm:$0xff]  }
  0x98   : > { %1633 = vmatprep.subr.bf16.mxu0 %v3463_v9  ;;  %3109 = vmatprep.subr.bf16.mxu1 %v3465_v10  ;;  %v3478_v21 = vld [vmem:[%s4105_s26 + $0x7c] ss:$12 sps:$4 sm:$0xff]   ;;  %v3481_v23 = vld [vmem:[%s4105_s26 + $0x78] ss:$12 sps:$4 sm:$0xff]   ;;  %v3482_v24 = vld [vmem:[%s4105_s26 + $0x80] ss:$12 sps:$4 sm:$0xff]  }
  0x99   : > { %v3483_v25 = vld [vmem:[%s4105_s26 + $0x94] ss:$12 sps:$4 sm:$0xff]   ;;  %v3485_v26 = vld [vmem:[%s4105_s26 + $0x158] ss:$12 sps:$4 sm:$0xff]   ;;  %v3486_v27 = vld [vmem:[%s4105_s26 + $0x90] ss:$12 sps:$4 sm:$0xff]  }
  0x9a   : > { %v3487_v28 = vld [vmem:[%s4105_s26 + $0x98] ss:$12 sps:$4 sm:$0xff]   ;;  %v3490_v30 = vld [vmem:[%s4105_s26 + $0x170] ss:$12 sps:$4 sm:$0xff]   ;;  %v3491_v31 = vld [vmem:[%s4105_s26 + $0xa8] ss:$12 sps:$4 sm:$0xff]  }
  0x9b   : > { %1634 = vmatpush1.bf16.msra.mxu0 %v3466_v11  ;;  %3110 = vmatpush3.bf16.msra.mxu1 %v3467_v12  ;;  %v3488_v29 = vld [vmem:[%s4105_s26 + $0xac] ss:$12 sps:$4 sm:$0xff]   ;;  %v3495_v32 = vld [vmem:[%s4098_s30 + $0x4] ss:$24 sps:$4 sm:$0xff]   ;;  %v3504_v40 = vld [vmem:[%s4105_s26 + $0xf4] ss:$12 sps:$4 sm:$0xff]  }
  0x9c   : > { %1635 = vmatprep.subr.bf16.mxu0 %v3468_v13  ;;  %3111 = vmatprep.subr.bf16.mxu1 %v3470_v14  ;;  %v3492_v33 = vld [vmem:[%s4105_s26 + $0xb0] ss:$12 sps:$4 sm:$0xff]   ;;  %v4151_v35 = vld [vmem:[%s4098_s30] ss:$24 sps:$4 sm:$0xff]   ;;  %v4156_v38 = vld [vmem:[%s4098_s30 + $0x34] ss:$24 sps:$4 sm:$0xff]  }
  0x9d   : > { %v3496_v34 = vld [vmem:[%s4105_s26 + $0xc4] ss:$12 sps:$4 sm:$0xff]   ;;  %2000 = vmatprep.mubr.bf16.mxu1 %v3495_v32  ;;  %1661 = vmatprep.mubr.bf16.mxu0 %v3495_v32  ;;  %v3498_v36 = vld [vmem:[%s4105_s26 + $0xc0] ss:$12 sps:$4 sm:$0xff]   ;;  %v3499_v37 = vld [vmem:[%s4105_s26 + $0xdc] ss:$12 sps:$4 sm:$0xff]  }
  0x9e   : > { %v3501_v39 = vld [vmem:[%s4105_s26 + $0xd8] ss:$12 sps:$4 sm:$0xff]   ;;  %v4163_v41 = vld [vmem:[%s4098_s30 + $0x30] ss:$24 sps:$4 sm:$0xff]   ;;  %v3516_v50 = vld [vmem:[%s4105_s26 + $0x120] ss:$12 sps:$4 sm:$0xff]  }
  0x9f   : > { %1636 = vmatpush1.bf16.msra.mxu0 %v3471_v15  ;;  %3112 = vmatpush3.bf16.msra.mxu1 %v3472_v16  ;;  %v3507_v42 = vld [vmem:[%s4105_s26 + $0xf0] ss:$12 sps:$4 sm:$0xff]   ;;  %v3508_v43 = vld [vmem:[%s4105_s26 + $0x10c] ss:$12 sps:$4 sm:$0xff]   ;;  %v3510_v45 = vld [vmem:[%s4105_s26 + $0x108] ss:$12 sps:$4 sm:$0xff]  }
  0xa0   : > { %1637 = vmatprep.subr.bf16.mxu0 %v3473_v17  ;;  %3113 = vmatprep.subr.bf16.mxu1 %v3475_v18  ;;  %v4168_v44 = vld [vmem:[%s4098_s30 + $0x64] ss:$24 sps:$4 sm:$0xff]   ;;  %v3528_v46 = vld [vmem:[%s4105_s26 + $0x248] ss:$12 sps:$4 sm:$0xff]   ;;  %v4177_v49 = vld [vmem:[%s4098_s30 + $0x60] ss:$24 sps:$4 sm:$0xff]  }
  0xa1   : > { %v3530_v47 = vld [vmem:[%s4105_s26 + $0x188] ss:$12 sps:$4 sm:$0xff]   ;;  %v3513_v48 = vld [vmem:[%s4105_s26 + $0x124] ss:$12 sps:$4 sm:$0xff]   ;;  %v3540_v53 = vld [vmem:[%s4105_s26 + $0x260] ss:$12 sps:$4 sm:$0xff]  }
  0xa2   : > { %v3517_v51 = vld [vmem:[%s4105_s26 + $0x13c] ss:$12 sps:$4 sm:$0xff]   ;;  %v4182_v52 = vld [vmem:[%s4098_s30 + $0x94] ss:$24 sps:$4 sm:$0xff]   ;;  %v3519_v55 = vld [vmem:[%s4105_s26 + $0x138] ss:$12 sps:$4 sm:$0xff]  }
  0xa3   : > { %1638 = vmatpush1.bf16.msra.mxu0 %v3476_v19  ;;  %3114 = vmatpush3.bf16.msra.mxu1 %v3477_v20  ;;  %v3541_v54 = vld [vmem:[%s4105_s26 + $0x1a0] ss:$12 sps:$4 sm:$0xff]   ;;  %v4191_v57 = vld [vmem:[%s4098_s30 + $0x90] ss:$24 sps:$4 sm:$0xff]   ;;  %v3548_v59 = vld [vmem:[%s4105_s26 + $0x278] ss:$12 sps:$4 sm:$0xff]  }
  0xa4   : > { %1639 = vmatprep.subr.bf16.mxu0 %v3478_v21  ;;  %3115 = vmatprep.subr.bf16.mxu1 %v3480_v22  ;;  %v3522_v56 = vld [vmem:[%s4105_s26 + $0x154] ss:$12 sps:$4 sm:$0xff]   ;;  %v3525_v58 = vld [vmem:[%s4105_s26 + $0x150] ss:$12 sps:$4 sm:$0xff]   ;;  %v3549_v60 = vld [vmem:[%s4105_s26 + $0x1b8] ss:$12 sps:$4 sm:$0xff]  }
  0xa5   : > { %v3526_v61 = vld [vmem:[%s4105_s26 + $0x16c] ss:$12 sps:$4 sm:$0xff]   ;;  %v4198_v62 = vld [vmem:[%s4098_s30 + $0xc4] ss:$24 sps:$4 sm:$0xff]   ;;  %v3529_v1 = vld [vmem:[%s4105_s26 + $0x168] ss:$12 sps:$4 sm:$0xff]  }
  0xa6   : > { %v3553_v63 = vld [vmem:[%s4105_s26 + $0x290] ss:$12 sps:$4 sm:$0xff]   ;;  %v3533_v3 = vld [vmem:[%s4105_s26 + $0x180] ss:$12 sps:$4 sm:$0xff]   ;;  %v3561_v5 = vld [vmem:[%s4105_s26 + $0x2a8] ss:$12 sps:$4 sm:$0xff]  }
  0xa7   : > { %1640 = vmatpush1.bf16.msra.mxu0 %v3481_v23  ;;  %3116 = vmatpush3.bf16.msra.mxu1 %v3482_v24  ;;  %v3554_v0 = vld [vmem:[%s4105_s26 + $0x1d0] ss:$12 sps:$4 sm:$0xff]   ;;  %v4208_v4 = vld [vmem:[%s4098_s30 + $0xc0] ss:$24 sps:$4 sm:$0xff]   ;;  %v3562_v6 = vld [vmem:[%s4105_s26 + $0x1e8] ss:$12 sps:$4 sm:$0xff]  }
  0xa8   : > { %1641 = vmatprep.subr.bf16.mxu0 %v3483_v25  ;;  %3117 = vmatprep.subr.bf16.mxu1 %v3485_v26  ;;  %v3535_v2 = vld [vmem:[%s4105_s26 + $0x184] ss:$12 sps:$4 sm:$0xff]   ;;  %v3539_v7 = vld [vmem:[%s4105_s26 + $0x19c] ss:$12 sps:$4 sm:$0xff]   ;;  %v4214_v8 = vld [vmem:[%s4098_s30 + $0xf4] ss:$24 sps:$4 sm:$0xff]  }
  0xa9   : > { %v3566_v9 = vld [vmem:[%s4105_s26 + $0x2c0] ss:$12 sps:$4 sm:$0xff]   ;;  %v3537_v11 = vld [vmem:[%s4105_s26 + $0x198] ss:$12 sps:$4 sm:$0xff]   ;;  %v3544_v13 = vld [vmem:[%s4105_s26 + $0x1b0] ss:$12 sps:$4 sm:$0xff]  }
  0xaa   : > { %v3567_v10 = vld [vmem:[%s4105_s26 + $0x200] ss:$12 sps:$4 sm:$0xff]   ;;  %v4226_v14 = vld [vmem:[%s4098_s30 + $0xf0] ss:$24 sps:$4 sm:$0xff]   ;;  %v3574_v15 = vld [vmem:[%s4105_s26 + $0x2d8] ss:$12 sps:$4 sm:$0xff]  }
  0xab   : > { %1642 = vmatpush1.bf16.msra.mxu0 %v3486_v27  ;;  %3118 = vmatpush3.bf16.msra.mxu1 %v3487_v28  ;;  %v3546_v12 = vld [vmem:[%s4105_s26 + $0x1b4] ss:$12 sps:$4 sm:$0xff]   ;;  %v3575_v16 = vld [vmem:[%s4105_s26 + $0x218] ss:$12 sps:$4 sm:$0xff]   ;;  %v3579_v19 = vld [vmem:[%s4105_s26 + $0x2f0] ss:$12 sps:$4 sm:$0xff]  }
  0xac   : > { %1643 = vmatprep.subr.bf16.mxu0 %v3488_v29  ;;  %3119 = vmatprep.subr.bf16.mxu1 %v3490_v30  ;;  %v3552_v17 = vld [vmem:[%s4105_s26 + $0x1cc] ss:$12 sps:$4 sm:$0xff]   ;;  %v4232_v18 = vld [vmem:[%s4098_s30 + $0x124] ss:$24 sps:$4 sm:$0xff]   ;;  %v3550_v21 = vld [vmem:[%s4105_s26 + $0x1c8] ss:$12 sps:$4 sm:$0xff]  }
  0xad   : > { %v3580_v20 = vld [vmem:[%s4105_s26 + $0x230] ss:$12 sps:$4 sm:$0xff]   ;;  %v3557_v23 = vld [vmem:[%s4105_s26 + $0x1e0] ss:$12 sps:$4 sm:$0xff]   ;;  %v3563_v27 = vld [vmem:[%s4105_s26 + $0x1f8] ss:$12 sps:$4 sm:$0xff]  }
  0xae   : > { %v3559_v22 = vld [vmem:[%s4105_s26 + $0x1e4] ss:$12 sps:$4 sm:$0xff]   ;;  %v4244_v24 = vld [vmem:[%s4098_s30 + $0x120] ss:$24 sps:$4 sm:$0xff]   ;;  %v3565_v25 = vld [vmem:[%s4105_s26 + $0x1fc] ss:$12 sps:$4 sm:$0xff]  }
  0xaf   : > { %1644 = vmatpush1.bf16.msra.mxu0 %v3491_v31  ;;  %3120 = vmatpush3.bf16.msra.mxu1 %v3492_v33  ;;  %v4248_v26 = vld [vmem:[%s4098_s30 + $0x154] ss:$24 sps:$4 sm:$0xff]   ;;  %v3570_v29 = vld [vmem:[%s4105_s26 + $0x210] ss:$12 sps:$4 sm:$0xff]   ;;  %p3035_p12 = scmp.ne.s32.totalorder %s3885_s15, 2 }
  0xb0   : > { %1645 = vmatprep.subr.bf16.mxu0 %v3496_v34  ;;  %3169 = vmatprep.subr.bf16.mxu1 %v3528_v46  ;;  %v3572_v28 = vld [vmem:[%s4105_s26 + $0x214] ss:$12 sps:$4 sm:$0xff]   ;;  %v4258_v30 = vld [vmem:[%s4098_s30 + $0x150] ss:$24 sps:$4 sm:$0xff]   ;;  %v3578_v31 = vld [vmem:[%s4105_s26 + $0x22c] ss:$12 sps:$4 sm:$0xff]  }
  0xb1   : > { %v4262_v32 = vld [vmem:[%s4098_s30 + $0xc] ss:$24 sps:$4 sm:$0xff]   ;;  %v3617_v33 = vld [vmem:[%s4105_s26 + $0x3c8] ss:$12 sps:$4 sm:$0xff]  }
  0xb2   : > { %2001 = vmatmul.mubr.bf16.vlgmr.msra.gmra.mrb[0].mxu1 %v4151_v35  ;;  %v3576_v34 = vld [vmem:[%s4105_s26 + $0x228] ss:$12 sps:$4 sm:$0xff]   ;;  %v3636_v46 = vld [vmem:[%s4105_s26 + $0x3f8] ss:$12 sps:$4 sm:$0xff]  }
  0xb3   : > { %1646 = vmatpush1.bf16.msra.mxu0 %v3498_v36  ;;  %2008 = vmatprep.mubr.bf16.mxu1 %v4156_v38  ;;  %v4272_v36 = vld [vmem:[%s4098_s30 + $0x8] ss:$24 sps:$4 sm:$0xff]  }
  0xb4   : > { %1647 = vmatprep.subr.bf16.mxu0 %v3499_v37  ;;  %3170 = vmatpush3.bf16.msra.mxu1 %v3530_v47  ;;  %v3584_v37 = vld [vmem:[%s4105_s26 + $0x240] ss:$12 sps:$4 sm:$0xff]   ;;  %v4291_v47 = vld [vmem:[%s4098_s30 + $0x38] ss:$24 sps:$4 sm:$0xff]  }
  0xb5   : > { %3171 = vmatprep.subr.bf16.mxu1 %v3540_v53  ;;  %v3603_v53 = vld [vmem:[%s4105_s26 + $0x2a4] ss:$12 sps:$4 sm:$0xff]  }
  0xb7   : > { %1648 = vmatpush1.bf16.msra.mxu0 %v3501_v39  ;;  %v4277_v39 = vld [vmem:[%s4098_s30 + $0x3c] ss:$24 sps:$4 sm:$0xff]  }
  0xb8   : > { %1649 = vmatprep.subr.bf16.mxu0 %v3504_v40  ;;  %3172 = vmatpush3.bf16.msra.mxu1 %v3541_v54  ;;  %v3618_v40 = vld [vmem:[%s4105_s26 + $0x308] ss:$12 sps:$4 sm:$0xff]   ;;  %v3601_v54 = vld [vmem:[%s4105_s26 + $0x2a0] ss:$12 sps:$4 sm:$0xff]  }
  0xb9   : > { %3173 = vmatprep.subr.bf16.mxu1 %v3548_v59  ;;  %v4313_v59 = vld [vmem:[%s4098_s30 + $0x9c] ss:$24 sps:$4 sm:$0xff]  }
  0xba   : > { %2009 = vmatmul.mubr.bf16.gmra.mrb[4].mxu1 %v4163_v41 }
  0xbb   : > { %1650 = vmatpush1.bf16.msra.mxu0 %v3507_v42  ;;  %2016 = vmatprep.mubr.bf16.mxu1 %v4168_v44  ;;  %v3587_v42 = vld [vmem:[%s4105_s26 + $0x258] ss:$12 sps:$4 sm:$0xff]  }
  0xbc   : > { %1651 = vmatprep.subr.bf16.mxu0 %v3508_v43  ;;  %3174 = vmatpush3.bf16.msra.mxu1 %v3549_v60  ;;  %v3594_v43 = vld [vmem:[%s4105_s26 + $0x274] ss:$12 sps:$4 sm:$0xff]  }
  0xbd   : > { %3175 = vmatprep.subr.bf16.mxu1 %v3553_v63  ;;  %v3650_v60 = vld [vmem:[%s4105_s26 + $0x368] ss:$12 sps:$4 sm:$0xff]  }
  0xbe   : > { %v3612_v63 = vld [vmem:[%s4105_s26 + $0x2d4] ss:$12 sps:$4 sm:$0xff]  }
  0xbf   : > { %1652 = vmatpush1.bf16.msra.mxu0 %v3510_v45  ;;  %v3629_v45 = vld [vmem:[%s4105_s26 + $0x320] ss:$12 sps:$4 sm:$0xff]  }
  0xc0   : > { %1653 = vmatprep.subr.bf16.mxu0 %v3513_v48  ;;  %3176 = vmatpush3.bf16.msra.mxu1 %v3554_v0  ;;  %v3598_v48 = vld [vmem:[%s4105_s26 + $0x28c] ss:$12 sps:$4 sm:$0xff]   ;;  %v3610_v0 = vld [vmem:[%s4105_s26 + $0x2d0] ss:$12 sps:$4 sm:$0xff]  }
  0xc1   : > { %3177 = vmatprep.subr.bf16.mxu1 %v3561_v5  ;;  %v4331_v5 = vld [vmem:[%s4098_s30 + $0xcc] ss:$24 sps:$4 sm:$0xff]  }
  0xc2   : > { %2017 = vmatmul.mubr.bf16.gmra.mrb[8].mxu1 %v4177_v49 }
  0xc3   : > { %1654 = vmatpush1.bf16.msra.mxu0 %v3516_v50  ;;  %2024 = vmatprep.mubr.bf16.mxu1 %v4182_v52  ;;  %v3637_v50 = vld [vmem:[%s4105_s26 + $0x338] ss:$12 sps:$4 sm:$0xff]  }
  0xc4   : > { %1655 = vmatprep.subr.bf16.mxu0 %v3517_v51  ;;  %3178 = vmatpush3.bf16.msra.mxu1 %v3562_v6  ;;  %v3641_v51 = vld [vmem:[%s4105_s26 + $0x410] ss:$12 sps:$4 sm:$0xff]   ;;  %v3663_v6 = vld [vmem:[%s4105_s26 + $0x398] ss:$12 sps:$4 sm:$0xff]  }
  0xc5   : > { %3179 = vmatprep.subr.bf16.mxu1 %v3566_v9  ;;  %v3623_v9 = vld [vmem:[%s4105_s26 + $0x304] ss:$12 sps:$4 sm:$0xff]  }
  0xc7   : > { %1656 = vmatpush1.bf16.msra.mxu0 %v3519_v55  ;;  %v3642_v55 = vld [vmem:[%s4105_s26 + $0x350] ss:$12 sps:$4 sm:$0xff]  }
  0xc8   : > { %1657 = vmatprep.subr.bf16.mxu0 %v3522_v56  ;;  %3180 = vmatpush3.bf16.msra.mxu1 %v3567_v10  ;;  %v3649_v56 = vld [vmem:[%s4105_s26 + $0x428] ss:$12 sps:$4 sm:$0xff]   ;;  %v3668_v10 = vld [vmem:[%s4105_s26 + $0x3b0] ss:$12 sps:$4 sm:$0xff]  }
  0xc9   : > { %3181 = vmatprep.subr.bf16.mxu1 %v3574_v15  ;;  %v3625_v15 = vld [vmem:[%s4105_s26 + $0x318] ss:$12 sps:$4 sm:$0xff]  }
  0xca   : > { %2025 = vmatmul.mubr.bf16.gmra.mrb[12].mxu1 %v4191_v57 }
  0xcb   : > { %1658 = vmatpush1.bf16.msra.mxu0 %v3525_v58  ;;  %2032 = vmatprep.mubr.bf16.mxu1 %v4198_v62  ;;  %v3607_v58 = vld [vmem:[%s4105_s26 + $0x2bc] ss:$12 sps:$4 sm:$0xff]  }
  0xcc   : > { %1659 = vmatprep.subr.bf16.mxu0 %v3526_v61  ;;  %3182 = vmatpush3.bf16.msra.mxu1 %v3575_v16  ;;  %v3654_v61 = vld [vmem:[%s4105_s26 + $0x440] ss:$12 sps:$4 sm:$0xff]  }
  0xcd   : > { %3183 = vmatprep.subr.bf16.mxu1 %v3579_v19  ;;  %v3634_v16 = vld [vmem:[%s4105_s26 + $0x334] ss:$12 sps:$4 sm:$0xff]   ;;  %v3640_v19 = vld [vmem:[%s4105_s26 + $0x34c] ss:$12 sps:$4 sm:$0xff]  }
  0xcf   : > { %1660 = vmatpush1.bf16.msra.mxu0 %v3529_v1  ;;  %v3655_v1 = vld [vmem:[%s4105_s26 + $0x380] ss:$12 sps:$4 sm:$0xff]  }
  0xd0   : > { %1742 = vmatprep.subr.bf16.mxu0 %v3535_v2  ;;  %3184 = vmatpush3.bf16.msra.mxu1 %v3580_v20  ;;  %v3662_v2 = vld [vmem:[%s4105_s26 + $0x458] ss:$12 sps:$4 sm:$0xff]  }
  0xd1   : > { %3233 = vmatprep.subr.bf16.mxu1 %v3617_v33  ;;  %v3643_v20 = vld [vmem:[%s4098_s30 + $0x12c] ss:$24 sps:$4 sm:$0xff]   ;;  %v3664_v33 = vld [vmem:[%s4105_s26 + $0x3a8] ss:$12 sps:$4 sm:$0xff]  }
  0xd2   : > { %1662 = vmatmul.mubr.bf16.vlgmr.msra.gmra.mrb[0].mxu0 %v4151_v35  ;;  %2033 = vmatmul.mubr.bf16.gmra.mrb[16].mxu1 %v4208_v4  ;;  %v3586_v35 = vld [vmem:[%s4105_s26 + $0x244] ss:$12 sps:$4 sm:$0xff]  }
  0xd3   : > { %1743 = vmatpush1.bf16.msra.mxu0 %v3533_v3  ;;  %1671 = vmatprep.mubr.bf16.mxu0 %v4156_v38  ;;  %v3589_v38 = vld [vmem:[%s4105_s26 + $0x25c] ss:$12 sps:$4 sm:$0xff]   ;;  %v4327_v3 = vld [vmem:[%s4098_s30 + $0x98] ss:$24 sps:$4 sm:$0xff]  }
  0xd4   : > { %1744 = vmatprep.subr.bf16.mxu0 %v3539_v7  ;;  %2040 = vmatprep.mubr.bf16.mxu1 %v4214_v8  ;;  %v3667_v7 = vld [vmem:[%s4105_s26 + $0x470] ss:$12 sps:$4 sm:$0xff]  }
  0xd7   : > { %1745 = vmatpush1.bf16.msra.mxu0 %v3537_v11  ;;  %v3621_v11 = vld [vmem:[%s4105_s26 + $0x300] ss:$12 sps:$4 sm:$0xff]  }
  0xd8   : > { %1746 = vmatprep.subr.bf16.mxu0 %v3546_v12  ;;  %v3624_v12 = vld [vmem:[%s4098_s30 + $0xc8] ss:$24 sps:$4 sm:$0xff]  }
  0xda   : > { %1672 = vmatmul.mubr.bf16.gmra.mrb[4].mxu0 %v4163_v41  ;;  %2041 = vmatmul.mubr.bf16.gmra.mrb[20].mxu1 %v4226_v14  ;;  %v3628_v41 = vld [vmem:[%s4105_s26 + $0x3e0] ss:$12 sps:$4 sm:$0xff]  }
  0xdb   : > { %1747 = vmatpush1.bf16.msra.mxu0 %v3544_v13  ;;  %1681 = vmatprep.mubr.bf16.mxu0 %v4168_v44  ;;  %v3592_v44 = vld [vmem:[%s4105_s26 + $0x270] ss:$12 sps:$4 sm:$0xff]  }
  0xdc   : > { %1748 = vmatprep.subr.bf16.mxu0 %v3552_v17  ;;  %2048 = vmatprep.mubr.bf16.mxu1 %v4232_v18  ;;  %v3627_v13 = vld [vmem:[%s4105_s26 + $0x31c] ss:$12 sps:$4 sm:$0xff]  }
  0xdd   : > { %v3632_v17 = vld [vmem:[%s4105_s26 + $0x330] ss:$12 sps:$4 sm:$0xff]  }
  0xdf   : > { %1749 = vmatpush1.bf16.msra.mxu0 %v3550_v21  ;;  %v3638_v21 = vld [vmem:[%s4105_s26 + $0x348] ss:$12 sps:$4 sm:$0xff]  }
  0xe0   : > { %1750 = vmatprep.subr.bf16.mxu0 %v3559_v22  ;;  %v3647_v22 = vld [vmem:[%s4105_s26 + $0x364] ss:$12 sps:$4 sm:$0xff]  }
  0xe2   : > { %1682 = vmatmul.mubr.bf16.gmra.mrb[8].mxu0 %v4177_v49  ;;  %2049 = vmatmul.mubr.bf16.gmra.mrb[24].mxu1 %v4244_v24  ;;  %v4295_v49 = vld [vmem:[%s4098_s30 + $0x6c] ss:$24 sps:$4 sm:$0xff]  }
  0xe3   : > { %1751 = vmatpush1.bf16.msra.mxu0 %v3557_v23  ;;  %1691 = vmatprep.mubr.bf16.mxu0 %v4182_v52  ;;  %v3596_v52 = vld [vmem:[%s4105_s26 + $0x288] ss:$12 sps:$4 sm:$0xff]   ;;  %v3645_v23 = vld [vmem:[%s4105_s26 + $0x360] ss:$12 sps:$4 sm:$0xff]  }
  0xe4   : > { %1752 = vmatprep.subr.bf16.mxu0 %v3565_v25  ;;  %2056 = vmatprep.mubr.bf16.mxu1 %v4248_v26  ;;  %v3653_v25 = vld [vmem:[%s4105_s26 + $0x37c] ss:$12 sps:$4 sm:$0xff]  }
  0xe7   : > { %1753 = vmatpush1.bf16.msra.mxu0 %v3563_v27  ;;  %v3651_v27 = vld [vmem:[%s4105_s26 + $0x378] ss:$12 sps:$4 sm:$0xff]  }
  0xe8   : > { %1754 = vmatprep.subr.bf16.mxu0 %v3572_v28  ;;  %v3660_v28 = vld [vmem:[%s4105_s26 + $0x394] ss:$12 sps:$4 sm:$0xff]  }
  0xea   : > { %1692 = vmatmul.mubr.bf16.gmra.mrb[12].mxu0 %v4191_v57  ;;  %2057 = vmatmul.mubr.bf16.gmra.mrb[28].mxu1 %v4258_v30  ;;  %v4309_v57 = vld [vmem:[%s4098_s30 + $0x68] ss:$24 sps:$4 sm:$0xff]  }
  0xeb   : > { %1755 = vmatpush1.bf16.msra.mxu0 %v3570_v29  ;;  %1701 = vmatprep.mubr.bf16.mxu0 %v4198_v62  ;;  %v3605_v62 = vld [vmem:[%s4105_s26 + $0x2b8] ss:$12 sps:$4 sm:$0xff]   ;;  %v3658_v29 = vld [vmem:[%s4105_s26 + $0x390] ss:$12 sps:$4 sm:$0xff]  }
  0xec   : > { %1756 = vmatprep.subr.bf16.mxu0 %v3578_v31  ;;  %2097 = vmatprep.mubr.bf16.mxu1 %v4262_v32  ;;  %v3666_v31 = vld [vmem:[%s4105_s26 + $0x3ac] ss:$12 sps:$4 sm:$0xff]  }
  0xef   : > { %1757 = vmatpush1.bf16.msra.mxu0 %v3576_v34  ;;  %v3674_v34 = vld [vmem:[%s4105_s26 + $0x3c4] ss:$12 sps:$4 sm:$0xff]  }
  0xf0   : > { %1758 = vmatprep.subr.bf16.mxu0 %v3586_v35  ;;  %v3669_v35 = vld [vmem:[%s4098_s30 + $0x10] ss:$24 sps:$4 sm:$0xff]  }
  0xf2   : > { %1702 = vmatmul.mubr.bf16.gmra.mrb[16].mxu0 %v4208_v4  ;;  %2098 = vmatmul.mubr.bf16.vlgmr.msra.gmra.mrb[32].mxu1 %v4272_v36  ;;  %v3616_v4 = vld [vmem:[%s4105_s26 + $0x2ec] ss:$12 sps:$4 sm:$0xff]  }
  0xf3   : > { %1759 = vmatpush1.bf16.msra.mxu0 %v3584_v37  ;;  %1711 = vmatprep.mubr.bf16.mxu0 %v4214_v8  ;;  %v3614_v8 = vld [vmem:[%s4105_s26 + $0x2e8] ss:$12 sps:$4 sm:$0xff]  }
  0xf4   : > { %1760 = vmatprep.subr.bf16.mxu0 %v3589_v38  ;;  %2105 = vmatprep.mubr.bf16.mxu1 %v4277_v39  ;;  %v3677_v37 = vld [vmem:[%s4105_s26 + $0x3dc] ss:$12 sps:$4 sm:$0xff]  }
  0xf5   : > { %3234 = vmatpush3.bf16.msra.mxu1 %v3618_v40  ;;  %v3678_v38 = vld [vmem:[%s4098_s30 + $0x44] ss:$24 sps:$4 sm:$0xff]   ;;  %v3682_v40 = vld [vmem:[%s4105_s26 + $0x3f4] ss:$12 sps:$4 sm:$0xff]  }
  0xf6   : > { %3235 = vmatprep.subr.bf16.mxu1 %v3628_v41  ;;  %v3680_v41 = vld [vmem:[%s4105_s26 + $0x3f0] ss:$12 sps:$4 sm:$0xff]  }
  0xf7   : > { %1761 = vmatpush1.bf16.msra.mxu0 %v3587_v42  ;;  %v3683_v42 = vld [vmem:[%s4098_s30 + $0x40] ss:$24 sps:$4 sm:$0xff]  }
  0xf8   : > { %1762 = vmatprep.subr.bf16.mxu0 %v3594_v43  ;;  %v3686_v43 = vld [vmem:[%s4105_s26 + $0x40c] ss:$12 sps:$4 sm:$0xff]  }
  0xf9   : > { %3236 = vmatpush3.bf16.msra.mxu1 %v3629_v45  ;;  %v3684_v45 = vld [vmem:[%s4105_s26 + $0x408] ss:$12 sps:$4 sm:$0xff]  }
  0xfa   : > { %1712 = vmatmul.mubr.bf16.gmra.mrb[20].mxu0 %v4226_v14  ;;  %3237 = vmatprep.subr.bf16.mxu1 %v3636_v46  ;;  %v3630_v14 = vld [vmem:[%s4098_s30 + $0xfc] ss:$24 sps:$4 sm:$0xff]   ;;  %v3691_v46 = vld [vmem:[%s4105_s26 + $0x424] ss:$12 sps:$4 sm:$0xff]  }
  0xfb   : > { %2106 = vmatmul.mubr.bf16.gmra.mrb[36].mxu1 %v4291_v47  ;;  %1763 = vmatpush1.bf16.msra.mxu0 %v3592_v44  ;;  %v3687_v44 = vld [vmem:[%s4098_s30 + $0x74] ss:$24 sps:$4 sm:$0xff]  }
  0xfc   : > { %1764 = vmatprep.subr.bf16.mxu0 %v3598_v48  ;;  %1721 = vmatprep.mubr.bf16.mxu0 %v4232_v18  ;;  %v3635_v18 = vld [vmem:[%s4098_s30 + $0xf8] ss:$24 sps:$4 sm:$0xff]  }
  0xfd   : > { %2113 = vmatprep.mubr.bf16.mxu1 %v4295_v49  ;;  %3238 = vmatpush3.bf16.msra.mxu1 %v3637_v50  ;;  %v3692_v48 = vld [vmem:[%s4098_s30 + $0x70] ss:$24 sps:$4 sm:$0xff]   ;;  %v3696_v50 = vld [vmem:[%s4098_s30 + $0xa4] ss:$24 sps:$4 sm:$0xff]  }
  0xfe   : > { %3239 = vmatprep.subr.bf16.mxu1 %v3641_v51  ;;  %v3693_v51 = vld [vmem:[%s4105_s26 + $0x438] ss:$12 sps:$4 sm:$0xff]  }
  0xff   : > { %1765 = vmatpush1.bf16.msra.mxu0 %v3596_v52  ;;  %v3700_v52 = vld [vmem:[%s4105_s26 + $0x454] ss:$12 sps:$4 sm:$0xff]  }
 0x100   : > { %1766 = vmatprep.subr.bf16.mxu0 %v3603_v53  ;;  %v3698_v53 = vld [vmem:[%s4105_s26 + $0x450] ss:$12 sps:$4 sm:$0xff]  }
 0x101   : > { %3240 = vmatpush3.bf16.msra.mxu1 %v3642_v55  ;;  %v3704_v55 = vld [vmem:[%s4105_s26 + $0x46c] ss:$12 sps:$4 sm:$0xff]  }
 0x102   : > { %1722 = vmatmul.mubr.bf16.gmra.mrb[24].mxu0 %v4244_v24  ;;  %3241 = vmatprep.subr.bf16.mxu1 %v3649_v56  ;;  %v3648_v24 = vld [vmem:[%s4098_s30 + $0x128] ss:$24 sps:$4 sm:$0xff]   ;;  %v3705_v56 = vld [vmem:[%s4098_s30 + $0xd4] ss:$24 sps:$4 sm:$0xff]  }
 0x103   : > { %2114 = vmatmul.mubr.bf16.gmra.mrb[40].mxu1 %v4309_v57  ;;  %1767 = vmatpush1.bf16.msra.mxu0 %v3601_v54  ;;  %v3701_v54 = vld [vmem:[%s4098_s30 + $0xa0] ss:$24 sps:$4 sm:$0xff]  }
 0x104   : > { %1768 = vmatprep.subr.bf16.mxu0 %v3607_v58  ;;  %1731 = vmatprep.mubr.bf16.mxu0 %v4248_v26  ;;  %v3656_v26 = vld [vmem:[%s4098_s30 + $0x15c] ss:$24 sps:$4 sm:$0xff]   ;;  %v3707_v58 = vld [vmem:[%s4098_s30 + $0xd0] ss:$24 sps:$4 sm:$0xff]  }
 0x105   : > { %2121 = vmatprep.mubr.bf16.mxu1 %v4313_v59  ;;  %3242 = vmatpush3.bf16.msra.mxu1 %v3650_v60  ;;  %v3710_v60 = vld [vmem:[%s4098_s30 + $0x100] ss:$24 sps:$4 sm:$0xff]  }
 0x106   : > { %3243 = vmatprep.subr.bf16.mxu1 %v3654_v61  ;;  %v3711_v61 = vld [vmem:[%s4098_s30 + $0x134] ss:$24 sps:$4 sm:$0xff]  }
 0x107   : > { %1769 = vmatpush1.bf16.msra.mxu0 %v3605_v62  ;;  %v3713_v62 = vld [vmem:[%s4098_s30 + $0x130] ss:$24 sps:$4 sm:$0xff]  }
 0x108   : > { %1770 = vmatprep.subr.bf16.mxu0 %v3612_v63  ;;  %v3714_v63 = vld [vmem:[%s4098_s30 + $0x164] ss:$24 sps:$4 sm:$0xff]  }
 0x109   : > { %3244 = vmatpush3.bf16.msra.mxu1 %v3655_v1 }
 0x10a   : > { %1732 = vmatmul.mubr.bf16.gmra.mrb[28].mxu0 %v4258_v30  ;;  %3245 = vmatprep.subr.bf16.mxu1 %v3662_v2  ;;  %v3661_v30 = vld [vmem:[%s4098_s30 + $0x158] ss:$24 sps:$4 sm:$0xff]  }
 0x10b   : > { %2122 = vmatmul.mubr.bf16.gmra.mrb[44].mxu1 %v4327_v3  ;;  %1771 = vmatpush1.bf16.msra.mxu0 %v3610_v0  ;;  %v3716_v0 = vld [vmem:[%s4098_s30 + $0x160] ss:$24 sps:$4 sm:$0xff]  }
 0x10c   : > { %1772 = vmatprep.subr.bf16.mxu0 %v3616_v4  ;;  %1774 = vmatprep.mubr.bf16.mxu0 %v4262_v32  ;;  %v3671_v32 = vld [vmem:[%s4098_s30 + $0x14] ss:$24 sps:$4 sm:$0xff]  }
 0x10d   : > { %2129 = vmatprep.mubr.bf16.mxu1 %v4331_v5  ;;  %3246 = vmatpush3.bf16.msra.mxu1 %v3663_v6 }
 0x10e   : > { %3247 = vmatprep.subr.bf16.mxu1 %v3667_v7 }
 0x10f   : > { %1773 = vmatpush1.bf16.msra.mxu0 %v3614_v8 }
 0x110   : > { %1855 = vmatprep.subr.bf16.mxu0 %v3623_v9 }
 0x111   : > { %3248 = vmatpush3.bf16.msra.mxu1 %v3668_v10 }
 0x112   : > { %1775 = vmatmul.mubr.bf16.vlgmr.msra.gmra.mrb[0].mxu0 %v4272_v36  ;;  %v3672_v36 = vld [vmem:[%s4105_s26 + $0x3c0] ss:$12 sps:$4 sm:$0xff]  }
 0x113   : > { %2130 = vmatmul.mubr.bf16.gmra.mrb[48].mxu1 %v3624_v12  ;;  %1856 = vmatpush1.bf16.msra.mxu0 %v3621_v11 }
 0x114   : > { %1857 = vmatprep.subr.bf16.mxu0 %v3627_v13  ;;  %1784 = vmatprep.mubr.bf16.mxu0 %v4277_v39  ;;  %v3675_v39 = vld [vmem:[%s4105_s26 + $0x3d8] ss:$12 sps:$4 sm:$0xff]  }
 0x115   : > { %2137 = vmatprep.mubr.bf16.mxu1 %v3630_v14 }
 0x117   : > { %1858 = vmatpush1.bf16.msra.mxu0 %v3625_v15 }
 0x118   : > { %1859 = vmatprep.subr.bf16.mxu0 %v3634_v16 }
 0x11a   : > { %1785 = vmatmul.mubr.bf16.gmra.mrb[4].mxu0 %v4291_v47  ;;  %v3689_v47 = vld [vmem:[%s4105_s26 + $0x420] ss:$12 sps:$4 sm:$0xff]  }
 0x11b   : > { %2138 = vmatmul.mubr.bf16.gmra.mrb[52].mxu1 %v3635_v18  ;;  %1860 = vmatpush1.bf16.msra.mxu0 %v3632_v17 }
 0x11c   : > { %1861 = vmatprep.subr.bf16.mxu0 %v3640_v19  ;;  %1794 = vmatprep.mubr.bf16.mxu0 %v4295_v49  ;;  %v3695_v49 = vld [vmem:[%s4105_s26 + $0x43c] ss:$12 sps:$4 sm:$0xff]  }
 0x11d   : > { %2145 = vmatprep.mubr.bf16.mxu1 %v3643_v20 }
 0x11f   : > { %1862 = vmatpush1.bf16.msra.mxu0 %v3638_v21 }
 0x120   : > { %1863 = vmatprep.subr.bf16.mxu0 %v3647_v22 }
 0x122   : > { %1795 = vmatmul.mubr.bf16.gmra.mrb[8].mxu0 %v4309_v57  ;;  %v3702_v57 = vld [vmem:[%s4105_s26 + $0x468] ss:$12 sps:$4 sm:$0xff]  }
 0x123   : > { %2146 = vmatmul.mubr.bf16.gmra.mrb[56].mxu1 %v3648_v24  ;;  %1864 = vmatpush1.bf16.msra.mxu0 %v3645_v23 }
 0x124   : > { %1865 = vmatprep.subr.bf16.mxu0 %v3653_v25  ;;  %1804 = vmatprep.mubr.bf16.mxu0 %v4313_v59  ;;  %v3708_v59 = vld [vmem:[%s4098_s30 + $0x104] ss:$24 sps:$4 sm:$0xff]  }
 0x125   : > { %2153 = vmatprep.mubr.bf16.mxu1 %v3656_v26 }
 0x127   : > { %1866 = vmatpush1.bf16.msra.mxu0 %v3651_v27 }
 0x128   : > { %1867 = vmatprep.subr.bf16.mxu0 %v3660_v28 }
 0x12a   : > { %1805 = vmatmul.mubr.bf16.gmra.mrb[12].mxu0 %v4327_v3 }
 0x12b   : > { %2154 = vmatmul.mubr.bf16.gmra.mrb[60].mxu1 %v3661_v30  ;;  %1868 = vmatpush1.bf16.msra.mxu0 %v3658_v29 }
 0x12c   : > { %1869 = vmatprep.subr.bf16.mxu0 %v3666_v31  ;;  %1814 = vmatprep.mubr.bf16.mxu0 %v4331_v5 }
 0x12d   : > { %2194 = vmatprep.mubr.bf16.mxu1 %v3671_v32 }
 0x12f   : > { %1870 = vmatpush1.bf16.msra.mxu0 %v3664_v33 }
 0x130   : > { %1871 = vmatprep.subr.bf16.mxu0 %v3674_v34 }
 0x132   : > { %1815 = vmatmul.mubr.bf16.gmra.mrb[16].mxu0 %v3624_v12 }
 0x133   : > { %2195 = vmatmul.mubr.bf16.vlgmr.msra.gmra.mrb[64].mxu1 %v3669_v35  ;;  %1872 = vmatpush1.bf16.msra.mxu0 %v3672_v36 }
 0x134   : > { %1873 = vmatprep.subr.bf16.mxu0 %v3677_v37  ;;  %1824 = vmatprep.mubr.bf16.mxu0 %v3630_v14 }
 0x135   : > { %2202 = vmatprep.mubr.bf16.mxu1 %v3678_v38 }
 0x137   : > { %1874 = vmatpush1.bf16.msra.mxu0 %v3675_v39 }
 0x138   : > { %1875 = vmatprep.subr.bf16.mxu0 %v3682_v40 }
 0x13a   : > { %1825 = vmatmul.mubr.bf16.gmra.mrb[20].mxu0 %v3635_v18 }
 0x13b   : > { %2203 = vmatmul.mubr.bf16.gmra.mrb[68].mxu1 %v3683_v42  ;;  %1876 = vmatpush1.bf16.msra.mxu0 %v3680_v41 }
 0x13c   : > { %1877 = vmatprep.subr.bf16.mxu0 %v3686_v43  ;;  %1834 = vmatprep.mubr.bf16.mxu0 %v3643_v20 }
 0x13d   : > { %2210 = vmatprep.mubr.bf16.mxu1 %v3687_v44 }
 0x13f   : > { %1878 = vmatpush1.bf16.msra.mxu0 %v3684_v45 }
 0x140   : > { %1879 = vmatprep.subr.bf16.mxu0 %v3691_v46 }
 0x142   : > { %1835 = vmatmul.mubr.bf16.gmra.mrb[24].mxu0 %v3648_v24 }
 0x143   : > { %2211 = vmatmul.mubr.bf16.gmra.mrb[72].mxu1 %v3692_v48  ;;  %1880 = vmatpush1.bf16.msra.mxu0 %v3689_v47 }
 0x144   : > { %1881 = vmatprep.subr.bf16.mxu0 %v3695_v49  ;;  %1844 = vmatprep.mubr.bf16.mxu0 %v3656_v26 }
 0x145   : > { %2218 = vmatprep.mubr.bf16.mxu1 %v3696_v50 }
 0x147   : > { %1882 = vmatpush1.bf16.msra.mxu0 %v3693_v51 }
 0x148   : > { %1883 = vmatprep.subr.bf16.mxu0 %v3700_v52 }
 0x14a   : > { %1845 = vmatmul.mubr.bf16.gmra.mrb[28].mxu0 %v3661_v30 }
 0x14b   : > { %2219 = vmatmul.mubr.bf16.gmra.mrb[76].mxu1 %v3701_v54  ;;  %1884 = vmatpush1.bf16.msra.mxu0 %v3698_v53 }
 0x14c   : > { %1885 = vmatprep.subr.bf16.mxu0 %v3704_v55  ;;  %1887 = vmatprep.mubr.bf16.mxu0 %v3671_v32 }
 0x14d   : > { %2226 = vmatprep.mubr.bf16.mxu1 %v3705_v56 }
 0x14f   : > { %1886 = vmatpush1.bf16.msra.mxu0 %v3702_v57 }
 0x152   : > { %1888 = vmatmul.mubr.bf16.vlgmr.msra.gmra.mrb[0].mxu0 %v3669_v35 }
 0x153   : > { %2227 = vmatmul.mubr.bf16.gmra.mrb[80].mxu1 %v3707_v58  ;;  %1897 = vmatprep.mubr.bf16.mxu0 %v3678_v38 }
 0x154   : > { %2234 = vmatprep.mubr.bf16.mxu1 %v3708_v59 }
 0x15a   : > { %1898 = vmatmul.mubr.bf16.gmra.mrb[4].mxu0 %v3683_v42 }
 0x15b   : > { %2235 = vmatmul.mubr.bf16.gmra.mrb[84].mxu1 %v3710_v60  ;;  %1907 = vmatprep.mubr.bf16.mxu0 %v3687_v44 }
 0x15c   : > { %2242 = vmatprep.mubr.bf16.mxu1 %v3711_v61 }
 0x162   : > { %1908 = vmatmul.mubr.bf16.gmra.mrb[8].mxu0 %v3692_v48 }
 0x163   : > { %2243 = vmatmul.mubr.bf16.gmra.mrb[88].mxu1 %v3713_v62  ;;  %1917 = vmatprep.mubr.bf16.mxu0 %v3696_v50 }
 0x164   : > { %2250 = vmatprep.mubr.bf16.mxu1 %v3714_v63 }
 0x16a   : > { %1918 = vmatmul.mubr.bf16.gmra.mrb[12].mxu0 %v3701_v54 }
 0x16b   : > { %2251 = vmatmul.mubr.bf16.gmra.mrb[92].mxu1 %v3716_v0  ;;  %1927 = vmatprep.mubr.bf16.mxu0 %v3705_v56 }
 0x172   : > { %1928 = vmatmul.mubr.bf16.gmra.mrb[16].mxu0 %v3707_v58 }
 0x173   : > { %1937 = vmatprep.mubr.bf16.mxu0 %v3708_v59 }
 0x17a   : > { %1938 = vmatmul.mubr.bf16.gmra.mrb[20].mxu0 %v3710_v60 }
 0x17b   : > { %1947 = vmatprep.mubr.bf16.mxu0 %v3711_v61 }
 0x182   : > { %1948 = vmatmul.mubr.bf16.gmra.mrb[24].mxu0 %v3713_v62 }
 0x183   : > { %1957 = vmatprep.mubr.bf16.mxu0 %v3714_v63 }
 0x185   : > { %v3121_v1 = vpop.f32.mrb[0].mxu1 }
 0x186   : > { %v3122_v2 = vpop.f32.mrb[1].mxu1 }
 0x187   : > { %v3123_v3 = vadd.f32 %v3122_v2, %v3121_v1  ;;  %v3124_v4 = vpop.f32.mrb[2].mxu1 }
 0x188   : > { %v3125_v5 = vpop.f32.mrb[3].mxu1 }
 0x189   : > { %v3126_v6 = vadd.f32 %v3125_v5, %v3124_v4 }
 0x18a   : > { %1958 = vmatmul.mubr.bf16.gmra.mrb[28].mxu0 %v3716_v0 }
 0x18d   : > { %v3127_v7 = vpop.f32.mrb[4].mxu1 }
 0x18e   : > { %v3128_v8 = vpop.f32.mrb[5].mxu1 }
 0x18f   : > { %v3129_v9 = vadd.f32 %v3128_v8, %v3127_v7  ;;  %v3130_v10 = vpop.f32.mrb[6].mxu1 }
 0x190   : > { %v3131_v11 = vpop.f32.mrb[7].mxu1 }
 0x191   : > { %v3132_v12 = vadd.f32 %v3131_v11, %v3130_v10 }
 0x195   : > { %v3133_v13 = vpop.f32.mrb[8].mxu1 }
 0x196   : > { %v3134_v14 = vpop.f32.mrb[9].mxu1 }
 0x197   : > { %v3135_v15 = vadd.f32 %v3134_v14, %v3133_v13  ;;  %v3136_v16 = vpop.f32.mrb[10].mxu1 }
 0x198   : > { %v3137_v17 = vpop.f32.mrb[11].mxu1 }
 0x199   : > { %v3138_v18 = vadd.f32 %v3137_v17, %v3136_v16 }
 0x19d   : > { %v3139_v19 = vpop.f32.mrb[12].mxu1 }
 0x19e   : > { %v3140_v20 = vpop.f32.mrb[13].mxu1 }
 0x19f   : > { %v3141_v21 = vadd.f32 %v3140_v20, %v3139_v19  ;;  %v3142_v22 = vpop.f32.mrb[14].mxu1 }
 0x1a0   : > { %v3143_v23 = vpop.f32.mrb[15].mxu1 }
 0x1a1   : > { %v3144_v24 = vadd.f32 %v3143_v23, %v3142_v22 }
 0x1a5   : > { %v3145_v25 = vpop.f32.mrb[16].mxu1 }
 0x1a6   : > { %v3146_v26 = vpop.f32.mrb[17].mxu1 }
 0x1a7   : > { %v3147_v27 = vadd.f32 %v3146_v26, %v3145_v25  ;;  %v3148_v28 = vpop.f32.mrb[18].mxu1 }
 0x1a8   : > { %v3149_v29 = vpop.f32.mrb[19].mxu1 }
 0x1a9   : > { %v3150_v30 = vadd.f32 %v3149_v29, %v3148_v28 }
 0x1ad   : > { %v3151_v31 = vpop.f32.mrb[20].mxu1 }
 0x1ae   : > { %v3152_v32 = vpop.f32.mrb[21].mxu1 }
 0x1af   : > { %v3153_v33 = vadd.f32 %v3152_v32, %v3151_v31  ;;  %v3154_v34 = vpop.f32.mrb[22].mxu1 }
 0x1b0   : > { %v3155_v35 = vpop.f32.mrb[23].mxu1 }
 0x1b1   : > { %v3156_v36 = vadd.f32 %v3155_v35, %v3154_v34 }
 0x1b5   : > { %v3157_v37 = vpop.f32.mrb[24].mxu1 }
 0x1b6   : > { %v3158_v38 = vpop.f32.mrb[25].mxu1 }
 0x1b7   : > { %v4404_v39 = vadd.f32 %v3158_v38, %v3157_v37  ;;  %v3160_v40 = vpop.f32.mrb[26].mxu1 }
 0x1b8   : > { %v3161_v41 = vpop.f32.mrb[27].mxu1 }
 0x1b9   : > { %v3162_v42 = vadd.f32 %v3161_v41, %v3160_v40 }
 0x1bd   : > { %v3163_v43 = vpop.f32.mrb[28].mxu1 }
 0x1be   : > { %v3164_v44 = vpop.f32.mrb[29].mxu1 }
 0x1bf   : > { %v4406_v45 = vadd.f32 %v3164_v44, %v3163_v43  ;;  %v3166_v46 = vpop.f32.mrb[30].mxu1 }
 0x1c0   : > { %v3167_v47 = vpop.f32.mrb[31].mxu1 }
 0x1c1   : > { %v4408_v48 = vadd.f32 %v3167_v47, %v3166_v46 }
 0x1c5   : > { %v3185_v49 = vpop.f32.mrb[32].mxu1 }
 0x1c6   : > { %v3186_v50 = vpop.f32.mrb[33].mxu1 }
 0x1c7   : > { %v3187_v51 = vadd.f32 %v3186_v50, %v3185_v49  ;;  %v3188_v52 = vpop.f32.mrb[34].mxu1 }
 0x1c8   : > { %v3189_v53 = vpop.f32.mrb[35].mxu1 }
 0x1c9   : > { %v4410_v54 = vadd.f32 %v3187_v51, %v3123_v3  ;;  %v3190_v55 = vadd.f32 %v3189_v53, %v3188_v52 }
 0x1cb   : > { %v4412_v56 = vadd.f32 %v3190_v55, %v3126_v6 }
 0x1ce   : > { %v3191_v57 = vpop.f32.mrb[36].mxu1 }
 0x1cf   : > { %v3192_v58 = vpop.f32.mrb[37].mxu1 }
 0x1d0   : > { %v3193_v59 = vadd.f32 %v3192_v58, %v3191_v57  ;;  %v3194_v60 = vpop.f32.mrb[38].mxu1  ;;  %v335_v58 = vld [vmem:[#allocation2 + $0x10] sm:$0xff] }
 0x1d1   : > { %v3195_v61 = vpop.f32.mrb[39].mxu1 }
 0x1d2   : > { %v4414_v62 = vadd.f32 %v3193_v59, %v3129_v9  ;;  %v3196_v63 = vadd.f32 %v3195_v61, %v3194_v60  ;;  %v338_v61 = vld [vmem:[#allocation2 + $0x28] sm:$0xff] }
 0x1d4   : > { %v4416_v0 = vadd.f32 %v3196_v63, %v3132_v12 }
 0x1d6   : > { %v3197_v1 = vpop.f32.mrb[40].mxu1 }
 0x1d7   : > { %v3198_v2 = vpop.f32.mrb[41].mxu1 }
 0x1d8   : > { %v3199_v4 = vadd.f32 %v3198_v2, %v3197_v1  ;;  %v3200_v5 = vpop.f32.mrb[42].mxu1 }
 0x1d9   : > { %v3201_v7 = vpop.f32.mrb[43].mxu1 }
 0x1da   : > { %v4418_v3 = vadd.f32 %v3199_v4, %v3135_v15  ;;  %v3202_v8 = vadd.f32 %v3201_v7, %v3200_v5  ;;  %v341_v7 = vld [vmem:[#allocation2 + $0x40] sm:$0xff] }
 0x1dc   : > { %v4420_v6 = vadd.f32 %v3202_v8, %v3138_v18 }
 0x1de   : > { %v3203_v10 = vpop.f32.mrb[44].mxu1 }
 0x1df   : > { %v3204_v11 = vpop.f32.mrb[45].mxu1 }
 0x1e0   : > { %v3205_v13 = vadd.f32 %v3204_v11, %v3203_v10  ;;  %v3206_v14 = vpop.f32.mrb[46].mxu1 }
 0x1e1   : > { %v3207_v16 = vpop.f32.mrb[47].mxu1 }
 0x1e2   : > { %v4422_v9 = vadd.f32 %v3205_v13, %v3141_v21  ;;  %v3208_v17 = vadd.f32 %v3207_v16, %v3206_v14  ;;  %v344_v13 = vld [vmem:[#allocation2 + $0x58] sm:$0xff] }
 0x1e4   : > { %v4424_v12 = vadd.f32 %v3208_v17, %v3144_v24 }
 0x1e6   : > { %v3209_v19 = vpop.f32.mrb[48].mxu1 }
 0x1e7   : > { %v3210_v20 = vpop.f32.mrb[49].mxu1 }
 0x1e8   : > { %v3211_v22 = vadd.f32 %v3210_v20, %v3209_v19  ;;  %v3212_v23 = vpop.f32.mrb[50].mxu1 }
 0x1e9   : > { %v3213_v25 = vpop.f32.mrb[51].mxu1 }
 0x1ea   : > { %v4426_v15 = vadd.f32 %v3211_v22, %v3147_v27  ;;  %v3214_v26 = vadd.f32 %v3213_v25, %v3212_v23  ;;  %v347_v22 = vld [vmem:[#allocation2 + $0x70] sm:$0xff] }
 0x1ec   : > { %v4428_v18 = vadd.f32 %v3214_v26, %v3150_v30 }
 0x1ee   : > { %v3215_v28 = vpop.f32.mrb[52].mxu1 }
 0x1ef   : > { %v3216_v29 = vpop.f32.mrb[53].mxu1 }
 0x1f0   : > { %v3217_v31 = vadd.f32 %v3216_v29, %v3215_v28  ;;  %v3218_v32 = vpop.f32.mrb[54].mxu1  ;;  %v350_v28 = vld [vmem:[#allocation2 + $0x88] sm:$0xff] }
 0x1f1   : > { %v3219_v34 = vpop.f32.mrb[55].mxu1 }
 0x1f2   : > { %v4430_v21 = vadd.f32 %v3217_v31, %v3153_v33  ;;  %v3220_v35 = vadd.f32 %v3219_v34, %v3218_v32 }
 0x1f4   : > { %v4432_v24 = vadd.f32 %v3220_v35, %v3156_v36 }
 0x1f6   : > { %v3221_v37 = vpop.f32.mrb[56].mxu1 }
 0x1f7   : > { %v3222_v38 = vpop.f32.mrb[57].mxu1 }
 0x1f8   : > { %v3223_v40 = vadd.f32 %v3222_v38, %v3221_v37  ;;  %v3224_v41 = vpop.f32.mrb[58].mxu1  ;;  %v353_v37 = vld [vmem:[#allocation2 + $0xa0] sm:$0xff] }
 0x1f9   : > { %v3225_v43 = vpop.f32.mrb[59].mxu1 }
 0x1fa   : > { %v4435_v27 = vadd.f32 %v3223_v40, %v4404_v39  ;;  %v3226_v30 = vadd.f32 %v3225_v43, %v3224_v41  ;;  %v356_v43 = vld [vmem:[#allocation2 + $0xb8] sm:$0xff] }
 0x1fc   : > { %v4437_v44 = vadd.f32 %v3226_v30, %v3162_v42  ;;  %v333_v30 = vld [vmem:[#allocation2] sm:$0xff] }
 0x1fe   : > { %v3227_v46 = vpop.f32.mrb[60].mxu1 }
 0x1ff   : > { %v3228_v47 = vpop.f32.mrb[61].mxu1 }
 0x200   : > { %v3229_v49 = vadd.f32 %v3228_v47, %v3227_v46  ;;  %v3230_v50 = vpop.f32.mrb[62].mxu1  ;;  %v334_v47 = vld [vmem:[#allocation2 + $0x8] sm:$0xff] }
 0x201   : > { %v3231_v33 = vpop.f32.mrb[63].mxu1 }
 0x202   : > { %v4440_v51 = vadd.f32 %v3229_v49, %v4406_v45  ;;  %v3232_v36 = vadd.f32 %v3231_v33, %v3230_v50 }
 0x204   : > { %v4443_v52 = vadd.f32 %v3232_v36, %v4408_v48 }
 0x206   : > { %v3249_v53 = vpop.f32.mrb[64].mxu1 }
 0x207   : > { %v3250_v55 = vpop.f32.mrb[65].mxu1 }
 0x208   : > { %v3251_v57 = vadd.f32 %v3250_v55, %v3249_v53  ;;  %v3252_v39 = vpop.f32.mrb[66].mxu1  ;;  %v337_v55 = vld [vmem:[#allocation2 + $0x20] sm:$0xff] }
 0x209   : > { %v3253_v59 = vpop.f32.mrb[67].mxu1 }
 0x20a   : > { %v2197_v42 = vadd.f32 %v3251_v57, %v4410_v54  ;;  %v3254_v60 = vadd.f32 %v3253_v59, %v3252_v39 }
 0x20c   : > { %v2261_v63 = vadd.f32 %v2197_v42, %v335_v58  ;;  %v2200_v1 = vadd.f32 %v3254_v60, %v4412_v56 }
 0x20e   : > { %2309 = vst [vmem:[#allocation2 + $0x10] sm:$0xff] %v2261_v63  ;;  %v2264_v45 = vadd.f32 %v2200_v1, %v338_v61  ;;  %v3255_v2 = vpop.f32.mrb[68].mxu1 }
 0x20f   : > { %v3256_v4 = vpop.f32.mrb[69].mxu1 }
 0x210   : > { %2312 = vst [vmem:[#allocation2 + $0x28] sm:$0xff] %v2264_v45  ;;  %v3257_v48 = vadd.f32 %v3256_v4, %v3255_v2  ;;  %v3258_v5 = vpop.f32.mrb[70].mxu1  ;;  %v362_v2 = vld [vmem:[#allocation2 + $0xe8] sm:$0xff]  ;;  %v339_v4 = vld [vmem:[#allocation2 + $0x30] sm:$0xff] }
 0x211   : > { %v3259_v8 = vpop.f32.mrb[71].mxu1 }
 0x212   : > { %v2205_v10 = vadd.f32 %v3257_v48, %v4414_v62  ;;  %v3260_v11 = vadd.f32 %v3259_v8, %v3258_v5 }
 0x214   : > { %v2267_v14 = vadd.f32 %v2205_v10, %v341_v7  ;;  %v2208_v54 = vadd.f32 %v3260_v11, %v4416_v0  ;;  %v340_v7 = vld [vmem:[#allocation2 + $0x38] sm:$0xff]  ;;  %v342_v10 = vld [vmem:[#allocation2 + $0x48] sm:$0xff] }
 0x216   : > { %2315 = vst [vmem:[#allocation2 + $0x40] sm:$0xff] %v2267_v14  ;;  %v2270_v16 = vadd.f32 %v2208_v54, %v344_v13  ;;  %v3261_v17 = vpop.f32.mrb[72].mxu1 }
 0x217   : > { %v3262_v56 = vpop.f32.mrb[73].mxu1 }
 0x218   : > { %2318 = vst [vmem:[#allocation2 + $0x58] sm:$0xff] %v2270_v16  ;;  %v3263_v19 = vadd.f32 %v3262_v56, %v3261_v17  ;;  %v3264_v20 = vpop.f32.mrb[74].mxu1  ;;  %v343_v16 = vld [vmem:[#allocation2 + $0x50] sm:$0xff] }
 0x219   : > { %v3265_v23 = vpop.f32.mrb[75].mxu1 }
 0x21a   : > { %v2213_v25 = vadd.f32 %v3263_v19, %v4418_v3  ;;  %v3266_v26 = vadd.f32 %v3265_v23, %v3264_v20 }
 0x21c   : > { %v2273_v29 = vadd.f32 %v2213_v25, %v347_v22  ;;  %v2216_v62 = vadd.f32 %v3266_v26, %v4420_v6  ;;  %v336_v6 = vld [vmem:[#allocation2 + $0x18] sm:$0xff] }
 0x21e   : > { %2321 = vst [vmem:[#allocation2 + $0x70] sm:$0xff] %v2273_v29  ;;  %v2276_v31 = vadd.f32 %v2216_v62, %v350_v28  ;;  %v3267_v32 = vpop.f32.mrb[76].mxu1  ;;  %v368_v62 = vld [vmem:[#allocation2 + $0x118] sm:$0xff] }
 0x21f   : > { %v3268_v0 = vpop.f32.mrb[77].mxu1 }
 0x220   : > { %2324 = vst [vmem:[#allocation2 + $0x88] sm:$0xff] %v2276_v31  ;;  %v3269_v34 = vadd.f32 %v3268_v0, %v3267_v32  ;;  %v3270_v35 = vpop.f32.mrb[78].mxu1  ;;  %v345_v31 = vld [vmem:[#allocation2 + $0x60] sm:$0xff] }
 0x221   : > { %v3271_v38 = vpop.f32.mrb[79].mxu1 }
 0x222   : > { %v2221_v40 = vadd.f32 %v3269_v34, %v4422_v9  ;;  %v3272_v41 = vadd.f32 %v3271_v38, %v3270_v35  ;;  %v346_v34 = vld [vmem:[#allocation2 + $0x68] sm:$0xff] }
 0x224   : > { %v2279_v3 = vadd.f32 %v2221_v40, %v353_v37  ;;  %v2224_v46 = vadd.f32 %v3272_v41, %v4424_v12  ;;  %v359_v12 = vld [vmem:[#allocation2 + $0xd0] sm:$0xff]  ;;  %v348_v37 = vld [vmem:[#allocation2 + $0x78] sm:$0xff] }
 0x225   : > { %v1889_v49 = vpop.f32.mrb[0].mxu0 }
 0x226   : > { %2327 = vst [vmem:[#allocation2 + $0xa0] sm:$0xff] %v2279_v3  ;;  %v2282_v50 = vadd.f32 %v2224_v46, %v356_v43  ;;  %v2259_v33 = vadd.f32 %v1889_v49, %v333_v30  ;;  %v3273_v36 = vpop.f32.mrb[80].mxu1  ;;  %v1891_v53 = vpop.f32.mrb[1].mxu0  ;;  %v349_v30 = vld [vmem:[#allocation2 + $0x80] sm:$0xff] }
 0x227   : > { %v2260_v57 = vadd.f32 %v1891_v53, %v334_v47  ;;  %v3274_v39 = vpop.f32.mrb[81].mxu1  ;;  %v1893_v58 = vpop.f32.mrb[2].mxu0 }
 0x228   : > { %2330 = vst [vmem:[#allocation2 + $0xb8] sm:$0xff] %v2282_v50  ;;  %2307 = vst [vmem:[#allocation2] sm:$0xff] %v2259_v33  ;;  %v3275_v9 = vadd.f32 %v3274_v39, %v3273_v36  ;;  %v2262_v59 = vadd.f32 %v1893_v58, %v336_v6  ;;  %v3276_v42 = vpop.f32.mrb[82].mxu1  ;;  %v1895_v60 = vpop.f32.mrb[3].mxu0  ;;  %v351_v39 = vld [vmem:[#allocation2 + $0x90] sm:$0xff] }
 0x229   : > { %2308 = vst [vmem:[#allocation2 + $0x8] sm:$0xff] %v2260_v57  ;;  %v2263_v61 = vadd.f32 %v1895_v60, %v337_v55  ;;  %v3277_v63 = vpop.f32.mrb[83].mxu1  ;;  %v374_v57 = vld [vmem:[#allocation2 + $0x148] sm:$0xff] }
 0x22a   : > { %v2229_v1 = vadd.f32 %v3275_v9, %v4426_v15  ;;  %2310 = vst [vmem:[#allocation2 + $0x18] sm:$0xff] %v2262_v59  ;;  %v3278_v45 = vadd.f32 %v3277_v63, %v3276_v42  ;;  %v352_v59 = vld [vmem:[#allocation2 + $0x98] sm:$0xff]  ;;  %v354_v60 = vld [vmem:[#allocation2 + $0xa8] sm:$0xff] }
 0x22b   : > { %2311 = vst [vmem:[#allocation2 + $0x20] sm:$0xff] %v2263_v61 }
 0x22c   : > { %v2285_v48 = vadd.f32 %v2229_v1, %v359_v12  ;;  %v2232_v5 = vadd.f32 %v3278_v45, %v4428_v18  ;;  %v365_v18 = vld [vmem:[#allocation2 + $0x100] sm:$0xff]  ;;  %v355_v45 = vld [vmem:[#allocation2 + $0xb0] sm:$0xff] }
 0x22d   : > { %v1899_v8 = vpop.f32.mrb[4].mxu0 }
 0x22e   : > { %2333 = vst [vmem:[#allocation2 + $0xd0] sm:$0xff] %v2285_v48  ;;  %v2288_v11 = vadd.f32 %v2232_v5, %v362_v2  ;;  %v2265_v13 = vadd.f32 %v1899_v8, %v339_v4  ;;  %v3279_v14 = vpop.f32.mrb[84].mxu1  ;;  %v1901_v54 = vpop.f32.mrb[5].mxu0 }
 0x22f   : > { %v2266_v17 = vadd.f32 %v1901_v54, %v340_v7  ;;  %v3280_v56 = vpop.f32.mrb[85].mxu1  ;;  %v1903_v15 = vpop.f32.mrb[6].mxu0  ;;  %v380_v54 = vld [vmem:[#allocation2 + $0x178] sm:$0xff] }
 0x230   : > { %2336 = vst [vmem:[#allocation2 + $0xe8] sm:$0xff] %v2288_v11  ;;  %2313 = vst [vmem:[#allocation2 + $0x30] sm:$0xff] %v2265_v13  ;;  %v3281_v19 = vadd.f32 %v3280_v56, %v3279_v14  ;;  %v2268_v20 = vadd.f32 %v1903_v15, %v342_v10  ;;  %v3282_v22 = vpop.f32.mrb[86].mxu1  ;;  %v1905_v23 = vpop.f32.mrb[7].mxu0  ;;  %v358_v15 = vld [vmem:[#allocation2 + $0xc8] sm:$0xff] }
 0x231   : > { %2314 = vst [vmem:[#allocation2 + $0x38] sm:$0xff] %v2266_v17  ;;  %v2269_v25 = vadd.f32 %v1905_v23, %v343_v16  ;;  %v3283_v26 = vpop.f32.mrb[87].mxu1  ;;  %v357_v16 = vld [vmem:[#allocation2 + $0xc0] sm:$0xff] }
 0x232   : > { %v2237_v28 = vadd.f32 %v3281_v19, %v4430_v21  ;;  %2316 = vst [vmem:[#allocation2 + $0x48] sm:$0xff] %v2268_v20  ;;  %v3284_v29 = vadd.f32 %v3283_v26, %v3282_v22  ;;  %v360_v20 = vld [vmem:[#allocation2 + $0xd8] sm:$0xff] }
 0x233   : > { %2317 = vst [vmem:[#allocation2 + $0x50] sm:$0xff] %v2269_v25  ;;  %v361_v25 = vld [vmem:[#allocation2 + $0xe0] sm:$0xff] }
 0x234   : > { %v2291_v32 = vadd.f32 %v2237_v28, %v365_v18  ;;  %v2240_v0 = vadd.f32 %v3284_v29, %v4432_v24  ;;  %v371_v24 = vld [vmem:[#allocation2 + $0x130] sm:$0xff] }
 0x235   : > { %v1909_v35 = vpop.f32.mrb[8].mxu0 }
 0x236   : > { %2339 = vst [vmem:[#allocation2 + $0x100] sm:$0xff] %v2291_v32  ;;  %v2294_v38 = vadd.f32 %v2240_v0, %v368_v62  ;;  %v2271_v40 = vadd.f32 %v1909_v35, %v345_v31  ;;  %v3285_v41 = vpop.f32.mrb[88].mxu1  ;;  %v1911_v43 = vpop.f32.mrb[9].mxu0  ;;  %v363_v31 = vld [vmem:[#allocation2 + $0xf0] sm:$0xff]  ;;  %v366_v0 = vld [vmem:[#allocation2 + $0x108] sm:$0xff] }
 0x237   : > { %v2272_v3 = vadd.f32 %v1911_v43, %v346_v34  ;;  %v3286_v46 = vpop.f32.mrb[89].mxu1  ;;  %v1913_v21 = vpop.f32.mrb[10].mxu0 }
 0x238   : > { %2342 = vst [vmem:[#allocation2 + $0x118] sm:$0xff] %v2294_v38  ;;  %2319 = vst [vmem:[#allocation2 + $0x60] sm:$0xff] %v2271_v40  ;;  %v3287_v47 = vadd.f32 %v3286_v46, %v3285_v41  ;;  %v2274_v49 = vadd.f32 %v1913_v21, %v348_v37  ;;  %v3288_v6 = vpop.f32.mrb[90].mxu1  ;;  %v1915_v50 = vpop.f32.mrb[11].mxu0  ;;  %v367_v37 = vld [vmem:[#allocation2 + $0x110] sm:$0xff]  ;;  %v370_v46 = vld [vmem:[#allocation2 + $0x128] sm:$0xff] }
 0x239   : > { %2320 = vst [vmem:[#allocation2 + $0x68] sm:$0xff] %v2272_v3  ;;  %v2275_v33 = vadd.f32 %v1915_v50, %v349_v30  ;;  %v3289_v36 = vpop.f32.mrb[91].mxu1  ;;  %v369_v3 = vld [vmem:[#allocation2 + $0x120] sm:$0xff] }
 0x23a   : > { %v2245_v53 = vadd.f32 %v3287_v47, %v4435_v27  ;;  %2322 = vst [vmem:[#allocation2 + $0x78] sm:$0xff] %v2274_v49  ;;  %v3290_v55 = vadd.f32 %v3289_v36, %v3288_v6  ;;  %v372_v47 = vld [vmem:[#allocation2 + $0x138] sm:$0xff]  ;;  %v373_v50 = vld [vmem:[#allocation2 + $0x140] sm:$0xff] }
 0x23b   : > { %2323 = vst [vmem:[#allocation2 + $0x80] sm:$0xff] %v2275_v33 }
 0x23c   : > { %v2297_v58 = vadd.f32 %v2245_v53, %v371_v24  ;;  %v2248_v9 = vadd.f32 %v3290_v55, %v4437_v44  ;;  %v377_v44 = vld [vmem:[#allocation2 + $0x160] sm:$0xff] }
 0x23d   : > { %v1919_v42 = vpop.f32.mrb[12].mxu0 }
 0x23e   : > { %2345 = vst [vmem:[#allocation2 + $0x130] sm:$0xff] %v2297_v58  ;;  %v2300_v12 = vadd.f32 %v2248_v9, %v374_v57  ;;  %v2277_v61 = vadd.f32 %v1919_v42, %v351_v39  ;;  %v3291_v63 = vpop.f32.mrb[92].mxu1  ;;  %v1921_v1 = vpop.f32.mrb[13].mxu0  ;;  %v375_v57 = vld [vmem:[#allocation2 + $0x150] sm:$0xff]  ;;  %v376_v39 = vld [vmem:[#allocation2 + $0x158] sm:$0xff]  ;;  %v378_v9 = vld [vmem:[#allocation2 + $0x168] sm:$0xff] }
 0x23f   : > { %v2278_v2 = vadd.f32 %v1921_v1, %v352_v59  ;;  %v3292_v4 = vpop.f32.mrb[93].mxu1  ;;  %v1923_v27 = vpop.f32.mrb[14].mxu0 }
 0x240   : > { %2348 = vst [vmem:[#allocation2 + $0x148] sm:$0xff] %v2300_v12  ;;  %2325 = vst [vmem:[#allocation2 + $0x90] sm:$0xff] %v2277_v61  ;;  %v3293_v48 = vadd.f32 %v3292_v4, %v3291_v63  ;;  %v2280_v5 = vadd.f32 %v1923_v27, %v354_v60  ;;  %v3294_v7 = vpop.f32.mrb[94].mxu1  ;;  %v1925_v8 = vpop.f32.mrb[15].mxu0  ;;  %v379_v60 = vld [vmem:[#allocation2 + $0x170] sm:$0xff] }
 0x241   : > { %2326 = vst [vmem:[#allocation2 + $0x98] sm:$0xff] %v2278_v2  ;;  %v2281_v10 = vadd.f32 %v1925_v8, %v355_v45  ;;  %v3295_v11 = vpop.f32.mrb[95].mxu1  ;;  %v2409_v2 = vlaneseq (!%p3035_p12)  ;;  %v2407_v27 = vld [vmem:[#allocation8] sm:$0x7] (!%p3035_p12) }
 0x242   : > { %v2253_v13 = vadd.f32 %v3293_v48, %v4440_v51  ;;  %2328 = vst [vmem:[#allocation2 + $0xa8] sm:$0xff] %v2280_v5  ;;  %v3296_v14 = vadd.f32 %v3295_v11, %v3294_v7  ;;  %v2359_v48 = vld [vmem:[#allocation2] sm:$0xff] (!%p3035_p12)  ;;  %v2360_v5 = vld [vmem:[#allocation2 + $0x8] sm:$0xff] (!%p3035_p12)  ;;  %v2362_v11 = vld [vmem:[#allocation2 + $0x18] sm:$0xff] (!%p3035_p12) }
 0x243   : > { %2329 = vst [vmem:[#allocation2 + $0xb0] sm:$0xff] %v2281_v10  ;;  %v2410_v4 = vshrl.u32 (!%p3035_p12), %v2409_v2, 7  ;;  %v2361_v10 = vld [vmem:[#allocation2 + $0x10] sm:$0xff] (!%p3035_p12) }
 0x244   : > { %v2303_v17 = vadd.f32 %v2253_v13, %v377_v44  ;;  %v2256_v56 = vadd.f32 %v3296_v14, %v4443_v52  ;;  %v364_v52 = vld [vmem:[#allocation2 + $0xf8] sm:$0xff]  ;;  %v2363_v13 = vld [vmem:[#allocation2 + $0x20] sm:$0xff] (!%p3035_p12) }
 0x245   : > { %v1929_v19 = vpop.f32.mrb[16].mxu0  ;;  %v2411_v7 = vsub.s32 (!%p3035_p12), 0, %v2410_v4  ;;  %v2415_v8 = vsub.s32 (!%p3035_p12), 1, %v2410_v4  ;;  %v2419_v44 = vsub.s32 (!%p3035_p12), 2, %v2410_v4  ;;  %v2379_v4 = vld [vmem:[#allocation2 + $0xa0] sm:$0xff] (!%p3035_p12) }
 0x246   : > { %2351 = vst [vmem:[#allocation2 + $0x160] sm:$0xff] %v2303_v17  ;;  %v2306_v22 = vadd.f32 %v2256_v56, %v380_v54  ;;  %v2283_v23 = vadd.f32 %v1929_v19, %v357_v16  ;;  %v1931_v18 = vpop.f32.mrb[17].mxu0  ;;  %v2364_v17 = vld [vmem:[#allocation2 + $0x28] sm:$0xff] (!%p3035_p12)  ;;  %v2365_v56 = vld [vmem:[#allocation2 + $0x30] sm:$0xff] (!%p3035_p12) }
 0x247   : > { %v2284_v26 = vadd.f32 %v1931_v18, %v358_v15  ;;  %v1933_v28 = vpop.f32.mrb[18].mxu0  ;;  %v4462_v14 = vrot.slane (!%p3035_p12), %v2407_v27, %v2411_v7  ;;  %v4464_v54 = vrot.slane (!%p3035_p12), %v2407_v27, %v2415_v8  ;;  %v4466_v16 = vrot.slane (!%p3035_p12), %v2407_v27, %v2419_v44  ;;  %v2366_v15 = vld [vmem:[#allocation2 + $0x38] sm:$0xff] (!%p3035_p12) }
 0x248   : > { %2354 = vst [vmem:[#allocation2 + $0x178] sm:$0xff] %v2306_v22  ;;  %2331 = vst [vmem:[#allocation2 + $0xc0] sm:$0xff] %v2283_v23  ;;  %v2286_v51 = vadd.f32 %v1933_v28, %v360_v20  ;;  %v1935_v29 = vpop.f32.mrb[19].mxu0  ;;  %v2378_v2 = vld [vmem:[#allocation2 + $0x98] sm:$0xff] (!%p3035_p12) }
 0x249   : > { %2332 = vst [vmem:[#allocation2 + $0xc8] sm:$0xff] %v2284_v26  ;;  %v2287_v62 = vadd.f32 %v1935_v29, %v361_v25  ;;  %v2424_v19 = vadd.f32 (!%p3035_p12), %v4462_v14, %v2359_v48  ;;  %v2425_v20 = vadd.f32 (!%p3035_p12), %v4464_v54, %v2360_v5  ;;  %v2426_v22 = vadd.f32 (!%p3035_p12), %v4466_v16, %v2361_v10  ;;  %v2368_v29 = vld [vmem:[#allocation2 + $0x48] sm:$0xff] (!%p3035_p12) }
 0x24a   : > { %2334 = vst [vmem:[#allocation2 + $0xd8] sm:$0xff] %v2286_v51  ;;  %v2427_v23 = vadd.f32 (!%p3035_p12), %v4462_v14, %v2362_v11  ;;  %v2428_v18 = vadd.f32 (!%p3035_p12), %v4464_v54, %v2363_v13  ;;  %v2429_v25 = vadd.f32 (!%p3035_p12), %v4466_v16, %v2364_v17  ;;  %v2430_v26 = vadd.f32 (!%p3035_p12), %v4462_v14, %v2365_v56  ;;  %v2367_v51 = vld [vmem:[#allocation2 + $0x40] sm:$0xff] (!%p3035_p12)  ;;  %v2380_v8 = vld [vmem:[#allocation2 + $0xa8] sm:$0xff] (!%p3035_p12)  ;;  %v2381_v17 = vld [vmem:[#allocation2 + $0xb0] sm:$0xff] (!%p3035_p12) }
 0x24b   : > { %2335 = vst [vmem:[#allocation2 + $0xe0] sm:$0xff] %v2287_v62  ;;  %v2431_v28 = vadd.f32 (!%p3035_p12), %v4464_v54, %v2366_v15  ;;  %v2472_v62 = vmax.f32 (!%p3035_p12), %v2424_v19, 0.0  ;;  %v2382_v56 = vld [vmem:[#allocation2 + $0xb8] sm:$0xff] (!%p3035_p12) }
 0x24d   : > { %v1939_v32 = vpop.f32.mrb[20].mxu0 }
 0x24e   : > { %v2289_v34 = vadd.f32 %v1939_v32, %v363_v31  ;;  %v1941_v35 = vpop.f32.mrb[21].mxu0  ;;  %v2473_v31 = vmax.f32 (!%p3035_p12), %v2425_v20, 0.0  ;;  %v2475_v32 = vmax.f32 (!%p3035_p12), %v2427_v23, 0.0  ;;  %v2443_v20 = vadd.f32 (!%p3035_p12), %v4464_v54, %v2378_v2 }
 0x24f   : > { %v2290_v38 = vadd.f32 %v1941_v35, %v364_v52  ;;  %v1943_v40 = vpop.f32.mrb[22].mxu0  ;;  %v2474_v52 = vmax.f32 (!%p3035_p12), %v2426_v22, 0.0  ;;  %v2477_v35 = vmax.f32 (!%p3035_p12), %v2429_v25, 0.0  ;;  %v2444_v22 = vadd.f32 (!%p3035_p12), %v4466_v16, %v2379_v4  ;;  %v2383_v23 = vld [vmem:[#allocation2 + $0xc0] sm:$0xff] (!%p3035_p12) }
 0x250   : > { %2337 = vst [vmem:[#allocation2 + $0xf0] sm:$0xff] %v2289_v34  ;;  %v2292_v41 = vadd.f32 %v1943_v40, %v366_v0  ;;  %v1945_v43 = vpop.f32.mrb[23].mxu0  ;;  %v2369_v0 = vld [vmem:[#allocation2 + $0x50] sm:$0xff] (!%p3035_p12)  ;;  %v2476_v34 = vmax.f32 (!%p3035_p12), %v2428_v18, 0.0  ;;  %v2370_v40 = vld [vmem:[#allocation2 + $0x58] sm:$0xff] (!%p3035_p12)  ;;  %v2384_v18 = vld [vmem:[#allocation2 + $0xc8] sm:$0xff] (!%p3035_p12) }
 0x251   : > { %2338 = vst [vmem:[#allocation2 + $0xf8] sm:$0xff] %v2290_v38  ;;  %v2293_v30 = vadd.f32 %v1945_v43, %v367_v37  ;;  %v2478_v37 = vmax.f32 (!%p3035_p12), %v2430_v26, 0.0  ;;  %v2479_v38 = vmax.f32 (!%p3035_p12), %v2431_v28, 0.0  ;;  %v3073_v43 = vpack.c.bf16 (!%p3035_p12), %v2473_v31, %v2472_v62 }
 0x252   : > { %2340 = vst [vmem:[#allocation2 + $0x108] sm:$0xff] %v2292_v41  ;;  %v2371_v41 = vld [vmem:[#allocation2 + $0x60] sm:$0xff] (!%p3035_p12)  ;;  %v2492_v62 = vmax.f32 (!%p3035_p12), %v2444_v22, 0.0  ;;  %v2446_v31 = vadd.f32 (!%p3035_p12), %v4464_v54, %v2381_v17 }
 0x253   : > { %2341 = vst [vmem:[#allocation2 + $0x110] sm:$0xff] %v2293_v30  ;;  %v3074_v30 = vpack.c.bf16 (!%p3035_p12), %v2474_v52, %v2474_v52  ;;  %2680 = vst [vmem:[#allocation9] sm:$0xff] (!%p3035_p12), %v3073_v43  ;;  %v2447_v52 = vadd.f32 (!%p3035_p12), %v4466_v16, %v2382_v56 }
 0x255   : > { %v1949_v21 = vpop.f32.mrb[24].mxu0  ;;  %2681 = vst [vmem:[#allocation9 + $0x8] sm:$0xf] (!%p3035_p12), %v3074_v30  ;;  %v3086_v30 = vpack.c.bf16 (!%p3035_p12), %v2492_v62, %v2492_v62 }
 0x256   : > { %v2295_v49 = vadd.f32 %v1949_v21, %v369_v3  ;;  %v1951_v6 = vpop.f32.mrb[25].mxu0  ;;  %v2432_v3 = vadd.f32 (!%p3035_p12), %v4466_v16, %v2367_v51  ;;  %v2372_v21 = vld [vmem:[#allocation2 + $0x68] sm:$0xff] (!%p3035_p12)  ;;  %v2445_v51 = vadd.f32 (!%p3035_p12), %v4462_v14, %v2380_v8  ;;  %v2397_v8 = vld [vmem:[#allocation2 + $0x130] sm:$0xff] (!%p3035_p12) }
 0x257   : > { %v2296_v24 = vadd.f32 %v1951_v6, %v370_v46  ;;  %v1953_v33 = vpop.f32.mrb[26].mxu0  ;;  %v2433_v46 = vadd.f32 (!%p3035_p12), %v4462_v14, %v2368_v29  ;;  %v3075_v6 = vpack.c.bf16 (!%p3035_p12), %v2476_v34, %v2475_v32  ;;  %v2491_v29 = vmax.f32 (!%p3035_p12), %v2443_v20, 0.0  ;;  %v2385_v32 = vld [vmem:[#allocation2 + $0xd0] sm:$0xff] (!%p3035_p12)  ;;  %2693 = vst [vmem:[#allocation9 + $0x50] sm:$0xf] (!%p3035_p12), %v3086_v30 }
 0x258   : > { %2343 = vst [vmem:[#allocation2 + $0x120] sm:$0xff] %v2295_v49  ;;  %v2298_v36 = vadd.f32 %v1953_v33, %v372_v47  ;;  %v1955_v53 = vpop.f32.mrb[27].mxu0  ;;  %v2373_v47 = vld [vmem:[#allocation2 + $0x70] sm:$0xff] (!%p3035_p12)  ;;  %v2374_v49 = vld [vmem:[#allocation2 + $0x78] sm:$0xff] (!%p3035_p12)  ;;  %v2434_v33 = vadd.f32 (!%p3035_p12), %v4464_v54, %v2369_v0 }
 0x259   : > { %2344 = vst [vmem:[#allocation2 + $0x128] sm:$0xff] %v2296_v24  ;;  %v2299_v55 = vadd.f32 %v1955_v53, %v373_v50  ;;  %v3076_v50 = vpack.c.bf16 (!%p3035_p12), %v2477_v35, %v2477_v35  ;;  %v3077_v24 = vpack.c.bf16 (!%p3035_p12), %v2479_v38, %v2478_v37  ;;  %v2480_v53 = vmax.f32 (!%p3035_p12), %v2432_v3, 0.0  ;;  %2682 = vst [vmem:[#allocation9 + $0xc] sm:$0xff] (!%p3035_p12), %v3075_v6  ;;  %v2386_v0 = vld [vmem:[#allocation2 + $0xd8] sm:$0xff] (!%p3035_p12) }
 0x25a   : > { %2346 = vst [vmem:[#allocation2 + $0x138] sm:$0xff] %v2298_v36  ;;  %v2375_v36 = vld [vmem:[#allocation2 + $0x80] sm:$0xff] (!%p3035_p12)  ;;  %v2493_v35 = vmax.f32 (!%p3035_p12), %v2445_v51, 0.0  ;;  %v2448_v37 = vadd.f32 (!%p3035_p12), %v4462_v14, %v2383_v23  ;;  %v2449_v38 = vadd.f32 (!%p3035_p12), %v4464_v54, %v2384_v18  ;;  %v2494_v3 = vmax.f32 (!%p3035_p12), %v2446_v31, 0.0  ;;  %v2400_v23 = vld [vmem:[#allocation2 + $0x148] sm:$0xff] (!%p3035_p12) }
 0x25b   : > { %2347 = vst [vmem:[#allocation2 + $0x140] sm:$0xff] %v2299_v55  ;;  %v2481_v55 = vmax.f32 (!%p3035_p12), %v2433_v46, 0.0  ;;  %2683 = vst [vmem:[#allocation9 + $0x14] sm:$0xf] (!%p3035_p12), %v3076_v50  ;;  %v2495_v46 = vmax.f32 (!%p3035_p12), %v2447_v52, 0.0  ;;  %v2450_v6 = vadd.f32 (!%p3035_p12), %v4466_v16, %v2385_v32  ;;  %v2451_v50 = vadd.f32 (!%p3035_p12), %v4462_v14, %v2386_v0 }
 0x25c   : > { %2684 = vst [vmem:[#allocation9 + $0x18] sm:$0xff] (!%p3035_p12), %v3077_v24  ;;  %v2390_v24 = vld [vmem:[#allocation2 + $0xf8] sm:$0xff] (!%p3035_p12) }
 0x25d   : > { %v1959_v58 = vpop.f32.mrb[28].mxu0  ;;  %2358 = sbr.rel (%p3035_p12) target bundleno = 634 (0x27a), region = 52 }
 0x25e   : > { %v2301_v59 = vadd.f32 %v1959_v58, %v375_v57  ;;  %v1961_v42 = vpop.f32.mrb[29].mxu0  ;;  %v2435_v57 = vadd.f32 (!%p3035_p12), %v4466_v16, %v2370_v40  ;;  %v2482_v58 = vmax.f32 (!%p3035_p12), %v2434_v33, 0.0  ;;  %v2387_v40 = vld [vmem:[#allocation2 + $0xe0] sm:$0xff] (!%p3035_p12) }
 0x25f   : > { %v2302_v12 = vadd.f32 %v1961_v42, %v376_v39  ;;  %v1963_v61 = vpop.f32.mrb[30].mxu0  ;;  %v2436_v39 = vadd.f32 (!%p3035_p12), %v4462_v14, %v2371_v41  ;;  %v2439_v42 = vadd.f32 (!%p3035_p12), %v4462_v14, %v2374_v49  ;;  %v2388_v41 = vld [vmem:[#allocation2 + $0xe8] sm:$0xff] (!%p3035_p12)  ;;  %v2497_v49 = vmax.f32 (!%p3035_p12), %v2449_v38, 0.0  ;;  %v2391_v33 = vld [vmem:[#allocation2 + $0x100] sm:$0xff] (!%p3035_p12) }
 0x260   : > { %2349 = vst [vmem:[#allocation2 + $0x150] sm:$0xff] %v2301_v59  ;;  %v2304_v63 = vadd.f32 %v1963_v61, %v378_v9  ;;  %v1965_v1 = vpop.f32.mrb[31].mxu0  ;;  %v2437_v9 = vadd.f32 (!%p3035_p12), %v4464_v54, %v2372_v21  ;;  %v2438_v59 = vadd.f32 (!%p3035_p12), %v4466_v16, %v2373_v47  ;;  %v3078_v61 = vpack.c.bf16 (!%p3035_p12), %v2480_v53, %v2480_v53  ;;  %v2389_v21 = vld [vmem:[#allocation2 + $0xf0] sm:$0xff] (!%p3035_p12)  ;;  %v2395_v2 = vld [vmem:[#allocation2 + $0x120] sm:$0xff] (!%p3035_p12) }
 0x261   : > { %2350 = vst [vmem:[#allocation2 + $0x158] sm:$0xff] %v2302_v12  ;;  %v2305_v45 = vadd.f32 %v1965_v1, %v379_v60  ;;  %v2376_v60 = vld [vmem:[#allocation2 + $0x88] sm:$0xff] (!%p3035_p12)  ;;  %v2377_v12 = vld [vmem:[#allocation2 + $0x90] sm:$0xff] (!%p3035_p12)  ;;  %v2484_v1 = vmax.f32 (!%p3035_p12), %v2436_v39, 0.0  ;;  %v3079_v27 = vpack.c.bf16 (!%p3035_p12), %v2482_v58, %v2481_v55  ;;  %v2487_v7 = vmax.f32 (!%p3035_p12), %v2439_v42, 0.0  ;;  %v2398_v17 = vld [vmem:[#allocation2 + $0x138] sm:$0xff] (!%p3035_p12) }
 0x262   : > { %2352 = vst [vmem:[#allocation2 + $0x168] sm:$0xff] %v2304_v63  ;;  %v2483_v63 = vmax.f32 (!%p3035_p12), %v2435_v57, 0.0  ;;  %v2485_v48 = vmax.f32 (!%p3035_p12), %v2437_v9, 0.0  ;;  %v2486_v5 = vmax.f32 (!%p3035_p12), %v2438_v59, 0.0  ;;  %2685 = vst [vmem:[#allocation9 + $0x20] sm:$0xf] (!%p3035_p12), %v3078_v61  ;;  %v2441_v11 = vadd.f32 (!%p3035_p12), %v4466_v16, %v2376_v60 }
 0x263   : > { %2353 = vst [vmem:[#allocation2 + $0x170] sm:$0xff] %v2305_v45  ;;  %v2440_v45 = vadd.f32 (!%p3035_p12), %v4464_v54, %v2375_v36  ;;  %v2442_v13 = vadd.f32 (!%p3035_p12), %v4462_v14, %v2377_v12  ;;  %2686 = vst [vmem:[#allocation9 + $0x24] sm:$0xff] (!%p3035_p12), %v3079_v27  ;;  %v2496_v47 = vmax.f32 (!%p3035_p12), %v2448_v37, 0.0  ;;  %v3087_v36 = vpack.c.bf16 (!%p3035_p12), %v2494_v3, %v2493_v35  ;;  %v2392_v39 = vld [vmem:[#allocation2 + $0x108] sm:$0xff] (!%p3035_p12)  ;;  %v2393_v58 = vld [vmem:[#allocation2 + $0x110] sm:$0xff] (!%p3035_p12) }
 0x264   : > { %v3080_v44 = vpack.c.bf16 %v2483_v63, %v2483_v63  ;;  %v3081_v15 = vpack.c.bf16 %v2485_v48, %v2484_v1  ;;  %v3082_v19 = vpack.c.bf16 %v2486_v5, %v2486_v5  ;;  %v2489_v26 = vmax.f32 %v2441_v11, 0.0  ;;  %v2399_v22 = vld [vmem:[#allocation2 + $0x140] sm:$0xff] }
 0x265   : > { %v2488_v10 = vmax.f32 %v2440_v45, 0.0  ;;  %v2490_v28 = vmax.f32 %v2442_v13, 0.0  ;;  %v3088_v53 = vpack.c.bf16 %v2495_v46, %v2495_v46  ;;  %v2452_v55 = vadd.f32 %v4464_v54, %v2387_v40  ;;  %2694 = vst [vmem:[#allocation9 + $0x54] sm:$0xff] %v3087_v36  ;;  %v2394_v45 = vld [vmem:[#allocation2 + $0x118] sm:$0xff]  ;;  %v2403_v38 = vld [vmem:[#allocation2 + $0x160] sm:$0xff] }
 0x266   : > { %2687 = vst [vmem:[#allocation9 + $0x2c] sm:$0xf] %v3080_v44  ;;  %2688 = vst [vmem:[#allocation9 + $0x30] sm:$0xff] %v3081_v15  ;;  %v3084_v34 = vpack.c.bf16 %v2489_v26, %v2489_v26  ;;  %v2453_v57 = vadd.f32 %v4466_v16, %v2388_v41  ;;  %v3089_v9 = vpack.c.bf16 %v2497_v49, %v2496_v47  ;;  %v2498_v59 = vmax.f32 %v2450_v6, 0.0 }
 0x267   : > { %v3083_v25 = vpack.c.bf16 %v2488_v10, %v2487_v7  ;;  %2689 = vst [vmem:[#allocation9 + $0x38] sm:$0xf] %v3082_v19  ;;  %v3085_v43 = vpack.c.bf16 %v2491_v29, %v2490_v28  ;;  %v2499_v42 = vmax.f32 %v2451_v50, 0.0  ;;  %v2454_v60 = vadd.f32 %v4462_v14, %v2389_v21  ;;  %2695 = vst [vmem:[#allocation9 + $0x5c] sm:$0xf] %v3088_v53  ;;  %v2396_v7 = vld [vmem:[#allocation2 + $0x128] sm:$0xff] }
 0x268   : > { %2691 = vst [vmem:[#allocation9 + $0x44] sm:$0xf] %v3084_v34  ;;  %v2500_v12 = vmax.f32 %v2452_v55, 0.0  ;;  %v2501_v61 = vmax.f32 %v2453_v57, 0.0  ;;  %v2455_v63 = vadd.f32 %v4464_v54, %v2390_v24  ;;  %v2456_v1 = vadd.f32 %v4466_v16, %v2391_v33  ;;  %2696 = vst [vmem:[#allocation9 + $0x60] sm:$0xff] %v3089_v9  ;;  %v2401_v51 = vld [vmem:[#allocation2 + $0x150] sm:$0xff] }
 0x269   : > { %2690 = vst [vmem:[#allocation9 + $0x3c] sm:$0xff] %v3083_v25  ;;  %2692 = vst [vmem:[#allocation9 + $0x48] sm:$0xff] %v3085_v43  ;;  %v3090_v4 = vpack.c.bf16 %v2498_v59, %v2498_v59  ;;  %v2502_v27 = vmax.f32 %v2454_v60, 0.0  ;;  %v2457_v48 = vadd.f32 %v4462_v14, %v2392_v39  ;;  %v2458_v5 = vadd.f32 %v4464_v54, %v2393_v58  ;;  %v2402_v29 = vld [vmem:[#allocation2 + $0x158] sm:$0xff]  ;;  %v2404_v40 = vld [vmem:[#allocation2 + $0x168] sm:$0xff] }
 0x26a   : > { %v3091_v44 = vpack.c.bf16 %v2500_v12, %v2499_v42  ;;  %v3092_v10 = vpack.c.bf16 %v2501_v61, %v2501_v61  ;;  %v2503_v11 = vmax.f32 %v2455_v63, 0.0  ;;  %v2504_v13 = vmax.f32 %v2456_v1, 0.0  ;;  %v2405_v46 = vld [vmem:[#allocation2 + $0x170] sm:$0xff]  ;;  %v2406_v21 = vld [vmem:[#allocation2 + $0x178] sm:$0xff] }
 0x26b   : > { %2697 = vst [vmem:[#allocation9 + $0x68] sm:$0xf] %v3090_v4  ;;  %v2505_v56 = vmax.f32 %v2457_v48, 0.0  ;;  %v2506_v15 = vmax.f32 %v2458_v5, 0.0  ;;  %v2459_v19 = vadd.f32 %v4466_v16, %v2394_v45  ;;  %v2460_v20 = vadd.f32 %v4462_v14, %v2395_v2 }
 0x26c   : > { %2698 = vst [vmem:[#allocation9 + $0x6c] sm:$0xff] %v3091_v44  ;;  %2699 = vst [vmem:[#allocation9 + $0x74] sm:$0xf] %v3092_v10  ;;  %v3093_v18 = vpack.c.bf16 %v2503_v11, %v2502_v27  ;;  %v3094_v25 = vpack.c.bf16 %v2504_v13, %v2504_v13  ;;  %v2461_v26 = vadd.f32 %v4464_v54, %v2396_v7 }
 0x26d   : > { %v2462_v28 = vadd.f32 %v4466_v16, %v2397_v8  ;;  %v3095_v62 = vpack.c.bf16 %v2506_v15, %v2505_v56  ;;  %v2507_v31 = vmax.f32 %v2459_v19, 0.0  ;;  %v2508_v52 = vmax.f32 %v2460_v20, 0.0 }
 0x26e   : > { %v2463_v32 = vadd.f32 %v4462_v14, %v2398_v17  ;;  %2700 = vst [vmem:[#allocation9 + $0x78] sm:$0xff] %v3093_v18  ;;  %2701 = vst [vmem:[#allocation9 + $0x80] sm:$0xf] %v3094_v25  ;;  %v2509_v0 = vmax.f32 %v2461_v26, 0.0  ;;  %v2464_v35 = vadd.f32 %v4464_v54, %v2399_v22  ;;  %v2465_v37 = vadd.f32 %v4466_v16, %v2400_v23 }
 0x26f   : > { %v2510_v34 = vmax.f32 %v2462_v28, 0.0  ;;  %2702 = vst [vmem:[#allocation9 + $0x84] sm:$0xff] %v3095_v62  ;;  %v3096_v41 = vpack.c.bf16 %v2507_v31, %v2507_v31  ;;  %v2466_v30 = vadd.f32 %v4462_v14, %v2401_v51  ;;  %v2467_v3 = vadd.f32 %v4464_v54, %v2402_v29 }
 0x270   : > { %v2511_v43 = vmax.f32 %v2463_v32, 0.0  ;;  %v3097_v47 = vpack.c.bf16 %v2509_v0, %v2508_v52  ;;  %v2512_v6 = vmax.f32 %v2464_v35, 0.0  ;;  %v2513_v50 = vmax.f32 %v2465_v37, 0.0 }
 0x271   : > { %v3098_v49 = vpack.c.bf16 %v2510_v34, %v2510_v34  ;;  %2703 = vst [vmem:[#allocation9 + $0x8c] sm:$0xf] %v3096_v41  ;;  %v2514_v24 = vmax.f32 %v2466_v30, 0.0  ;;  %v2515_v33 = vmax.f32 %v2467_v3, 0.0  ;;  %v2468_v36 = vadd.f32 %v4466_v16, %v2403_v38 }
 0x272   : > { %v2469_v53 = vadd.f32 %v4462_v14, %v2404_v40  ;;  %2704 = vst [vmem:[#allocation9 + $0x90] sm:$0xff] %v3097_v47  ;;  %v3099_v55 = vpack.c.bf16 %v2512_v6, %v2511_v43  ;;  %v3100_v57 = vpack.c.bf16 %v2513_v50, %v2513_v50  ;;  %v2470_v39 = vadd.f32 %v4464_v54, %v2405_v46 }
 0x273   : > { %2705 = vst [vmem:[#allocation9 + $0x98] sm:$0xf] %v3098_v49  ;;  %v2471_v58 = vadd.f32 %v4466_v16, %v2406_v21  ;;  %v3101_v9 = vpack.c.bf16 %v2515_v33, %v2514_v24  ;;  %v2516_v59 = vmax.f32 %v2468_v36, 0.0 }
 0x274   : > { %v2517_v42 = vmax.f32 %v2469_v53, 0.0  ;;  %2706 = vst [vmem:[#allocation9 + $0x9c] sm:$0xff] %v3099_v55  ;;  %2707 = vst [vmem:[#allocation9 + $0xa4] sm:$0xf] %v3100_v57  ;;  %v2518_v60 = vmax.f32 %v2470_v39, 0.0 }
 0x275   : > { %v2519_v12 = vmax.f32 %v2471_v58, 0.0  ;;  %2708 = vst [vmem:[#allocation9 + $0xa8] sm:$0xff] %v3101_v9  ;;  %v3102_v61 = vpack.c.bf16 %v2516_v59, %v2516_v59 }
 0x276   : > { %v3103_v63 = vpack.c.bf16 %v2518_v60, %v2517_v42 }
 0x277   : > { %v3104_v1 = vpack.c.bf16 %v2519_v12, %v2519_v12  ;;  %2709 = vst [vmem:[#allocation9 + $0xb0] sm:$0xf] %v3102_v61 }
 0x278   : > { %2710 = vst [vmem:[#allocation9 + $0xb4] sm:$0xff] %v3103_v63 }
 0x279   : > { %2711 = vst [vmem:[#allocation9 + $0xbc] sm:$0xf] %v3104_v1 }
 0x27a PF: > { %p3393_p5 = scmp.eq.s32.totalorder %s3956_s18, 2  ;;  %s3904_s15 = smov [#allocation9]  }
 0x27b   : > { %s2724_s23 = sshll.u32 %s3904_s15, 4  ;;  %s2725_s23 = int_to_ptr.vmem [resolvable:$true] %s2724_s23 }
 0x27c   : > { %s3805_s25 = scalar_lea.vmem %s2725_s23, 3072  ;;  %p3812_p0 = scmp.lt.s32.totalorder %s2725_s23, %s2725_s23 }
 0x27d   : > { %p3806_p13 = scmp.ne.s32.totalorder %s2725_s23, %s3805_s25  ;;  %p3813_p4 = scmp.lt.s32.totalorder %s3805_s25, %s3805_s25 }
 0x27f   : > { %p3807_p1 = pnand %p3806_p13, %p3393_p5  ;;  %p3814_p3 = por %p3813_p4, %p3812_p0 }
 0x281   : > { %p3808_p2 = pneg %p3807_p1 }
 0x283   : > { %p3815_p7 = pnand %p3814_p3, %p3808_p2 }
 0x285   : > { %3818 = shalt.err (!%p3815_p7)
}
 0x286   : > { %s3819_s8 = scalar_lea.hbm %s4560_s3, 3072 }
 0x287   : > { %p3820_p10 = scmp.ne.s32.totalorder %s4560_s3, %s3819_s8  ;;  %p3825_p9 = scmp.lt.u32.totalorder %s3819_s8, %s4560_s3 }
 0x289   : > { %p3821_p6 = pnand %p3820_p10, %p3393_p5 }
 0x28b   : > { %p3822_p8 = pneg %p3821_p6 }
 0x28d   : > { %p3827_p11 = pnand %p3825_p9, %p3822_p8 }
 0x28f   : > { %3830 = shalt.err (!%p3827_p11)
}
 0x290   : > { %s3905_s10 = smov 192   ;;  %s3906_s0 = smov 12  }
 0x291   : > { %3375 = dma.vmem_to_hbm [thread:$0]  (%p3393_p5), %s2725_s23, 3072, %s4560_s3, [#allocation5], %s3905_s10, %s3905_s10, %s3906_s0  }
 0x292   : > { %3868 = dma.done.wait (%p3393_p5), [#allocation5], 3072  }
 0x293   : > { %3870 = vsyncadd (%p3393_p5), [#allocation5], 4294964224 }
 0x294 PF: > { %s20_s17 = sadd.s32 1, %s3893_s17   ;;  %s4577_s12 = smov %s3877_s13 }
 0x295   : > { %p17_p12 = scmp.ge.s32.totalorder %s20_s17, 5   ;;  %s4578_s13 = smov %s3881_s14 }
 0x296   : > { %s4579_s14 = smov %s3982_s24  ;;  %s4580_s15 = smov %s3889_s16 }
 0x297   : > { %s4581_s16 = smov %s4583_s19  ;;  %19 = sbr.rel (!%p17_p12) target bundleno = 9 (0x9), region = 96 }
 0x29e   :  { %2740 = vsyncpa [#allocation4], 1 }
 0x29f   :  { %2742 = vsyncpa [#allocation4 + $0x1], 1 }
 0x2a0   :  { %2743 = vsyncpa [#allocation7], 1 }
 0x2a1   :  { %2745 = vsyncpa [#allocation7 + $0x1], 1 }
 0x2a2   :  { %2746 = vsyncpa [#allocation5], 1 }
 0x2a3   :  { %2748 = vsyncpa [#allocation5 + $0x1], 1 }

// kernel: inception_resnet_c_forward.5
= control target key start
LH: loop header
LB: loop body
LE: loop exit
PB: predicated region body
PF: predicated region fallthrough
CT: control target
= control target key end

     0   :  { %8 = vsyncpa [#allocation4], 0  ;;  %s2297_s0 = inlined_call_operand.hbm [shape: bf16[128,640], index: 0, kind: input, shape index: {}]   ;;  %s2298_s1 = inlined_call_operand.hbm [shape: bf16[640,256], index: 1, kind: input, shape index: {}]   ;;  %s2299_s2 = inlined_call_operand.hbm [shape: f32[1,256], index: 2, kind: input, shape index: {}]   ;;  %s2300_s3 = inlined_call_operand.hbm [shape: bf16[128,256], index: 3, kind: output, shape index: {}]  }
   0x1   :  { %9 = vsyncpa [#allocation7], 0 }
   0x2   :  { %10 = vsyncpa [#allocation5], 0  ;;  %s2030_s12 = smov [#allocation6]   ;;  %s1936_s16 = scalar_lea.hbm %s2298_s1, 10240 }
   0x3   :  { %s28_s13 = sshll.u32 %s2030_s12, 4  ;;  %p1937_p0 = scmp.ne.s32.totalorder %s2298_s1, %s1936_s16  ;;  %s29_s13 = int_to_ptr.vmem [resolvable:$true] %s28_s13 }
   0x4   :  { %p1940_p1 = scmp.lt.u32.totalorder %s1936_s16, %s2298_s1 }
   0x6   :  { %p1942_p2 = pnand %p1940_p1, %p1937_p0 }
   0x8   :  { %1945 = shalt.err (!%p1942_p2)
}
   0x9   :  { %s1946_s21 = scalar_lea.vmem %s29_s13, 10240  ;;  %p1951_p4 = scmp.lt.s32.totalorder %s29_s13, %s29_s13 }
   0xa   :  { %p1947_p3 = scmp.ne.s32.totalorder %s29_s13, %s1946_s21  ;;  %p1952_p5 = scmp.lt.s32.totalorder %s1946_s21, %s1946_s21 }
   0xc   :  { %p1953_p6 = por %p1952_p5, %p1951_p4 }
   0xe   :  { %p1954_p7 = pnand %p1953_p6, %p1947_p3 }
  0x10   :  { %1957 = shalt.err (!%p1954_p7)
}
  0x11   :  { %s2031_s22 = smov 128   ;;  %s2032_s23 = smov 8  }
  0x12   :  { %34 = dma.hbm_to_vmem [thread:$0]  %s2298_s1, 10240, %s29_s13, [#allocation7], %s2031_s22, %s2031_s22, %s2032_s23  }
  0x13   :  { %s2033_s26 = smov [#allocation3]   ;;  %s1958_s30 = scalar_lea.hbm %s2297_s0, 5120 }
  0x14   :  { %s16_s27 = sshll.u32 %s2033_s26, 4  ;;  %p1959_p8 = scmp.ne.s32.totalorder %s2297_s0, %s1958_s30  ;;  %s17_s27 = int_to_ptr.vmem [resolvable:$true] %s16_s27 }
  0x15   :  { %p1962_p9 = scmp.lt.u32.totalorder %s1958_s30, %s2297_s0 }
  0x17   :  { %p1964_p10 = pnand %p1962_p9, %p1959_p8 }
  0x19   :  { %1967 = shalt.err (!%p1964_p10)
}
  0x1a   :  { %s1968_s8 = scalar_lea.vmem %s17_s27, 5120  ;;  %p1973_p12 = scmp.lt.s32.totalorder %s17_s27, %s17_s27 }
  0x1b   :  { %p1969_p11 = scmp.ne.s32.totalorder %s17_s27, %s1968_s8  ;;  %p1974_p13 = scmp.lt.s32.totalorder %s1968_s8, %s1968_s8 }
  0x1d   :  { %p1975_p0 = por %p1974_p13, %p1973_p12 }
  0x1f   :  { %p1976_p1 = pnand %p1975_p0, %p1969_p11 }
  0x21   :  { %1979 = shalt.err (!%p1976_p1)
}
  0x22   :  { %s2034_s1 = smov 320   ;;  %s2035_s9 = smov 20  }
  0x23   :  { %22 = dma.hbm_to_vmem [thread:$0]  %s2297_s0, 5120, %s17_s27, [#allocation4], %s2034_s1, %s2034_s1, %s2035_s9  }
  0x24   :  { %s2036_s12 = smov [#allocation8]   ;;  %s1980_s16 = scalar_lea.hbm %s2299_s2, 32 }
  0x25   :  { %s41_s13 = sshll.u32 %s2036_s12, 4  ;;  %p1981_p2 = scmp.ne.s32.totalorder %s2299_s2, %s1980_s16  ;;  %s42_s13 = int_to_ptr.vmem [resolvable:$true] %s41_s13 }
  0x26   :  { %p1984_p3 = scmp.lt.u32.totalorder %s1980_s16, %s2299_s2 }
  0x28   :  { %p1986_p4 = pnand %p1984_p3, %p1981_p2 }
  0x2a   :  { %1989 = shalt.err (!%p1986_p4)
}
  0x2b   :  { %s1990_s21 = scalar_lea.vmem %s42_s13, 32  ;;  %p1995_p6 = scmp.lt.s32.totalorder %s42_s13, %s42_s13 }
  0x2c   :  { %p1991_p5 = scmp.ne.s32.totalorder %s42_s13, %s1990_s21  ;;  %p1996_p7 = scmp.lt.s32.totalorder %s1990_s21, %s1990_s21 }
  0x2e   :  { %p1997_p8 = por %p1996_p7, %p1995_p6 }
  0x30   :  { %p1998_p9 = pnand %p1997_p8, %p1991_p5 }
  0x32   :  { %2001 = shalt.err (!%p1998_p9)
}
  0x33   :  { %44 = dma.hbm_to_vmem [thread:$0]  %s2299_s2, 32, %s42_s13, [#allocation7]  }
  0x34   :  { %2024 = dma.done.wait [#allocation4], 5120  }
  0x35   :  { %2025 = vsyncadd [#allocation4], 4294962176 }
  0x36   :  { %2026 = dma.done.wait [#allocation7], 10272  }
  0x37   :  { %2027 = vsyncadd [#allocation7], 4294957024  ;;  %v1760_v0 = vld [vmem:[#allocation6 + $0x4] ss:$8 sps:$4 sm:$0xff]   ;;  %v1764_v2 = vld [vmem:[#allocation6] ss:$8 sps:$4 sm:$0xff]  }
  0x38   :  { %v2098_v1 = vld [vmem:[#allocation6 + $0x104] ss:$8 sps:$4 sm:$0xff]   ;;  %859 = vmatprep.subr.bf16.mxu1 %v1760_v0  ;;  %v2100_v3 = vld [vmem:[#allocation6 + $0x100] ss:$8 sps:$4 sm:$0xff]   ;;  %v1766_v4 = vld [vmem:[#allocation6 + $0x14] ss:$8 sps:$4 sm:$0xff]  }
  0x39   :  { %972 = vmatprep.subr.bf16.mxu0 %v2098_v1  ;;  %860 = vmatpush1.bf16.msra.mxu1 %v1764_v2  ;;  %v2104_v5 = vld [vmem:[#allocation6 + $0x114] ss:$8 sps:$4 sm:$0xff]   ;;  %v1770_v6 = vld [vmem:[#allocation6 + $0x10] ss:$8 sps:$4 sm:$0xff]   ;;  %v1772_v8 = vld [vmem:[#allocation6 + $0x24] ss:$8 sps:$4 sm:$0xff]  }
  0x3a   :  { %973 = vmatpush1.bf16.msra.mxu0 %v2100_v3  ;;  %861 = vmatprep.subr.bf16.mxu1 %v1766_v4  ;;  %v2106_v7 = vld [vmem:[#allocation6 + $0x110] ss:$8 sps:$4 sm:$0xff]   ;;  %v2109_v9 = vld [vmem:[#allocation6 + $0x124] ss:$8 sps:$4 sm:$0xff]   ;;  %v1776_v10 = vld [vmem:[#allocation6 + $0x20] ss:$8 sps:$4 sm:$0xff]  }
  0x3b   :  { %974 = vmatprep.subr.bf16.mxu0 %v2104_v5  ;;  %v2111_v11 = vld [vmem:[#allocation6 + $0x120] ss:$8 sps:$4 sm:$0xff]   ;;  %v1778_v12 = vld [vmem:[#allocation6 + $0x34] ss:$8 sps:$4 sm:$0xff]   ;;  %v1782_v14 = vld [vmem:[#allocation6 + $0x30] ss:$8 sps:$4 sm:$0xff]  }
  0x3c   :  { %v2115_v13 = vld [vmem:[#allocation6 + $0x134] ss:$8 sps:$4 sm:$0xff]   ;;  %v2118_v15 = vld [vmem:[#allocation6 + $0x130] ss:$8 sps:$4 sm:$0xff]   ;;  %v1784_v16 = vld [vmem:[#allocation6 + $0x44] ss:$8 sps:$4 sm:$0xff]  }
  0x3d   :  { %862 = vmatpush1.bf16.msra.mxu1 %v1770_v6  ;;  %v2121_v17 = vld [vmem:[#allocation6 + $0x144] ss:$8 sps:$4 sm:$0xff]   ;;  %v1788_v18 = vld [vmem:[#allocation6 + $0x40] ss:$8 sps:$4 sm:$0xff]   ;;  %v1790_v20 = vld [vmem:[#allocation6 + $0x54] ss:$8 sps:$4 sm:$0xff]  }
  0x3e   :  { %975 = vmatpush1.bf16.msra.mxu0 %v2106_v7  ;;  %863 = vmatprep.subr.bf16.mxu1 %v1772_v8  ;;  %v2123_v19 = vld [vmem:[#allocation6 + $0x140] ss:$8 sps:$4 sm:$0xff]   ;;  %v2127_v21 = vld [vmem:[#allocation6 + $0x154] ss:$8 sps:$4 sm:$0xff]   ;;  %v1794_v22 = vld [vmem:[#allocation6 + $0x50] ss:$8 sps:$4 sm:$0xff]  }
  0x3f   :  { %976 = vmatprep.subr.bf16.mxu0 %v2109_v9  ;;  %v2130_v23 = vld [vmem:[#allocation6 + $0x150] ss:$8 sps:$4 sm:$0xff]   ;;  %v1796_v24 = vld [vmem:[#allocation6 + $0x64] ss:$8 sps:$4 sm:$0xff]   ;;  %v1800_v26 = vld [vmem:[#allocation6 + $0x60] ss:$8 sps:$4 sm:$0xff]  }
  0x40   :  { %v2133_v25 = vld [vmem:[#allocation6 + $0x164] ss:$8 sps:$4 sm:$0xff]   ;;  %v2135_v27 = vld [vmem:[#allocation6 + $0x160] ss:$8 sps:$4 sm:$0xff]   ;;  %v1802_v28 = vld [vmem:[#allocation6 + $0x74] ss:$8 sps:$4 sm:$0xff]  }
  0x41   :  { %864 = vmatpush1.bf16.msra.mxu1 %v1776_v10  ;;  %v2139_v29 = vld [vmem:[#allocation6 + $0x174] ss:$8 sps:$4 sm:$0xff]   ;;  %v1806_v30 = vld [vmem:[#allocation6 + $0x70] ss:$8 sps:$4 sm:$0xff]   ;;  %v1808_v32 = vld [vmem:[#allocation6 + $0x84] ss:$8 sps:$4 sm:$0xff]  }
  0x42   :  { %977 = vmatpush1.bf16.msra.mxu0 %v2111_v11  ;;  %865 = vmatprep.subr.bf16.mxu1 %v1778_v12  ;;  %v2142_v31 = vld [vmem:[#allocation6 + $0x170] ss:$8 sps:$4 sm:$0xff]   ;;  %v2145_v33 = vld [vmem:[#allocation6 + $0x184] ss:$8 sps:$4 sm:$0xff]   ;;  %v1812_v34 = vld [vmem:[#allocation6 + $0x80] ss:$8 sps:$4 sm:$0xff]  }
  0x43   :  { %978 = vmatprep.subr.bf16.mxu0 %v2115_v13  ;;  %v2147_v35 = vld [vmem:[#allocation6 + $0x180] ss:$8 sps:$4 sm:$0xff]   ;;  %v1814_v36 = vld [vmem:[#allocation6 + $0x94] ss:$8 sps:$4 sm:$0xff]   ;;  %v1818_v38 = vld [vmem:[#allocation6 + $0x90] ss:$8 sps:$4 sm:$0xff]  }
  0x44   :  { %v2151_v37 = vld [vmem:[#allocation6 + $0x194] ss:$8 sps:$4 sm:$0xff]   ;;  %v2154_v39 = vld [vmem:[#allocation6 + $0x190] ss:$8 sps:$4 sm:$0xff]   ;;  %v1820_v40 = vld [vmem:[#allocation6 + $0xa4] ss:$8 sps:$4 sm:$0xff]  }
  0x45   :  { %866 = vmatpush1.bf16.msra.mxu1 %v1782_v14  ;;  %v2157_v41 = vld [vmem:[#allocation6 + $0x1a4] ss:$8 sps:$4 sm:$0xff]   ;;  %v1824_v42 = vld [vmem:[#allocation6 + $0xa0] ss:$8 sps:$4 sm:$0xff]   ;;  %v1826_v44 = vld [vmem:[#allocation6 + $0xb4] ss:$8 sps:$4 sm:$0xff]  }
  0x46   :  { %979 = vmatpush1.bf16.msra.mxu0 %v2118_v15  ;;  %867 = vmatprep.subr.bf16.mxu1 %v1784_v16  ;;  %v2159_v43 = vld [vmem:[#allocation6 + $0x1a0] ss:$8 sps:$4 sm:$0xff]   ;;  %v2163_v45 = vld [vmem:[#allocation6 + $0x1b4] ss:$8 sps:$4 sm:$0xff]   ;;  %v1830_v46 = vld [vmem:[#allocation6 + $0xb0] ss:$8 sps:$4 sm:$0xff]  }
  0x47   :  { %980 = vmatprep.subr.bf16.mxu0 %v2121_v17  ;;  %v2165_v47 = vld [vmem:[#allocation6 + $0x1b0] ss:$8 sps:$4 sm:$0xff]   ;;  %v1832_v48 = vld [vmem:[#allocation6 + $0xc4] ss:$8 sps:$4 sm:$0xff]   ;;  %v1836_v52 = vld [vmem:[#allocation6 + $0xc0] ss:$8 sps:$4 sm:$0xff]  }
  0x48   :  { %v1858_v49 = vld [vmem:[#allocation3 + $0x4] ss:$20 sps:$4 sm:$0xff]   ;;  %v1861_v51 = vld [vmem:[#allocation3 + $0xc] ss:$20 sps:$4 sm:$0xff]   ;;  %v1838_v54 = vld [vmem:[#allocation6 + $0xd4] ss:$8 sps:$4 sm:$0xff]  }
  0x49   :  { %868 = vmatpush1.bf16.msra.mxu1 %v1788_v18  ;;  %v2168_v50 = vld [vmem:[#allocation6 + $0x1c4] ss:$8 sps:$4 sm:$0xff]   ;;  %891 = vmatprep.mubr.bf16.mxu1 %v1858_v49  ;;  %v2171_v53 = vld [vmem:[#allocation6 + $0x1c0] ss:$8 sps:$4 sm:$0xff]   ;;  %v2175_v55 = vld [vmem:[#allocation6 + $0x1d4] ss:$8 sps:$4 sm:$0xff]  }
  0x4a   :  { %981 = vmatpush1.bf16.msra.mxu0 %v2123_v19  ;;  %869 = vmatprep.subr.bf16.mxu1 %v1790_v20  ;;  %v1842_v56 = vld [vmem:[#allocation6 + $0xd0] ss:$8 sps:$4 sm:$0xff]   ;;  %v1844_v58 = vld [vmem:[#allocation6 + $0xe4] ss:$8 sps:$4 sm:$0xff]   ;;  %v1848_v60 = vld [vmem:[#allocation6 + $0xe0] ss:$8 sps:$4 sm:$0xff]  }
  0x4b   :  { %982 = vmatprep.subr.bf16.mxu0 %v2127_v21  ;;  %1004 = vmatprep.mubr.bf16.mxu0 %v1861_v51  ;;  %v2177_v57 = vld [vmem:[#allocation6 + $0x1d0] ss:$8 sps:$4 sm:$0xff]   ;;  %v2181_v59 = vld [vmem:[#allocation6 + $0x1e4] ss:$8 sps:$4 sm:$0xff]   ;;  %v2183_v61 = vld [vmem:[#allocation6 + $0x1e0] ss:$8 sps:$4 sm:$0xff]  }
  0x4c   :  { %v1850_v62 = vld [vmem:[#allocation6 + $0xf4] ss:$8 sps:$4 sm:$0xff]   ;;  %v1854_v0 = vld [vmem:[#allocation6 + $0xf0] ss:$8 sps:$4 sm:$0xff]   ;;  %v1864_v4 = vld [vmem:[#allocation6 + $0x204] ss:$8 sps:$4 sm:$0xff]  }
  0x4d   :  { %870 = vmatpush1.bf16.msra.mxu1 %v1794_v22  ;;  %v2187_v63 = vld [vmem:[#allocation6 + $0x1f4] ss:$8 sps:$4 sm:$0xff]   ;;  %v2190_v2 = vld [vmem:[#allocation6 + $0x1f0] ss:$8 sps:$4 sm:$0xff]   ;;  %v1862_v10 = vld [vmem:[#allocation6 + $0x200] ss:$8 sps:$4 sm:$0xff]  }
  0x4e   :  { %983 = vmatpush1.bf16.msra.mxu0 %v2130_v23  ;;  %871 = vmatprep.subr.bf16.mxu1 %v1796_v24  ;;  %v1856_v6 = vld [vmem:[#allocation3] ss:$20 sps:$4 sm:$0xff]   ;;  %v1859_v8 = vld [vmem:[#allocation3 + $0x8] ss:$20 sps:$4 sm:$0xff]   ;;  %v1865_v18 = vld [vmem:[#allocation6 + $0x210] ss:$8 sps:$4 sm:$0xff]  }
  0x4f   :  { %984 = vmatprep.subr.bf16.mxu0 %v2133_v25  ;;  %v1867_v12 = vld [vmem:[#allocation6 + $0x214] ss:$8 sps:$4 sm:$0xff]   ;;  %v1868_v14 = vld [vmem:[#allocation3 + $0x2c] ss:$20 sps:$4 sm:$0xff]   ;;  %v1873_v24 = vld [vmem:[#allocation3 + $0x30] ss:$20 sps:$4 sm:$0xff]  }
  0x50   :  { %v1870_v16 = vld [vmem:[#allocation3 + $0x34] ss:$20 sps:$4 sm:$0xff]   ;;  %v1876_v20 = vld [vmem:[#allocation6 + $0x224] ss:$8 sps:$4 sm:$0xff]   ;;  %v1928_v51 = vld [vmem:[#allocation3 + $0xfc] ss:$20 sps:$4 sm:$0xff]  }
  0x51   :  { %872 = vmatpush1.bf16.msra.mxu1 %v1800_v26  ;;  %v1872_v22 = vld [vmem:[#allocation3 + $0x28] ss:$20 sps:$4 sm:$0xff]   ;;  %v1926_v49 = vld [vmem:[#allocation3 + $0xd0] ss:$20 sps:$4 sm:$0xff]   ;;  %s2038_s2 = smov [#allocation9]  }
  0x52   :  { %985 = vmatpush1.bf16.msra.mxu0 %v2135_v27  ;;  %873 = vmatprep.subr.bf16.mxu1 %v1802_v28  ;;  %v1879_v26 = vld [vmem:[#allocation6 + $0x234] ss:$8 sps:$4 sm:$0xff]   ;;  %s1490_s25 = sshll.u32 %s2038_s2, 4  ;;  %s1491_s25 = int_to_ptr.vmem [resolvable:$true] %s1490_s25 }
  0x53   :  { %986 = vmatprep.subr.bf16.mxu0 %v2139_v29  ;;  %v1880_v28 = vld [vmem:[#allocation3 + $0x54] ss:$20 sps:$4 sm:$0xff]   ;;  %s2002_s26 = scalar_lea.vmem %s1491_s25, 2048  ;;  %p2007_p11 = scmp.lt.s32.totalorder %s1491_s25, %s1491_s25 }
  0x54   :  { %p2003_p10 = scmp.ne.s32.totalorder %s1491_s25, %s2002_s26  ;;  %p2008_p12 = scmp.lt.s32.totalorder %s2002_s26, %s2002_s26 }
  0x55   :  { %874 = vmatpush1.bf16.msra.mxu1 %v1806_v30  ;;  %v1888_v30 = vld [vmem:[#allocation6 + $0x244] ss:$8 sps:$4 sm:$0xff]  }
  0x56   :  { %987 = vmatpush1.bf16.msra.mxu0 %v2142_v31  ;;  %875 = vmatprep.subr.bf16.mxu1 %v1808_v32  ;;  %v1885_v32 = vld [vmem:[#allocation3 + $0x58] ss:$20 sps:$4 sm:$0xff]   ;;  %p2009_p13 = por %p2008_p12, %p2007_p11 }
  0x57   :  { %988 = vmatprep.subr.bf16.mxu0 %v2145_v33 }
  0x58   :  { %p2010_p0 = pnand %p2009_p13, %p2003_p10 }
  0x59   :  { %876 = vmatpush1.bf16.msra.mxu1 %v1812_v34  ;;  %v1891_v34 = vld [vmem:[#allocation6 + $0x254] ss:$8 sps:$4 sm:$0xff]  }
  0x5a   :  { %989 = vmatpush1.bf16.msra.mxu0 %v2147_v35  ;;  %877 = vmatprep.subr.bf16.mxu1 %v1814_v36  ;;  %v1892_v36 = vld [vmem:[#allocation3 + $0x7c] ss:$20 sps:$4 sm:$0xff]  }
  0x5b   :  { %990 = vmatprep.subr.bf16.mxu0 %v2151_v37 }
  0x5d   :  { %878 = vmatpush1.bf16.msra.mxu1 %v1818_v38  ;;  %v1900_v38 = vld [vmem:[#allocation6 + $0x264] ss:$8 sps:$4 sm:$0xff]  }
  0x5e   :  { %991 = vmatpush1.bf16.msra.mxu0 %v2154_v39  ;;  %879 = vmatprep.subr.bf16.mxu1 %v1820_v40  ;;  %v1897_v40 = vld [vmem:[#allocation3 + $0x80] ss:$20 sps:$4 sm:$0xff]  }
  0x5f   :  { %992 = vmatprep.subr.bf16.mxu0 %v2157_v41 }
  0x61   :  { %880 = vmatpush1.bf16.msra.mxu1 %v1824_v42  ;;  %v1903_v42 = vld [vmem:[#allocation6 + $0x274] ss:$8 sps:$4 sm:$0xff]  }
  0x62   :  { %993 = vmatpush1.bf16.msra.mxu0 %v2159_v43  ;;  %881 = vmatprep.subr.bf16.mxu1 %v1826_v44  ;;  %v1904_v44 = vld [vmem:[#allocation3 + $0xa4] ss:$20 sps:$4 sm:$0xff]  }
  0x63   :  { %994 = vmatprep.subr.bf16.mxu0 %v2163_v45 }
  0x65   :  { %882 = vmatpush1.bf16.msra.mxu1 %v1830_v46  ;;  %v1907_v46 = vld [vmem:[#allocation3 + $0x10] ss:$20 sps:$4 sm:$0xff]  }
  0x66   :  { %995 = vmatpush1.bf16.msra.mxu0 %v2165_v47  ;;  %883 = vmatprep.subr.bf16.mxu1 %v1832_v48  ;;  %v1912_v48 = vld [vmem:[#allocation3 + $0xf4] ss:$20 sps:$4 sm:$0xff]  }
  0x67   :  { %996 = vmatprep.subr.bf16.mxu0 %v2168_v50 }
  0x69   :  { %884 = vmatpush1.bf16.msra.mxu1 %v1836_v52  ;;  %v1930_v52 = vld [vmem:[#allocation3 + $0xf8] ss:$20 sps:$4 sm:$0xff]  }
  0x6a   :  { %997 = vmatpush1.bf16.msra.mxu0 %v2171_v53  ;;  %885 = vmatprep.subr.bf16.mxu1 %v1838_v54  ;;  %v1932_v54 = vld [vmem:[#allocation3 + $0x124] ss:$20 sps:$4 sm:$0xff]  }
  0x6b   :  { %998 = vmatprep.subr.bf16.mxu0 %v2175_v55 }
  0x6d   :  { %886 = vmatpush1.bf16.msra.mxu1 %v1842_v56  ;;  %v1935_v56 = vld [vmem:[#allocation3 + $0x128] ss:$20 sps:$4 sm:$0xff]  }
  0x6e   :  { %999 = vmatpush1.bf16.msra.mxu0 %v2177_v57  ;;  %887 = vmatprep.subr.bf16.mxu1 %v1844_v58 }
  0x6f   :  { %1000 = vmatprep.subr.bf16.mxu0 %v2181_v59 }
  0x71   :  { %888 = vmatpush1.bf16.msra.mxu1 %v1848_v60 }
  0x72   :  { %1001 = vmatpush1.bf16.msra.mxu0 %v2183_v61  ;;  %889 = vmatprep.subr.bf16.mxu1 %v1850_v62 }
  0x73   :  { %1002 = vmatprep.subr.bf16.mxu0 %v2187_v63 }
  0x75   :  { %890 = vmatpush1.bf16.msra.mxu1 %v1854_v0 }
  0x76   :  { %1003 = vmatpush1.bf16.msra.mxu0 %v2190_v2  ;;  %1655 = vmatprep.subr.bf16.mxu1 %v2098_v1  ;;  %v1874_v1 = vld [vmem:[#allocation6 + $0x220] ss:$8 sps:$4 sm:$0xff]  }
  0x77   :  { %1085 = vmatprep.subr.bf16.mxu0 %v1864_v4 }
  0x78   :  { %892 = vmatmul.mubr.bf16.vlgmr.msra.gmra.mrb[0].mxu1 %v1856_v6 }
  0x79   :  { %1005 = vmatmul.mubr.bf16.vlgmr.msra.gmra.mrb[0].mxu0 %v1859_v8  ;;  %1671 = vmatpush1.bf16.msra.mxu1 %v2100_v3  ;;  %v1882_v3 = vld [vmem:[#allocation3 + $0x5c] ss:$20 sps:$4 sm:$0xff]  }
  0x7a   :  { %1086 = vmatpush1.bf16.msra.mxu0 %v1862_v10  ;;  %1656 = vmatprep.subr.bf16.mxu1 %v2104_v5  ;;  %v1877_v5 = vld [vmem:[#allocation6 + $0x230] ss:$8 sps:$4 sm:$0xff]   ;;  %v1299_v10 = vlaneseq }
  0x7b   :  { %1087 = vmatprep.subr.bf16.mxu0 %v1867_v12  ;;  %901 = vmatprep.mubr.bf16.mxu1 %v1868_v14 }
  0x7c   :  { %1014 = vmatprep.mubr.bf16.mxu0 %v1870_v16  ;;  %v1300_v12 = vshrl.u32 %v1299_v10, 7 }
  0x7d   :  { %1672 = vmatpush1.bf16.msra.mxu1 %v2106_v7  ;;  %v1884_v7 = vld [vmem:[#allocation3 + $0x50] ss:$20 sps:$4 sm:$0xff]  }
  0x7e   :  { %1088 = vmatpush1.bf16.msra.mxu0 %v1865_v18  ;;  %1657 = vmatprep.subr.bf16.mxu1 %v2109_v9  ;;  %v1886_v9 = vld [vmem:[#allocation6 + $0x240] ss:$8 sps:$4 sm:$0xff]  }
  0x7f   :  { %1089 = vmatprep.subr.bf16.mxu0 %v1876_v20 }
  0x80   :  { %902 = vmatmul.mubr.bf16.gmra.mrb[4].mxu1 %v1872_v22  ;;  %v1301_v22 = vsub.s32 0, %v1300_v12 }
  0x81   :  { %1015 = vmatmul.mubr.bf16.gmra.mrb[4].mxu0 %v1873_v24  ;;  %1673 = vmatpush1.bf16.msra.mxu1 %v2111_v11  ;;  %v1894_v11 = vld [vmem:[#allocation3 + $0x84] ss:$20 sps:$4 sm:$0xff]   ;;  %v1297_v24 = vld [vmem:[#allocation8] sm:$0x3] }
  0x82   :  { %1090 = vmatpush1.bf16.msra.mxu0 %v1874_v1  ;;  %1658 = vmatprep.subr.bf16.mxu1 %v2115_v13  ;;  %v1889_v13 = vld [vmem:[#allocation6 + $0x250] ss:$8 sps:$4 sm:$0xff]   ;;  %v1305_v1 = vsub.s32 1, %v1300_v12 }
  0x83   :  { %1091 = vmatprep.subr.bf16.mxu0 %v1879_v26  ;;  %911 = vmatprep.mubr.bf16.mxu1 %v1880_v28  ;;  %v2242_v26 = vrot.slane %v1297_v24, %v1301_v22 }
  0x84   :  { %1024 = vmatprep.mubr.bf16.mxu0 %v1882_v3  ;;  %v2244_v3 = vrot.slane %v1297_v24, %v1305_v1 }
  0x85   :  { %1674 = vmatpush1.bf16.msra.mxu1 %v2118_v15  ;;  %v1896_v15 = vld [vmem:[#allocation3 + $0x78] ss:$20 sps:$4 sm:$0xff]  }
  0x86   :  { %1092 = vmatpush1.bf16.msra.mxu0 %v1877_v5  ;;  %1659 = vmatprep.subr.bf16.mxu1 %v2121_v17  ;;  %v1898_v17 = vld [vmem:[#allocation6 + $0x260] ss:$8 sps:$4 sm:$0xff]  }
  0x87   :  { %1093 = vmatprep.subr.bf16.mxu0 %v1888_v30 }
  0x88   :  { %912 = vmatmul.mubr.bf16.gmra.mrb[8].mxu1 %v1884_v7 }
  0x89   :  { %1025 = vmatmul.mubr.bf16.gmra.mrb[8].mxu0 %v1885_v32  ;;  %1675 = vmatpush1.bf16.msra.mxu1 %v2123_v19  ;;  %v1901_v19 = vld [vmem:[#allocation6 + $0x270] ss:$8 sps:$4 sm:$0xff]  }
  0x8a   :  { %1094 = vmatpush1.bf16.msra.mxu0 %v1886_v9  ;;  %1660 = vmatprep.subr.bf16.mxu1 %v2127_v21  ;;  %v2037_v21 = vmov 0  }
  0x8b   :  { %1095 = vmatprep.subr.bf16.mxu0 %v1891_v34  ;;  %921 = vmatprep.mubr.bf16.mxu1 %v1892_v36 }
  0x8c   :  { %1034 = vmatprep.mubr.bf16.mxu0 %v1894_v11 }
  0x8d   :  { %1676 = vmatpush1.bf16.msra.mxu1 %v2130_v23  ;;  %v1906_v23 = vld [vmem:[#allocation3 + $0xa0] ss:$20 sps:$4 sm:$0xff]  }
  0x8e   :  { %1096 = vmatpush1.bf16.msra.mxu0 %v1889_v13  ;;  %1661 = vmatprep.subr.bf16.mxu1 %v2133_v25  ;;  %v1908_v25 = vld [vmem:[#allocation3 + $0xcc] ss:$20 sps:$4 sm:$0xff]  }
  0x8f   :  { %1097 = vmatprep.subr.bf16.mxu0 %v1900_v38 }
  0x90   :  { %922 = vmatmul.mubr.bf16.gmra.mrb[12].mxu1 %v1896_v15 }
  0x91   :  { %1035 = vmatmul.mubr.bf16.gmra.mrb[12].mxu0 %v1897_v40  ;;  %1677 = vmatpush1.bf16.msra.mxu1 %v2135_v27  ;;  %v1910_v27 = vld [vmem:[#allocation3 + $0xc8] ss:$20 sps:$4 sm:$0xff]  }
  0x92   :  { %1098 = vmatpush1.bf16.msra.mxu0 %v1898_v17  ;;  %1662 = vmatprep.subr.bf16.mxu1 %v2139_v29  ;;  %v1911_v29 = vld [vmem:[#allocation3 + $0x38] ss:$20 sps:$4 sm:$0xff]  }
  0x93   :  { %1099 = vmatprep.subr.bf16.mxu0 %v1903_v42  ;;  %931 = vmatprep.mubr.bf16.mxu1 %v1904_v44 }
  0x94   :  { %1117 = vmatprep.mubr.bf16.mxu0 %v2037_v21 }
  0x95   :  { %1678 = vmatpush1.bf16.msra.mxu1 %v2142_v31  ;;  %v1914_v31 = vld [vmem:[#allocation3 + $0xf0] ss:$20 sps:$4 sm:$0xff]  }
  0x96   :  { %1100 = vmatpush1.bf16.msra.mxu0 %v1901_v19  ;;  %1663 = vmatprep.subr.bf16.mxu1 %v2145_v33  ;;  %v1915_v33 = vld [vmem:[#allocation3 + $0x60] ss:$20 sps:$4 sm:$0xff]  }
  0x98   :  { %932 = vmatmul.mubr.bf16.gmra.mrb[16].mxu1 %v1906_v23 }
  0x99   :  { %1118 = vmatmul.mubr.bf16.vlgmr.msra.gmra.mrb[0].mxu0 %v1907_v46  ;;  %1679 = vmatpush1.bf16.msra.mxu1 %v2147_v35  ;;  %v1916_v35 = vld [vmem:[#allocation3 + $0x11c] ss:$20 sps:$4 sm:$0xff]  }
  0x9a   :  { %941 = vmatprep.mubr.bf16.mxu1 %v1908_v25  ;;  %1664 = vmatprep.subr.bf16.mxu1 %v2151_v37  ;;  %v1918_v37 = vld [vmem:[#allocation3 + $0x118] ss:$20 sps:$4 sm:$0xff]  }
  0x9b   :  { %1127 = vmatprep.mubr.bf16.mxu0 %v2037_v21 }
  0x9d   :  { %1680 = vmatpush1.bf16.msra.mxu1 %v2154_v39  ;;  %v1919_v39 = vld [vmem:[#allocation3 + $0x88] ss:$20 sps:$4 sm:$0xff]  }
  0x9e   :  { %1665 = vmatprep.subr.bf16.mxu1 %v2157_v41  ;;  %v1922_v41 = vld [vmem:[#allocation3 + $0xac] ss:$20 sps:$4 sm:$0xff]  }
  0xa0   :  { %942 = vmatmul.mubr.bf16.gmra.mrb[20].mxu1 %v1910_v27 }
  0xa1   :  { %1128 = vmatmul.mubr.bf16.gmra.mrb[4].mxu0 %v1911_v29  ;;  %1681 = vmatpush1.bf16.msra.mxu1 %v2159_v43  ;;  %v1920_v43 = vld [vmem:[#allocation3 + $0xa8] ss:$20 sps:$4 sm:$0xff]  }
  0xa2   :  { %951 = vmatprep.mubr.bf16.mxu1 %v1912_v48  ;;  %1666 = vmatprep.subr.bf16.mxu1 %v2163_v45  ;;  %v1923_v45 = vld [vmem:[#allocation3 + $0xb0] ss:$20 sps:$4 sm:$0xff]  }
  0xa3   :  { %1137 = vmatprep.mubr.bf16.mxu0 %v2037_v21 }
  0xa5   :  { %1682 = vmatpush1.bf16.msra.mxu1 %v2165_v47  ;;  %v1924_v47 = vld [vmem:[#allocation3 + $0xd4] ss:$20 sps:$4 sm:$0xff]  }
  0xa6   :  { %1667 = vmatprep.subr.bf16.mxu1 %v2168_v50  ;;  %v1927_v50 = vld [vmem:[#allocation3 + $0xd8] ss:$20 sps:$4 sm:$0xff]  }
  0xa8   :  { %952 = vmatmul.mubr.bf16.gmra.mrb[24].mxu1 %v1914_v31 }
  0xa9   :  { %1138 = vmatmul.mubr.bf16.gmra.mrb[8].mxu0 %v1915_v33  ;;  %1683 = vmatpush1.bf16.msra.mxu1 %v2171_v53  ;;  %v1931_v53 = vld [vmem:[#allocation3 + $0x100] ss:$20 sps:$4 sm:$0xff]  }
  0xaa   :  { %961 = vmatprep.mubr.bf16.mxu1 %v1916_v35  ;;  %1668 = vmatprep.subr.bf16.mxu1 %v2175_v55  ;;  %v1934_v55 = vld [vmem:[#allocation3 + $0x120] ss:$20 sps:$4 sm:$0xff]  }
  0xab   :  { %1147 = vmatprep.mubr.bf16.mxu0 %v2037_v21 }
  0xad   :  { %1684 = vmatpush1.bf16.msra.mxu1 %v2177_v57 }
  0xae   :  { %1669 = vmatprep.subr.bf16.mxu1 %v2181_v59 }
  0xb0   :  { %962 = vmatmul.mubr.bf16.gmra.mrb[28].mxu1 %v1918_v37 }
  0xb1   :  { %1148 = vmatmul.mubr.bf16.gmra.mrb[12].mxu0 %v1919_v39  ;;  %1685 = vmatpush1.bf16.msra.mxu1 %v2183_v61 }
  0xb2   :  { %1044 = vmatprep.mubr.bf16.mxu1 %v1922_v41  ;;  %1670 = vmatprep.subr.bf16.mxu1 %v2187_v63 }
  0xb3   :  { %1157 = vmatprep.mubr.bf16.mxu0 %v2037_v21 }
  0xb5   :  { %1686 = vmatpush1.bf16.msra.mxu1 %v2190_v2 }
  0xb8   :  { %1045 = vmatmul.mubr.bf16.vlgmr.msra.gmra.mrb[16].mxu1 %v1920_v43 }
  0xb9   :  { %1158 = vmatmul.mubr.bf16.gmra.mrb[16].mxu0 %v1923_v45  ;;  %1054 = vmatprep.mubr.bf16.mxu1 %v1924_v47 }
  0xba   :  { %1167 = vmatprep.mubr.bf16.mxu0 %v2037_v21 }
  0xc0   :  { %1055 = vmatmul.mubr.bf16.gmra.mrb[20].mxu1 %v1926_v49 }
  0xc1   :  { %1168 = vmatmul.mubr.bf16.gmra.mrb[20].mxu0 %v1927_v50  ;;  %1064 = vmatprep.mubr.bf16.mxu1 %v1928_v51 }
  0xc2   :  { %1177 = vmatprep.mubr.bf16.mxu0 %v2037_v21 }
  0xc8   :  { %1065 = vmatmul.mubr.bf16.gmra.mrb[24].mxu1 %v1930_v52 }
  0xc9   :  { %1178 = vmatmul.mubr.bf16.gmra.mrb[24].mxu0 %v1931_v53  ;;  %1074 = vmatprep.mubr.bf16.mxu1 %v1932_v54 }
  0xca   :  { %1187 = vmatprep.mubr.bf16.mxu0 %v2037_v21 }
  0xd0   :  { %1075 = vmatmul.mubr.bf16.gmra.mrb[28].mxu1 %v1934_v55 }
  0xd1   :  { %1188 = vmatmul.mubr.bf16.gmra.mrb[28].mxu0 %v1935_v56 }
 0x14b   :  { %v893_v57 = vpop.f32.mrb[0].mxu1 }
 0x14c   :  { %v895_v58 = vpop.f32.mrb[1].mxu1 }
 0x14d   :  { %v897_v59 = vpop.f32.mrb[2].mxu1 }
 0x14e   :  { %v899_v60 = vpop.f32.mrb[3].mxu1 }
 0x153   :  { %v903_v61 = vpop.f32.mrb[4].mxu1 }
 0x154   :  { %v905_v62 = vpop.f32.mrb[5].mxu1 }
 0x155   :  { %v907_v63 = vpop.f32.mrb[6].mxu1 }
 0x156   :  { %v909_v0 = vpop.f32.mrb[7].mxu1 }
 0x15b   :  { %v913_v2 = vpop.f32.mrb[8].mxu1 }
 0x15c   :  { %v915_v4 = vpop.f32.mrb[9].mxu1 }
 0x15d   :  { %v917_v6 = vpop.f32.mrb[10].mxu1 }
 0x15e   :  { %v919_v8 = vpop.f32.mrb[11].mxu1 }
 0x163   :  { %v2234_v14 = vpop.f32.mrb[12].mxu1 }
 0x164   :  { %v2236_v16 = vpop.f32.mrb[13].mxu1 }
 0x165   :  { %v2238_v18 = vpop.f32.mrb[14].mxu1 }
 0x166   :  { %v2240_v20 = vpop.f32.mrb[15].mxu1 }
 0x16c   :  { %v1119_v28 = vpop.f32.mrb[0].mxu0 }
 0x16d   :  { %v1687_v5 = vadd.f32 %v1119_v28, %v893_v57  ;;  %v1121_v30 = vpop.f32.mrb[1].mxu0 }
 0x16e   :  { %v1688_v7 = vadd.f32 %v1121_v30, %v895_v58  ;;  %v1123_v32 = vpop.f32.mrb[2].mxu0 }
 0x16f   :  { %v1309_v9 = vadd.f32 %v1687_v5, %v2242_v26  ;;  %v1689_v34 = vadd.f32 %v1123_v32, %v897_v59  ;;  %v1125_v36 = vpop.f32.mrb[3].mxu0 }
 0x170   :  { %v1310_v11 = vadd.f32 %v1688_v7, %v2244_v3  ;;  %v1690_v13 = vadd.f32 %v1125_v36, %v899_v60 }
 0x171   :  { %v1341_v38 = vmax.f32 %v1309_v9, 0.0  ;;  %v1311_v15 = vadd.f32 %v1689_v34, %v2242_v26 }
 0x172   :  { %v1342_v40 = vmax.f32 %v1310_v11, 0.0  ;;  %v1312_v17 = vadd.f32 %v1690_v13, %v2244_v3 }
 0x173   :  { %v1343_v42 = vmax.f32 %v1311_v15, 0.0 }
 0x174   :  { %v1639_v44 = vpack.c.bf16 %v1342_v40, %v1341_v38  ;;  %v1344_v19 = vmax.f32 %v1312_v17, 0.0  ;;  %v1129_v21 = vpop.f32.mrb[4].mxu0 }
 0x175   :  { %v1691_v23 = vadd.f32 %v1129_v21, %v903_v61  ;;  %v1131_v46 = vpop.f32.mrb[5].mxu0 }
 0x176   :  { %1469 = vst [vmem:[#allocation9] sm:$0xff] %v1639_v44  ;;  %v1640_v25 = vpack.c.bf16 %v1344_v19, %v1343_v42  ;;  %v1692_v27 = vadd.f32 %v1131_v46, %v905_v62  ;;  %v1133_v29 = vpop.f32.mrb[6].mxu0 }
 0x177   :  { %v1313_v48 = vadd.f32 %v1691_v23, %v2242_v26  ;;  %v1693_v31 = vadd.f32 %v1133_v29, %v907_v63  ;;  %v1135_v33 = vpop.f32.mrb[7].mxu0 }
 0x178   :  { %1470 = vst [vmem:[#allocation9 + $0x8] sm:$0xff] %v1640_v25  ;;  %v1314_v35 = vadd.f32 %v1692_v27, %v2244_v3  ;;  %v1694_v37 = vadd.f32 %v1135_v33, %v909_v0 }
 0x179   :  { %v1345_v39 = vmax.f32 %v1313_v48, 0.0  ;;  %v1315_v41 = vadd.f32 %v1693_v31, %v2242_v26 }
 0x17a   :  { %v1346_v43 = vmax.f32 %v1314_v35, 0.0  ;;  %v1316_v45 = vadd.f32 %v1694_v37, %v2244_v3 }
 0x17b   :  { %v1347_v47 = vmax.f32 %v1315_v41, 0.0 }
 0x17c   :  { %v1641_v49 = vpack.c.bf16 %v1346_v43, %v1345_v39  ;;  %v1348_v50 = vmax.f32 %v1316_v45, 0.0  ;;  %v1139_v51 = vpop.f32.mrb[8].mxu0 }
 0x17d   :  { %v1695_v52 = vadd.f32 %v1139_v51, %v913_v2  ;;  %v1141_v53 = vpop.f32.mrb[9].mxu0 }
 0x17e   :  { %1471 = vst [vmem:[#allocation9 + $0x10] sm:$0xff] %v1641_v49  ;;  %v1642_v54 = vpack.c.bf16 %v1348_v50, %v1347_v47  ;;  %v1696_v55 = vadd.f32 %v1141_v53, %v915_v4  ;;  %v1143_v56 = vpop.f32.mrb[10].mxu0 }
 0x17f   :  { %v1317_v57 = vadd.f32 %v1695_v52, %v2242_v26  ;;  %v1697_v58 = vadd.f32 %v1143_v56, %v917_v6  ;;  %v1145_v59 = vpop.f32.mrb[11].mxu0 }
 0x180   :  { %1472 = vst [vmem:[#allocation9 + $0x18] sm:$0xff] %v1642_v54  ;;  %v1318_v60 = vadd.f32 %v1696_v55, %v2244_v3  ;;  %v1698_v61 = vadd.f32 %v1145_v59, %v919_v8 }
 0x181   :  { %v1349_v62 = vmax.f32 %v1317_v57, 0.0  ;;  %v1319_v63 = vadd.f32 %v1697_v58, %v2242_v26 }
 0x182   :  { %v1350_v0 = vmax.f32 %v1318_v60, 0.0  ;;  %v1320_v10 = vadd.f32 %v1698_v61, %v2244_v3 }
 0x183   :  { %v1351_v2 = vmax.f32 %v1319_v63, 0.0 }
 0x184   :  { %v1643_v12 = vpack.c.bf16 %v1350_v0, %v1349_v62  ;;  %v1352_v22 = vmax.f32 %v1320_v10, 0.0  ;;  %v1149_v24 = vpop.f32.mrb[12].mxu0 }
 0x185   :  { %v1699_v4 = vadd.f32 %v1149_v24, %v2234_v14  ;;  %v1151_v1 = vpop.f32.mrb[13].mxu0 }
 0x186   :  { %1473 = vst [vmem:[#allocation9 + $0x20] sm:$0xff] %v1643_v12  ;;  %v1644_v6 = vpack.c.bf16 %v1352_v22, %v1351_v2  ;;  %v1700_v28 = vadd.f32 %v1151_v1, %v2236_v16  ;;  %v1153_v5 = vpop.f32.mrb[14].mxu0 }
 0x187   :  { %v1321_v8 = vadd.f32 %v1699_v4, %v2242_v26  ;;  %v1701_v30 = vadd.f32 %v1153_v5, %v2238_v18  ;;  %v1155_v7 = vpop.f32.mrb[15].mxu0 }
 0x188   :  { %1474 = vst [vmem:[#allocation9 + $0x28] sm:$0xff] %v1644_v6  ;;  %v1322_v32 = vadd.f32 %v1700_v28, %v2244_v3  ;;  %v1702_v9 = vadd.f32 %v1155_v7, %v2240_v20 }
 0x189   :  { %v1353_v34 = vmax.f32 %v1321_v8, 0.0  ;;  %v1323_v36 = vadd.f32 %v1701_v30, %v2242_v26 }
 0x18a   :  { %v1354_v14 = vmax.f32 %v1322_v32, 0.0  ;;  %v1324_v11 = vadd.f32 %v1702_v9, %v2244_v3 }
 0x18b   :  { %v1355_v13 = vmax.f32 %v1323_v36, 0.0  ;;  %v1046_v15 = vpop.f32.mrb[16].mxu1 }
 0x18c   :  { %v1645_v38 = vpack.c.bf16 %v1354_v14, %v1353_v34  ;;  %v1356_v16 = vmax.f32 %v1324_v11, 0.0  ;;  %v1159_v40 = vpop.f32.mrb[16].mxu0  ;;  %v1048_v42 = vpop.f32.mrb[17].mxu1 }
 0x18d   :  { %v1703_v17 = vadd.f32 %v1159_v40, %v1046_v15  ;;  %v1161_v18 = vpop.f32.mrb[17].mxu0  ;;  %v1050_v21 = vpop.f32.mrb[18].mxu1 }
 0x18e   :  { %1475 = vst [vmem:[#allocation9 + $0x30] sm:$0xff] %v1645_v38  ;;  %v1646_v44 = vpack.c.bf16 %v1356_v16, %v1355_v13  ;;  %v1704_v19 = vadd.f32 %v1161_v18, %v1048_v42  ;;  %v1163_v23 = vpop.f32.mrb[18].mxu0  ;;  %v1052_v25 = vpop.f32.mrb[19].mxu1 }
 0x18f   :  { %v1325_v20 = vadd.f32 %v1703_v17, %v2242_v26  ;;  %v1705_v46 = vadd.f32 %v1163_v23, %v1050_v21  ;;  %v1165_v27 = vpop.f32.mrb[19].mxu0 }
 0x190   :  { %1476 = vst [vmem:[#allocation9 + $0x38] sm:$0xff] %v1646_v44  ;;  %v1326_v29 = vadd.f32 %v1704_v19, %v2244_v3  ;;  %v1706_v48 = vadd.f32 %v1165_v27, %v1052_v25 }
 0x191   :  { %v1357_v31 = vmax.f32 %v1325_v20, 0.0  ;;  %v1327_v33 = vadd.f32 %v1705_v46, %v2242_v26 }
 0x192   :  { %v1358_v35 = vmax.f32 %v1326_v29, 0.0  ;;  %v1328_v37 = vadd.f32 %v1706_v48, %v2244_v3 }
 0x193   :  { %v1359_v39 = vmax.f32 %v1327_v33, 0.0  ;;  %v1056_v45 = vpop.f32.mrb[20].mxu1 }
 0x194   :  { %v1647_v41 = vpack.c.bf16 %v1358_v35, %v1357_v31  ;;  %v1360_v43 = vmax.f32 %v1328_v37, 0.0  ;;  %v1169_v47 = vpop.f32.mrb[20].mxu0  ;;  %v1058_v50 = vpop.f32.mrb[21].mxu1 }
 0x195   :  { %v1707_v49 = vadd.f32 %v1169_v47, %v1056_v45  ;;  %v1171_v51 = vpop.f32.mrb[21].mxu0  ;;  %v1060_v54 = vpop.f32.mrb[22].mxu1 }
 0x196   :  { %1477 = vst [vmem:[#allocation9 + $0x40] sm:$0xff] %v1647_v41  ;;  %v1648_v52 = vpack.c.bf16 %v1360_v43, %v1359_v39  ;;  %v1708_v53 = vadd.f32 %v1171_v51, %v1058_v50  ;;  %v1173_v55 = vpop.f32.mrb[22].mxu0  ;;  %v1062_v58 = vpop.f32.mrb[23].mxu1 }
 0x197   :  { %v1329_v56 = vadd.f32 %v1707_v49, %v2242_v26  ;;  %v1709_v57 = vadd.f32 %v1173_v55, %v1060_v54  ;;  %v1175_v59 = vpop.f32.mrb[23].mxu0 }
 0x198   :  { %1478 = vst [vmem:[#allocation9 + $0x48] sm:$0xff] %v1648_v52  ;;  %v1330_v60 = vadd.f32 %v1708_v53, %v2244_v3  ;;  %v1710_v61 = vadd.f32 %v1175_v59, %v1062_v58 }
 0x199   :  { %v1361_v62 = vmax.f32 %v1329_v56, 0.0  ;;  %v1331_v63 = vadd.f32 %v1709_v57, %v2242_v26 }
 0x19a   :  { %v1362_v0 = vmax.f32 %v1330_v60, 0.0  ;;  %v1332_v10 = vadd.f32 %v1710_v61, %v2244_v3 }
 0x19b   :  { %v1363_v2 = vmax.f32 %v1331_v63, 0.0  ;;  %v1066_v24 = vpop.f32.mrb[24].mxu1 }
 0x19c   :  { %v1649_v12 = vpack.c.bf16 %v1362_v0, %v1361_v62  ;;  %v1364_v22 = vmax.f32 %v1332_v10, 0.0  ;;  %v1179_v4 = vpop.f32.mrb[24].mxu0  ;;  %v1068_v6 = vpop.f32.mrb[25].mxu1 }
 0x19d   :  { %v1711_v1 = vadd.f32 %v1179_v4, %v1066_v24  ;;  %v1181_v28 = vpop.f32.mrb[25].mxu0  ;;  %v1070_v30 = vpop.f32.mrb[26].mxu1 }
 0x19e   :  { %1479 = vst [vmem:[#allocation9 + $0x50] sm:$0xff] %v1649_v12  ;;  %v1650_v5 = vpack.c.bf16 %v1364_v22, %v1363_v2  ;;  %v1712_v8 = vadd.f32 %v1181_v28, %v1068_v6  ;;  %v1183_v7 = vpop.f32.mrb[26].mxu0  ;;  %v1072_v34 = vpop.f32.mrb[27].mxu1 }
 0x19f   :  { %v1333_v32 = vadd.f32 %v1711_v1, %v2242_v26  ;;  %v1713_v9 = vadd.f32 %v1183_v7, %v1070_v30  ;;  %v1185_v36 = vpop.f32.mrb[27].mxu0 }
 0x1a0   :  { %1480 = vst [vmem:[#allocation9 + $0x58] sm:$0xff] %v1650_v5  ;;  %v1334_v14 = vadd.f32 %v1712_v8, %v2244_v3  ;;  %v1714_v11 = vadd.f32 %v1185_v36, %v1072_v34 }
 0x1a1   :  { %v1365_v13 = vmax.f32 %v1333_v32, 0.0  ;;  %v1335_v38 = vadd.f32 %v1713_v9, %v2242_v26 }
 0x1a2   :  { %v1366_v16 = vmax.f32 %v1334_v14, 0.0  ;;  %v1336_v15 = vadd.f32 %v1714_v11, %v2244_v3 }
 0x1a3   :  { %v1367_v40 = vmax.f32 %v1335_v38, 0.0  ;;  %v1076_v18 = vpop.f32.mrb[28].mxu1 }
 0x1a4   :  { %v1651_v17 = vpack.c.bf16 %v1366_v16, %v1365_v13  ;;  %v1368_v42 = vmax.f32 %v1336_v15, 0.0  ;;  %v1189_v44 = vpop.f32.mrb[28].mxu0  ;;  %v1078_v21 = vpop.f32.mrb[29].mxu1 }
 0x1a5   :  { %v1715_v19 = vadd.f32 %v1189_v44, %v1076_v18  ;;  %v1191_v23 = vpop.f32.mrb[29].mxu0  ;;  %v1080_v25 = vpop.f32.mrb[30].mxu1 }
 0x1a6   :  { %1481 = vst [vmem:[#allocation9 + $0x60] sm:$0xff] %v1651_v17  ;;  %v1652_v20 = vpack.c.bf16 %v1368_v42, %v1367_v40  ;;  %v1716_v46 = vadd.f32 %v1191_v23, %v1078_v21  ;;  %v1193_v27 = vpop.f32.mrb[30].mxu0  ;;  %v1082_v31 = vpop.f32.mrb[31].mxu1 }
 0x1a7   :  { %v1337_v29 = vadd.f32 %v1715_v19, %v2242_v26  ;;  %v1717_v48 = vadd.f32 %v1193_v27, %v1080_v25  ;;  %v1195_v33 = vpop.f32.mrb[31].mxu0 }
 0x1a8   :  { %1482 = vst [vmem:[#allocation9 + $0x68] sm:$0xff] %v1652_v20  ;;  %v1338_v35 = vadd.f32 %v1716_v46, %v2244_v3  ;;  %v1718_v37 = vadd.f32 %v1195_v33, %v1082_v31 }
 0x1a9   :  { %v1369_v39 = vmax.f32 %v1337_v29, 0.0  ;;  %v1339_v41 = vadd.f32 %v1717_v48, %v2242_v26 }
 0x1aa   :  { %v1370_v43 = vmax.f32 %v1338_v35, 0.0  ;;  %v1340_v45 = vadd.f32 %v1718_v37, %v2244_v3 }
 0x1ab   :  { %v1371_v47 = vmax.f32 %v1339_v41, 0.0 }
 0x1ac   :  { %v1653_v49 = vpack.c.bf16 %v1370_v43, %v1369_v39  ;;  %v1372_v50 = vmax.f32 %v1340_v45, 0.0 }
 0x1ae   :  { %1483 = vst [vmem:[#allocation9 + $0x70] sm:$0xff] %v1653_v49  ;;  %v1654_v51 = vpack.c.bf16 %v1372_v50, %v1371_v47 }
 0x1b0   :  { %1484 = vst [vmem:[#allocation9 + $0x78] sm:$0xff] %v1654_v51 }
 0x1b1   :  { %2013 = shalt.err (!%p2010_p0)
}
 0x1b2   :  { %s2014_s29 = scalar_lea.hbm %s2300_s3, 2048 }
 0x1b3   :  { %p2015_p1 = scmp.ne.s32.totalorder %s2300_s3, %s2014_s29  ;;  %p2018_p2 = scmp.lt.u32.totalorder %s2014_s29, %s2300_s3 }
 0x1b5   :  { %p2020_p3 = pnand %p2018_p2, %p2015_p1 }
 0x1b7   :  { %2023 = shalt.err (!%p2020_p3)
}
 0x1b8   :  { %1496 = dma.vmem_to_hbm [thread:$0]  %s1491_s25, 2048, %s2300_s3, [#allocation5], %s2031_s22, %s2031_s22, %s2032_s23  }
 0x1b9   :  { %2028 = dma.done.wait [#allocation5], 2048  }
 0x1ba   :  { %2029 = vsyncadd [#allocation5], 4294965248 }
 0x1bb   :  { %1500 = vsyncpa [#allocation4], 1 }
 0x1bc   :  { %1501 = vsyncpa [#allocation7], 1 }
 0x1bd   :  { %1502 = vsyncpa [#allocation5], 1 }

// kernel: inception_resnet_c_forward.6
= control target key start
LH: loop header
LB: loop body
LE: loop exit
PB: predicated region body
PF: predicated region fallthrough
CT: control target
= control target key end

     0   :  { %8 = vsyncpa [#allocation4], 0  ;;  %s2425_s0 = inlined_call_operand.hbm [shape: bf16[128,768], index: 0, kind: input, shape index: {}]   ;;  %s2426_s1 = inlined_call_operand.hbm [shape: bf16[768,256], index: 1, kind: input, shape index: {}]   ;;  %s2427_s2 = inlined_call_operand.hbm [shape: f32[1,256], index: 2, kind: input, shape index: {}]   ;;  %s2428_s3 = inlined_call_operand.hbm [shape: bf16[128,256], index: 3, kind: output, shape index: {}]  }
   0x1   :  { %9 = vsyncpa [#allocation7], 0 }
   0x2   :  { %10 = vsyncpa [#allocation5], 0  ;;  %s2220_s12 = smov [#allocation6]   ;;  %s2126_s16 = scalar_lea.hbm %s2426_s1, 12288 }
   0x3   :  { %s28_s13 = sshll.u32 %s2220_s12, 4  ;;  %p2127_p0 = scmp.ne.s32.totalorder %s2426_s1, %s2126_s16  ;;  %s29_s13 = int_to_ptr.vmem [resolvable:$true] %s28_s13 }
   0x4   :  { %p2130_p1 = scmp.lt.u32.totalorder %s2126_s16, %s2426_s1 }
   0x6   :  { %p2132_p2 = pnand %p2130_p1, %p2127_p0 }
   0x8   :  { %2135 = shalt.err (!%p2132_p2)
}
   0x9   :  { %s2136_s21 = scalar_lea.vmem %s29_s13, 12288  ;;  %p2141_p4 = scmp.lt.s32.totalorder %s29_s13, %s29_s13 }
   0xa   :  { %p2137_p3 = scmp.ne.s32.totalorder %s29_s13, %s2136_s21  ;;  %p2142_p5 = scmp.lt.s32.totalorder %s2136_s21, %s2136_s21 }
   0xc   :  { %p2143_p6 = por %p2142_p5, %p2141_p4 }
   0xe   :  { %p2144_p7 = pnand %p2143_p6, %p2137_p3 }
  0x10   :  { %2147 = shalt.err (!%p2144_p7)
}
  0x11   :  { %s2221_s22 = smov 128   ;;  %s2222_s23 = smov 8  }
  0x12   :  { %34 = dma.hbm_to_vmem [thread:$0]  %s2426_s1, 12288, %s29_s13, [#allocation7], %s2221_s22, %s2221_s22, %s2222_s23  }
  0x13   :  { %s2223_s26 = smov [#allocation3]   ;;  %s2148_s30 = scalar_lea.hbm %s2425_s0, 6144 }
  0x14   :  { %s16_s27 = sshll.u32 %s2223_s26, 4  ;;  %p2149_p8 = scmp.ne.s32.totalorder %s2425_s0, %s2148_s30  ;;  %s17_s27 = int_to_ptr.vmem [resolvable:$true] %s16_s27 }
  0x15   :  { %p2152_p9 = scmp.lt.u32.totalorder %s2148_s30, %s2425_s0 }
  0x17   :  { %p2154_p10 = pnand %p2152_p9, %p2149_p8 }
  0x19   :  { %2157 = shalt.err (!%p2154_p10)
}
  0x1a   :  { %s2158_s8 = scalar_lea.vmem %s17_s27, 6144  ;;  %p2163_p12 = scmp.lt.s32.totalorder %s17_s27, %s17_s27 }
  0x1b   :  { %p2159_p11 = scmp.ne.s32.totalorder %s17_s27, %s2158_s8  ;;  %p2164_p13 = scmp.lt.s32.totalorder %s2158_s8, %s2158_s8 }
  0x1d   :  { %p2165_p0 = por %p2164_p13, %p2163_p12 }
  0x1f   :  { %p2166_p1 = pnand %p2165_p0, %p2159_p11 }
  0x21   :  { %2169 = shalt.err (!%p2166_p1)
}
  0x22   :  { %s2224_s1 = smov 384   ;;  %s2225_s9 = smov 24  }
  0x23   :  { %22 = dma.hbm_to_vmem [thread:$0]  %s2425_s0, 6144, %s17_s27, [#allocation4], %s2224_s1, %s2224_s1, %s2225_s9  }
  0x24   :  { %s2226_s12 = smov [#allocation8]   ;;  %s2170_s16 = scalar_lea.hbm %s2427_s2, 32 }
  0x25   :  { %s41_s13 = sshll.u32 %s2226_s12, 4  ;;  %p2171_p2 = scmp.ne.s32.totalorder %s2427_s2, %s2170_s16  ;;  %s42_s13 = int_to_ptr.vmem [resolvable:$true] %s41_s13 }
  0x26   :  { %p2174_p3 = scmp.lt.u32.totalorder %s2170_s16, %s2427_s2 }
  0x28   :  { %p2176_p4 = pnand %p2174_p3, %p2171_p2 }
  0x2a   :  { %2179 = shalt.err (!%p2176_p4)
}
  0x2b   :  { %s2180_s21 = scalar_lea.vmem %s42_s13, 32  ;;  %p2185_p6 = scmp.lt.s32.totalorder %s42_s13, %s42_s13 }
  0x2c   :  { %p2181_p5 = scmp.ne.s32.totalorder %s42_s13, %s2180_s21  ;;  %p2186_p7 = scmp.lt.s32.totalorder %s2180_s21, %s2180_s21 }
  0x2e   :  { %p2187_p8 = por %p2186_p7, %p2185_p6 }
  0x30   :  { %p2188_p9 = pnand %p2187_p8, %p2181_p5 }
  0x32   :  { %2191 = shalt.err (!%p2188_p9)
}
  0x33   :  { %44 = dma.hbm_to_vmem [thread:$0]  %s2427_s2, 32, %s42_s13, [#allocation7]  }
  0x34   :  { %2214 = dma.done.wait [#allocation4], 6144  }
  0x35   :  { %2215 = vsyncadd [#allocation4], 4294961152 }
  0x36   :  { %2216 = dma.done.wait [#allocation7], 12320  }
  0x37   :  { %2217 = vsyncadd [#allocation7], 4294954976  ;;  %v1910_v0 = vld [vmem:[#allocation6 + $0x4] ss:$8 sps:$4 sm:$0xff]   ;;  %v1914_v2 = vld [vmem:[#allocation6] ss:$8 sps:$4 sm:$0xff]  }
  0x38   :  { %v1912_v1 = vld [vmem:[#allocation6 + $0x104] ss:$8 sps:$4 sm:$0xff]   ;;  %986 = vmatprep.subr.bf16.mxu1 %v1910_v0  ;;  %v1915_v3 = vld [vmem:[#allocation6 + $0x100] ss:$8 sps:$4 sm:$0xff]   ;;  %v1916_v4 = vld [vmem:[#allocation6 + $0x14] ss:$8 sps:$4 sm:$0xff]  }
  0x39   :  { %1099 = vmatprep.subr.bf16.mxu0 %v1912_v1  ;;  %987 = vmatpush1.bf16.msra.mxu1 %v1914_v2  ;;  %v1918_v5 = vld [vmem:[#allocation6 + $0x114] ss:$8 sps:$4 sm:$0xff]   ;;  %v1920_v6 = vld [vmem:[#allocation6 + $0x10] ss:$8 sps:$4 sm:$0xff]   ;;  %v1922_v8 = vld [vmem:[#allocation6 + $0x24] ss:$8 sps:$4 sm:$0xff]  }
  0x3a   :  { %1100 = vmatpush1.bf16.msra.mxu0 %v1915_v3  ;;  %988 = vmatprep.subr.bf16.mxu1 %v1916_v4  ;;  %v1921_v7 = vld [vmem:[#allocation6 + $0x110] ss:$8 sps:$4 sm:$0xff]   ;;  %v1924_v9 = vld [vmem:[#allocation6 + $0x124] ss:$8 sps:$4 sm:$0xff]   ;;  %v1926_v10 = vld [vmem:[#allocation6 + $0x20] ss:$8 sps:$4 sm:$0xff]  }
  0x3b   :  { %1101 = vmatprep.subr.bf16.mxu0 %v1918_v5  ;;  %v1927_v11 = vld [vmem:[#allocation6 + $0x120] ss:$8 sps:$4 sm:$0xff]   ;;  %v1928_v12 = vld [vmem:[#allocation6 + $0x34] ss:$8 sps:$4 sm:$0xff]   ;;  %v1932_v14 = vld [vmem:[#allocation6 + $0x30] ss:$8 sps:$4 sm:$0xff]  }
  0x3c   :  { %v1930_v13 = vld [vmem:[#allocation6 + $0x134] ss:$8 sps:$4 sm:$0xff]   ;;  %v1933_v15 = vld [vmem:[#allocation6 + $0x130] ss:$8 sps:$4 sm:$0xff]   ;;  %v1934_v16 = vld [vmem:[#allocation6 + $0x44] ss:$8 sps:$4 sm:$0xff]  }
  0x3d   :  { %989 = vmatpush1.bf16.msra.mxu1 %v1920_v6  ;;  %v1936_v17 = vld [vmem:[#allocation6 + $0x144] ss:$8 sps:$4 sm:$0xff]   ;;  %v1938_v18 = vld [vmem:[#allocation6 + $0x40] ss:$8 sps:$4 sm:$0xff]   ;;  %v1940_v20 = vld [vmem:[#allocation6 + $0x54] ss:$8 sps:$4 sm:$0xff]  }
  0x3e   :  { %1102 = vmatpush1.bf16.msra.mxu0 %v1921_v7  ;;  %990 = vmatprep.subr.bf16.mxu1 %v1922_v8  ;;  %v1939_v19 = vld [vmem:[#allocation6 + $0x140] ss:$8 sps:$4 sm:$0xff]   ;;  %v1942_v21 = vld [vmem:[#allocation6 + $0x154] ss:$8 sps:$4 sm:$0xff]   ;;  %v1944_v22 = vld [vmem:[#allocation6 + $0x50] ss:$8 sps:$4 sm:$0xff]  }
  0x3f   :  { %1103 = vmatprep.subr.bf16.mxu0 %v1924_v9  ;;  %v1945_v23 = vld [vmem:[#allocation6 + $0x150] ss:$8 sps:$4 sm:$0xff]   ;;  %v1946_v24 = vld [vmem:[#allocation6 + $0x64] ss:$8 sps:$4 sm:$0xff]   ;;  %v1950_v26 = vld [vmem:[#allocation6 + $0x60] ss:$8 sps:$4 sm:$0xff]  }
  0x40   :  { %v1948_v25 = vld [vmem:[#allocation6 + $0x164] ss:$8 sps:$4 sm:$0xff]   ;;  %v1951_v27 = vld [vmem:[#allocation6 + $0x160] ss:$8 sps:$4 sm:$0xff]   ;;  %v1952_v28 = vld [vmem:[#allocation6 + $0x74] ss:$8 sps:$4 sm:$0xff]  }
  0x41   :  { %991 = vmatpush1.bf16.msra.mxu1 %v1926_v10  ;;  %v1954_v29 = vld [vmem:[#allocation6 + $0x174] ss:$8 sps:$4 sm:$0xff]   ;;  %v1956_v30 = vld [vmem:[#allocation6 + $0x70] ss:$8 sps:$4 sm:$0xff]   ;;  %v1958_v32 = vld [vmem:[#allocation6 + $0x84] ss:$8 sps:$4 sm:$0xff]  }
  0x42   :  { %1104 = vmatpush1.bf16.msra.mxu0 %v1927_v11  ;;  %992 = vmatprep.subr.bf16.mxu1 %v1928_v12  ;;  %v1957_v31 = vld [vmem:[#allocation6 + $0x170] ss:$8 sps:$4 sm:$0xff]   ;;  %v1960_v33 = vld [vmem:[#allocation6 + $0x184] ss:$8 sps:$4 sm:$0xff]   ;;  %v1962_v34 = vld [vmem:[#allocation6 + $0x80] ss:$8 sps:$4 sm:$0xff]  }
  0x43   :  { %1105 = vmatprep.subr.bf16.mxu0 %v1930_v13  ;;  %v1963_v35 = vld [vmem:[#allocation6 + $0x180] ss:$8 sps:$4 sm:$0xff]   ;;  %v1964_v36 = vld [vmem:[#allocation6 + $0x94] ss:$8 sps:$4 sm:$0xff]   ;;  %v1968_v38 = vld [vmem:[#allocation6 + $0x90] ss:$8 sps:$4 sm:$0xff]  }
  0x44   :  { %v1966_v37 = vld [vmem:[#allocation6 + $0x194] ss:$8 sps:$4 sm:$0xff]   ;;  %v1969_v39 = vld [vmem:[#allocation6 + $0x190] ss:$8 sps:$4 sm:$0xff]   ;;  %v1970_v40 = vld [vmem:[#allocation6 + $0xa4] ss:$8 sps:$4 sm:$0xff]  }
  0x45   :  { %993 = vmatpush1.bf16.msra.mxu1 %v1932_v14  ;;  %v1972_v41 = vld [vmem:[#allocation6 + $0x1a4] ss:$8 sps:$4 sm:$0xff]   ;;  %v1974_v42 = vld [vmem:[#allocation6 + $0xa0] ss:$8 sps:$4 sm:$0xff]   ;;  %v1976_v44 = vld [vmem:[#allocation6 + $0xb4] ss:$8 sps:$4 sm:$0xff]  }
  0x46   :  { %1106 = vmatpush1.bf16.msra.mxu0 %v1933_v15  ;;  %994 = vmatprep.subr.bf16.mxu1 %v1934_v16  ;;  %v1975_v43 = vld [vmem:[#allocation6 + $0x1a0] ss:$8 sps:$4 sm:$0xff]   ;;  %v1978_v45 = vld [vmem:[#allocation6 + $0x1b4] ss:$8 sps:$4 sm:$0xff]   ;;  %v1980_v46 = vld [vmem:[#allocation6 + $0xb0] ss:$8 sps:$4 sm:$0xff]  }
  0x47   :  { %1107 = vmatprep.subr.bf16.mxu0 %v1936_v17  ;;  %v1981_v47 = vld [vmem:[#allocation6 + $0x1b0] ss:$8 sps:$4 sm:$0xff]   ;;  %v1982_v48 = vld [vmem:[#allocation6 + $0xc4] ss:$8 sps:$4 sm:$0xff]   ;;  %v1986_v52 = vld [vmem:[#allocation6 + $0xc0] ss:$8 sps:$4 sm:$0xff]  }
  0x48   :  { %v2008_v49 = vld [vmem:[#allocation3 + $0x4] ss:$24 sps:$4 sm:$0xff]   ;;  %v1987_v53 = vld [vmem:[#allocation6 + $0x1c0] ss:$8 sps:$4 sm:$0xff]   ;;  %v1992_v56 = vld [vmem:[#allocation6 + $0xd0] ss:$8 sps:$4 sm:$0xff]  }
  0x49   :  { %995 = vmatpush1.bf16.msra.mxu1 %v1938_v18  ;;  %v1984_v50 = vld [vmem:[#allocation6 + $0x1c4] ss:$8 sps:$4 sm:$0xff]   ;;  %1018 = vmatprep.mubr.bf16.mxu1 %v2008_v49  ;;  %v1988_v54 = vld [vmem:[#allocation6 + $0xd4] ss:$8 sps:$4 sm:$0xff]   ;;  %v1993_v57 = vld [vmem:[#allocation6 + $0x1d0] ss:$8 sps:$4 sm:$0xff]  }
  0x4a   :  { %1108 = vmatpush1.bf16.msra.mxu0 %v1939_v19  ;;  %996 = vmatprep.subr.bf16.mxu1 %v1940_v20  ;;  %v2011_v51 = vld [vmem:[#allocation3 + $0xc] ss:$24 sps:$4 sm:$0xff]   ;;  %v1990_v55 = vld [vmem:[#allocation6 + $0x1d4] ss:$8 sps:$4 sm:$0xff]   ;;  %v1998_v60 = vld [vmem:[#allocation6 + $0xe0] ss:$8 sps:$4 sm:$0xff]  }
  0x4b   :  { %1109 = vmatprep.subr.bf16.mxu0 %v1942_v21  ;;  %1131 = vmatprep.mubr.bf16.mxu0 %v2011_v51  ;;  %v1994_v58 = vld [vmem:[#allocation6 + $0xe4] ss:$8 sps:$4 sm:$0xff]   ;;  %v1999_v61 = vld [vmem:[#allocation6 + $0x1e0] ss:$8 sps:$4 sm:$0xff]   ;;  %v2000_v62 = vld [vmem:[#allocation6 + $0xf4] ss:$8 sps:$4 sm:$0xff]  }
  0x4c   :  { %v1996_v59 = vld [vmem:[#allocation6 + $0x1e4] ss:$8 sps:$4 sm:$0xff]   ;;  %v2002_v63 = vld [vmem:[#allocation6 + $0x1f4] ss:$8 sps:$4 sm:$0xff]   ;;  %v2004_v0 = vld [vmem:[#allocation6 + $0xf0] ss:$8 sps:$4 sm:$0xff]  }
  0x4d   :  { %997 = vmatpush1.bf16.msra.mxu1 %v1944_v22  ;;  %v2005_v1 = vld [vmem:[#allocation6 + $0x1f0] ss:$8 sps:$4 sm:$0xff]   ;;  %v2014_v2 = vld [vmem:[#allocation6 + $0x204] ss:$8 sps:$4 sm:$0xff]   ;;  %v2009_v4 = vld [vmem:[#allocation3 + $0x8] ss:$24 sps:$4 sm:$0xff]  }
  0x4e   :  { %1110 = vmatpush1.bf16.msra.mxu0 %v1945_v23  ;;  %998 = vmatprep.subr.bf16.mxu1 %v1946_v24  ;;  %v2006_v3 = vld [vmem:[#allocation3] ss:$24 sps:$4 sm:$0xff]   ;;  %v2017_v6 = vld [vmem:[#allocation6 + $0x214] ss:$8 sps:$4 sm:$0xff]   ;;  %v2026_v10 = vld [vmem:[#allocation6 + $0x224] ss:$8 sps:$4 sm:$0xff]  }
  0x4f   :  { %1111 = vmatprep.subr.bf16.mxu0 %v1948_v25  ;;  %v2012_v5 = vld [vmem:[#allocation6 + $0x200] ss:$8 sps:$4 sm:$0xff]   ;;  %v2018_v7 = vld [vmem:[#allocation3 + $0x34] ss:$24 sps:$4 sm:$0xff]   ;;  %v2015_v9 = vld [vmem:[#allocation6 + $0x210] ss:$8 sps:$4 sm:$0xff]  }
  0x50   :  { %v2020_v8 = vld [vmem:[#allocation3 + $0x3c] ss:$24 sps:$4 sm:$0xff]   ;;  %v2022_v11 = vld [vmem:[#allocation3 + $0x30] ss:$24 sps:$4 sm:$0xff]   ;;  %v2032_v16 = vld [vmem:[#allocation3 + $0x6c] ss:$24 sps:$4 sm:$0xff]  }
  0x51   :  { %999 = vmatpush1.bf16.msra.mxu1 %v1950_v26  ;;  %v2023_v12 = vld [vmem:[#allocation3 + $0x38] ss:$24 sps:$4 sm:$0xff]   ;;  %v2024_v13 = vld [vmem:[#allocation6 + $0x220] ss:$8 sps:$4 sm:$0xff]   ;;  %v2029_v14 = vld [vmem:[#allocation6 + $0x234] ss:$8 sps:$4 sm:$0xff]  }
  0x52   :  { %1112 = vmatpush1.bf16.msra.mxu0 %v1951_v27  ;;  %1000 = vmatprep.subr.bf16.mxu1 %v1952_v28  ;;  %v2030_v15 = vld [vmem:[#allocation3 + $0x64] ss:$24 sps:$4 sm:$0xff]   ;;  %v2027_v17 = vld [vmem:[#allocation6 + $0x230] ss:$8 sps:$4 sm:$0xff]   ;;  %v2035_v20 = vld [vmem:[#allocation3 + $0x68] ss:$24 sps:$4 sm:$0xff]  }
  0x53   :  { %1113 = vmatprep.subr.bf16.mxu0 %v1954_v29  ;;  %v2038_v18 = vld [vmem:[#allocation6 + $0x244] ss:$8 sps:$4 sm:$0xff]   ;;  %v2034_v19 = vld [vmem:[#allocation3 + $0x60] ss:$24 sps:$4 sm:$0xff]   ;;  %v2041_v22 = vld [vmem:[#allocation6 + $0x254] ss:$8 sps:$4 sm:$0xff]  }
  0x54   :  { %v2036_v21 = vld [vmem:[#allocation6 + $0x240] ss:$8 sps:$4 sm:$0xff]   ;;  %v2042_v23 = vld [vmem:[#allocation3 + $0x94] ss:$24 sps:$4 sm:$0xff]   ;;  %v2039_v25 = vld [vmem:[#allocation6 + $0x250] ss:$8 sps:$4 sm:$0xff]  }
  0x55   :  { %1001 = vmatpush1.bf16.msra.mxu1 %v1956_v30  ;;  %v2044_v24 = vld [vmem:[#allocation3 + $0x9c] ss:$24 sps:$4 sm:$0xff]   ;;  %v2050_v26 = vld [vmem:[#allocation6 + $0x264] ss:$8 sps:$4 sm:$0xff]   ;;  %v2046_v27 = vld [vmem:[#allocation3 + $0x90] ss:$24 sps:$4 sm:$0xff]  }
  0x56   :  { %1114 = vmatpush1.bf16.msra.mxu0 %v1957_v31  ;;  %1002 = vmatprep.subr.bf16.mxu1 %v1958_v32  ;;  %v2047_v28 = vld [vmem:[#allocation3 + $0x98] ss:$24 sps:$4 sm:$0xff]   ;;  %v2048_v29 = vld [vmem:[#allocation6 + $0x260] ss:$8 sps:$4 sm:$0xff]   ;;  %v2053_v30 = vld [vmem:[#allocation6 + $0x274] ss:$8 sps:$4 sm:$0xff]  }
  0x57   :  { %1115 = vmatprep.subr.bf16.mxu0 %v1960_v33  ;;  %v2054_v31 = vld [vmem:[#allocation3 + $0xc4] ss:$24 sps:$4 sm:$0xff]   ;;  %v2051_v33 = vld [vmem:[#allocation6 + $0x270] ss:$8 sps:$4 sm:$0xff]   ;;  %s2227_s2 = smov [#allocation9]  }
  0x58   :  { %v2056_v32 = vld [vmem:[#allocation3 + $0xcc] ss:$24 sps:$4 sm:$0xff]   ;;  %v2075_v49 = vld [vmem:[#allocation6 + $0x2b0] ss:$8 sps:$4 sm:$0xff]   ;;  %s1617_s25 = sshll.u32 %s2227_s2, 4  ;;  %s1618_s25 = int_to_ptr.vmem [resolvable:$true] %s1617_s25 }
  0x59   :  { %1003 = vmatpush1.bf16.msra.mxu1 %v1962_v34  ;;  %v2062_v34 = vld [vmem:[#allocation6 + $0x284] ss:$8 sps:$4 sm:$0xff]   ;;  %v2082_v51 = vld [vmem:[#allocation3 + $0x120] ss:$24 sps:$4 sm:$0xff]   ;;  %s2192_s26 = scalar_lea.vmem %s1618_s25, 2048  ;;  %p2197_p11 = scmp.lt.s32.totalorder %s1618_s25, %s1618_s25 }
  0x5a   :  { %1116 = vmatpush1.bf16.msra.mxu0 %v1963_v35  ;;  %1004 = vmatprep.subr.bf16.mxu1 %v1964_v36  ;;  %v2058_v35 = vld [vmem:[#allocation3 + $0xc0] ss:$24 sps:$4 sm:$0xff]   ;;  %p2193_p10 = scmp.ne.s32.totalorder %s1618_s25, %s2192_s26  ;;  %p2198_p12 = scmp.lt.s32.totalorder %s2192_s26, %s2192_s26 }
  0x5b   :  { %1117 = vmatprep.subr.bf16.mxu0 %v1966_v37  ;;  %v2059_v36 = vld [vmem:[#allocation3 + $0xc8] ss:$24 sps:$4 sm:$0xff]  }
  0x5c   :  { %v2060_v37 = vld [vmem:[#allocation6 + $0x280] ss:$8 sps:$4 sm:$0xff]   ;;  %p2199_p13 = por %p2198_p12, %p2197_p11 }
  0x5d   :  { %1005 = vmatpush1.bf16.msra.mxu1 %v1968_v38  ;;  %v2065_v38 = vld [vmem:[#allocation6 + $0x294] ss:$8 sps:$4 sm:$0xff]  }
  0x5e   :  { %1118 = vmatpush1.bf16.msra.mxu0 %v1969_v39  ;;  %1006 = vmatprep.subr.bf16.mxu1 %v1970_v40  ;;  %v2066_v39 = vld [vmem:[#allocation3 + $0xf4] ss:$24 sps:$4 sm:$0xff]   ;;  %p2200_p0 = pnand %p2199_p13, %p2193_p10 }
  0x5f   :  { %1119 = vmatprep.subr.bf16.mxu0 %v1972_v41  ;;  %v2068_v40 = vld [vmem:[#allocation3 + $0xfc] ss:$24 sps:$4 sm:$0xff]   ;;  %v2063_v41 = vld [vmem:[#allocation6 + $0x290] ss:$8 sps:$4 sm:$0xff]  }
  0x61   :  { %1007 = vmatpush1.bf16.msra.mxu1 %v1974_v42  ;;  %v2074_v42 = vld [vmem:[#allocation6 + $0x2a4] ss:$8 sps:$4 sm:$0xff]  }
  0x62   :  { %1120 = vmatpush1.bf16.msra.mxu0 %v1975_v43  ;;  %1008 = vmatprep.subr.bf16.mxu1 %v1976_v44  ;;  %v2070_v43 = vld [vmem:[#allocation3 + $0xf0] ss:$24 sps:$4 sm:$0xff]  }
  0x63   :  { %1121 = vmatprep.subr.bf16.mxu0 %v1978_v45  ;;  %v2071_v44 = vld [vmem:[#allocation3 + $0xf8] ss:$24 sps:$4 sm:$0xff]   ;;  %v2072_v45 = vld [vmem:[#allocation6 + $0x2a0] ss:$8 sps:$4 sm:$0xff]  }
  0x65   :  { %1009 = vmatpush1.bf16.msra.mxu1 %v1980_v46  ;;  %v2077_v46 = vld [vmem:[#allocation6 + $0x2b4] ss:$8 sps:$4 sm:$0xff]  }
  0x66   :  { %1122 = vmatpush1.bf16.msra.mxu0 %v1981_v47  ;;  %1010 = vmatprep.subr.bf16.mxu1 %v1982_v48  ;;  %v2078_v47 = vld [vmem:[#allocation3 + $0x124] ss:$24 sps:$4 sm:$0xff]  }
  0x67   :  { %1123 = vmatprep.subr.bf16.mxu0 %v1984_v50  ;;  %v2080_v48 = vld [vmem:[#allocation3 + $0x12c] ss:$24 sps:$4 sm:$0xff]  }
  0x68   :  { %v2086_v50 = vld [vmem:[#allocation6 + $0x2c4] ss:$8 sps:$4 sm:$0xff]  }
  0x69   :  { %1011 = vmatpush1.bf16.msra.mxu1 %v1986_v52  ;;  %v2083_v52 = vld [vmem:[#allocation3 + $0x128] ss:$24 sps:$4 sm:$0xff]  }
  0x6a   :  { %1124 = vmatpush1.bf16.msra.mxu0 %v1987_v53  ;;  %1012 = vmatprep.subr.bf16.mxu1 %v1988_v54  ;;  %v2084_v53 = vld [vmem:[#allocation6 + $0x2c0] ss:$8 sps:$4 sm:$0xff]   ;;  %v2089_v54 = vld [vmem:[#allocation6 + $0x2d4] ss:$8 sps:$4 sm:$0xff]  }
  0x6b   :  { %1125 = vmatprep.subr.bf16.mxu0 %v1990_v55  ;;  %v2090_v55 = vld [vmem:[#allocation3 + $0x154] ss:$24 sps:$4 sm:$0xff]  }
  0x6d   :  { %1013 = vmatpush1.bf16.msra.mxu1 %v1992_v56  ;;  %v2092_v56 = vld [vmem:[#allocation3 + $0x15c] ss:$24 sps:$4 sm:$0xff]  }
  0x6e   :  { %1126 = vmatpush1.bf16.msra.mxu0 %v1993_v57  ;;  %1014 = vmatprep.subr.bf16.mxu1 %v1994_v58  ;;  %v2087_v57 = vld [vmem:[#allocation6 + $0x2d0] ss:$8 sps:$4 sm:$0xff]   ;;  %v2098_v58 = vld [vmem:[#allocation6 + $0x2e4] ss:$8 sps:$4 sm:$0xff]  }
  0x6f   :  { %1127 = vmatprep.subr.bf16.mxu0 %v1996_v59  ;;  %v2094_v59 = vld [vmem:[#allocation3 + $0x150] ss:$24 sps:$4 sm:$0xff]  }
  0x71   :  { %1015 = vmatpush1.bf16.msra.mxu1 %v1998_v60  ;;  %v2095_v60 = vld [vmem:[#allocation3 + $0x158] ss:$24 sps:$4 sm:$0xff]  }
  0x72   :  { %1128 = vmatpush1.bf16.msra.mxu0 %v1999_v61  ;;  %1016 = vmatprep.subr.bf16.mxu1 %v2000_v62  ;;  %v2096_v61 = vld [vmem:[#allocation6 + $0x2e0] ss:$8 sps:$4 sm:$0xff]   ;;  %v2101_v62 = vld [vmem:[#allocation6 + $0x2f4] ss:$8 sps:$4 sm:$0xff]  }
  0x73   :  { %1129 = vmatprep.subr.bf16.mxu0 %v2002_v63  ;;  %v2104_v63 = vld [vmem:[#allocation3 + $0x14] ss:$24 sps:$4 sm:$0xff]  }
  0x75   :  { %1017 = vmatpush1.bf16.msra.mxu1 %v2004_v0  ;;  %v2107_v0 = vld [vmem:[#allocation3 + $0xd4] ss:$24 sps:$4 sm:$0xff]  }
  0x76   :  { %1130 = vmatpush1.bf16.msra.mxu0 %v2005_v1  ;;  %1806 = vmatprep.subr.bf16.mxu1 %v2014_v2  ;;  %v2099_v1 = vld [vmem:[#allocation6 + $0x2f0] ss:$8 sps:$4 sm:$0xff]  }
  0x77   :  { %1212 = vmatprep.subr.bf16.mxu0 %v2014_v2  ;;  %v2102_v2 = vld [vmem:[#allocation3 + $0x10] ss:$24 sps:$4 sm:$0xff]  }
  0x78   :  { %1019 = vmatmul.mubr.bf16.vlgmr.msra.gmra.mrb[0].mxu1 %v2006_v3  ;;  %v2105_v3 = vld [vmem:[#allocation3 + $0xd0] ss:$24 sps:$4 sm:$0xff]  }
  0x79   :  { %1132 = vmatmul.mubr.bf16.vlgmr.msra.gmra.mrb[0].mxu0 %v2009_v4  ;;  %1822 = vmatpush1.bf16.msra.mxu1 %v2012_v5  ;;  %v2108_v4 = vld [vmem:[#allocation3 + $0x44] ss:$24 sps:$4 sm:$0xff]  }
  0x7a   :  { %1213 = vmatpush1.bf16.msra.mxu0 %v2012_v5  ;;  %1807 = vmatprep.subr.bf16.mxu1 %v2017_v6  ;;  %v2110_v5 = vld [vmem:[#allocation3 + $0x104] ss:$24 sps:$4 sm:$0xff]  }
  0x7b   :  { %1214 = vmatprep.subr.bf16.mxu0 %v2017_v6  ;;  %1028 = vmatprep.mubr.bf16.mxu1 %v2018_v7  ;;  %v2112_v6 = vld [vmem:[#allocation3 + $0x40] ss:$24 sps:$4 sm:$0xff]  }
  0x7c   :  { %1141 = vmatprep.mubr.bf16.mxu0 %v2020_v8  ;;  %v2113_v7 = vld [vmem:[#allocation3 + $0x100] ss:$24 sps:$4 sm:$0xff]   ;;  %v2114_v8 = vld [vmem:[#allocation3 + $0x74] ss:$24 sps:$4 sm:$0xff]  }
  0x7d   :  { %1823 = vmatpush1.bf16.msra.mxu1 %v2015_v9 }
  0x7e   :  { %1215 = vmatpush1.bf16.msra.mxu0 %v2015_v9  ;;  %1808 = vmatprep.subr.bf16.mxu1 %v2026_v10  ;;  %v2116_v9 = vld [vmem:[#allocation3 + $0x134] ss:$24 sps:$4 sm:$0xff]  }
  0x7f   :  { %1216 = vmatprep.subr.bf16.mxu0 %v2026_v10  ;;  %v2118_v10 = vld [vmem:[#allocation3 + $0x70] ss:$24 sps:$4 sm:$0xff]  }
  0x80   :  { %1029 = vmatmul.mubr.bf16.gmra.mrb[4].mxu1 %v2022_v11  ;;  %v2119_v11 = vld [vmem:[#allocation3 + $0x130] ss:$24 sps:$4 sm:$0xff]  }
  0x81   :  { %1142 = vmatmul.mubr.bf16.gmra.mrb[4].mxu0 %v2023_v12  ;;  %1824 = vmatpush1.bf16.msra.mxu1 %v2024_v13  ;;  %v2120_v12 = vld [vmem:[#allocation3 + $0xa4] ss:$24 sps:$4 sm:$0xff]  }
  0x82   :  { %1217 = vmatpush1.bf16.msra.mxu0 %v2024_v13  ;;  %1809 = vmatprep.subr.bf16.mxu1 %v2029_v14  ;;  %v2122_v13 = vld [vmem:[#allocation3 + $0x164] ss:$24 sps:$4 sm:$0xff]  }
  0x83   :  { %1218 = vmatprep.subr.bf16.mxu0 %v2029_v14  ;;  %1038 = vmatprep.mubr.bf16.mxu1 %v2030_v15  ;;  %v2124_v14 = vld [vmem:[#allocation3 + $0xa0] ss:$24 sps:$4 sm:$0xff]  }
  0x84   :  { %1151 = vmatprep.mubr.bf16.mxu0 %v2032_v16  ;;  %v2125_v15 = vld [vmem:[#allocation3 + $0x160] ss:$24 sps:$4 sm:$0xff]  }
  0x85   :  { %1825 = vmatpush1.bf16.msra.mxu1 %v2027_v17 }
  0x86   :  { %1219 = vmatpush1.bf16.msra.mxu0 %v2027_v17  ;;  %1810 = vmatprep.subr.bf16.mxu1 %v2038_v18 }
  0x87   :  { %1220 = vmatprep.subr.bf16.mxu0 %v2038_v18 }
  0x88   :  { %1039 = vmatmul.mubr.bf16.gmra.mrb[8].mxu1 %v2034_v19 }
  0x89   :  { %1152 = vmatmul.mubr.bf16.gmra.mrb[8].mxu0 %v2035_v20  ;;  %1826 = vmatpush1.bf16.msra.mxu1 %v2036_v21 }
  0x8a   :  { %1221 = vmatpush1.bf16.msra.mxu0 %v2036_v21  ;;  %1811 = vmatprep.subr.bf16.mxu1 %v2041_v22 }
  0x8b   :  { %1222 = vmatprep.subr.bf16.mxu0 %v2041_v22  ;;  %1048 = vmatprep.mubr.bf16.mxu1 %v2042_v23 }
  0x8c   :  { %1161 = vmatprep.mubr.bf16.mxu0 %v2044_v24 }
  0x8d   :  { %1827 = vmatpush1.bf16.msra.mxu1 %v2039_v25 }
  0x8e   :  { %1223 = vmatpush1.bf16.msra.mxu0 %v2039_v25  ;;  %1812 = vmatprep.subr.bf16.mxu1 %v2050_v26 }
  0x8f   :  { %1224 = vmatprep.subr.bf16.mxu0 %v2050_v26 }
  0x90   :  { %1049 = vmatmul.mubr.bf16.gmra.mrb[12].mxu1 %v2046_v27 }
  0x91   :  { %1162 = vmatmul.mubr.bf16.gmra.mrb[12].mxu0 %v2047_v28  ;;  %1828 = vmatpush1.bf16.msra.mxu1 %v2048_v29 }
  0x92   :  { %1225 = vmatpush1.bf16.msra.mxu0 %v2048_v29  ;;  %1813 = vmatprep.subr.bf16.mxu1 %v2053_v30 }
  0x93   :  { %1226 = vmatprep.subr.bf16.mxu0 %v2053_v30  ;;  %1058 = vmatprep.mubr.bf16.mxu1 %v2054_v31 }
  0x94   :  { %1171 = vmatprep.mubr.bf16.mxu0 %v2056_v32 }
  0x95   :  { %1829 = vmatpush1.bf16.msra.mxu1 %v2051_v33 }
  0x96   :  { %1227 = vmatpush1.bf16.msra.mxu0 %v2051_v33  ;;  %1814 = vmatprep.subr.bf16.mxu1 %v2062_v34 }
  0x97   :  { %1228 = vmatprep.subr.bf16.mxu0 %v2062_v34 }
  0x98   :  { %1059 = vmatmul.mubr.bf16.gmra.mrb[16].mxu1 %v2058_v35 }
  0x99   :  { %1172 = vmatmul.mubr.bf16.gmra.mrb[16].mxu0 %v2059_v36  ;;  %1830 = vmatpush1.bf16.msra.mxu1 %v2060_v37 }
  0x9a   :  { %1229 = vmatpush1.bf16.msra.mxu0 %v2060_v37  ;;  %1815 = vmatprep.subr.bf16.mxu1 %v2065_v38 }
  0x9b   :  { %1230 = vmatprep.subr.bf16.mxu0 %v2065_v38  ;;  %1068 = vmatprep.mubr.bf16.mxu1 %v2066_v39 }
  0x9c   :  { %1181 = vmatprep.mubr.bf16.mxu0 %v2068_v40 }
  0x9d   :  { %1831 = vmatpush1.bf16.msra.mxu1 %v2063_v41 }
  0x9e   :  { %1231 = vmatpush1.bf16.msra.mxu0 %v2063_v41  ;;  %1816 = vmatprep.subr.bf16.mxu1 %v2074_v42 }
  0x9f   :  { %1232 = vmatprep.subr.bf16.mxu0 %v2074_v42 }
  0xa0   :  { %1069 = vmatmul.mubr.bf16.gmra.mrb[20].mxu1 %v2070_v43 }
  0xa1   :  { %1182 = vmatmul.mubr.bf16.gmra.mrb[20].mxu0 %v2071_v44  ;;  %1832 = vmatpush1.bf16.msra.mxu1 %v2072_v45 }
  0xa2   :  { %1233 = vmatpush1.bf16.msra.mxu0 %v2072_v45  ;;  %1817 = vmatprep.subr.bf16.mxu1 %v2077_v46 }
  0xa3   :  { %1234 = vmatprep.subr.bf16.mxu0 %v2077_v46  ;;  %1078 = vmatprep.mubr.bf16.mxu1 %v2078_v47 }
  0xa4   :  { %1191 = vmatprep.mubr.bf16.mxu0 %v2080_v48 }
  0xa5   :  { %1833 = vmatpush1.bf16.msra.mxu1 %v2075_v49 }
  0xa6   :  { %1235 = vmatpush1.bf16.msra.mxu0 %v2075_v49  ;;  %1818 = vmatprep.subr.bf16.mxu1 %v2086_v50 }
  0xa7   :  { %1236 = vmatprep.subr.bf16.mxu0 %v2086_v50 }
  0xa8   :  { %1079 = vmatmul.mubr.bf16.gmra.mrb[24].mxu1 %v2082_v51 }
  0xa9   :  { %1192 = vmatmul.mubr.bf16.gmra.mrb[24].mxu0 %v2083_v52  ;;  %1834 = vmatpush1.bf16.msra.mxu1 %v2084_v53 }
  0xaa   :  { %1237 = vmatpush1.bf16.msra.mxu0 %v2084_v53  ;;  %1819 = vmatprep.subr.bf16.mxu1 %v2089_v54 }
  0xab   :  { %1238 = vmatprep.subr.bf16.mxu0 %v2089_v54  ;;  %1088 = vmatprep.mubr.bf16.mxu1 %v2090_v55 }
  0xac   :  { %1201 = vmatprep.mubr.bf16.mxu0 %v2092_v56 }
  0xad   :  { %1835 = vmatpush1.bf16.msra.mxu1 %v2087_v57 }
  0xae   :  { %1239 = vmatpush1.bf16.msra.mxu0 %v2087_v57  ;;  %1820 = vmatprep.subr.bf16.mxu1 %v2098_v58 }
  0xaf   :  { %1240 = vmatprep.subr.bf16.mxu0 %v2098_v58 }
  0xb0   :  { %1089 = vmatmul.mubr.bf16.gmra.mrb[28].mxu1 %v2094_v59 }
  0xb1   :  { %1202 = vmatmul.mubr.bf16.gmra.mrb[28].mxu0 %v2095_v60  ;;  %1836 = vmatpush1.bf16.msra.mxu1 %v2096_v61 }
  0xb2   :  { %1241 = vmatpush1.bf16.msra.mxu0 %v2096_v61  ;;  %1821 = vmatprep.subr.bf16.mxu1 %v2101_v62 }
  0xb3   :  { %1242 = vmatprep.subr.bf16.mxu0 %v2101_v62  ;;  %1244 = vmatprep.mubr.bf16.mxu0 %v2104_v63 }
  0xb4   :  { %1284 = vmatprep.mubr.bf16.mxu1 %v2107_v0 }
  0xb5   :  { %1837 = vmatpush1.bf16.msra.mxu1 %v2099_v1 }
  0xb6   :  { %1243 = vmatpush1.bf16.msra.mxu0 %v2099_v1 }
  0xb8   :  { %1285 = vmatmul.mubr.bf16.vlgmr.msra.gmra.mrb[32].mxu1 %v2105_v3  ;;  %v1426_v3 = vlaneseq }
  0xb9   :  { %1245 = vmatmul.mubr.bf16.vlgmr.msra.gmra.mrb[0].mxu0 %v2102_v2  ;;  %1294 = vmatprep.mubr.bf16.mxu1 %v2110_v5 }
  0xba   :  { %1254 = vmatprep.mubr.bf16.mxu0 %v2108_v4  ;;  %v1427_v5 = vshrl.u32 %v1426_v3, 7 }
  0xc0   :  { %1295 = vmatmul.mubr.bf16.gmra.mrb[36].mxu1 %v2113_v7 }
  0xc1   :  { %1255 = vmatmul.mubr.bf16.gmra.mrb[4].mxu0 %v2112_v6  ;;  %1304 = vmatprep.mubr.bf16.mxu1 %v2116_v9 }
  0xc2   :  { %1264 = vmatprep.mubr.bf16.mxu0 %v2114_v8 }
  0xc8   :  { %1305 = vmatmul.mubr.bf16.gmra.mrb[40].mxu1 %v2119_v11 }
  0xc9   :  { %1265 = vmatmul.mubr.bf16.gmra.mrb[8].mxu0 %v2118_v10  ;;  %1314 = vmatprep.mubr.bf16.mxu1 %v2122_v13 }
  0xca   :  { %1274 = vmatprep.mubr.bf16.mxu0 %v2120_v12 }
  0xd0   :  { %1315 = vmatmul.mubr.bf16.gmra.mrb[44].mxu1 %v2125_v15 }
  0xd1   :  { %1275 = vmatmul.mubr.bf16.gmra.mrb[12].mxu0 %v2124_v14 }
 0x14b   :  { %v2287_v16 = vpop.f32.mrb[0].mxu1 }
 0x14c   :  { %v2289_v17 = vpop.f32.mrb[1].mxu1 }
 0x14d   :  { %v2291_v18 = vpop.f32.mrb[2].mxu1 }
 0x14e   :  { %v2293_v19 = vpop.f32.mrb[3].mxu1 }
 0x153   :  { %v2295_v20 = vpop.f32.mrb[4].mxu1 }
 0x154   :  { %v2297_v21 = vpop.f32.mrb[5].mxu1 }
 0x155   :  { %v2299_v22 = vpop.f32.mrb[6].mxu1 }
 0x156   :  { %v2301_v23 = vpop.f32.mrb[7].mxu1 }
 0x15b   :  { %v2303_v24 = vpop.f32.mrb[8].mxu1 }
 0x15c   :  { %v2305_v25 = vpop.f32.mrb[9].mxu1 }
 0x15d   :  { %v2307_v26 = vpop.f32.mrb[10].mxu1 }
 0x15e   :  { %v2309_v27 = vpop.f32.mrb[11].mxu1 }
 0x163   :  { %v2311_v28 = vpop.f32.mrb[12].mxu1 }
 0x164   :  { %v2313_v29 = vpop.f32.mrb[13].mxu1 }
 0x165   :  { %v2315_v30 = vpop.f32.mrb[14].mxu1 }
 0x166   :  { %v2317_v31 = vpop.f32.mrb[15].mxu1 }
 0x16b   :  { %v1060_v32 = vpop.f32.mrb[16].mxu1 }
 0x16c   :  { %v1173_v33 = vpop.f32.mrb[16].mxu0  ;;  %v1062_v35 = vpop.f32.mrb[17].mxu1 }
 0x16d   :  { %v1174_v34 = vadd.f32 %v1173_v33, %v1060_v32  ;;  %v1175_v36 = vpop.f32.mrb[17].mxu0  ;;  %v1064_v38 = vpop.f32.mrb[18].mxu1  ;;  %v1428_v33 = vsub.s32 0, %v1427_v5 }
 0x16e   :  { %v1176_v37 = vadd.f32 %v1175_v36, %v1062_v35  ;;  %v1177_v39 = vpop.f32.mrb[18].mxu0  ;;  %v1066_v41 = vpop.f32.mrb[19].mxu1  ;;  %v1424_v36 = vld [vmem:[#allocation8] sm:$0x3] }
 0x16f   :  { %v1178_v40 = vadd.f32 %v1177_v39, %v1064_v38  ;;  %v1179_v42 = vpop.f32.mrb[19].mxu0  ;;  %v1432_v38 = vsub.s32 1, %v1427_v5  ;;  %v2345_v39 = vrot.slane %v1424_v36, %v1428_v33 }
 0x170   :  { %v2319_v43 = vadd.f32 %v1179_v42, %v1066_v41 }
 0x173   :  { %v1070_v44 = vpop.f32.mrb[20].mxu1 }
 0x174   :  { %v1183_v45 = vpop.f32.mrb[20].mxu0  ;;  %v1072_v47 = vpop.f32.mrb[21].mxu1 }
 0x175   :  { %v2321_v46 = vadd.f32 %v1183_v45, %v1070_v44  ;;  %v1185_v48 = vpop.f32.mrb[21].mxu0  ;;  %v1074_v50 = vpop.f32.mrb[22].mxu1  ;;  %v2347_v44 = vrot.slane %v1424_v36, %v1432_v38 }
 0x176   :  { %v2323_v49 = vadd.f32 %v1185_v48, %v1072_v47  ;;  %v1187_v51 = vpop.f32.mrb[22].mxu0  ;;  %v1076_v53 = vpop.f32.mrb[23].mxu1 }
 0x177   :  { %v2325_v52 = vadd.f32 %v1187_v51, %v1074_v50  ;;  %v1189_v54 = vpop.f32.mrb[23].mxu0 }
 0x178   :  { %v2327_v55 = vadd.f32 %v1189_v54, %v1076_v53 }
 0x17b   :  { %v1080_v56 = vpop.f32.mrb[24].mxu1 }
 0x17c   :  { %v1193_v57 = vpop.f32.mrb[24].mxu0  ;;  %v1082_v59 = vpop.f32.mrb[25].mxu1 }
 0x17d   :  { %v2329_v58 = vadd.f32 %v1193_v57, %v1080_v56  ;;  %v1195_v60 = vpop.f32.mrb[25].mxu0  ;;  %v1084_v62 = vpop.f32.mrb[26].mxu1 }
 0x17e   :  { %v2331_v61 = vadd.f32 %v1195_v60, %v1082_v59  ;;  %v1197_v63 = vpop.f32.mrb[26].mxu0  ;;  %v1086_v1 = vpop.f32.mrb[27].mxu1 }
 0x17f   :  { %v2333_v0 = vadd.f32 %v1197_v63, %v1084_v62  ;;  %v1199_v2 = vpop.f32.mrb[27].mxu0 }
 0x180   :  { %v2335_v4 = vadd.f32 %v1199_v2, %v1086_v1 }
 0x183   :  { %v1090_v6 = vpop.f32.mrb[28].mxu1 }
 0x184   :  { %v1203_v7 = vpop.f32.mrb[28].mxu0  ;;  %v1092_v9 = vpop.f32.mrb[29].mxu1 }
 0x185   :  { %v2337_v8 = vadd.f32 %v1203_v7, %v1090_v6  ;;  %v1205_v10 = vpop.f32.mrb[29].mxu0  ;;  %v1094_v12 = vpop.f32.mrb[30].mxu1 }
 0x186   :  { %v2339_v11 = vadd.f32 %v1205_v10, %v1092_v9  ;;  %v1207_v13 = vpop.f32.mrb[30].mxu0  ;;  %v1096_v15 = vpop.f32.mrb[31].mxu1 }
 0x187   :  { %v2341_v14 = vadd.f32 %v1207_v13, %v1094_v12  ;;  %v1209_v32 = vpop.f32.mrb[31].mxu0 }
 0x188   :  { %v2343_v35 = vadd.f32 %v1209_v32, %v1096_v15 }
 0x18b   :  { %v1286_v42 = vpop.f32.mrb[32].mxu1 }
 0x18c   :  { %v1246_v41 = vpop.f32.mrb[0].mxu0  ;;  %v1287_v47 = vadd.f32 %v1286_v42, %v1174_v34  ;;  %v1288_v50 = vpop.f32.mrb[33].mxu1 }
 0x18d   :  { %v1838_v45 = vadd.f32 %v1246_v41, %v2287_v16  ;;  %v1248_v48 = vpop.f32.mrb[1].mxu0  ;;  %v1289_v53 = vadd.f32 %v1288_v50, %v1176_v37  ;;  %v1290_v56 = vpop.f32.mrb[34].mxu1 }
 0x18e   :  { %v1839_v51 = vadd.f32 %v1248_v48, %v2289_v17  ;;  %v1250_v54 = vpop.f32.mrb[2].mxu0  ;;  %v1452_v59 = vadd.f32 %v2345_v39, %v1287_v47  ;;  %v1291_v62 = vadd.f32 %v1290_v56, %v1178_v40  ;;  %v1292_v1 = vpop.f32.mrb[35].mxu1 }
 0x18f   :  { %v1436_v57 = vadd.f32 %v1838_v45, %v2345_v39  ;;  %v1840_v60 = vadd.f32 %v1250_v54, %v2291_v18  ;;  %v1252_v63 = vpop.f32.mrb[3].mxu0  ;;  %v1453_v16 = vadd.f32 %v2347_v44, %v1289_v53  ;;  %v1293_v17 = vadd.f32 %v1292_v1, %v2319_v43 }
 0x190   :  { %v1437_v2 = vadd.f32 %v1839_v51, %v2347_v44  ;;  %v1841_v34 = vadd.f32 %v1252_v63, %v2293_v19  ;;  %v1484_v3 = vmax.f32 %v1452_v59, 0.0  ;;  %v1454_v6 = vadd.f32 %v2345_v39, %v1291_v62 }
 0x191   :  { %v1468_v37 = vmax.f32 %v1436_v57, 0.0  ;;  %v1438_v5 = vadd.f32 %v1840_v60, %v2345_v39  ;;  %v1485_v9 = vmax.f32 %v1453_v16, 0.0  ;;  %v1455_v40 = vadd.f32 %v2347_v44, %v1293_v17 }
 0x192   :  { %v1469_v7 = vmax.f32 %v1437_v2, 0.0  ;;  %v1439_v18 = vadd.f32 %v1841_v34, %v2347_v44  ;;  %v1486_v12 = vmax.f32 %v1454_v6, 0.0 }
 0x193   :  { %v1470_v10 = vmax.f32 %v1438_v5, 0.0  ;;  %v1798_v15 = vpack.c.bf16 %v1485_v9, %v1484_v3  ;;  %v1487_v19 = vmax.f32 %v1455_v40, 0.0  ;;  %v1296_v43 = vpop.f32.mrb[36].mxu1 }
 0x194   :  { %v1790_v13 = vpack.c.bf16 %v1469_v7, %v1468_v37  ;;  %v1471_v32 = vmax.f32 %v1439_v18, 0.0  ;;  %v1256_v33 = vpop.f32.mrb[4].mxu0  ;;  %v1297_v38 = vadd.f32 %v1296_v43, %v2321_v46  ;;  %v1298_v42 = vpop.f32.mrb[37].mxu1 }
 0x195   :  { %v1842_v36 = vadd.f32 %v1256_v33, %v2295_v20  ;;  %v1258_v41 = vpop.f32.mrb[5].mxu0  ;;  %1604 = vst [vmem:[#allocation9 + $0x40] sm:$0xff] %v1798_v15  ;;  %v1799_v47 = vpack.c.bf16 %v1487_v19, %v1486_v12  ;;  %v1299_v50 = vadd.f32 %v1298_v42, %v2323_v49  ;;  %v1300_v53 = vpop.f32.mrb[38].mxu1 }
 0x196   :  { %1596 = vst [vmem:[#allocation9] sm:$0xff] %v1790_v13  ;;  %v1791_v45 = vpack.c.bf16 %v1471_v32, %v1470_v10  ;;  %v1843_v48 = vadd.f32 %v1258_v41, %v2297_v21  ;;  %v1260_v51 = vpop.f32.mrb[6].mxu0  ;;  %v1456_v56 = vadd.f32 %v2345_v39, %v1297_v38  ;;  %v1301_v46 = vadd.f32 %v1300_v53, %v2325_v52  ;;  %v1302_v59 = vpop.f32.mrb[39].mxu1 }
 0x197   :  { %v1440_v54 = vadd.f32 %v1842_v36, %v2345_v39  ;;  %v1844_v20 = vadd.f32 %v1260_v51, %v2299_v22  ;;  %v1262_v57 = vpop.f32.mrb[7].mxu0  ;;  %1605 = vst [vmem:[#allocation9 + $0x48] sm:$0xff] %v1799_v47  ;;  %v1457_v21 = vadd.f32 %v2347_v44, %v1299_v50  ;;  %v1303_v62 = vadd.f32 %v1302_v59, %v2327_v55 }
 0x198   :  { %1597 = vst [vmem:[#allocation9 + $0x8] sm:$0xff] %v1791_v45  ;;  %v1441_v60 = vadd.f32 %v1843_v48, %v2347_v44  ;;  %v1845_v49 = vadd.f32 %v1262_v57, %v2301_v23  ;;  %v1488_v1 = vmax.f32 %v1456_v56, 0.0  ;;  %v1458_v22 = vadd.f32 %v2345_v39, %v1301_v46 }
 0x199   :  { %v1472_v63 = vmax.f32 %v1440_v54, 0.0  ;;  %v1442_v2 = vadd.f32 %v1844_v20, %v2345_v39  ;;  %v1489_v52 = vmax.f32 %v1457_v21, 0.0  ;;  %v1459_v17 = vadd.f32 %v2347_v44, %v1303_v62 }
 0x19a   :  { %v1473_v16 = vmax.f32 %v1441_v60, 0.0  ;;  %v1443_v34 = vadd.f32 %v1845_v49, %v2347_v44  ;;  %v1490_v3 = vmax.f32 %v1458_v22, 0.0 }
 0x19b   :  { %v1474_v37 = vmax.f32 %v1442_v2, 0.0  ;;  %v1800_v6 = vpack.c.bf16 %v1489_v52, %v1488_v1  ;;  %v1491_v23 = vmax.f32 %v1459_v17, 0.0  ;;  %v1306_v55 = vpop.f32.mrb[40].mxu1 }
 0x19c   :  { %v1792_v5 = vpack.c.bf16 %v1473_v16, %v1472_v63  ;;  %v1475_v7 = vmax.f32 %v1443_v34, 0.0  ;;  %v1266_v9 = vpop.f32.mrb[8].mxu0  ;;  %v1307_v40 = vadd.f32 %v1306_v55, %v2329_v58  ;;  %v1308_v12 = vpop.f32.mrb[41].mxu1 }
 0x19d   :  { %v1846_v18 = vadd.f32 %v1266_v9, %v2303_v24  ;;  %v1268_v10 = vpop.f32.mrb[9].mxu0  ;;  %1606 = vst [vmem:[#allocation9 + $0x50] sm:$0xff] %v1800_v6  ;;  %v1801_v15 = vpack.c.bf16 %v1491_v23, %v1490_v3  ;;  %v1309_v19 = vadd.f32 %v1308_v12, %v2331_v61  ;;  %v1310_v43 = vpop.f32.mrb[42].mxu1 }
 0x19e   :  { %1598 = vst [vmem:[#allocation9 + $0x10] sm:$0xff] %v1792_v5  ;;  %v1793_v13 = vpack.c.bf16 %v1475_v7, %v1474_v37  ;;  %v1847_v32 = vadd.f32 %v1268_v10, %v2305_v25  ;;  %v1270_v33 = vpop.f32.mrb[10].mxu0  ;;  %v1460_v38 = vadd.f32 %v2345_v39, %v1307_v40  ;;  %v1311_v58 = vadd.f32 %v1310_v43, %v2333_v0  ;;  %v1312_v42 = vpop.f32.mrb[43].mxu1 }
 0x19f   :  { %v1444_v36 = vadd.f32 %v1846_v18, %v2345_v39  ;;  %v1848_v24 = vadd.f32 %v1270_v33, %v2307_v26  ;;  %v1272_v41 = vpop.f32.mrb[11].mxu0  ;;  %1607 = vst [vmem:[#allocation9 + $0x58] sm:$0xff] %v1801_v15  ;;  %v1461_v25 = vadd.f32 %v2347_v44, %v1309_v19  ;;  %v1313_v47 = vadd.f32 %v1312_v42, %v2335_v4 }
 0x1a0   :  { %1599 = vst [vmem:[#allocation9 + $0x18] sm:$0xff] %v1793_v13  ;;  %v1445_v45 = vadd.f32 %v1847_v32, %v2347_v44  ;;  %v1849_v61 = vadd.f32 %v1272_v41, %v2309_v27  ;;  %v1492_v50 = vmax.f32 %v1460_v38, 0.0  ;;  %v1462_v26 = vadd.f32 %v2345_v39, %v1311_v58 }
 0x1a1   :  { %v1476_v48 = vmax.f32 %v1444_v36, 0.0  ;;  %v1446_v51 = vadd.f32 %v1848_v24, %v2345_v39  ;;  %v1493_v0 = vmax.f32 %v1461_v25, 0.0  ;;  %v1463_v56 = vadd.f32 %v2347_v44, %v1313_v47 }
 0x1a2   :  { %v1477_v53 = vmax.f32 %v1445_v45, 0.0  ;;  %v1447_v54 = vadd.f32 %v1849_v61, %v2347_v44  ;;  %v1494_v46 = vmax.f32 %v1462_v26, 0.0 }
 0x1a3   :  { %v1478_v20 = vmax.f32 %v1446_v51, 0.0  ;;  %v1802_v59 = vpack.c.bf16 %v1493_v0, %v1492_v50  ;;  %v1495_v27 = vmax.f32 %v1463_v56, 0.0  ;;  %v1316_v4 = vpop.f32.mrb[44].mxu1 }
 0x1a4   :  { %v1794_v57 = vpack.c.bf16 %v1477_v53, %v1476_v48  ;;  %v1479_v60 = vmax.f32 %v1447_v54, 0.0  ;;  %v1276_v21 = vpop.f32.mrb[12].mxu0  ;;  %v1317_v62 = vadd.f32 %v1316_v4, %v2337_v8  ;;  %v1318_v1 = vpop.f32.mrb[45].mxu1 }
 0x1a5   :  { %v1850_v49 = vadd.f32 %v1276_v21, %v2311_v28  ;;  %v1278_v63 = vpop.f32.mrb[13].mxu0  ;;  %1608 = vst [vmem:[#allocation9 + $0x60] sm:$0xff] %v1802_v59  ;;  %v1803_v22 = vpack.c.bf16 %v1495_v27, %v1494_v46  ;;  %v1319_v52 = vadd.f32 %v1318_v1, %v2339_v11  ;;  %v1320_v17 = vpop.f32.mrb[46].mxu1 }
 0x1a6   :  { %1600 = vst [vmem:[#allocation9 + $0x20] sm:$0xff] %v1794_v57  ;;  %v1795_v2 = vpack.c.bf16 %v1479_v60, %v1478_v20  ;;  %v1851_v16 = vadd.f32 %v1278_v63, %v2313_v29  ;;  %v1280_v34 = vpop.f32.mrb[14].mxu0  ;;  %v1464_v3 = vadd.f32 %v2345_v39, %v1317_v62  ;;  %v1321_v8 = vadd.f32 %v1320_v17, %v2341_v14  ;;  %v1322_v6 = vpop.f32.mrb[47].mxu1 }
 0x1a7   :  { %v1448_v37 = vadd.f32 %v1850_v49, %v2345_v39  ;;  %v1852_v28 = vadd.f32 %v1280_v34, %v2315_v30  ;;  %v1282_v5 = vpop.f32.mrb[15].mxu0  ;;  %1609 = vst [vmem:[#allocation9 + $0x68] sm:$0xff] %v1803_v22  ;;  %v1465_v29 = vadd.f32 %v2347_v44, %v1319_v52  ;;  %v1323_v23 = vadd.f32 %v1322_v6, %v2343_v35 }
 0x1a8   :  { %1601 = vst [vmem:[#allocation9 + $0x28] sm:$0xff] %v1795_v2  ;;  %v1449_v7 = vadd.f32 %v1851_v16, %v2347_v44  ;;  %v1853_v11 = vadd.f32 %v1282_v5, %v2317_v31  ;;  %v1496_v55 = vmax.f32 %v1464_v3, 0.0  ;;  %v1466_v30 = vadd.f32 %v2345_v39, %v1321_v8 }
 0x1a9   :  { %v1480_v9 = vmax.f32 %v1448_v37, 0.0  ;;  %v1450_v18 = vadd.f32 %v1852_v28, %v2345_v39  ;;  %v1497_v14 = vmax.f32 %v1465_v29, 0.0  ;;  %v1467_v12 = vadd.f32 %v2347_v44, %v1323_v23 }
 0x1aa   :  { %v1481_v40 = vmax.f32 %v1449_v7, 0.0  ;;  %v1451_v10 = vadd.f32 %v1853_v11, %v2347_v44  ;;  %v1498_v15 = vmax.f32 %v1466_v30, 0.0 }
 0x1ab   :  { %v1482_v13 = vmax.f32 %v1450_v18, 0.0  ;;  %v1804_v31 = vpack.c.bf16 %v1497_v14, %v1496_v55  ;;  %v1499_v35 = vmax.f32 %v1467_v12, 0.0 }
 0x1ac   :  { %v1796_v32 = vpack.c.bf16 %v1481_v40, %v1480_v9  ;;  %v1483_v19 = vmax.f32 %v1451_v10, 0.0 }
 0x1ad   :  { %1610 = vst [vmem:[#allocation9 + $0x70] sm:$0xff] %v1804_v31  ;;  %v1805_v43 = vpack.c.bf16 %v1499_v35, %v1498_v15 }
 0x1ae   :  { %1602 = vst [vmem:[#allocation9 + $0x30] sm:$0xff] %v1796_v32  ;;  %v1797_v33 = vpack.c.bf16 %v1483_v19, %v1482_v13 }
 0x1af   :  { %1611 = vst [vmem:[#allocation9 + $0x78] sm:$0xff] %v1805_v43 }
 0x1b0   :  { %1603 = vst [vmem:[#allocation9 + $0x38] sm:$0xff] %v1797_v33 }
 0x1b1   :  { %2203 = shalt.err (!%p2200_p0)
}
 0x1b2   :  { %s2204_s29 = scalar_lea.hbm %s2428_s3, 2048 }
 0x1b3   :  { %p2205_p1 = scmp.ne.s32.totalorder %s2428_s3, %s2204_s29  ;;  %p2208_p2 = scmp.lt.u32.totalorder %s2204_s29, %s2428_s3 }
 0x1b5   :  { %p2210_p3 = pnand %p2208_p2, %p2205_p1 }
 0x1b7   :  { %2213 = shalt.err (!%p2210_p3)
}
 0x1b8   :  { %1623 = dma.vmem_to_hbm [thread:$0]  %s1618_s25, 2048, %s2428_s3, [#allocation5], %s2221_s22, %s2221_s22, %s2222_s23  }
 0x1b9   :  { %2218 = dma.done.wait [#allocation5], 2048  }
 0x1ba   :  { %2219 = vsyncadd [#allocation5], 4294965248 }
 0x1bb   :  { %1627 = vsyncpa [#allocation4], 1 }
 0x1bc   :  { %1628 = vsyncpa [#allocation7], 1 }
 0x1bd   :  { %1629 = vsyncpa [#allocation5], 1 }

// kernel: inception_resnet_c_forward.7
= control target key start
LH: loop header
LB: loop body
LE: loop exit
PB: predicated region body
PF: predicated region fallthrough
CT: control target
= control target key end

     0   :  { %s5643_s0 = inlined_call_operand.hbm [shape: bf16[128,512], index: 0, kind: input, shape index: {}]   ;;  %s5644_s1 = inlined_call_operand.hbm [shape: bf16[512,2304], index: 1, kind: input, shape index: {}]   ;;  %s5645_s2 = inlined_call_operand.hbm [shape: f32[1,2304], index: 2, kind: input, shape index: {}]   ;;  %s5646_s3 = inlined_call_operand.hbm [shape: f32[128,2304], index: 3, kind: input, shape index: {}]   ;;  %s5647_s4 = inlined_call_operand.hbm [shape: f32[128,2304], index: 4, kind: output, shape index: {}]  }
   0x1   :  { %5660 = sst [smem:[#allocation20_spill]] %s5644_s1 }
   0x2   :  { %9 = vsyncpa [#allocation4], 0 }
   0x3   :  { %10 = vsyncpa [#allocation7], 0 }
   0x4   :  { %12 = vsyncpa [#allocation7 + $0x1], 0 }
   0x5   :  { %13 = vsyncpa [#allocation10], 0 }
   0x6   :  { %15 = vsyncpa [#allocation10 + $0x1], 0 }
   0x7   :  { %16 = vsyncpa [#allocation5], 0 }
   0x8   :  { %18 = vsyncpa [#allocation5 + $0x1], 0  ;;  %s4671_s15 = smov 0   ;;  %s4673_s16 = smov 0  }
   0x9   :  { %s4675_s17 = smov 0   ;;  %s4677_s18 = smov 0  }
   0xa   :  { %s4679_s19 = smov 0   ;;  %s4681_s20 = smov 0  }
   0xb LB: > { %5661 = sst [smem:[#allocation16_spill]] %s4616_s17  ;;  %s39_s21 = sadd.s32 1, %s4624_s19  ;;  %s4628_s20 = sphi %s4681_s20, %s24_s20   ;;  %s4624_s19 = sphi %s4679_s19, %s5689_s19   ;;  %s4620_s18 = sphi %s4677_s18, %s5688_s18   ;;  %s4616_s17 = sphi %s4675_s17, %s5684_s17   ;;  %s4612_s16 = sphi %s4673_s16, %s5687_s16   ;;  %s4608_s15 = sphi %s4671_s15, %s5686_s15  }
   0xc   : > { %s80_s22 = sadd.s32 1, %s4616_s17  ;;  %p41_p0 = scmp.ge.s32.totalorder %s39_s21, 3 }
   0xd   : > { %p5648_p1 = scmp.ne.s32.totalorder %s4616_s17, %s4612_s16  ;;  %p88_p2 = scmp.eq.s32.totalorder %s4628_s20, 0 }
   0xe   : > { %s5691_s21 = smov (%p41_p0, %s39_s21), 0  ;;  %p4020_p4 = scmp.lt.s32.totalorder %s4628_s20, 3 }
   0xf   : > { %5662 = sst [smem:[#allocation17_spill]] %s5691_s21  ;;  %p89_p3 = por %p88_p2, %p5648_p1 }
  0x10   : > { %s76_s23 = ssub.s32 %s4624_s19, %s5691_s21  ;;  %s218_s24 = sand.u32 1, %s4628_s20  }
  0x11   : > { %p78_p5 = scmp.eq.s32.totalorder %s76_s23, 0  ;;  %s4716_s25 = sand.u32 1, %s4616_s17  }
  0x12   : > { %s3883_s26 = smul.u32 384, %s4624_s19  ;;  %s5664_s1 = sld [smem:[#allocation20_spill]] }
  0x13   : > { %s4720_s27 = scalar_select %p78_p5, %s4616_s17, %s80_s22  }
  0x14   : > { %s3983_s28 = smul.u32 1536, %s4716_s25  ;;  %p4728_p6 = pnand %p4020_p4, %p89_p3 }
  0x15   : > { %5663 = sst [smem:[#allocation18_spill]] %s4720_s27  ;;  %s4734_s9 = scalar_lea.sflag [#allocation7], %s218_s24 }
  0x16   : > { %s5665_s6 = scalar_select %p4728_p6, 1, 0 }
  0x17   : > { %s222_s7 = scalar_lea.vmem [#allocation6], %s3983_s28  ;;  %p4740_p8 = pneg %p4728_p6 }
  0x18   : > { %s4726_s5 = scalar_lea.hbm %s5664_s1, %s3883_s26  ;;  %s232_s8 = sshll.u32 %s222_s7, 4  ;;  %s4732_s8 = int_to_ptr.vmem [resolvable:$true] %s232_s8 }
  0x19   : > { %s4420_s10 = scalar_lea.hbm %s4726_s5, 24576  ;;  %s4425_s14 = scalar_lea.hbm %s5664_s1, 73728 }
  0x1a   : > { %p4421_p7 = scmp.ne.s32.totalorder %s4726_s5, %s4420_s10  ;;  %p4426_p11 = scmp.lt.u32.totalorder %s4726_s5, %s5664_s1 }
  0x1b   : > { %s5666_s11 = scalar_select %p4740_p8, 1, 0 }
  0x1c   : > { %p4423_p9 = pnand %p4740_p8, %p4421_p7  ;;  %p4427_p12 = scmp.lt.u32.totalorder %s4425_s14, %s4420_s10 }
  0x1d   : > { %p4429_p0 = scmp.lt.u32.totalorder %s4420_s10, %s4726_s5 }
  0x1e   : > { %p4424_p10 = pneg %p4423_p9  ;;  %p4428_p13 = por %p4427_p12, %p4426_p11 }
  0x20   : > { %p4430_p2 = por %p4429_p0, %p4428_p13 }
  0x22   : > { %p4431_p3 = pnand %p4430_p2, %p4424_p10 }
  0x24   : > { %4434 = shalt.err (!%p4431_p3)
}
  0x25   : > { %s4435_s24 = scalar_lea.vmem %s4732_s8, 24576  ;;  %s4630_s26 = smov [#allocation6]  }
  0x26   : > { %p4436_p4 = scmp.ne.s32.totalorder %s4732_s8, %s4435_s24  ;;  %s4440_s28 = sshll.u32 %s4630_s26, 4  ;;  %s4441_s28 = int_to_ptr.vmem [resolvable:$false] %s4440_s28 }
  0x27   : > { %s4442_s29 = scalar_lea.vmem %s4441_s28, 49152  ;;  %p4443_p9 = scmp.lt.s32.totalorder %s4732_s8, %s4441_s28 }
  0x28   : > { %p4438_p5 = pnand %p4436_p4, %p4740_p8  ;;  %p4444_p1 = scmp.lt.s32.totalorder %s4442_s29, %s4435_s24 }
  0x2a   : > { %p4439_p7 = pneg %p4438_p5  ;;  %p4445_p11 = por %p4444_p1, %p4443_p9 }
  0x2c   : > { %p4446_p12 = pnand %p4445_p11, %p4439_p7 }
  0x2e   : > { %4449 = shalt.err (!%p4446_p12)
}
  0x2f   : > { %s4631_s30 = smov 1152   ;;  %s4632_s7 = smov 384  }
  0x30   : > { %s4633_s10 = smov 24   ;;  %s4765_s12 = sadd.s32 4294967295, %s4628_s20  }
  0x31   : > { %4008 = dma.hbm_to_vmem [thread:$0]  (!%p4728_p6), %s4726_s5, 24576, %s4732_s8, %s4734_s9, %s4631_s30, %s4632_s7, %s4633_s10  }
  0x32   : > { %s3647_s13 = sadd.s32 4294967294, %s4628_s20   ;;  %p93_p1 = scmp.ne.s32.totalorder %s4612_s16, %s4608_s15 }
  0x33   : > { %p5652_p10 = scmp.eq.s32.totalorder %s4765_s12, 0  ;;  %p173_p13 = scmp.eq.s32.totalorder %s4765_s12, 2 }
  0x34   : > { %p179_p0 = scmp.eq.s32.totalorder %s3647_s13, 2  ;;  %p3648_p3 = scmp.ge.s32.totalorder %s4628_s20, 1 }
  0x35   : > { %p4774_p2 = por %p5652_p10, %p93_p1  ;;  %p5668_p4 = scmp.ne.s32.totalorder %s4616_s17, %s4612_s16 }
  0x36   : > { %p4786_p7 = por %p179_p0, %p93_p1  ;;  %p186_p9 = scmp.lt.s32.totalorder %s4628_s20, 4 }
  0x37   : > { %s5667_s14 = scalar_select %p4774_p2, 1, 0 }
  0x38   : > { %p4782_p5 = por %p173_p13, %p5668_p4  ;;  %p4791_p11 = pnand %p3648_p3, %p186_p9 }
  0x39   : > { %s5670_s8 = scalar_select %p4786_p7, 1, 0 }
  0x3a   : > { %s5669_s5 = scalar_select %p4782_p5, 1, 0 }
  0x3b   : > { %5671 = sst [smem:[#allocation19_spill]] %s5670_s8  ;;  %s4634_s23 = smov [#allocation3]  }
  0x3c   : > { %s5672_s22 = scalar_select %p4791_p11, 1, 0 }
  0x3d   : > { %s204_s24 = sshll.u32 %s4634_s23, 4  ;;  %p4001_p12 = pneg %p4791_p11  ;;  %s4795_s24 = int_to_ptr.vmem [resolvable:$true] %s204_s24 }
  0x3e   : > { %s3984_s26 = smul.u32 6, %s4716_s25  ;;  %s4450_s27 = scalar_lea.hbm %s5643_s0, 4096 }
  0x3f   : > { %s3884_s28 = smul.u32 96, %s4624_s19  ;;  %p4803_p13 = pnand %p4001_p12, %p5652_p10 }
  0x40   : > { %s246_s13 = scalar_lea.vmem [#allocation8], %s3984_s26  ;;  %p4451_p1 = scmp.ne.s32.totalorder %s5643_s0, %s4450_s27 }
  0x41   : > { %s4810_s10 = scalar_lea.hbm %s5645_s2, %s3884_s28  ;;  %s254_s1 = sshll.u32 %s246_s13, 4  ;;  %s4812_s1 = int_to_ptr.vmem [resolvable:$true] %s254_s1 }
  0x42   : > { %p4452_p0 = pneg %p4803_p13  ;;  %p4457_p9 = scmp.lt.u32.totalorder %s4450_s27, %s5643_s0 }
  0x44   : > { %p4453_p3 = pnand %p4452_p0, %p4451_p1 }
  0x46   : > { %p4454_p4 = pneg %p4453_p3 }
  0x48   : > { %p4459_p12 = pnand %p4457_p9, %p4454_p4 }
  0x4a   : > { %4462 = shalt.err (!%p4459_p12)
}
  0x4b   : > { %s4463_s26 = scalar_lea.vmem %s4795_s24, 4096  ;;  %p4471_p2 = scmp.lt.s32.totalorder %s4795_s24, %s4795_s24 }
  0x4c   : > { %p4464_p10 = scmp.ne.s32.totalorder %s4795_s24, %s4463_s26  ;;  %p4472_p11 = scmp.lt.s32.totalorder %s4463_s26, %s4463_s26 }
  0x4e   : > { %p4466_p7 = pnand %p4464_p10, %p4452_p0  ;;  %p4473_p6 = por %p4472_p11, %p4471_p2 }
  0x50   : > { %p4467_p5 = pneg %p4466_p7 }
  0x52   : > { %p4474_p8 = pnand %p4473_p6, %p4467_p5 }
  0x54   : > { %4477 = shalt.err (!%p4474_p8)
}
  0x55   : > { %s4635_s17 = smov 256   ;;  %s4636_s21 = smov 16  }
  0x56   : > { %4004 = dma.hbm_to_vmem [thread:$0]  (!%p4803_p13), %s5643_s0, 4096, %s4795_s24, [#allocation4], %s4635_s17, %s4635_s17, %s4636_s21  }
  0x57   : > { %s4478_s28 = scalar_lea.hbm %s4810_s10, 96  ;;  %p5674_p7 = scmp.ne.s32.totalorder %s5666_s11, 0 }
  0x58   : > { %p4479_p10 = scmp.ne.s32.totalorder %s4810_s10, %s4478_s28  ;;  %s4483_s30 = scalar_lea.hbm %s5645_s2, 288 }
  0x59   : > { %p4484_p8 = scmp.lt.u32.totalorder %s4810_s10, %s5645_s2  ;;  %p4485_p5 = scmp.lt.u32.totalorder %s4483_s30, %s4478_s28 }
  0x5a   : > { %p4481_p2 = pnand %p4479_p10, %p5674_p7  ;;  %p4487_p1 = scmp.lt.u32.totalorder %s4478_s28, %s4810_s10 }
  0x5b   : > { %p4486_p11 = por %p4485_p5, %p4484_p8 }
  0x5c   : > { %p4482_p6 = pneg %p4481_p2 }
  0x5d   : > { %p4488_p0 = por %p4487_p1, %p4486_p11 }
  0x5f   : > { %p4489_p3 = pnand %p4488_p0, %p4482_p6 }
  0x61   : > { %4492 = shalt.err (!%p4489_p3)
}
  0x62   : > { %s4493_s24 = scalar_lea.vmem %s4812_s1, 96  ;;  %s4637_s29 = smov [#allocation8]  }
  0x63   : > { %p4494_p13 = scmp.ne.s32.totalorder %s4812_s1, %s4493_s24  ;;  %s4498_s17 = sshll.u32 %s4637_s29, 4  ;;  %s4499_s17 = int_to_ptr.vmem [resolvable:$false] %s4498_s17 }
  0x64   : > { %s4500_s21 = scalar_lea.vmem %s4499_s17, 192  ;;  %p4501_p12 = scmp.lt.s32.totalorder %s4812_s1, %s4499_s17 }
  0x65   : > { %p4496_p4 = pnand %p4494_p13, %p5674_p7  ;;  %p4502_p10 = scmp.lt.s32.totalorder %s4500_s21, %s4493_s24 }
  0x67   : > { %p4497_p9 = pneg %p4496_p4  ;;  %p4503_p2 = por %p4502_p10, %p4501_p12 }
  0x69   : > { %p4504_p8 = pnand %p4503_p2, %p4497_p9 }
  0x6b   : > { %4507 = shalt.err (!%p4504_p8)
}
  0x6c   : > { %p5675_p6 = scmp.ne.s32.totalorder %s5665_s6, 0  ;;  %s3985_s27 = smul.u32 768, %s4716_s25 }
  0x6d   : > { %s3885_s8 = smul.u32 768, %s4624_s19  ;;  %s262_s26 = scalar_lea.sflag [#allocation10], %s4716_s25 }
  0x6e   : > { %4011 = dma.hbm_to_vmem [thread:$0]  (!%p5675_p6), %s4810_s10, 96, %s4812_s1, %s4734_s9  }
  0x6f   : > { %s4862_s23 = scalar_lea.hbm %s5646_s3, %s3885_s8  ;;  %s265_s30 = scalar_lea.vmem [#allocation9], %s3985_s27 }
  0x70   : > { %s275_s7 = sshll.u32 %s265_s30, 4  ;;  %s4508_s24 = scalar_lea.hbm %s4862_s23, 12288  ;;  %s4864_s7 = int_to_ptr.vmem [resolvable:$true] %s275_s7 }
  0x71   : > { %p4509_p5 = scmp.ne.s32.totalorder %s4862_s23, %s4508_s24  ;;  %s4513_s10 = scalar_lea.hbm %s5646_s3, 36864 }
  0x72   : > { %p4514_p0 = scmp.lt.u32.totalorder %s4862_s23, %s5646_s3  ;;  %p4515_p3 = scmp.lt.u32.totalorder %s4513_s10, %s4508_s24 }
  0x73   : > { %p4511_p11 = pnand %p4509_p5, %p5674_p7  ;;  %p4517_p4 = scmp.lt.u32.totalorder %s4508_s24, %s4862_s23 }
  0x74   : > { %p4516_p13 = por %p4515_p3, %p4514_p0 }
  0x75   : > { %p4512_p1 = pneg %p4511_p11 }
  0x76   : > { %p4518_p9 = por %p4517_p4, %p4516_p13 }
  0x78   : > { %p4519_p12 = pnand %p4518_p9, %p4512_p1 }
  0x7a   : > { %4522 = shalt.err (!%p4519_p12)
}
  0x7b   : > { %s4523_s21 = scalar_lea.vmem %s4864_s7, 12288  ;;  %s4638_s27 = smov [#allocation9]  }
  0x7c   : > { %p4524_p10 = scmp.ne.s32.totalorder %s4864_s7, %s4523_s21  ;;  %s4528_s8 = sshll.u32 %s4638_s27, 4  ;;  %s4529_s8 = int_to_ptr.vmem [resolvable:$false] %s4528_s8 }
  0x7d   : > { %s4530_s28 = scalar_lea.vmem %s4529_s8, 24576  ;;  %p4531_p5 = scmp.lt.s32.totalorder %s4864_s7, %s4529_s8 }
  0x7e   : > { %p4526_p2 = pnand %p4524_p10, %p5674_p7  ;;  %p4532_p11 = scmp.lt.s32.totalorder %s4530_s28, %s4523_s21 }
  0x80   : > { %p4527_p8 = pneg %p4526_p2  ;;  %p4533_p0 = por %p4532_p11, %p4531_p5 }
  0x82   : > { %p4534_p3 = pnand %p4533_p0, %p4527_p8 }
  0x84   : > { %4537 = shalt.err (!%p4534_p3)
}
  0x85   : > { %s4639_s13 = smov 2304   ;;  %s4640_s30 = smov 768  }
  0x86   : > { %s4641_s24 = smov 48   ;;  %p5676_p7 = scmp.ne.s32.totalorder %s5672_s22, 0 }
  0x87   : > { %4014 = dma.hbm_to_vmem [thread:$0]  (!%p5675_p6), %s4862_s23, 12288, %s4864_s7, %s262_s26, %s4639_s13, %s4640_s30, %s4641_s24  }
  0x88   : > { %287 = sbr.rel (%p5676_p7) target bundleno = 644 (0x284), region = 36  ;;  %p5677_p1 = scmp.eq.s32.totalorder (!%p5676_p7), %s4765_s12, 0 }
  0x8f   : > { %4591 = dma.done.wait (%p5677_p1), [#allocation4], 4096   ;;  %p5678_p13 = pmov %p5677_p1 }
  0x90   : > { %s293_s11 = sand.u32 1, %s4765_s12   ;;  %s4898_s1 = sand.u32 1, %s4612_s16  }
  0x91   : > { %4593 = vsyncadd (%p5678_p13), [#allocation4], 4294963200  ;;  %s3986_s9 = smul.u32 1536, %s4898_s1  ;;  %s294_s6 = scalar_lea.sflag [#allocation7], %s293_s11 }
  0x92   : > { %p5679_p6 = scmp.ne.s32.totalorder %s5667_s14, 0 }
  0x93   : > { %s4901_s25 = scalar_lea.vmem [#allocation6], %s3986_s9 }
  0x94   : > { %4595 = dma.done.wait (%p5679_p6), %s294_s6, 24672  }
  0x95   : > { %4597 = vsyncadd (%p5679_p6), %s294_s6, 4294942624  ;;  %s3987_s22 = smul.u32 6, %s4898_s1  ;;  %s312_s7 = scalar_lea.sflag [#allocation10], %s4898_s1 }
  0x96   : > { %s3988_s23 = smul.u32 768, %s4898_s1 }
  0x97   : > { %s4909_s12 = scalar_lea.vmem [#allocation8], %s3987_s22 }
  0x98   : > { %s4914_s26 = scalar_lea.vmem [#allocation9], %s3988_s23 }
  0x99   : > { %4599 = dma.done.wait (%p5679_p6), %s312_s7, 12288  }
  0x9a   : > { %4601 = vsyncadd (%p5679_p6), %s312_s7, 4294955008  ;;  %v4083_v0 = vld [vmem:[%s4901_s25 + $0x4] ss:$24 sps:$4 sm:$0xff]   ;;  %v4087_v2 = vld [vmem:[%s4901_s25] ss:$24 sps:$4 sm:$0xff]   ;;  %s5290_s14 = scalar_lea.vmem [#allocation11], %s3988_s23 }
  0x9b   : > { %v4085_v1 = vld [vmem:[%s4901_s25 + $0x304] ss:$24 sps:$4 sm:$0xff]   ;;  %1899 = vmatprep.subr.bf16.mxu1 %v4083_v0  ;;  %v4088_v3 = vld [vmem:[%s4901_s25 + $0x300] ss:$24 sps:$4 sm:$0xff]   ;;  %v4089_v4 = vld [vmem:[%s4901_s25 + $0x34] ss:$24 sps:$4 sm:$0xff]  }
  0x9c   : > { %2012 = vmatprep.subr.bf16.mxu0 %v4085_v1  ;;  %1900 = vmatpush1.bf16.msra.mxu1 %v4087_v2  ;;  %v4091_v5 = vld [vmem:[%s4901_s25 + $0x334] ss:$24 sps:$4 sm:$0xff]   ;;  %v4093_v6 = vld [vmem:[%s4901_s25 + $0x30] ss:$24 sps:$4 sm:$0xff]   ;;  %v4095_v8 = vld [vmem:[%s4901_s25 + $0x64] ss:$24 sps:$4 sm:$0xff]  }
  0x9d   : > { %2013 = vmatpush1.bf16.msra.mxu0 %v4088_v3  ;;  %1901 = vmatprep.subr.bf16.mxu1 %v4089_v4  ;;  %v4094_v7 = vld [vmem:[%s4901_s25 + $0x330] ss:$24 sps:$4 sm:$0xff]   ;;  %v4097_v9 = vld [vmem:[%s4901_s25 + $0x364] ss:$24 sps:$4 sm:$0xff]   ;;  %v4099_v10 = vld [vmem:[%s4901_s25 + $0x60] ss:$24 sps:$4 sm:$0xff]  }
  0x9e   : > { %2014 = vmatprep.subr.bf16.mxu0 %v4091_v5  ;;  %v4100_v11 = vld [vmem:[%s4901_s25 + $0x360] ss:$24 sps:$4 sm:$0xff]   ;;  %v4101_v12 = vld [vmem:[%s4901_s25 + $0x94] ss:$24 sps:$4 sm:$0xff]   ;;  %v4105_v14 = vld [vmem:[%s4901_s25 + $0x90] ss:$24 sps:$4 sm:$0xff]  }
  0x9f   : > { %v4103_v13 = vld [vmem:[%s4901_s25 + $0x394] ss:$24 sps:$4 sm:$0xff]   ;;  %v4106_v15 = vld [vmem:[%s4901_s25 + $0x390] ss:$24 sps:$4 sm:$0xff]   ;;  %v4107_v16 = vld [vmem:[%s4901_s25 + $0xc4] ss:$24 sps:$4 sm:$0xff]  }
  0xa0   : > { %1902 = vmatpush1.bf16.msra.mxu1 %v4093_v6  ;;  %v4109_v17 = vld [vmem:[%s4901_s25 + $0x3c4] ss:$24 sps:$4 sm:$0xff]   ;;  %v4111_v18 = vld [vmem:[%s4901_s25 + $0xc0] ss:$24 sps:$4 sm:$0xff]   ;;  %v4113_v20 = vld [vmem:[%s4901_s25 + $0xf4] ss:$24 sps:$4 sm:$0xff]  }
  0xa1   : > { %2015 = vmatpush1.bf16.msra.mxu0 %v4094_v7  ;;  %1903 = vmatprep.subr.bf16.mxu1 %v4095_v8  ;;  %v4112_v19 = vld [vmem:[%s4901_s25 + $0x3c0] ss:$24 sps:$4 sm:$0xff]   ;;  %v4115_v21 = vld [vmem:[%s4901_s25 + $0x3f4] ss:$24 sps:$4 sm:$0xff]   ;;  %v4117_v22 = vld [vmem:[%s4901_s25 + $0xf0] ss:$24 sps:$4 sm:$0xff]  }
  0xa2   : > { %2016 = vmatprep.subr.bf16.mxu0 %v4097_v9  ;;  %v4118_v23 = vld [vmem:[%s4901_s25 + $0x3f0] ss:$24 sps:$4 sm:$0xff]   ;;  %v4119_v24 = vld [vmem:[%s4901_s25 + $0x124] ss:$24 sps:$4 sm:$0xff]   ;;  %v4123_v26 = vld [vmem:[%s4901_s25 + $0x120] ss:$24 sps:$4 sm:$0xff]  }
  0xa3   : > { %v4121_v25 = vld [vmem:[%s4901_s25 + $0x424] ss:$24 sps:$4 sm:$0xff]   ;;  %v4124_v27 = vld [vmem:[%s4901_s25 + $0x420] ss:$24 sps:$4 sm:$0xff]   ;;  %v4125_v28 = vld [vmem:[%s4901_s25 + $0x154] ss:$24 sps:$4 sm:$0xff]  }
  0xa4   : > { %1904 = vmatpush1.bf16.msra.mxu1 %v4099_v10  ;;  %v4127_v29 = vld [vmem:[%s4901_s25 + $0x454] ss:$24 sps:$4 sm:$0xff]   ;;  %v4129_v30 = vld [vmem:[%s4901_s25 + $0x150] ss:$24 sps:$4 sm:$0xff]   ;;  %v4131_v32 = vld [vmem:[%s4901_s25 + $0x184] ss:$24 sps:$4 sm:$0xff]  }
  0xa5   : > { %2017 = vmatpush1.bf16.msra.mxu0 %v4100_v11  ;;  %1905 = vmatprep.subr.bf16.mxu1 %v4101_v12  ;;  %v4130_v31 = vld [vmem:[%s4901_s25 + $0x450] ss:$24 sps:$4 sm:$0xff]   ;;  %v4133_v33 = vld [vmem:[%s4901_s25 + $0x484] ss:$24 sps:$4 sm:$0xff]   ;;  %v4135_v34 = vld [vmem:[%s4901_s25 + $0x180] ss:$24 sps:$4 sm:$0xff]  }
  0xa6   : > { %2018 = vmatprep.subr.bf16.mxu0 %v4103_v13  ;;  %v4136_v35 = vld [vmem:[%s4901_s25 + $0x480] ss:$24 sps:$4 sm:$0xff]   ;;  %v4137_v36 = vld [vmem:[%s4901_s25 + $0x1b4] ss:$24 sps:$4 sm:$0xff]   ;;  %v4141_v38 = vld [vmem:[%s4901_s25 + $0x1b0] ss:$24 sps:$4 sm:$0xff]  }
  0xa7   : > { %v4139_v37 = vld [vmem:[%s4901_s25 + $0x4b4] ss:$24 sps:$4 sm:$0xff]   ;;  %v4142_v39 = vld [vmem:[%s4901_s25 + $0x4b0] ss:$24 sps:$4 sm:$0xff]   ;;  %v4143_v40 = vld [vmem:[%s4901_s25 + $0x1e4] ss:$24 sps:$4 sm:$0xff]  }
  0xa8   : > { %1906 = vmatpush1.bf16.msra.mxu1 %v4105_v14  ;;  %v4145_v41 = vld [vmem:[%s4901_s25 + $0x4e4] ss:$24 sps:$4 sm:$0xff]   ;;  %v4147_v42 = vld [vmem:[%s4901_s25 + $0x1e0] ss:$24 sps:$4 sm:$0xff]   ;;  %v4149_v44 = vld [vmem:[%s4901_s25 + $0x214] ss:$24 sps:$4 sm:$0xff]  }
  0xa9   : > { %2019 = vmatpush1.bf16.msra.mxu0 %v4106_v15  ;;  %1907 = vmatprep.subr.bf16.mxu1 %v4107_v16  ;;  %v4148_v43 = vld [vmem:[%s4901_s25 + $0x4e0] ss:$24 sps:$4 sm:$0xff]   ;;  %v4151_v45 = vld [vmem:[%s4901_s25 + $0x514] ss:$24 sps:$4 sm:$0xff]   ;;  %v4153_v46 = vld [vmem:[%s4901_s25 + $0x210] ss:$24 sps:$4 sm:$0xff]  }
  0xaa   : > { %2020 = vmatprep.subr.bf16.mxu0 %v4109_v17  ;;  %v4154_v47 = vld [vmem:[%s4901_s25 + $0x510] ss:$24 sps:$4 sm:$0xff]   ;;  %v4968_v48 = vld [vmem:[#allocation3 + $0x4] ss:$16 sps:$4 sm:$0xff]   ;;  %v4181_v50 = vld [vmem:[#allocation3 + $0xc] ss:$16 sps:$4 sm:$0xff]  }
  0xab   : > { %v4155_v49 = vld [vmem:[%s4901_s25 + $0x244] ss:$24 sps:$4 sm:$0xff]   ;;  %1931 = vmatprep.mubr.bf16.mxu1 %v4968_v48  ;;  %2044 = vmatprep.mubr.bf16.mxu0 %v4181_v50  ;;  %v4159_v52 = vld [vmem:[%s4901_s25 + $0x240] ss:$24 sps:$4 sm:$0xff]   ;;  %v4161_v54 = vld [vmem:[%s4901_s25 + $0x274] ss:$24 sps:$4 sm:$0xff]  }
  0xac   : > { %1908 = vmatpush1.bf16.msra.mxu1 %v4111_v18  ;;  %v4157_v51 = vld [vmem:[%s4901_s25 + $0x544] ss:$24 sps:$4 sm:$0xff]   ;;  %v4160_v53 = vld [vmem:[%s4901_s25 + $0x540] ss:$24 sps:$4 sm:$0xff]   ;;  %v4163_v55 = vld [vmem:[%s4901_s25 + $0x574] ss:$24 sps:$4 sm:$0xff]  }
  0xad   : > { %2021 = vmatpush1.bf16.msra.mxu0 %v4112_v19  ;;  %1909 = vmatprep.subr.bf16.mxu1 %v4113_v20  ;;  %v4165_v56 = vld [vmem:[%s4901_s25 + $0x270] ss:$24 sps:$4 sm:$0xff]   ;;  %v4167_v58 = vld [vmem:[%s4901_s25 + $0x2a4] ss:$24 sps:$4 sm:$0xff]   ;;  %v4171_v60 = vld [vmem:[%s4901_s25 + $0x2a0] ss:$24 sps:$4 sm:$0xff]  }
  0xae   : > { %2022 = vmatprep.subr.bf16.mxu0 %v4115_v21  ;;  %v4166_v57 = vld [vmem:[%s4901_s25 + $0x570] ss:$24 sps:$4 sm:$0xff]   ;;  %v4169_v59 = vld [vmem:[%s4901_s25 + $0x5a4] ss:$24 sps:$4 sm:$0xff]   ;;  %v4172_v61 = vld [vmem:[%s4901_s25 + $0x5a0] ss:$24 sps:$4 sm:$0xff]  }
  0xaf   : > { %v4173_v62 = vld [vmem:[%s4901_s25 + $0x2d4] ss:$24 sps:$4 sm:$0xff]   ;;  %v4177_v0 = vld [vmem:[%s4901_s25 + $0x2d0] ss:$24 sps:$4 sm:$0xff]   ;;  %v4196_v9 = vld [vmem:[%s4901_s25 + $0x44] ss:$24 sps:$4 sm:$0xff]  }
  0xb0   : > { %1910 = vmatpush1.bf16.msra.mxu1 %v4117_v22  ;;  %v4175_v63 = vld [vmem:[%s4901_s25 + $0x5d4] ss:$24 sps:$4 sm:$0xff]   ;;  %v4178_v1 = vld [vmem:[%s4901_s25 + $0x5d0] ss:$24 sps:$4 sm:$0xff]   ;;  %v4194_v13 = vld [vmem:[%s4901_s25 + $0x40] ss:$24 sps:$4 sm:$0xff]  }
  0xb1   : > { %2023 = vmatpush1.bf16.msra.mxu0 %v4118_v23  ;;  %1911 = vmatprep.subr.bf16.mxu1 %v4119_v24  ;;  %v4187_v2 = vld [vmem:[%s4901_s25 + $0xc] ss:$24 sps:$4 sm:$0xff]   ;;  %v4989_v4 = vld [vmem:[#allocation3] ss:$16 sps:$4 sm:$0xff]   ;;  %v4991_v5 = vld [vmem:[#allocation3 + $0x8] ss:$16 sps:$4 sm:$0xff]  }
  0xb2   : > { %2024 = vmatprep.subr.bf16.mxu0 %v4121_v25  ;;  %v4190_v3 = vld [vmem:[%s4901_s25 + $0x14] ss:$24 sps:$4 sm:$0xff]   ;;  %v4185_v6 = vld [vmem:[%s4901_s25 + $0x8] ss:$24 sps:$4 sm:$0xff]   ;;  %v4191_v12 = vld [vmem:[%s4901_s25 + $0x38] ss:$24 sps:$4 sm:$0xff]  }
  0xb3   : > { %v4188_v7 = vld [vmem:[%s4901_s25 + $0x10] ss:$24 sps:$4 sm:$0xff]   ;;  %v4193_v8 = vld [vmem:[%s4901_s25 + $0x3c] ss:$24 sps:$4 sm:$0xff]   ;;  %v4205_v14 = vld [vmem:[%s4901_s25 + $0x6c] ss:$24 sps:$4 sm:$0xff]  }
  0xb4   : > { %1912 = vmatpush1.bf16.msra.mxu1 %v4123_v26  ;;  %v4997_v10 = vld [vmem:[#allocation3 + $0x24] ss:$16 sps:$4 sm:$0xff]   ;;  %v4999_v11 = vld [vmem:[#allocation3 + $0x2c] ss:$16 sps:$4 sm:$0xff]   ;;  %v5009_v16 = vld [vmem:[#allocation3 + $0x20] ss:$16 sps:$4 sm:$0xff]  }
  0xb5   : > { %2025 = vmatpush1.bf16.msra.mxu0 %v4124_v27  ;;  %1913 = vmatprep.subr.bf16.mxu1 %v4125_v28  ;;  %v4208_v15 = vld [vmem:[%s4901_s25 + $0x74] ss:$24 sps:$4 sm:$0xff]   ;;  %v5011_v17 = vld [vmem:[#allocation3 + $0x28] ss:$16 sps:$4 sm:$0xff]   ;;  %v4214_v21 = vld [vmem:[%s4901_s25 + $0xa4] ss:$24 sps:$4 sm:$0xff]  }
  0xb6   : > { %2026 = vmatprep.subr.bf16.mxu0 %v4127_v29  ;;  %v4203_v18 = vld [vmem:[%s4901_s25 + $0x68] ss:$24 sps:$4 sm:$0xff]   ;;  %v4211_v20 = vld [vmem:[%s4901_s25 + $0x9c] ss:$24 sps:$4 sm:$0xff]   ;;  %v4209_v24 = vld [vmem:[%s4901_s25 + $0x98] ss:$24 sps:$4 sm:$0xff]  }
  0xb7   : > { %v4206_v19 = vld [vmem:[%s4901_s25 + $0x70] ss:$24 sps:$4 sm:$0xff]   ;;  %v5017_v22 = vld [vmem:[#allocation3 + $0x44] ss:$16 sps:$4 sm:$0xff]   ;;  %v5019_v23 = vld [vmem:[#allocation3 + $0x4c] ss:$16 sps:$4 sm:$0xff]  }
  0xb8   : > { %1914 = vmatpush1.bf16.msra.mxu1 %v4129_v30  ;;  %v4212_v25 = vld [vmem:[%s4901_s25 + $0xa0] ss:$24 sps:$4 sm:$0xff]   ;;  %v4223_v26 = vld [vmem:[%s4901_s25 + $0xcc] ss:$24 sps:$4 sm:$0xff]   ;;  %s3886_s10 = smul.u32 768, %s4620_s18  ;;  %s3493_s29 = sshll.u32 %s5290_s14, 4  ;;  %s5589_s29 = int_to_ptr.vmem [resolvable:$true] %s3493_s29 }
  0xb9   : > { %2027 = vmatpush1.bf16.msra.mxu0 %v4130_v31  ;;  %1915 = vmatprep.subr.bf16.mxu1 %v4131_v32  ;;  %v4226_v27 = vld [vmem:[%s4901_s25 + $0xd4] ss:$24 sps:$4 sm:$0xff]   ;;  %v5029_v28 = vld [vmem:[#allocation3 + $0x40] ss:$16 sps:$4 sm:$0xff]   ;;  %v5031_v29 = vld [vmem:[#allocation3 + $0x48] ss:$16 sps:$4 sm:$0xff]  }
  0xba   : > { %2028 = vmatprep.subr.bf16.mxu0 %v4133_v33  ;;  %v4221_v30 = vld [vmem:[%s4901_s25 + $0xc8] ss:$24 sps:$4 sm:$0xff]   ;;  %v4229_v32 = vld [vmem:[%s4901_s25 + $0xfc] ss:$24 sps:$4 sm:$0xff]   ;;  %s5585_s21 = scalar_lea.hbm %s5647_s4, %s3886_s10  ;;  %s3477_s27 = scalar_lea.sflag [#allocation5], %s4898_s1 }
  0xbb   : > { %v4224_v31 = vld [vmem:[%s4901_s25 + $0xd0] ss:$24 sps:$4 sm:$0xff]   ;;  %v4232_v33 = vld [vmem:[%s4901_s25 + $0x104] ss:$24 sps:$4 sm:$0xff]   ;;  %v4248_v50 = vld [vmem:[%s4901_s25 + $0x160] ss:$24 sps:$4 sm:$0xff]  }
  0xbc   : > { %1916 = vmatpush1.bf16.msra.mxu1 %v4135_v34  ;;  %v5037_v34 = vld [vmem:[#allocation3 + $0x64] ss:$16 sps:$4 sm:$0xff]   ;;  %s4538_s8 = scalar_lea.vmem %s5589_s29, 12288  ;;  %p5680_p9 = scmp.ne.s32.totalorder %s5669_s5, 0 }
  0xbd   : > { %2029 = vmatpush1.bf16.msra.mxu0 %v4136_v35  ;;  %1917 = vmatprep.subr.bf16.mxu1 %v4137_v36  ;;  %v5039_v35 = vld [vmem:[#allocation3 + $0x6c] ss:$16 sps:$4 sm:$0xff]   ;;  %v4227_v36 = vld [vmem:[%s4901_s25 + $0xf8] ss:$24 sps:$4 sm:$0xff]   ;;  %p4539_p4 = scmp.ne.s32.totalorder %s5589_s29, %s4538_s8  ;;  %s4642_s28 = smov [#allocation11]  }
  0xbe   : > { %2030 = vmatprep.subr.bf16.mxu0 %v4139_v37  ;;  %v4230_v37 = vld [vmem:[%s4901_s25 + $0x100] ss:$24 sps:$4 sm:$0xff]   ;;  %s4542_s13 = sshll.u32 %s4642_s28, 4  ;;  %s4543_s13 = int_to_ptr.vmem [resolvable:$false] %s4542_s13 }
  0xbf   : > { %p4540_p12 = pnand %p4539_p4, %p5680_p9  ;;  %s4544_s30 = scalar_lea.vmem %s4543_s13, 24576 }
  0xc0   : > { %1918 = vmatpush1.bf16.msra.mxu1 %v4141_v38  ;;  %v4241_v38 = vld [vmem:[%s4901_s25 + $0x12c] ss:$24 sps:$4 sm:$0xff]   ;;  %p4545_p2 = scmp.lt.s32.totalorder %s5589_s29, %s4543_s13  ;;  %p4546_p8 = scmp.lt.s32.totalorder %s4544_s30, %s4538_s8 }
  0xc1   : > { %2031 = vmatpush1.bf16.msra.mxu0 %v4142_v39  ;;  %1919 = vmatprep.subr.bf16.mxu1 %v4143_v40  ;;  %v4244_v39 = vld [vmem:[%s4901_s25 + $0x134] ss:$24 sps:$4 sm:$0xff]   ;;  %v5049_v40 = vld [vmem:[#allocation3 + $0x60] ss:$16 sps:$4 sm:$0xff]   ;;  %p4541_p10 = pneg %p4540_p12 }
  0xc2   : > { %2032 = vmatprep.subr.bf16.mxu0 %v4145_v41  ;;  %v5051_v41 = vld [vmem:[#allocation3 + $0x68] ss:$16 sps:$4 sm:$0xff]   ;;  %p4547_p5 = por %p4546_p8, %p4545_p2 }
  0xc4   : > { %1920 = vmatpush1.bf16.msra.mxu1 %v4147_v42  ;;  %v4239_v42 = vld [vmem:[%s4901_s25 + $0x128] ss:$24 sps:$4 sm:$0xff]   ;;  %p4548_p11 = pnand %p4547_p5, %p4541_p10 }
  0xc5   : > { %2033 = vmatpush1.bf16.msra.mxu0 %v4148_v43  ;;  %1921 = vmatprep.subr.bf16.mxu1 %v4149_v44  ;;  %v4242_v43 = vld [vmem:[%s4901_s25 + $0x130] ss:$24 sps:$4 sm:$0xff]   ;;  %v4247_v44 = vld [vmem:[%s4901_s25 + $0x15c] ss:$24 sps:$4 sm:$0xff]  }
  0xc6   : > { %2034 = vmatprep.subr.bf16.mxu0 %v4151_v45  ;;  %v4250_v45 = vld [vmem:[%s4901_s25 + $0x164] ss:$24 sps:$4 sm:$0xff]  }
  0xc8   : > { %1922 = vmatpush1.bf16.msra.mxu1 %v4153_v46  ;;  %v5057_v46 = vld [vmem:[#allocation3 + $0x84] ss:$16 sps:$4 sm:$0xff]  }
  0xc9   : > { %2035 = vmatpush1.bf16.msra.mxu0 %v4154_v47  ;;  %1923 = vmatprep.subr.bf16.mxu1 %v4155_v49  ;;  %v5059_v47 = vld [vmem:[#allocation3 + $0x8c] ss:$16 sps:$4 sm:$0xff]   ;;  %v4245_v49 = vld [vmem:[%s4901_s25 + $0x158] ss:$24 sps:$4 sm:$0xff]  }
  0xca   : > { %2036 = vmatprep.subr.bf16.mxu0 %v4157_v51  ;;  %v4259_v51 = vld [vmem:[%s4901_s25 + $0x18c] ss:$24 sps:$4 sm:$0xff]  }
  0xcc   : > { %1924 = vmatpush1.bf16.msra.mxu1 %v4159_v52  ;;  %v4262_v52 = vld [vmem:[%s4901_s25 + $0x194] ss:$24 sps:$4 sm:$0xff]  }
  0xcd   : > { %2037 = vmatpush1.bf16.msra.mxu0 %v4160_v53  ;;  %1925 = vmatprep.subr.bf16.mxu1 %v4161_v54  ;;  %v5069_v53 = vld [vmem:[#allocation3 + $0x80] ss:$16 sps:$4 sm:$0xff]   ;;  %v5071_v54 = vld [vmem:[#allocation3 + $0x88] ss:$16 sps:$4 sm:$0xff]  }
  0xce   : > { %2038 = vmatprep.subr.bf16.mxu0 %v4163_v55  ;;  %v4257_v55 = vld [vmem:[%s4901_s25 + $0x188] ss:$24 sps:$4 sm:$0xff]  }
  0xd0   : > { %1926 = vmatpush1.bf16.msra.mxu1 %v4165_v56  ;;  %v4260_v56 = vld [vmem:[%s4901_s25 + $0x190] ss:$24 sps:$4 sm:$0xff]  }
  0xd1   : > { %2039 = vmatpush1.bf16.msra.mxu0 %v4166_v57  ;;  %1927 = vmatprep.subr.bf16.mxu1 %v4167_v58  ;;  %v4265_v57 = vld [vmem:[%s4901_s25 + $0x1bc] ss:$24 sps:$4 sm:$0xff]  }
  0xd2   : > { %2040 = vmatprep.subr.bf16.mxu0 %v4169_v59  ;;  %v4268_v58 = vld [vmem:[%s4901_s25 + $0x1c4] ss:$24 sps:$4 sm:$0xff]  }
  0xd3   : > { %v5077_v59 = vld [vmem:[#allocation3 + $0xa4] ss:$16 sps:$4 sm:$0xff]  }
  0xd4   : > { %1928 = vmatpush1.bf16.msra.mxu1 %v4171_v60  ;;  %v5079_v60 = vld [vmem:[#allocation3 + $0xac] ss:$16 sps:$4 sm:$0xff]  }
  0xd5   : > { %2041 = vmatpush1.bf16.msra.mxu0 %v4172_v61  ;;  %1929 = vmatprep.subr.bf16.mxu1 %v4173_v62  ;;  %v4263_v61 = vld [vmem:[%s4901_s25 + $0x1b8] ss:$24 sps:$4 sm:$0xff]  }
  0xd6   : > { %2042 = vmatprep.subr.bf16.mxu0 %v4175_v63  ;;  %v4266_v62 = vld [vmem:[%s4901_s25 + $0x1c0] ss:$24 sps:$4 sm:$0xff]   ;;  %v4277_v63 = vld [vmem:[%s4901_s25 + $0x1ec] ss:$24 sps:$4 sm:$0xff]  }
  0xd8   : > { %1930 = vmatpush1.bf16.msra.mxu1 %v4177_v0  ;;  %v4280_v0 = vld [vmem:[%s4901_s25 + $0x1f4] ss:$24 sps:$4 sm:$0xff]  }
  0xd9   : > { %2043 = vmatpush1.bf16.msra.mxu0 %v4178_v1  ;;  %2125 = vmatprep.subr.bf16.mxu1 %v4187_v2  ;;  %v5089_v1 = vld [vmem:[#allocation3 + $0xa0] ss:$16 sps:$4 sm:$0xff]   ;;  %v5091_v2 = vld [vmem:[#allocation3 + $0xa8] ss:$16 sps:$4 sm:$0xff]  }
  0xda   : > { %2351 = vmatprep.subr.bf16.mxu0 %v4190_v3  ;;  %v4275_v3 = vld [vmem:[%s4901_s25 + $0x1e8] ss:$24 sps:$4 sm:$0xff]  }
  0xdb   : > { %1932 = vmatmul.mubr.bf16.vlgmr.msra.gmra.mrb[0].mxu1 %v4989_v4 }
  0xdc   : > { %2045 = vmatmul.mubr.bf16.vlgmr.msra.gmra.mrb[0].mxu0 %v4991_v5  ;;  %2126 = vmatpush1.bf16.msra.mxu1 %v4185_v6  ;;  %v4278_v6 = vld [vmem:[%s4901_s25 + $0x1f0] ss:$24 sps:$4 sm:$0xff]  }
  0xdd   : > { %2352 = vmatpush1.bf16.msra.mxu0 %v4188_v7  ;;  %2127 = vmatprep.subr.bf16.mxu1 %v4193_v8  ;;  %v4283_v7 = vld [vmem:[%s4901_s25 + $0x21c] ss:$24 sps:$4 sm:$0xff]  }
  0xde   : > { %2353 = vmatprep.subr.bf16.mxu0 %v4196_v9  ;;  %1941 = vmatprep.mubr.bf16.mxu1 %v4997_v10  ;;  %v4286_v8 = vld [vmem:[%s4901_s25 + $0x224] ss:$24 sps:$4 sm:$0xff]  }
  0xdf   : > { %2054 = vmatprep.mubr.bf16.mxu0 %v4999_v11  ;;  %v5097_v9 = vld [vmem:[#allocation3 + $0xc4] ss:$16 sps:$4 sm:$0xff]  }
  0xe0   : > { %2128 = vmatpush1.bf16.msra.mxu1 %v4191_v12  ;;  %v5099_v12 = vld [vmem:[#allocation3 + $0xcc] ss:$16 sps:$4 sm:$0xff]  }
  0xe1   : > { %2354 = vmatpush1.bf16.msra.mxu0 %v4194_v13  ;;  %2129 = vmatprep.subr.bf16.mxu1 %v4205_v14  ;;  %v4281_v13 = vld [vmem:[%s4901_s25 + $0x218] ss:$24 sps:$4 sm:$0xff]  }
  0xe2   : > { %2355 = vmatprep.subr.bf16.mxu0 %v4208_v15  ;;  %v4284_v14 = vld [vmem:[%s4901_s25 + $0x220] ss:$24 sps:$4 sm:$0xff]   ;;  %v4295_v15 = vld [vmem:[%s4901_s25 + $0x24c] ss:$24 sps:$4 sm:$0xff]  }
  0xe3   : > { %1942 = vmatmul.mubr.bf16.gmra.mrb[4].mxu1 %v5009_v16 }
  0xe4   : > { %2055 = vmatmul.mubr.bf16.gmra.mrb[4].mxu0 %v5011_v17  ;;  %2130 = vmatpush1.bf16.msra.mxu1 %v4203_v18  ;;  %v4298_v18 = vld [vmem:[%s4901_s25 + $0x254] ss:$24 sps:$4 sm:$0xff]  }
  0xe5   : > { %2356 = vmatpush1.bf16.msra.mxu0 %v4206_v19  ;;  %2131 = vmatprep.subr.bf16.mxu1 %v4211_v20  ;;  %v5109_v19 = vld [vmem:[#allocation3 + $0xc0] ss:$16 sps:$4 sm:$0xff]   ;;  %v5111_v20 = vld [vmem:[#allocation3 + $0xc8] ss:$16 sps:$4 sm:$0xff]  }
  0xe6   : > { %2357 = vmatprep.subr.bf16.mxu0 %v4214_v21  ;;  %1951 = vmatprep.mubr.bf16.mxu1 %v5017_v22  ;;  %v4293_v21 = vld [vmem:[%s4901_s25 + $0x248] ss:$24 sps:$4 sm:$0xff]  }
  0xe7   : > { %2064 = vmatprep.mubr.bf16.mxu0 %v5019_v23 }
  0xe8   : > { %2132 = vmatpush1.bf16.msra.mxu1 %v4209_v24  ;;  %v4296_v24 = vld [vmem:[%s4901_s25 + $0x250] ss:$24 sps:$4 sm:$0xff]  }
  0xe9   : > { %2358 = vmatpush1.bf16.msra.mxu0 %v4212_v25  ;;  %2133 = vmatprep.subr.bf16.mxu1 %v4223_v26  ;;  %v4301_v25 = vld [vmem:[%s4901_s25 + $0x27c] ss:$24 sps:$4 sm:$0xff]  }
  0xea   : > { %2359 = vmatprep.subr.bf16.mxu0 %v4226_v27  ;;  %v4304_v26 = vld [vmem:[%s4901_s25 + $0x284] ss:$24 sps:$4 sm:$0xff]  }
  0xeb   : > { %1952 = vmatmul.mubr.bf16.gmra.mrb[8].mxu1 %v5029_v28  ;;  %v5117_v27 = vld [vmem:[#allocation3 + $0xe4] ss:$16 sps:$4 sm:$0xff]  }
  0xec   : > { %2065 = vmatmul.mubr.bf16.gmra.mrb[8].mxu0 %v5031_v29  ;;  %2134 = vmatpush1.bf16.msra.mxu1 %v4221_v30  ;;  %v5119_v30 = vld [vmem:[#allocation3 + $0xec] ss:$16 sps:$4 sm:$0xff]  }
  0xed   : > { %2360 = vmatpush1.bf16.msra.mxu0 %v4224_v31  ;;  %2135 = vmatprep.subr.bf16.mxu1 %v4229_v32  ;;  %v4299_v31 = vld [vmem:[%s4901_s25 + $0x278] ss:$24 sps:$4 sm:$0xff]  }
  0xee   : > { %2361 = vmatprep.subr.bf16.mxu0 %v4232_v33  ;;  %1961 = vmatprep.mubr.bf16.mxu1 %v5037_v34  ;;  %v4302_v32 = vld [vmem:[%s4901_s25 + $0x280] ss:$24 sps:$4 sm:$0xff]   ;;  %v4313_v33 = vld [vmem:[%s4901_s25 + $0x2ac] ss:$24 sps:$4 sm:$0xff]  }
  0xef   : > { %2074 = vmatprep.mubr.bf16.mxu0 %v5039_v35 }
  0xf0   : > { %2136 = vmatpush1.bf16.msra.mxu1 %v4227_v36  ;;  %v4316_v36 = vld [vmem:[%s4901_s25 + $0x2b4] ss:$24 sps:$4 sm:$0xff]  }
  0xf1   : > { %2362 = vmatpush1.bf16.msra.mxu0 %v4230_v37  ;;  %2137 = vmatprep.subr.bf16.mxu1 %v4241_v38  ;;  %v5129_v37 = vld [vmem:[#allocation3 + $0xe0] ss:$16 sps:$4 sm:$0xff]   ;;  %v5131_v38 = vld [vmem:[#allocation3 + $0xe8] ss:$16 sps:$4 sm:$0xff]  }
  0xf2   : > { %2363 = vmatprep.subr.bf16.mxu0 %v4244_v39  ;;  %v4311_v39 = vld [vmem:[%s4901_s25 + $0x2a8] ss:$24 sps:$4 sm:$0xff]  }
  0xf3   : > { %1962 = vmatmul.mubr.bf16.gmra.mrb[12].mxu1 %v5049_v40 }
  0xf4   : > { %2075 = vmatmul.mubr.bf16.gmra.mrb[12].mxu0 %v5051_v41  ;;  %2138 = vmatpush1.bf16.msra.mxu1 %v4239_v42  ;;  %v4314_v42 = vld [vmem:[%s4901_s25 + $0x2b0] ss:$24 sps:$4 sm:$0xff]  }
  0xf5   : > { %2364 = vmatpush1.bf16.msra.mxu0 %v4242_v43  ;;  %2139 = vmatprep.subr.bf16.mxu1 %v4247_v44  ;;  %v4319_v43 = vld [vmem:[%s4901_s25 + $0x2dc] ss:$24 sps:$4 sm:$0xff]  }
  0xf6   : > { %2365 = vmatprep.subr.bf16.mxu0 %v4250_v45  ;;  %1971 = vmatprep.mubr.bf16.mxu1 %v5057_v46  ;;  %v4322_v44 = vld [vmem:[%s4901_s25 + $0x2e4] ss:$24 sps:$4 sm:$0xff]   ;;  %v4317_v45 = vld [vmem:[%s4901_s25 + $0x2d8] ss:$24 sps:$4 sm:$0xff]  }
  0xf7   : > { %2084 = vmatprep.mubr.bf16.mxu0 %v5059_v47 }
  0xf8   : > { %2140 = vmatpush1.bf16.msra.mxu1 %v4245_v49  ;;  %v4320_v49 = vld [vmem:[%s4901_s25 + $0x2e0] ss:$24 sps:$4 sm:$0xff]  }
  0xf9   : > { %2366 = vmatpush1.bf16.msra.mxu0 %v4248_v50  ;;  %2141 = vmatprep.subr.bf16.mxu1 %v4259_v51  ;;  %v4325_v50 = vld [vmem:[%s4901_s25 + $0x30c] ss:$24 sps:$4 sm:$0xff]  }
  0xfa   : > { %2367 = vmatprep.subr.bf16.mxu0 %v4262_v52  ;;  %v4328_v51 = vld [vmem:[%s4901_s25 + $0x314] ss:$24 sps:$4 sm:$0xff]   ;;  %v4323_v52 = vld [vmem:[%s4901_s25 + $0x308] ss:$24 sps:$4 sm:$0xff]  }
  0xfb   : > { %1972 = vmatmul.mubr.bf16.gmra.mrb[16].mxu1 %v5069_v53 }
  0xfc   : > { %2085 = vmatmul.mubr.bf16.gmra.mrb[16].mxu0 %v5071_v54  ;;  %2142 = vmatpush1.bf16.msra.mxu1 %v4257_v55  ;;  %v4326_v55 = vld [vmem:[%s4901_s25 + $0x310] ss:$24 sps:$4 sm:$0xff]  }
  0xfd   : > { %2368 = vmatpush1.bf16.msra.mxu0 %v4260_v56  ;;  %2143 = vmatprep.subr.bf16.mxu1 %v4265_v57  ;;  %v4331_v56 = vld [vmem:[%s4901_s25 + $0x33c] ss:$24 sps:$4 sm:$0xff]  }
  0xfe   : > { %2369 = vmatprep.subr.bf16.mxu0 %v4268_v58  ;;  %1981 = vmatprep.mubr.bf16.mxu1 %v5077_v59  ;;  %v4334_v57 = vld [vmem:[%s4901_s25 + $0x344] ss:$24 sps:$4 sm:$0xff]   ;;  %v4329_v58 = vld [vmem:[%s4901_s25 + $0x338] ss:$24 sps:$4 sm:$0xff]  }
  0xff   : > { %2094 = vmatprep.mubr.bf16.mxu0 %v5079_v60 }
 0x100   : > { %2144 = vmatpush1.bf16.msra.mxu1 %v4263_v61  ;;  %v4332_v61 = vld [vmem:[%s4901_s25 + $0x340] ss:$24 sps:$4 sm:$0xff]  }
 0x101   : > { %2370 = vmatpush1.bf16.msra.mxu0 %v4266_v62  ;;  %2145 = vmatprep.subr.bf16.mxu1 %v4277_v63  ;;  %v4340_v62 = vld [vmem:[%s4901_s25 + $0x374] ss:$24 sps:$4 sm:$0xff]   ;;  %v4335_v63 = vld [vmem:[%s4901_s25 + $0x368] ss:$24 sps:$4 sm:$0xff]  }
 0x102   : > { %2371 = vmatprep.subr.bf16.mxu0 %v4280_v0  ;;  %v4338_v0 = vld [vmem:[%s4901_s25 + $0x370] ss:$24 sps:$4 sm:$0xff]  }
 0x103   : > { %1982 = vmatmul.mubr.bf16.gmra.mrb[20].mxu1 %v5089_v1 }
 0x104   : > { %2095 = vmatmul.mubr.bf16.gmra.mrb[20].mxu0 %v5091_v2  ;;  %2146 = vmatpush1.bf16.msra.mxu1 %v4275_v3  ;;  %v4346_v3 = vld [vmem:[%s4901_s25 + $0x3a4] ss:$24 sps:$4 sm:$0xff]  }
 0x105   : > { %2372 = vmatpush1.bf16.msra.mxu0 %v4278_v6  ;;  %2147 = vmatprep.subr.bf16.mxu1 %v4283_v7  ;;  %v4341_v6 = vld [vmem:[%s4901_s25 + $0x398] ss:$24 sps:$4 sm:$0xff]  }
 0x106   : > { %2373 = vmatprep.subr.bf16.mxu0 %v4286_v8  ;;  %1991 = vmatprep.mubr.bf16.mxu1 %v5097_v9  ;;  %v4344_v7 = vld [vmem:[%s4901_s25 + $0x3a0] ss:$24 sps:$4 sm:$0xff]   ;;  %v4352_v8 = vld [vmem:[%s4901_s25 + $0x3d4] ss:$24 sps:$4 sm:$0xff]  }
 0x107   : > { %2104 = vmatprep.mubr.bf16.mxu0 %v5099_v12 }
 0x108   : > { %2148 = vmatpush1.bf16.msra.mxu1 %v4281_v13  ;;  %v4347_v13 = vld [vmem:[%s4901_s25 + $0x3c8] ss:$24 sps:$4 sm:$0xff]  }
 0x109   : > { %2374 = vmatpush1.bf16.msra.mxu0 %v4284_v14  ;;  %2149 = vmatprep.subr.bf16.mxu1 %v4295_v15  ;;  %v4350_v14 = vld [vmem:[%s4901_s25 + $0x3d0] ss:$24 sps:$4 sm:$0xff]   ;;  %v4358_v15 = vld [vmem:[%s4901_s25 + $0x404] ss:$24 sps:$4 sm:$0xff]  }
 0x10a   : > { %2375 = vmatprep.subr.bf16.mxu0 %v4298_v18  ;;  %v4353_v18 = vld [vmem:[%s4901_s25 + $0x3f8] ss:$24 sps:$4 sm:$0xff]  }
 0x10b   : > { %1992 = vmatmul.mubr.bf16.gmra.mrb[24].mxu1 %v5109_v19 }
 0x10c   : > { %2105 = vmatmul.mubr.bf16.gmra.mrb[24].mxu0 %v5111_v20  ;;  %2150 = vmatpush1.bf16.msra.mxu1 %v4293_v21  ;;  %v4361_v21 = vld [vmem:[%s4901_s25 + $0x42c] ss:$24 sps:$4 sm:$0xff]  }
 0x10d   : > { %2376 = vmatpush1.bf16.msra.mxu0 %v4296_v24  ;;  %2151 = vmatprep.subr.bf16.mxu1 %v4301_v25  ;;  %v4364_v24 = vld [vmem:[%s4901_s25 + $0x434] ss:$24 sps:$4 sm:$0xff]   ;;  %v4362_v25 = vld [vmem:[%s4901_s25 + $0x430] ss:$24 sps:$4 sm:$0xff]  }
 0x10e   : > { %2377 = vmatprep.subr.bf16.mxu0 %v4304_v26  ;;  %2001 = vmatprep.mubr.bf16.mxu1 %v5117_v27  ;;  %v4367_v26 = vld [vmem:[%s4901_s25 + $0x45c] ss:$24 sps:$4 sm:$0xff]  }
 0x10f   : > { %2114 = vmatprep.mubr.bf16.mxu0 %v5119_v30 }
 0x110   : > { %2152 = vmatpush1.bf16.msra.mxu1 %v4299_v31  ;;  %v4370_v31 = vld [vmem:[%s4901_s25 + $0x464] ss:$24 sps:$4 sm:$0xff]  }
 0x111   : > { %2378 = vmatpush1.bf16.msra.mxu0 %v4302_v32  ;;  %2153 = vmatprep.subr.bf16.mxu1 %v4313_v33  ;;  %v4368_v32 = vld [vmem:[%s4901_s25 + $0x460] ss:$24 sps:$4 sm:$0xff]   ;;  %v4373_v33 = vld [vmem:[%s4901_s25 + $0x48c] ss:$24 sps:$4 sm:$0xff]  }
 0x112   : > { %2379 = vmatprep.subr.bf16.mxu0 %v4316_v36  ;;  %v4376_v36 = vld [vmem:[%s4901_s25 + $0x494] ss:$24 sps:$4 sm:$0xff]  }
 0x113   : > { %2002 = vmatmul.mubr.bf16.gmra.mrb[28].mxu1 %v5129_v37 }
 0x114   : > { %2115 = vmatmul.mubr.bf16.gmra.mrb[28].mxu0 %v5131_v38  ;;  %2154 = vmatpush1.bf16.msra.mxu1 %v4311_v39  ;;  %v4374_v39 = vld [vmem:[%s4901_s25 + $0x490] ss:$24 sps:$4 sm:$0xff]  }
 0x115   : > { %2380 = vmatpush1.bf16.msra.mxu0 %v4314_v42  ;;  %2155 = vmatprep.subr.bf16.mxu1 %v4319_v43  ;;  %v4379_v42 = vld [vmem:[%s4901_s25 + $0x4bc] ss:$24 sps:$4 sm:$0xff]  }
 0x116   : > { %2381 = vmatprep.subr.bf16.mxu0 %v4322_v44  ;;  %2157 = vmatprep.mubr.bf16.mxu1 %v4968_v48  ;;  %v4382_v43 = vld [vmem:[%s4901_s25 + $0x4c4] ss:$24 sps:$4 sm:$0xff]   ;;  %v4380_v44 = vld [vmem:[%s4901_s25 + $0x4c0] ss:$24 sps:$4 sm:$0xff]  }
 0x117   : > { %2383 = vmatprep.mubr.bf16.mxu0 %v4968_v48  ;;  %v4337_v48 = vld [vmem:[%s4901_s25 + $0x36c] ss:$24 sps:$4 sm:$0xff]  }
 0x118   : > { %2156 = vmatpush1.bf16.msra.mxu1 %v4317_v45  ;;  %v4385_v45 = vld [vmem:[%s4901_s25 + $0x4ec] ss:$24 sps:$4 sm:$0xff]  }
 0x119   : > { %2382 = vmatpush1.bf16.msra.mxu0 %v4320_v49  ;;  %2238 = vmatprep.subr.bf16.mxu1 %v4325_v50  ;;  %v4388_v49 = vld [vmem:[%s4901_s25 + $0x4f4] ss:$24 sps:$4 sm:$0xff]   ;;  %v4386_v50 = vld [vmem:[%s4901_s25 + $0x4f0] ss:$24 sps:$4 sm:$0xff]  }
 0x11a   : > { %2464 = vmatprep.subr.bf16.mxu0 %v4328_v51  ;;  %v4391_v51 = vld [vmem:[%s4901_s25 + $0x51c] ss:$24 sps:$4 sm:$0xff]  }
 0x11b   : > { %2158 = vmatmul.mubr.bf16.vlgmr.msra.gmra.mrb[32].mxu1 %v4989_v4 }
 0x11c   : > { %2384 = vmatmul.mubr.bf16.vlgmr.msra.gmra.mrb[32].mxu0 %v4989_v4  ;;  %2239 = vmatpush1.bf16.msra.mxu1 %v4323_v52  ;;  %v4343_v4 = vld [vmem:[%s4901_s25 + $0x39c] ss:$24 sps:$4 sm:$0xff]  }
 0x11d   : > { %2465 = vmatpush1.bf16.msra.mxu0 %v4326_v55  ;;  %2240 = vmatprep.subr.bf16.mxu1 %v4331_v56  ;;  %v4394_v52 = vld [vmem:[%s4901_s25 + $0x524] ss:$24 sps:$4 sm:$0xff]   ;;  %v4392_v55 = vld [vmem:[%s4901_s25 + $0x520] ss:$24 sps:$4 sm:$0xff]  }
 0x11e   : > { %2466 = vmatprep.subr.bf16.mxu0 %v4334_v57  ;;  %2167 = vmatprep.mubr.bf16.mxu1 %v4997_v10  ;;  %v4397_v56 = vld [vmem:[%s4901_s25 + $0x54c] ss:$24 sps:$4 sm:$0xff]  }
 0x11f   : > { %2393 = vmatprep.mubr.bf16.mxu0 %v4997_v10  ;;  %v4349_v10 = vld [vmem:[%s4901_s25 + $0x3cc] ss:$24 sps:$4 sm:$0xff]  }
 0x120   : > { %2241 = vmatpush1.bf16.msra.mxu1 %v4329_v58  ;;  %v4400_v57 = vld [vmem:[%s4901_s25 + $0x554] ss:$24 sps:$4 sm:$0xff]   ;;  %v4398_v58 = vld [vmem:[%s4901_s25 + $0x550] ss:$24 sps:$4 sm:$0xff]  }
 0x121   : > { %2467 = vmatpush1.bf16.msra.mxu0 %v4332_v61  ;;  %2242 = vmatprep.subr.bf16.mxu1 %v4337_v48  ;;  %v4403_v61 = vld [vmem:[%s4901_s25 + $0x57c] ss:$24 sps:$4 sm:$0xff]  }
 0x122   : > { %2468 = vmatprep.subr.bf16.mxu0 %v4340_v62  ;;  %v4406_v48 = vld [vmem:[%s4901_s25 + $0x584] ss:$24 sps:$4 sm:$0xff]   ;;  %v4404_v62 = vld [vmem:[%s4901_s25 + $0x580] ss:$24 sps:$4 sm:$0xff]  }
 0x123   : > { %2168 = vmatmul.mubr.bf16.gmra.mrb[36].mxu1 %v5009_v16 }
 0x124   : > { %2394 = vmatmul.mubr.bf16.gmra.mrb[36].mxu0 %v5009_v16  ;;  %2243 = vmatpush1.bf16.msra.mxu1 %v4335_v63  ;;  %v4355_v16 = vld [vmem:[%s4901_s25 + $0x3fc] ss:$24 sps:$4 sm:$0xff]   ;;  %v4409_v63 = vld [vmem:[%s4901_s25 + $0x5ac] ss:$24 sps:$4 sm:$0xff]  }
 0x125   : > { %2469 = vmatpush1.bf16.msra.mxu0 %v4338_v0  ;;  %2244 = vmatprep.subr.bf16.mxu1 %v4343_v4  ;;  %v4412_v0 = vld [vmem:[%s4901_s25 + $0x5b4] ss:$24 sps:$4 sm:$0xff]   ;;  %v4407_v4 = vld [vmem:[%s4901_s25 + $0x5a8] ss:$24 sps:$4 sm:$0xff]  }
 0x126   : > { %2470 = vmatprep.subr.bf16.mxu0 %v4346_v3  ;;  %2177 = vmatprep.mubr.bf16.mxu1 %v5017_v22  ;;  %v4415_v3 = vld [vmem:[%s4901_s25 + $0x5dc] ss:$24 sps:$4 sm:$0xff]  }
 0x127   : > { %2403 = vmatprep.mubr.bf16.mxu0 %v5017_v22  ;;  %v4356_v22 = vld [vmem:[%s4901_s25 + $0x400] ss:$24 sps:$4 sm:$0xff]  }
 0x128   : > { %2245 = vmatpush1.bf16.msra.mxu1 %v4341_v6  ;;  %v4418_v6 = vld [vmem:[%s4901_s25 + $0x5e4] ss:$24 sps:$4 sm:$0xff]  }
 0x129   : > { %2471 = vmatpush1.bf16.msra.mxu0 %v4344_v7  ;;  %2246 = vmatprep.subr.bf16.mxu1 %v4349_v10  ;;  %v4413_v7 = vld [vmem:[%s4901_s25 + $0x5d8] ss:$24 sps:$4 sm:$0xff]  }
 0x12a   : > { %2472 = vmatprep.subr.bf16.mxu0 %v4352_v8  ;;  %v4416_v10 = vld [vmem:[%s4901_s25 + $0x5e0] ss:$24 sps:$4 sm:$0xff]   ;;  %v4419_v8 = vld [vmem:[#allocation3 + $0xc] ss:$16 sps:$4 sm:$0xff]  }
 0x12b   : > { %2178 = vmatmul.mubr.bf16.gmra.mrb[40].mxu1 %v5029_v28 }
 0x12c   : > { %2404 = vmatmul.mubr.bf16.gmra.mrb[40].mxu0 %v5029_v28  ;;  %2247 = vmatpush1.bf16.msra.mxu1 %v4347_v13  ;;  %v4359_v28 = vld [vmem:[%s4901_s25 + $0x428] ss:$24 sps:$4 sm:$0xff]  }
 0x12d   : > { %2473 = vmatpush1.bf16.msra.mxu0 %v4350_v14  ;;  %2248 = vmatprep.subr.bf16.mxu1 %v4355_v16  ;;  %v2772_v16 = vld [vmem:[%s4914_s26] sm:$0xff] }
 0x12e   : > { %2474 = vmatprep.subr.bf16.mxu0 %v4358_v15  ;;  %2187 = vmatprep.mubr.bf16.mxu1 %v5037_v34 }
 0x12f   : > { %2413 = vmatprep.mubr.bf16.mxu0 %v5037_v34  ;;  %v4365_v34 = vld [vmem:[%s4901_s25 + $0x458] ss:$24 sps:$4 sm:$0xff]  }
 0x130   : > { %2249 = vmatpush1.bf16.msra.mxu1 %v4353_v18 }
 0x131   : > { %2475 = vmatpush1.bf16.msra.mxu0 %v4356_v22  ;;  %2250 = vmatprep.subr.bf16.mxu1 %v4361_v21  ;;  %v2773_v21 = vld [vmem:[%s4914_s26 + $0x8] sm:$0xff] }
 0x132   : > { %2476 = vmatprep.subr.bf16.mxu0 %v4364_v24 }
 0x133   : > { %2188 = vmatmul.mubr.bf16.gmra.mrb[44].mxu1 %v5049_v40 }
 0x134   : > { %2414 = vmatmul.mubr.bf16.gmra.mrb[44].mxu0 %v5049_v40  ;;  %2251 = vmatpush1.bf16.msra.mxu1 %v4359_v28  ;;  %v4371_v40 = vld [vmem:[%s4901_s25 + $0x488] ss:$24 sps:$4 sm:$0xff]  }
 0x135   : > { %2477 = vmatpush1.bf16.msra.mxu0 %v4362_v25  ;;  %2252 = vmatprep.subr.bf16.mxu1 %v4367_v26  ;;  %v2778_v25 = vld [vmem:[%s4914_s26 + $0x30] sm:$0xff] }
 0x136   : > { %2478 = vmatprep.subr.bf16.mxu0 %v4370_v31  ;;  %2197 = vmatprep.mubr.bf16.mxu1 %v5057_v46 }
 0x137   : > { %2423 = vmatprep.mubr.bf16.mxu0 %v5057_v46  ;;  %v4377_v46 = vld [vmem:[%s4901_s25 + $0x4b8] ss:$24 sps:$4 sm:$0xff]  }
 0x138   : > { %2253 = vmatpush1.bf16.msra.mxu1 %v4365_v34 }
 0x139   : > { %2479 = vmatpush1.bf16.msra.mxu0 %v4368_v32  ;;  %2254 = vmatprep.subr.bf16.mxu1 %v4373_v33  ;;  %v2779_v32 = vld [vmem:[%s4914_s26 + $0x38] sm:$0xff] }
 0x13a   : > { %2480 = vmatprep.subr.bf16.mxu0 %v4376_v36 }
 0x13b   : > { %2198 = vmatmul.mubr.bf16.gmra.mrb[48].mxu1 %v5069_v53 }
 0x13c   : > { %2424 = vmatmul.mubr.bf16.gmra.mrb[48].mxu0 %v5069_v53  ;;  %2255 = vmatpush1.bf16.msra.mxu1 %v4371_v40  ;;  %v4383_v53 = vld [vmem:[%s4901_s25 + $0x4e8] ss:$24 sps:$4 sm:$0xff]  }
 0x13d   : > { %2481 = vmatpush1.bf16.msra.mxu0 %v4374_v39  ;;  %2256 = vmatprep.subr.bf16.mxu1 %v4379_v42 }
 0x13e   : > { %2482 = vmatprep.subr.bf16.mxu0 %v4382_v43  ;;  %2207 = vmatprep.mubr.bf16.mxu1 %v5077_v59 }
 0x13f   : > { %2433 = vmatprep.mubr.bf16.mxu0 %v5077_v59  ;;  %v4389_v59 = vld [vmem:[%s4901_s25 + $0x518] ss:$24 sps:$4 sm:$0xff]  }
 0x140   : > { %2257 = vmatpush1.bf16.msra.mxu1 %v4377_v46 }
 0x141   : > { %2483 = vmatpush1.bf16.msra.mxu0 %v4380_v44  ;;  %2258 = vmatprep.subr.bf16.mxu1 %v4385_v45 }
 0x142   : > { %2484 = vmatprep.subr.bf16.mxu0 %v4388_v49 }
 0x143   : > { %2208 = vmatmul.mubr.bf16.gmra.mrb[52].mxu1 %v5089_v1 }
 0x144   : > { %2434 = vmatmul.mubr.bf16.gmra.mrb[52].mxu0 %v5089_v1  ;;  %2259 = vmatpush1.bf16.msra.mxu1 %v4383_v53  ;;  %v4395_v1 = vld [vmem:[%s4901_s25 + $0x548] ss:$24 sps:$4 sm:$0xff]  }
 0x145   : > { %2485 = vmatpush1.bf16.msra.mxu0 %v4386_v50  ;;  %2260 = vmatprep.subr.bf16.mxu1 %v4391_v51 }
 0x146   : > { %2486 = vmatprep.subr.bf16.mxu0 %v4394_v52  ;;  %2217 = vmatprep.mubr.bf16.mxu1 %v5097_v9 }
 0x147   : > { %2443 = vmatprep.mubr.bf16.mxu0 %v5097_v9  ;;  %v4401_v9 = vld [vmem:[%s4901_s25 + $0x578] ss:$24 sps:$4 sm:$0xff]  }
 0x148   : > { %2261 = vmatpush1.bf16.msra.mxu1 %v4389_v59 }
 0x149   : > { %2487 = vmatpush1.bf16.msra.mxu0 %v4392_v55  ;;  %2262 = vmatprep.subr.bf16.mxu1 %v4397_v56 }
 0x14a   : > { %2488 = vmatprep.subr.bf16.mxu0 %v4400_v57 }
 0x14b   : > { %2218 = vmatmul.mubr.bf16.gmra.mrb[56].mxu1 %v5109_v19 }
 0x14c   : > { %2444 = vmatmul.mubr.bf16.gmra.mrb[56].mxu0 %v5109_v19  ;;  %2263 = vmatpush1.bf16.msra.mxu1 %v4395_v1  ;;  %v4410_v19 = vld [vmem:[%s4901_s25 + $0x5b0] ss:$24 sps:$4 sm:$0xff]  }
 0x14d   : > { %2489 = vmatpush1.bf16.msra.mxu0 %v4398_v58  ;;  %2264 = vmatprep.subr.bf16.mxu1 %v4403_v61  ;;  %v2784_v61 = vld [vmem:[%s4914_s26 + $0x60] sm:$0xff] }
 0x14e   : > { %2490 = vmatprep.subr.bf16.mxu0 %v4406_v48  ;;  %2227 = vmatprep.mubr.bf16.mxu1 %v5117_v27 }
 0x14f   : > { %2453 = vmatprep.mubr.bf16.mxu0 %v5117_v27 }
 0x150   : > { %2265 = vmatpush1.bf16.msra.mxu1 %v4401_v9 }
 0x151   : > { %2491 = vmatpush1.bf16.msra.mxu0 %v4404_v62  ;;  %2266 = vmatprep.subr.bf16.mxu1 %v4409_v63  ;;  %v2785_v63 = vld [vmem:[%s4914_s26 + $0x68] sm:$0xff] }
 0x152   : > { %2492 = vmatprep.subr.bf16.mxu0 %v4412_v0 }
 0x153   : > { %2228 = vmatmul.mubr.bf16.gmra.mrb[60].mxu1 %v5129_v37 }
 0x154   : > { %2454 = vmatmul.mubr.bf16.gmra.mrb[60].mxu0 %v5129_v37  ;;  %2267 = vmatpush1.bf16.msra.mxu1 %v4407_v4 }
 0x155   : > { %2493 = vmatpush1.bf16.msra.mxu0 %v4410_v19  ;;  %2268 = vmatprep.subr.bf16.mxu1 %v4415_v3  ;;  %v2790_v19 = vld [vmem:[%s4914_s26 + $0x90] sm:$0xff] }
 0x156   : > { %2494 = vmatprep.subr.bf16.mxu0 %v4418_v6  ;;  %2270 = vmatprep.mubr.bf16.mxu1 %v4419_v8 }
 0x157   : > { %2496 = vmatprep.mubr.bf16.mxu0 %v4419_v8 }
 0x158   : > { %2269 = vmatpush1.bf16.msra.mxu1 %v4413_v7 }
 0x159   : > { %2495 = vmatpush1.bf16.msra.mxu0 %v4416_v10  ;;  %v2791_v10 = vld [vmem:[%s4914_s26 + $0x98] sm:$0xff] }
 0x15b   : > { %2271 = vmatmul.mubr.bf16.vlgmr.msra.gmra.mrb[32].mxu1 %v4991_v5 }
 0x15c   : > { %2497 = vmatmul.mubr.bf16.vlgmr.msra.gmra.mrb[32].mxu0 %v4991_v5  ;;  %2280 = vmatprep.mubr.bf16.mxu1 %v4999_v11  ;;  %v2966_v5 = vlaneseq }
 0x15d   : > { %2506 = vmatprep.mubr.bf16.mxu0 %v4999_v11 }
 0x15e   : > { %v5267_v11 = vshrl.u32 %v2966_v5, 7 }
 0x163   : > { %2281 = vmatmul.mubr.bf16.gmra.mrb[36].mxu1 %v5011_v17 }
 0x164   : > { %2507 = vmatmul.mubr.bf16.gmra.mrb[36].mxu0 %v5011_v17  ;;  %2290 = vmatprep.mubr.bf16.mxu1 %v5019_v23  ;;  %v2968_v17 = vsub.s32 0, %v5267_v11 }
 0x165   : > { %2516 = vmatprep.mubr.bf16.mxu0 %v5019_v23  ;;  %v5271_v23 = vld [vmem:[%s4909_s12] sm:$0x3f] }
 0x16b   : > { %2291 = vmatmul.mubr.bf16.gmra.mrb[40].mxu1 %v5031_v29 }
 0x16c   : > { %2517 = vmatmul.mubr.bf16.gmra.mrb[40].mxu0 %v5031_v29  ;;  %2300 = vmatprep.mubr.bf16.mxu1 %v5039_v35  ;;  %v2972_v29 = vsub.s32 1, %v5267_v11 }
 0x16d   : > { %2526 = vmatprep.mubr.bf16.mxu0 %v5039_v35  ;;  %v5275_v35 = vrot.slane %v5271_v23, %v2968_v17 }
 0x173   : > { %2301 = vmatmul.mubr.bf16.gmra.mrb[44].mxu1 %v5051_v41 }
 0x174   : > { %2527 = vmatmul.mubr.bf16.gmra.mrb[44].mxu0 %v5051_v41  ;;  %2310 = vmatprep.mubr.bf16.mxu1 %v5059_v47 }
 0x175   : > { %2536 = vmatprep.mubr.bf16.mxu0 %v5059_v47 }
 0x17b   : > { %2311 = vmatmul.mubr.bf16.gmra.mrb[48].mxu1 %v5071_v54 }
 0x17c   : > { %2537 = vmatmul.mubr.bf16.gmra.mrb[48].mxu0 %v5071_v54  ;;  %2320 = vmatprep.mubr.bf16.mxu1 %v5079_v60  ;;  %v5278_v54 = vrot.slane %v5271_v23, %v2972_v29 }
 0x17d   : > { %2546 = vmatprep.mubr.bf16.mxu0 %v5079_v60 }
 0x183   : > { %2321 = vmatmul.mubr.bf16.gmra.mrb[52].mxu1 %v5091_v2 }
 0x184   : > { %2547 = vmatmul.mubr.bf16.gmra.mrb[52].mxu0 %v5091_v2  ;;  %2330 = vmatprep.mubr.bf16.mxu1 %v5099_v12 }
 0x185   : > { %2556 = vmatprep.mubr.bf16.mxu0 %v5099_v12 }
 0x18b   : > { %2331 = vmatmul.mubr.bf16.gmra.mrb[56].mxu1 %v5111_v20 }
 0x18c   : > { %2557 = vmatmul.mubr.bf16.gmra.mrb[56].mxu0 %v5111_v20  ;;  %2340 = vmatprep.mubr.bf16.mxu1 %v5119_v30 }
 0x18d   : > { %2566 = vmatprep.mubr.bf16.mxu0 %v5119_v30 }
 0x193   : > { %2341 = vmatmul.mubr.bf16.gmra.mrb[60].mxu1 %v5131_v38 }
 0x194   : > { %2567 = vmatmul.mubr.bf16.gmra.mrb[60].mxu0 %v5131_v38 }
 0x1ae   : > { %v1933_v41 = vpop.f32.mrb[0].mxu1 }
 0x1af   : > { %v2046_v47 = vpop.f32.mrb[0].mxu0  ;;  %v1935_v2 = vpop.f32.mrb[1].mxu1 }
 0x1b0   : > { %v2047_v60 = vadd.f32 %v2046_v47, %v1933_v41  ;;  %v2048_v12 = vpop.f32.mrb[1].mxu0  ;;  %v1937_v27 = vpop.f32.mrb[2].mxu1 }
 0x1b1   : > { %v2049_v20 = vadd.f32 %v2048_v12, %v1935_v2  ;;  %v2050_v30 = vpop.f32.mrb[2].mxu0  ;;  %v1939_v13 = vpop.f32.mrb[3].mxu1 }
 0x1b2   : > { %v2996_v37 = vadd.f32 %v5275_v35, %v2047_v60  ;;  %v2051_v38 = vadd.f32 %v2050_v30, %v1937_v27  ;;  %v2052_v14 = vpop.f32.mrb[3].mxu0 }
 0x1b3   : > { %v2997_v15 = vadd.f32 %v5278_v54, %v2049_v20  ;;  %v2053_v18 = vadd.f32 %v2052_v14, %v1939_v13 }
 0x1b4   : > { %v3092_v22 = vmul.f32 0.2, %v2996_v37  ;;  %v3002_v24 = vadd.f32 %v5275_v35, %v2051_v38 }
 0x1b5   : > { %v3093_v28 = vmul.f32 0.2, %v2997_v15  ;;  %v3003_v26 = vadd.f32 %v5278_v54, %v2053_v18 }
 0x1b6   : > { %v3188_v31 = vadd.f32 %v3092_v22, %v2772_v16  ;;  %v3098_v34 = vmul.f32 0.2, %v3002_v24  ;;  %v1943_v40 = vpop.f32.mrb[4].mxu1 }
 0x1b7   : > { %v3189_v33 = vadd.f32 %v3093_v28, %v2773_v21  ;;  %v3099_v36 = vmul.f32 0.2, %v3003_v26  ;;  %v2056_v39 = vpop.f32.mrb[4].mxu0  ;;  %v1945_v44 = vpop.f32.mrb[5].mxu1  ;;  %v2796_v21 = vld [vmem:[%s4914_s26 + $0xc0] sm:$0xff]  ;;  %v2797_v26 = vld [vmem:[%s4914_s26 + $0xc8] sm:$0xff] }
 0x1b8   : > { %v3284_v42 = vmax.f32 %v3188_v31, 0.0  ;;  %v3194_v43 = vadd.f32 %v3098_v34, %v2778_v25  ;;  %v2057_v46 = vadd.f32 %v2056_v39, %v1943_v40  ;;  %v2058_v45 = vpop.f32.mrb[5].mxu0  ;;  %v1947_v51 = vpop.f32.mrb[6].mxu1  ;;  %v2803_v39 = vld [vmem:[%s4914_s26 + $0xf8] sm:$0xff] }
 0x1b9   : > { %v3285_v49 = vmax.f32 %v3189_v33, 0.0  ;;  %v3195_v53 = vadd.f32 %v3099_v36, %v2779_v32  ;;  %v2059_v50 = vadd.f32 %v2058_v45, %v1945_v44  ;;  %v2060_v52 = vpop.f32.mrb[6].mxu0  ;;  %v1949_v57 = vpop.f32.mrb[7].mxu1  ;;  %v2802_v32 = vld [vmem:[%s4914_s26 + $0xf0] sm:$0xff] }
 0x1ba   : > { %3380 = vst [vmem:[%s5290_s14] sm:$0xff] %v3284_v42  ;;  %v3290_v59 = vmax.f32 %v3194_v43, 0.0  ;;  %v3008_v55 = vadd.f32 %v5275_v35, %v2057_v46  ;;  %v2061_v56 = vadd.f32 %v2060_v52, %v1947_v51  ;;  %v2062_v1 = vpop.f32.mrb[7].mxu0 }
 0x1bb   : > { %3381 = vst [vmem:[%s5290_s14 + $0x8] sm:$0xff] %v3285_v49  ;;  %v3291_v58 = vmax.f32 %v3195_v53, 0.0  ;;  %v3009_v48 = vadd.f32 %v5278_v54, %v2059_v50  ;;  %v2063_v9 = vadd.f32 %v2062_v1, %v1949_v57 }
 0x1bc   : > { %3386 = vst [vmem:[%s5290_s14 + $0x30] sm:$0xff] %v3290_v59  ;;  %v3104_v62 = vmul.f32 0.2, %v3008_v55  ;;  %v3014_v0 = vadd.f32 %v5275_v35, %v2061_v56 }
 0x1bd   : > { %3387 = vst [vmem:[%s5290_s14 + $0x38] sm:$0xff] %v3291_v58  ;;  %v3105_v4 = vmul.f32 0.2, %v3009_v48  ;;  %v3015_v3 = vadd.f32 %v5278_v54, %v2063_v9 }
 0x1be   : > { %v3200_v6 = vadd.f32 %v3104_v62, %v2784_v61  ;;  %v3110_v7 = vmul.f32 0.2, %v3014_v0  ;;  %v1953_v17 = vpop.f32.mrb[8].mxu1 }
 0x1bf   : > { %v3201_v8 = vadd.f32 %v3105_v4, %v2785_v63  ;;  %v3111_v5 = vmul.f32 0.2, %v3015_v3  ;;  %v2066_v29 = vpop.f32.mrb[8].mxu0  ;;  %v1955_v2 = vpop.f32.mrb[9].mxu1  ;;  %v2808_v63 = vld [vmem:[%s4914_s26 + $0x120] sm:$0xff]  ;;  %v2809_v3 = vld [vmem:[%s4914_s26 + $0x128] sm:$0xff] }
 0x1c0   : > { %v3296_v41 = vmax.f32 %v3200_v6, 0.0  ;;  %v3206_v47 = vadd.f32 %v3110_v7, %v2790_v19  ;;  %v2067_v60 = vadd.f32 %v2066_v29, %v1953_v17  ;;  %v2068_v12 = vpop.f32.mrb[9].mxu0  ;;  %v1957_v37 = vpop.f32.mrb[10].mxu1  ;;  %v2815_v29 = vld [vmem:[%s4914_s26 + $0x158] sm:$0xff] }
 0x1c1   : > { %v3297_v20 = vmax.f32 %v3201_v8, 0.0  ;;  %v3207_v27 = vadd.f32 %v3111_v5, %v2791_v10  ;;  %v2069_v30 = vadd.f32 %v2068_v12, %v1955_v2  ;;  %v2070_v38 = vpop.f32.mrb[10].mxu0  ;;  %v1959_v15 = vpop.f32.mrb[11].mxu1  ;;  %v2814_v10 = vld [vmem:[%s4914_s26 + $0x150] sm:$0xff] }
 0x1c2   : > { %3392 = vst [vmem:[%s5290_s14 + $0x60] sm:$0xff] %v3296_v41  ;;  %v3302_v13 = vmax.f32 %v3206_v47, 0.0  ;;  %v3020_v14 = vadd.f32 %v5275_v35, %v2067_v60  ;;  %v2071_v16 = vadd.f32 %v2070_v38, %v1957_v37  ;;  %v2072_v18 = vpop.f32.mrb[11].mxu0 }
 0x1c3   : > { %3393 = vst [vmem:[%s5290_s14 + $0x68] sm:$0xff] %v3297_v20  ;;  %v3303_v22 = vmax.f32 %v3207_v27, 0.0  ;;  %v3021_v24 = vadd.f32 %v5278_v54, %v2069_v30  ;;  %v2073_v28 = vadd.f32 %v2072_v18, %v1959_v15 }
 0x1c4   : > { %3398 = vst [vmem:[%s5290_s14 + $0x90] sm:$0xff] %v3302_v13  ;;  %v3116_v25 = vmul.f32 0.2, %v3020_v14  ;;  %v3026_v31 = vadd.f32 %v5275_v35, %v2071_v16 }
 0x1c5   : > { %3399 = vst [vmem:[%s5290_s14 + $0x98] sm:$0xff] %v3303_v22  ;;  %v3117_v34 = vmul.f32 0.2, %v3021_v24  ;;  %v3027_v33 = vadd.f32 %v5278_v54, %v2073_v28 }
 0x1c6   : > { %v3212_v36 = vadd.f32 %v3116_v25, %v2796_v21  ;;  %v3122_v40 = vmul.f32 0.2, %v3026_v31  ;;  %v1963_v46 = vpop.f32.mrb[12].mxu1 }
 0x1c7   : > { %v3213_v42 = vadd.f32 %v3117_v34, %v2797_v26  ;;  %v3123_v43 = vmul.f32 0.2, %v3027_v33  ;;  %v2076_v44 = vpop.f32.mrb[12].mxu0  ;;  %v1965_v50 = vpop.f32.mrb[13].mxu1  ;;  %v2820_v26 = vld [vmem:[%s4914_s26 + $0x180] sm:$0xff]  ;;  %v2821_v33 = vld [vmem:[%s4914_s26 + $0x188] sm:$0xff] }
 0x1c8   : > { %v3308_v45 = vmax.f32 %v3212_v36, 0.0  ;;  %v3218_v49 = vadd.f32 %v3122_v40, %v2802_v32  ;;  %v2077_v53 = vadd.f32 %v2076_v44, %v1963_v46  ;;  %v2078_v51 = vpop.f32.mrb[13].mxu0  ;;  %v1967_v56 = vpop.f32.mrb[14].mxu1  ;;  %v2827_v44 = vld [vmem:[%s4914_s26 + $0x1b8] sm:$0xff] }
 0x1c9   : > { %v3309_v52 = vmax.f32 %v3213_v42, 0.0  ;;  %v3219_v59 = vadd.f32 %v3123_v43, %v2803_v39  ;;  %v2079_v55 = vadd.f32 %v2078_v51, %v1965_v50  ;;  %v2080_v57 = vpop.f32.mrb[14].mxu0  ;;  %v1969_v48 = vpop.f32.mrb[15].mxu1  ;;  %v2826_v39 = vld [vmem:[%s4914_s26 + $0x1b0] sm:$0xff] }
 0x1ca   : > { %3404 = vst [vmem:[%s5290_s14 + $0xc0] sm:$0xff] %v3308_v45  ;;  %v3314_v1 = vmax.f32 %v3218_v49, 0.0  ;;  %v3032_v58 = vadd.f32 %v5275_v35, %v2077_v53  ;;  %v2081_v61 = vadd.f32 %v2080_v57, %v1967_v56  ;;  %v2082_v9 = vpop.f32.mrb[15].mxu0 }
 0x1cb   : > { %3405 = vst [vmem:[%s5290_s14 + $0xc8] sm:$0xff] %v3309_v52  ;;  %v3315_v62 = vmax.f32 %v3219_v59, 0.0  ;;  %v3033_v0 = vadd.f32 %v5278_v54, %v2079_v55  ;;  %v2083_v4 = vadd.f32 %v2082_v9, %v1969_v48 }
 0x1cc   : > { %3410 = vst [vmem:[%s5290_s14 + $0xf0] sm:$0xff] %v3314_v1  ;;  %v3128_v19 = vmul.f32 0.2, %v3032_v58  ;;  %v3038_v6 = vadd.f32 %v5275_v35, %v2081_v61 }
 0x1cd   : > { %3411 = vst [vmem:[%s5290_s14 + $0xf8] sm:$0xff] %v3315_v62  ;;  %v3129_v7 = vmul.f32 0.2, %v3033_v0  ;;  %v3039_v8 = vadd.f32 %v5278_v54, %v2083_v4 }
 0x1ce   : > { %v3224_v5 = vadd.f32 %v3128_v19, %v2808_v63  ;;  %v3134_v17 = vmul.f32 0.2, %v3038_v6  ;;  %v1973_v60 = vpop.f32.mrb[16].mxu1 }
 0x1cf   : > { %v3225_v41 = vadd.f32 %v3129_v7, %v2809_v3  ;;  %v3135_v47 = vmul.f32 0.2, %v3039_v8  ;;  %v2086_v2 = vpop.f32.mrb[16].mxu0  ;;  %v1975_v30 = vpop.f32.mrb[17].mxu1  ;;  %v2832_v3 = vld [vmem:[%s4914_s26 + $0x1e0] sm:$0xff]  ;;  %v2833_v8 = vld [vmem:[%s4914_s26 + $0x1e8] sm:$0xff] }
 0x1d0   : > { %v3320_v12 = vmax.f32 %v3224_v5, 0.0  ;;  %v3230_v20 = vadd.f32 %v3134_v17, %v2814_v10  ;;  %v2087_v27 = vadd.f32 %v2086_v2, %v1973_v60  ;;  %v2088_v37 = vpop.f32.mrb[17].mxu0  ;;  %v1977_v16 = vpop.f32.mrb[18].mxu1  ;;  %v2839_v2 = vld [vmem:[%s4914_s26 + $0x218] sm:$0xff] }
 0x1d1   : > { %v3321_v38 = vmax.f32 %v3225_v41, 0.0  ;;  %v3231_v13 = vadd.f32 %v3135_v47, %v2815_v29  ;;  %v2089_v14 = vadd.f32 %v2088_v37, %v1975_v30  ;;  %v2090_v15 = vpop.f32.mrb[18].mxu0  ;;  %v1979_v24 = vpop.f32.mrb[19].mxu1  ;;  %v2838_v29 = vld [vmem:[%s4914_s26 + $0x210] sm:$0xff] }
 0x1d2   : > { %3416 = vst [vmem:[%s5290_s14 + $0x120] sm:$0xff] %v3320_v12  ;;  %v3326_v18 = vmax.f32 %v3230_v20, 0.0  ;;  %v3044_v22 = vadd.f32 %v5275_v35, %v2087_v27  ;;  %v2091_v21 = vadd.f32 %v2090_v15, %v1977_v16  ;;  %v2092_v28 = vpop.f32.mrb[19].mxu0 }
 0x1d3   : > { %3417 = vst [vmem:[%s5290_s14 + $0x128] sm:$0xff] %v3321_v38  ;;  %v3327_v25 = vmax.f32 %v3231_v13, 0.0  ;;  %v3045_v31 = vadd.f32 %v5278_v54, %v2089_v14  ;;  %v2093_v34 = vadd.f32 %v2092_v28, %v1979_v24 }
 0x1d4   : > { %3422 = vst [vmem:[%s5290_s14 + $0x150] sm:$0xff] %v3326_v18  ;;  %v3140_v32 = vmul.f32 0.2, %v3044_v22  ;;  %v3050_v36 = vadd.f32 %v5275_v35, %v2091_v21 }
 0x1d5   : > { %3423 = vst [vmem:[%s5290_s14 + $0x158] sm:$0xff] %v3327_v25  ;;  %v3141_v40 = vmul.f32 0.2, %v3045_v31  ;;  %v3051_v42 = vadd.f32 %v5278_v54, %v2093_v34 }
 0x1d6   : > { %v3236_v43 = vadd.f32 %v3140_v32, %v2820_v26  ;;  %v3146_v46 = vmul.f32 0.2, %v3050_v36  ;;  %v1983_v53 = vpop.f32.mrb[20].mxu1 }
 0x1d7   : > { %v3237_v45 = vadd.f32 %v3141_v40, %v2821_v33  ;;  %v3147_v49 = vmul.f32 0.2, %v3051_v42  ;;  %v2096_v50 = vpop.f32.mrb[20].mxu0  ;;  %v1985_v55 = vpop.f32.mrb[21].mxu1  ;;  %v2844_v33 = vld [vmem:[%s4914_s26 + $0x240] sm:$0xff]  ;;  %v2845_v42 = vld [vmem:[%s4914_s26 + $0x248] sm:$0xff] }
 0x1d8   : > { %v3332_v51 = vmax.f32 %v3236_v43, 0.0  ;;  %v3242_v52 = vadd.f32 %v3146_v46, %v2826_v39  ;;  %v2097_v59 = vadd.f32 %v2096_v50, %v1983_v53  ;;  %v2098_v56 = vpop.f32.mrb[21].mxu0  ;;  %v1987_v61 = vpop.f32.mrb[22].mxu1  ;;  %v2851_v50 = vld [vmem:[%s4914_s26 + $0x278] sm:$0xff] }
 0x1d9   : > { %v3333_v57 = vmax.f32 %v3237_v45, 0.0  ;;  %v3243_v1 = vadd.f32 %v3147_v49, %v2827_v44  ;;  %v2099_v58 = vadd.f32 %v2098_v56, %v1985_v55  ;;  %v2100_v48 = vpop.f32.mrb[22].mxu0  ;;  %v1989_v0 = vpop.f32.mrb[23].mxu1  ;;  %v2850_v44 = vld [vmem:[%s4914_s26 + $0x270] sm:$0xff] }
 0x1da   : > { %3428 = vst [vmem:[%s5290_s14 + $0x180] sm:$0xff] %v3332_v51  ;;  %v3338_v9 = vmax.f32 %v3242_v52, 0.0  ;;  %v3056_v62 = vadd.f32 %v5275_v35, %v2097_v59  ;;  %v2101_v63 = vadd.f32 %v2100_v48, %v1987_v61  ;;  %v2102_v4 = vpop.f32.mrb[23].mxu0 }
 0x1db   : > { %3429 = vst [vmem:[%s5290_s14 + $0x188] sm:$0xff] %v3333_v57  ;;  %v3339_v19 = vmax.f32 %v3243_v1, 0.0  ;;  %v3057_v6 = vadd.f32 %v5278_v54, %v2099_v58  ;;  %v2103_v7 = vadd.f32 %v2102_v4, %v1989_v0 }
 0x1dc   : > { %3434 = vst [vmem:[%s5290_s14 + $0x1b0] sm:$0xff] %v3338_v9  ;;  %v3152_v10 = vmul.f32 0.2, %v3056_v62  ;;  %v3062_v5 = vadd.f32 %v5275_v35, %v2101_v63 }
 0x1dd   : > { %3435 = vst [vmem:[%s5290_s14 + $0x1b8] sm:$0xff] %v3339_v19  ;;  %v3153_v17 = vmul.f32 0.2, %v3057_v6  ;;  %v3063_v41 = vadd.f32 %v5278_v54, %v2103_v7 }
 0x1de   : > { %v3248_v47 = vadd.f32 %v3152_v10, %v2832_v3  ;;  %v3158_v60 = vmul.f32 0.2, %v3062_v5  ;;  %v1993_v27 = vpop.f32.mrb[24].mxu1 }
 0x1df   : > { %v3249_v12 = vadd.f32 %v3153_v17, %v2833_v8  ;;  %v3159_v20 = vmul.f32 0.2, %v3063_v41  ;;  %v2106_v30 = vpop.f32.mrb[24].mxu0  ;;  %v1995_v14 = vpop.f32.mrb[25].mxu1  ;;  %v2856_v8 = vld [vmem:[%s4914_s26 + $0x2a0] sm:$0xff]  ;;  %v2857_v41 = vld [vmem:[%s4914_s26 + $0x2a8] sm:$0xff] }
 0x1e0   : > { %v3344_v37 = vmax.f32 %v3248_v47, 0.0  ;;  %v3254_v38 = vadd.f32 %v3158_v60, %v2838_v29  ;;  %v2107_v13 = vadd.f32 %v2106_v30, %v1993_v27  ;;  %v2108_v16 = vpop.f32.mrb[25].mxu0  ;;  %v1997_v21 = vpop.f32.mrb[26].mxu1  ;;  %v2863_v30 = vld [vmem:[%s4914_s26 + $0x2d8] sm:$0xff] }
 0x1e1   : > { %v3345_v15 = vmax.f32 %v3249_v12, 0.0  ;;  %v3255_v18 = vadd.f32 %v3159_v20, %v2839_v2  ;;  %v2109_v22 = vadd.f32 %v2108_v16, %v1995_v14  ;;  %v2110_v24 = vpop.f32.mrb[26].mxu0  ;;  %v1999_v31 = vpop.f32.mrb[27].mxu1  ;;  %v2862_v2 = vld [vmem:[%s4914_s26 + $0x2d0] sm:$0xff] }
 0x1e2   : > { %3440 = vst [vmem:[%s5290_s14 + $0x1e0] sm:$0xff] %v3344_v37  ;;  %v3350_v28 = vmax.f32 %v3254_v38, 0.0  ;;  %v3068_v25 = vadd.f32 %v5275_v35, %v2107_v13  ;;  %v2111_v26 = vadd.f32 %v2110_v24, %v1997_v21  ;;  %v2112_v34 = vpop.f32.mrb[27].mxu0  ;;  %v2980_v21 = vsub.s32 3, %v5267_v11 }
 0x1e3   : > { %3441 = vst [vmem:[%s5290_s14 + $0x1e8] sm:$0xff] %v3345_v15  ;;  %v3351_v32 = vmax.f32 %v3255_v18, 0.0  ;;  %v3069_v36 = vadd.f32 %v5278_v54, %v2109_v22  ;;  %v2113_v40 = vadd.f32 %v2112_v34, %v1999_v31  ;;  %v2976_v22 = vsub.s32 2, %v5267_v11 }
 0x1e4   : > { %3446 = vst [vmem:[%s5290_s14 + $0x210] sm:$0xff] %v3350_v28  ;;  %v3164_v39 = vmul.f32 0.2, %v3068_v25  ;;  %v3074_v43 = vadd.f32 %v5275_v35, %v2111_v26  ;;  %v2988_v24 = vsub.s32 5, %v5267_v11  ;;  %v5391_v26 = vrot.slane %v5271_v23, %v2980_v21  ;;  %v2789_v21 = vld [vmem:[%s4914_s26 + $0x88] sm:$0xff] }
 0x1e5   : > { %3447 = vst [vmem:[%s5290_s14 + $0x218] sm:$0xff] %v3351_v32  ;;  %v3165_v46 = vmul.f32 0.2, %v3069_v36  ;;  %v3075_v45 = vadd.f32 %v5278_v54, %v2113_v40  ;;  %v5385_v28 = vrot.slane %v5271_v23, %v2976_v22  ;;  %v2787_v22 = vld [vmem:[%s4914_s26 + $0x78] sm:$0xff] }
 0x1e6   : > { %v3260_v49 = vadd.f32 %v3164_v39, %v2844_v33  ;;  %v3170_v53 = vmul.f32 0.2, %v3074_v43  ;;  %v2003_v59 = vpop.f32.mrb[28].mxu1  ;;  %v5394_v31 = vrot.slane %v5271_v23, %v2988_v24  ;;  %v2774_v33 = vld [vmem:[%s4914_s26 + $0x10] sm:$0xff]  ;;  %v2775_v43 = vld [vmem:[%s4914_s26 + $0x18] sm:$0xff] }
 0x1e7   : > { %v3261_v51 = vadd.f32 %v3165_v46, %v2845_v42  ;;  %v3171_v52 = vmul.f32 0.2, %v3075_v45  ;;  %v2116_v55 = vpop.f32.mrb[28].mxu0  ;;  %v2005_v58 = vpop.f32.mrb[29].mxu1  ;;  %v2776_v42 = vld [vmem:[%s4914_s26 + $0x20] sm:$0xff] }
 0x1e8   : > { %v3356_v56 = vmax.f32 %v3260_v49, 0.0  ;;  %v3266_v57 = vadd.f32 %v3170_v53, %v2850_v44  ;;  %v2117_v1 = vadd.f32 %v2116_v55, %v2003_v59  ;;  %v2118_v61 = vpop.f32.mrb[29].mxu0  ;;  %v2007_v63 = vpop.f32.mrb[30].mxu1  ;;  %v2777_v44 = vld [vmem:[%s4914_s26 + $0x28] sm:$0xff] }
 0x1e9   : > { %v3357_v48 = vmax.f32 %v3261_v51, 0.0  ;;  %v3267_v9 = vadd.f32 %v3171_v52, %v2851_v50  ;;  %v2119_v62 = vadd.f32 %v2118_v61, %v2005_v58  ;;  %v2120_v0 = vpop.f32.mrb[30].mxu0  ;;  %v2009_v6 = vpop.f32.mrb[31].mxu1  ;;  %v2782_v58 = vld [vmem:[%s4914_s26 + $0x50] sm:$0xff] }
 0x1ea   : > { %3452 = vst [vmem:[%s5290_s14 + $0x240] sm:$0xff] %v3356_v56  ;;  %v3362_v4 = vmax.f32 %v3266_v57, 0.0  ;;  %v3080_v19 = vadd.f32 %v5275_v35, %v2117_v1  ;;  %v2121_v3 = vadd.f32 %v2120_v0, %v2007_v63  ;;  %v2122_v7 = vpop.f32.mrb[31].mxu0  ;;  %v2780_v1 = vld [vmem:[%s4914_s26 + $0x40] sm:$0xff] }
 0x1eb   : > { %3453 = vst [vmem:[%s5290_s14 + $0x248] sm:$0xff] %v3357_v48  ;;  %v3363_v10 = vmax.f32 %v3267_v9, 0.0  ;;  %v3081_v5 = vadd.f32 %v5278_v54, %v2119_v62  ;;  %v2123_v17 = vadd.f32 %v2122_v7, %v2009_v6 }
 0x1ec   : > { %3458 = vst [vmem:[%s5290_s14 + $0x270] sm:$0xff] %v3362_v4  ;;  %v3176_v29 = vmul.f32 0.2, %v3080_v19  ;;  %v3086_v47 = vadd.f32 %v5275_v35, %v2121_v3  ;;  %v2781_v4 = vld [vmem:[%s4914_s26 + $0x48] sm:$0xff]  ;;  %v2783_v19 = vld [vmem:[%s4914_s26 + $0x58] sm:$0xff] }
 0x1ed   : > { %3459 = vst [vmem:[%s5290_s14 + $0x278] sm:$0xff] %v3363_v10  ;;  %v3177_v60 = vmul.f32 0.2, %v3081_v5  ;;  %v3087_v12 = vadd.f32 %v5278_v54, %v2123_v17  ;;  %v2984_v54 = vsub.s32 4, %v5267_v11 }
 0x1ee   : > { %v3272_v20 = vadd.f32 %v3176_v29, %v2856_v8  ;;  %v3182_v27 = vmul.f32 0.2, %v3086_v47 }
 0x1ef   : > { %v3273_v37 = vadd.f32 %v3177_v60, %v2857_v41  ;;  %v3183_v38 = vmul.f32 0.2, %v3087_v12  ;;  %v5388_v25 = vrot.slane %v5271_v23, %v2984_v54 }
 0x1f0   : > { %v3368_v13 = vmax.f32 %v3272_v20, 0.0  ;;  %v3278_v14 = vadd.f32 %v3182_v27, %v2862_v2 }
 0x1f1   : > { %v3369_v16 = vmax.f32 %v3273_v37, 0.0  ;;  %v3279_v15 = vadd.f32 %v3183_v38, %v2863_v30  ;;  %v2786_v37 = vld [vmem:[%s4914_s26 + $0x70] sm:$0xff] }
 0x1f2   : > { %3464 = vst [vmem:[%s5290_s14 + $0x2a0] sm:$0xff] %v3368_v13  ;;  %v3374_v35 = vmax.f32 %v3278_v14, 0.0  ;;  %v2788_v13 = vld [vmem:[%s4914_s26 + $0x80] sm:$0xff] }
 0x1f3   : > { %3465 = vst [vmem:[%s5290_s14 + $0x2a8] sm:$0xff] %v3369_v16  ;;  %v3375_v18 = vmax.f32 %v3279_v15, 0.0 }
 0x1f4   : > { %3470 = vst [vmem:[%s5290_s14 + $0x2d0] sm:$0xff] %v3374_v35 }
 0x1f5   : > { %3471 = vst [vmem:[%s5290_s14 + $0x2d8] sm:$0xff] %v3375_v18 }
 0x22e   : > { %v2272_v34 = vpop.f32.mrb[32].mxu1 }
 0x22f   : > { %v2498_v32 = vpop.f32.mrb[32].mxu0  ;;  %v2998_v36 = vadd.f32 %v5385_v28, %v2272_v34  ;;  %v2274_v11 = vpop.f32.mrb[33].mxu1 }
 0x230   : > { %v3000_v40 = vadd.f32 %v5388_v25, %v2498_v32  ;;  %v2500_v39 = vpop.f32.mrb[33].mxu0  ;;  %v2999_v46 = vadd.f32 %v5391_v26, %v2274_v11  ;;  %v2276_v23 = vpop.f32.mrb[34].mxu1 }
 0x231   : > { %v3001_v45 = vadd.f32 %v5394_v31, %v2500_v39  ;;  %v2502_v49 = vpop.f32.mrb[34].mxu0  ;;  %v3094_v53 = vmul.f32 0.2, %v2998_v36  ;;  %v3004_v51 = vadd.f32 %v5385_v28, %v2276_v23  ;;  %v2278_v59 = vpop.f32.mrb[35].mxu1 }
 0x232   : > { %v3096_v50 = vmul.f32 0.2, %v3000_v40  ;;  %v3006_v52 = vadd.f32 %v5388_v25, %v2502_v49  ;;  %v2504_v55 = vpop.f32.mrb[35].mxu0  ;;  %v3095_v56 = vmul.f32 0.2, %v2999_v46  ;;  %v3005_v61 = vadd.f32 %v5391_v26, %v2278_v59  ;;  %v2793_v59 = vld [vmem:[%s4914_s26 + $0xa8] sm:$0xff] }
 0x233   : > { %v3097_v57 = vmul.f32 0.2, %v3001_v45  ;;  %v3007_v48 = vadd.f32 %v5394_v31, %v2504_v55  ;;  %v3190_v9 = vadd.f32 %v3094_v53, %v2774_v33  ;;  %v3100_v63 = vmul.f32 0.2, %v3004_v51  ;;  %v2794_v45 = vld [vmem:[%s4914_s26 + $0xb0] sm:$0xff]  ;;  %v2795_v55 = vld [vmem:[%s4914_s26 + $0xb8] sm:$0xff] }
 0x234   : > { %v3192_v62 = vadd.f32 %v3096_v50, %v2776_v42  ;;  %v3102_v0 = vmul.f32 0.2, %v3006_v52  ;;  %v3191_v3 = vadd.f32 %v3095_v56, %v2775_v43  ;;  %v3101_v7 = vmul.f32 0.2, %v3005_v61 }
 0x235   : > { %v3193_v6 = vadd.f32 %v3097_v57, %v2777_v44  ;;  %v3103_v10 = vmul.f32 0.2, %v3007_v48  ;;  %v3286_v8 = vmax.f32 %v3190_v9, 0.0  ;;  %v3196_v17 = vadd.f32 %v3100_v63, %v2780_v1  ;;  %v2792_v44 = vld [vmem:[%s4914_s26 + $0xa0] sm:$0xff] }
 0x236   : > { %v3288_v5 = vmax.f32 %v3192_v62, 0.0  ;;  %v3198_v29 = vadd.f32 %v3102_v0, %v2782_v58  ;;  %v3287_v41 = vmax.f32 %v3191_v3, 0.0  ;;  %v3197_v60 = vadd.f32 %v3101_v7, %v2781_v4  ;;  %v2282_v12 = vpop.f32.mrb[36].mxu1 }
 0x237   : > { %v3289_v47 = vmax.f32 %v3193_v6, 0.0  ;;  %v3199_v2 = vadd.f32 %v3103_v10, %v2783_v19  ;;  %v2508_v20 = vpop.f32.mrb[36].mxu0  ;;  %3382 = vst [vmem:[%s5290_s14 + $0x10] sm:$0xff] %v3286_v8  ;;  %v3292_v27 = vmax.f32 %v3196_v17, 0.0  ;;  %v3010_v38 = vadd.f32 %v5385_v28, %v2282_v12  ;;  %v2284_v16 = vpop.f32.mrb[37].mxu1  ;;  %v2798_v8 = vld [vmem:[%s4914_s26 + $0xd0] sm:$0xff] }
 0x238   : > { %3384 = vst [vmem:[%s5290_s14 + $0x20] sm:$0xff] %v3288_v5  ;;  %v3294_v30 = vmax.f32 %v3198_v29, 0.0  ;;  %v3012_v14 = vadd.f32 %v5388_v25, %v2508_v20  ;;  %v2510_v15 = vpop.f32.mrb[37].mxu0  ;;  %3383 = vst [vmem:[%s5290_s14 + $0x18] sm:$0xff] %v3287_v41  ;;  %v3293_v35 = vmax.f32 %v3197_v60, 0.0  ;;  %v3011_v54 = vadd.f32 %v5391_v26, %v2284_v16  ;;  %v2286_v34 = vpop.f32.mrb[38].mxu1 }
 0x239   : > { %3385 = vst [vmem:[%s5290_s14 + $0x28] sm:$0xff] %v3289_v47  ;;  %v3295_v18 = vmax.f32 %v3199_v2, 0.0  ;;  %v3013_v24 = vadd.f32 %v5394_v31, %v2510_v15  ;;  %v2512_v32 = vpop.f32.mrb[38].mxu0  ;;  %3388 = vst [vmem:[%s5290_s14 + $0x40] sm:$0xff] %v3292_v27  ;;  %v3106_v33 = vmul.f32 0.2, %v3010_v38  ;;  %v3016_v40 = vadd.f32 %v5385_v28, %v2286_v34 }
 0x23a   : > { %3390 = vst [vmem:[%s5290_s14 + $0x50] sm:$0xff] %v3294_v30  ;;  %v3108_v36 = vmul.f32 0.2, %v3012_v14  ;;  %v3018_v11 = vadd.f32 %v5388_v25, %v2512_v32  ;;  %v2288_v39 = vpop.f32.mrb[39].mxu1  ;;  %v2514_v42 = vpop.f32.mrb[39].mxu0  ;;  %3389 = vst [vmem:[%s5290_s14 + $0x48] sm:$0xff] %v3293_v35 }
 0x23b   : > { %3391 = vst [vmem:[%s5290_s14 + $0x58] sm:$0xff] %v3295_v18  ;;  %v3107_v43 = vmul.f32 0.2, %v3011_v54  ;;  %v3109_v46 = vmul.f32 0.2, %v3013_v24  ;;  %v3017_v23 = vadd.f32 %v5391_v26, %v2288_v39  ;;  %v3019_v49 = vadd.f32 %v5394_v31, %v2514_v42  ;;  %v2800_v17 = vld [vmem:[%s4914_s26 + $0xe0] sm:$0xff] }
 0x23c   : > { %v3202_v53 = vadd.f32 %v3106_v33, %v2786_v37  ;;  %v3204_v50 = vadd.f32 %v3108_v36, %v2788_v13  ;;  %v3112_v51 = vmul.f32 0.2, %v3016_v40  ;;  %v3114_v52 = vmul.f32 0.2, %v3018_v11  ;;  %v2799_v12 = vld [vmem:[%s4914_s26 + $0xd8] sm:$0xff]  ;;  %v2801_v27 = vld [vmem:[%s4914_s26 + $0xe8] sm:$0xff] }
 0x23d   : > { %v3203_v56 = vadd.f32 %v3107_v43, %v2787_v22  ;;  %v3205_v57 = vadd.f32 %v3109_v46, %v2789_v21  ;;  %v3113_v1 = vmul.f32 0.2, %v3017_v23  ;;  %v3115_v58 = vmul.f32 0.2, %v3019_v49  ;;  %v2804_v21 = vld [vmem:[%s4914_s26 + $0x100] sm:$0xff]  ;;  %v2806_v24 = vld [vmem:[%s4914_s26 + $0x110] sm:$0xff] }
 0x23e   : > { %v3298_v61 = vmax.f32 %v3202_v53, 0.0  ;;  %v3300_v48 = vmax.f32 %v3204_v50, 0.0  ;;  %v3208_v9 = vadd.f32 %v3112_v51, %v2792_v44  ;;  %v3210_v62 = vadd.f32 %v3114_v52, %v2794_v45  ;;  %v2292_v3 = vpop.f32.mrb[40].mxu1  ;;  %v2805_v39 = vld [vmem:[%s4914_s26 + $0x108] sm:$0xff]  ;;  %v2807_v42 = vld [vmem:[%s4914_s26 + $0x118] sm:$0xff] }
 0x23f   : > { %v3299_v63 = vmax.f32 %v3203_v56, 0.0  ;;  %v3301_v0 = vmax.f32 %v3205_v57, 0.0  ;;  %v3209_v4 = vadd.f32 %v3113_v1, %v2793_v59  ;;  %v3211_v19 = vadd.f32 %v3115_v58, %v2795_v55  ;;  %v2518_v6 = vpop.f32.mrb[40].mxu0  ;;  %v2294_v41 = vpop.f32.mrb[41].mxu1 }
 0x240   : > { %3394 = vst [vmem:[%s5290_s14 + $0x70] sm:$0xff] %v3298_v61  ;;  %3396 = vst [vmem:[%s5290_s14 + $0x80] sm:$0xff] %v3300_v48  ;;  %v3304_v7 = vmax.f32 %v3208_v9, 0.0  ;;  %v3306_v10 = vmax.f32 %v3210_v62, 0.0  ;;  %v3022_v5 = vadd.f32 %v5385_v28, %v2292_v3  ;;  %v3024_v29 = vadd.f32 %v5388_v25, %v2518_v6  ;;  %v2520_v47 = vpop.f32.mrb[41].mxu0  ;;  %v2296_v37 = vpop.f32.mrb[42].mxu1 }
 0x241   : > { %3395 = vst [vmem:[%s5290_s14 + $0x78] sm:$0xff] %v3299_v63  ;;  %3397 = vst [vmem:[%s5290_s14 + $0x88] sm:$0xff] %v3301_v0  ;;  %v3305_v60 = vmax.f32 %v3209_v4, 0.0  ;;  %v3307_v2 = vmax.f32 %v3211_v19, 0.0  ;;  %v3023_v20 = vadd.f32 %v5391_v26, %v2294_v41  ;;  %v3025_v30 = vadd.f32 %v5394_v31, %v2520_v47  ;;  %v2522_v38 = vpop.f32.mrb[42].mxu0  ;;  %v2298_v35 = vpop.f32.mrb[43].mxu1 }
 0x242   : > { %3400 = vst [vmem:[%s5290_s14 + $0xa0] sm:$0xff] %v3304_v7  ;;  %3402 = vst [vmem:[%s5290_s14 + $0xb0] sm:$0xff] %v3306_v10  ;;  %v3118_v13 = vmul.f32 0.2, %v3022_v5  ;;  %v3120_v14 = vmul.f32 0.2, %v3024_v29  ;;  %v3028_v16 = vadd.f32 %v5385_v28, %v2296_v37  ;;  %v3030_v15 = vadd.f32 %v5388_v25, %v2522_v38 }
 0x243   : > { %v2524_v18 = vpop.f32.mrb[43].mxu0  ;;  %3401 = vst [vmem:[%s5290_s14 + $0xa8] sm:$0xff] %v3305_v60  ;;  %3403 = vst [vmem:[%s5290_s14 + $0xb8] sm:$0xff] %v3307_v2  ;;  %v3119_v22 = vmul.f32 0.2, %v3023_v20  ;;  %v3029_v34 = vadd.f32 %v5391_v26, %v2298_v35  ;;  %v2810_v61 = vld [vmem:[%s4914_s26 + $0x130] sm:$0xff] }
 0x244   : > { %v3121_v54 = vmul.f32 0.2, %v3025_v30  ;;  %v3031_v32 = vadd.f32 %v5394_v31, %v2524_v18  ;;  %v3214_v33 = vadd.f32 %v3118_v13, %v2798_v8  ;;  %v3216_v36 = vadd.f32 %v3120_v14, %v2800_v17  ;;  %v2812_v9 = vld [vmem:[%s4914_s26 + $0x140] sm:$0xff]  ;;  %v2811_v3 = vld [vmem:[%s4914_s26 + $0x138] sm:$0xff]  ;;  %v2813_v7 = vld [vmem:[%s4914_s26 + $0x148] sm:$0xff] }
 0x245   : > { %v3124_v40 = vmul.f32 0.2, %v3028_v16  ;;  %v3126_v11 = vmul.f32 0.2, %v3030_v15  ;;  %v3215_v43 = vadd.f32 %v3119_v22, %v2799_v12  ;;  %v3125_v44 = vmul.f32 0.2, %v3029_v34 }
 0x246   : > { %v3217_v46 = vadd.f32 %v3121_v54, %v2801_v27  ;;  %v3127_v45 = vmul.f32 0.2, %v3031_v32  ;;  %v3310_v23 = vmax.f32 %v3214_v33, 0.0  ;;  %v3312_v49 = vmax.f32 %v3216_v36, 0.0  ;;  %v2302_v56 = vpop.f32.mrb[44].mxu1  ;;  %v2816_v27 = vld [vmem:[%s4914_s26 + $0x160] sm:$0xff] }
 0x247   : > { %v3220_v53 = vadd.f32 %v3124_v40, %v2804_v21  ;;  %v3222_v50 = vadd.f32 %v3126_v11, %v2806_v24  ;;  %v3311_v51 = vmax.f32 %v3215_v43, 0.0  ;;  %v3221_v59 = vadd.f32 %v3125_v44, %v2805_v39  ;;  %v2528_v57 = vpop.f32.mrb[44].mxu0  ;;  %v2304_v63 = vpop.f32.mrb[45].mxu1  ;;  %v2818_v30 = vld [vmem:[%s4914_s26 + $0x170] sm:$0xff]  ;;  %v2817_v35 = vld [vmem:[%s4914_s26 + $0x168] sm:$0xff]  ;;  %v2819_v18 = vld [vmem:[%s4914_s26 + $0x178] sm:$0xff] }
 0x248   : > { %v3313_v52 = vmax.f32 %v3217_v46, 0.0  ;;  %v3223_v55 = vadd.f32 %v3127_v45, %v2807_v42  ;;  %3406 = vst [vmem:[%s5290_s14 + $0xd0] sm:$0xff] %v3310_v23  ;;  %3408 = vst [vmem:[%s5290_s14 + $0xe0] sm:$0xff] %v3312_v49  ;;  %v3034_v48 = vadd.f32 %v5385_v28, %v2302_v56  ;;  %v3036_v62 = vadd.f32 %v5388_v25, %v2528_v57  ;;  %v2530_v0 = vpop.f32.mrb[45].mxu0  ;;  %v2306_v8 = vpop.f32.mrb[46].mxu1  ;;  %v2822_v23 = vld [vmem:[%s4914_s26 + $0x190] sm:$0xff] }
 0x249   : > { %v3316_v1 = vmax.f32 %v3220_v53, 0.0  ;;  %v3318_v58 = vmax.f32 %v3222_v50, 0.0  ;;  %3407 = vst [vmem:[%s5290_s14 + $0xd8] sm:$0xff] %v3311_v51  ;;  %v3317_v4 = vmax.f32 %v3221_v59, 0.0  ;;  %v3035_v6 = vadd.f32 %v5391_v26, %v2304_v63  ;;  %v2532_v5 = vpop.f32.mrb[46].mxu0  ;;  %v2308_v60 = vpop.f32.mrb[47].mxu1 }
 0x24a   : > { %3409 = vst [vmem:[%s5290_s14 + $0xe8] sm:$0xff] %v3313_v52  ;;  %v3319_v19 = vmax.f32 %v3223_v55, 0.0  ;;  %v3037_v10 = vadd.f32 %v5394_v31, %v2530_v0  ;;  %v3130_v17 = vmul.f32 0.2, %v3034_v48  ;;  %v3132_v29 = vmul.f32 0.2, %v3036_v62 }
 0x24b   : > { %3412 = vst [vmem:[%s5290_s14 + $0x100] sm:$0xff] %v3316_v1  ;;  %3414 = vst [vmem:[%s5290_s14 + $0x110] sm:$0xff] %v3318_v58  ;;  %v3040_v41 = vadd.f32 %v5385_v28, %v2306_v8  ;;  %v3042_v47 = vadd.f32 %v5388_v25, %v2532_v5  ;;  %v2534_v2 = vpop.f32.mrb[47].mxu0  ;;  %v3131_v12 = vmul.f32 0.2, %v3035_v6  ;;  %v3041_v37 = vadd.f32 %v5391_v26, %v2308_v60  ;;  %v2824_v53 = vld [vmem:[%s4914_s26 + $0x1a0] sm:$0xff] }
 0x24c   : > { %3413 = vst [vmem:[%s5290_s14 + $0x108] sm:$0xff] %v3317_v4  ;;  %3415 = vst [vmem:[%s5290_s14 + $0x118] sm:$0xff] %v3319_v19  ;;  %v3133_v20 = vmul.f32 0.2, %v3037_v10  ;;  %v3043_v38 = vadd.f32 %v5394_v31, %v2534_v2  ;;  %v3226_v13 = vadd.f32 %v3130_v17, %v2810_v61  ;;  %v3228_v14 = vadd.f32 %v3132_v29, %v2812_v9  ;;  %v2823_v56 = vld [vmem:[%s4914_s26 + $0x198] sm:$0xff]  ;;  %v2825_v1 = vld [vmem:[%s4914_s26 + $0x1a8] sm:$0xff] }
 0x24d   : > { %v3136_v16 = vmul.f32 0.2, %v3040_v41  ;;  %v3138_v15 = vmul.f32 0.2, %v3042_v47  ;;  %v3227_v22 = vadd.f32 %v3131_v12, %v2811_v3  ;;  %v3137_v21 = vmul.f32 0.2, %v3041_v37 }
 0x24e   : > { %v3229_v54 = vadd.f32 %v3133_v20, %v2813_v7  ;;  %v3139_v24 = vmul.f32 0.2, %v3043_v38  ;;  %v3322_v34 = vmax.f32 %v3226_v13, 0.0  ;;  %v3324_v32 = vmax.f32 %v3228_v14, 0.0  ;;  %v2312_v43 = vpop.f32.mrb[48].mxu1  ;;  %v2828_v7 = vld [vmem:[%s4914_s26 + $0x1c0] sm:$0xff] }
 0x24f   : > { %v3232_v33 = vadd.f32 %v3136_v16, %v2816_v27  ;;  %v3234_v36 = vadd.f32 %v3138_v15, %v2818_v30  ;;  %v3323_v40 = vmax.f32 %v3227_v22, 0.0  ;;  %v3233_v39 = vadd.f32 %v3137_v21, %v2817_v35  ;;  %v2538_v46 = vpop.f32.mrb[48].mxu0  ;;  %v2314_v51 = vpop.f32.mrb[49].mxu1  ;;  %v2830_v10 = vld [vmem:[%s4914_s26 + $0x1d0] sm:$0xff]  ;;  %v2829_v60 = vld [vmem:[%s4914_s26 + $0x1c8] sm:$0xff]  ;;  %v2831_v2 = vld [vmem:[%s4914_s26 + $0x1d8] sm:$0xff] }
 0x250   : > { %v3325_v11 = vmax.f32 %v3229_v54, 0.0  ;;  %v3235_v42 = vadd.f32 %v3139_v24, %v2819_v18  ;;  %3418 = vst [vmem:[%s5290_s14 + $0x130] sm:$0xff] %v3322_v34  ;;  %3420 = vst [vmem:[%s5290_s14 + $0x140] sm:$0xff] %v3324_v32  ;;  %v3046_v49 = vadd.f32 %v5385_v28, %v2312_v43  ;;  %v3048_v50 = vadd.f32 %v5388_v25, %v2538_v46  ;;  %v2540_v52 = vpop.f32.mrb[49].mxu0  ;;  %v2316_v61 = vpop.f32.mrb[50].mxu1  ;;  %v2834_v34 = vld [vmem:[%s4914_s26 + $0x1f0] sm:$0xff] }
 0x251   : > { %v3328_v44 = vmax.f32 %v3232_v33, 0.0  ;;  %v3330_v45 = vmax.f32 %v3234_v36, 0.0  ;;  %3419 = vst [vmem:[%s5290_s14 + $0x138] sm:$0xff] %v3323_v40  ;;  %v3329_v59 = vmax.f32 %v3233_v39, 0.0  ;;  %v3047_v57 = vadd.f32 %v5391_v26, %v2314_v51  ;;  %v2542_v48 = vpop.f32.mrb[50].mxu0  ;;  %v2318_v4 = vpop.f32.mrb[51].mxu1 }
 0x252   : > { %3421 = vst [vmem:[%s5290_s14 + $0x148] sm:$0xff] %v3325_v11  ;;  %v3331_v55 = vmax.f32 %v3235_v42, 0.0  ;;  %v3049_v58 = vadd.f32 %v5394_v31, %v2540_v52  ;;  %v3142_v9 = vmul.f32 0.2, %v3046_v49  ;;  %v3144_v62 = vmul.f32 0.2, %v3048_v50 }
 0x253   : > { %3424 = vst [vmem:[%s5290_s14 + $0x160] sm:$0xff] %v3328_v44  ;;  %3426 = vst [vmem:[%s5290_s14 + $0x170] sm:$0xff] %v3330_v45  ;;  %v3052_v63 = vadd.f32 %v5385_v28, %v2316_v61  ;;  %v3054_v0 = vadd.f32 %v5388_v25, %v2542_v48  ;;  %v2544_v19 = vpop.f32.mrb[51].mxu0  ;;  %v3143_v3 = vmul.f32 0.2, %v3047_v57  ;;  %v3053_v8 = vadd.f32 %v5391_v26, %v2318_v4  ;;  %v2836_v33 = vld [vmem:[%s4914_s26 + $0x200] sm:$0xff] }
 0x254   : > { %3425 = vst [vmem:[%s5290_s14 + $0x168] sm:$0xff] %v3329_v59  ;;  %3427 = vst [vmem:[%s5290_s14 + $0x178] sm:$0xff] %v3331_v55  ;;  %v3145_v6 = vmul.f32 0.2, %v3049_v58  ;;  %v3055_v5 = vadd.f32 %v5394_v31, %v2544_v19  ;;  %v3238_v17 = vadd.f32 %v3142_v9, %v2822_v23  ;;  %v3240_v29 = vadd.f32 %v3144_v62, %v2824_v53  ;;  %v2835_v43 = vld [vmem:[%s4914_s26 + $0x1f8] sm:$0xff]  ;;  %v2837_v44 = vld [vmem:[%s4914_s26 + $0x208] sm:$0xff] }
 0x255   : > { %v3148_v41 = vmul.f32 0.2, %v3052_v63  ;;  %v3150_v47 = vmul.f32 0.2, %v3054_v0  ;;  %v3239_v12 = vadd.f32 %v3143_v3, %v2823_v56  ;;  %v3149_v27 = vmul.f32 0.2, %v3053_v8 }
 0x256   : > { %v3241_v20 = vadd.f32 %v3145_v6, %v2825_v1  ;;  %v3151_v30 = vmul.f32 0.2, %v3055_v5  ;;  %v3334_v37 = vmax.f32 %v3238_v17, 0.0  ;;  %v3336_v38 = vmax.f32 %v3240_v29, 0.0  ;;  %v2322_v22 = vpop.f32.mrb[52].mxu1  ;;  %v2840_v1 = vld [vmem:[%s4914_s26 + $0x220] sm:$0xff] }
 0x257   : > { %v3244_v13 = vadd.f32 %v3148_v41, %v2828_v7  ;;  %v3246_v14 = vadd.f32 %v3150_v47, %v2830_v10  ;;  %v3335_v16 = vmax.f32 %v3239_v12, 0.0  ;;  %v3245_v35 = vadd.f32 %v3149_v27, %v2829_v60  ;;  %v2548_v54 = vpop.f32.mrb[52].mxu0  ;;  %v2324_v40 = vpop.f32.mrb[53].mxu1  ;;  %v2842_v58 = vld [vmem:[%s4914_s26 + $0x230] sm:$0xff]  ;;  %v2841_v4 = vld [vmem:[%s4914_s26 + $0x228] sm:$0xff]  ;;  %v2843_v19 = vld [vmem:[%s4914_s26 + $0x238] sm:$0xff] }
 0x258   : > { %v3337_v15 = vmax.f32 %v3241_v20, 0.0  ;;  %v3247_v18 = vadd.f32 %v3151_v30, %v2831_v2  ;;  %3430 = vst [vmem:[%s5290_s14 + $0x190] sm:$0xff] %v3334_v37  ;;  %3432 = vst [vmem:[%s5290_s14 + $0x1a0] sm:$0xff] %v3336_v38  ;;  %v3058_v32 = vadd.f32 %v5385_v28, %v2322_v22  ;;  %v3060_v36 = vadd.f32 %v5388_v25, %v2548_v54  ;;  %v2550_v11 = vpop.f32.mrb[53].mxu0  ;;  %v2326_v23 = vpop.f32.mrb[54].mxu1  ;;  %v2846_v37 = vld [vmem:[%s4914_s26 + $0x250] sm:$0xff] }
 0x259   : > { %v3340_v21 = vmax.f32 %v3244_v13, 0.0  ;;  %v3342_v24 = vmax.f32 %v3246_v14, 0.0  ;;  %3431 = vst [vmem:[%s5290_s14 + $0x198] sm:$0xff] %v3335_v16  ;;  %v3341_v39 = vmax.f32 %v3245_v35, 0.0  ;;  %v3059_v46 = vadd.f32 %v5391_v26, %v2324_v40  ;;  %v2552_v49 = vpop.f32.mrb[54].mxu0  ;;  %v2328_v59 = vpop.f32.mrb[55].mxu1 }
 0x25a   : > { %3433 = vst [vmem:[%s5290_s14 + $0x1a8] sm:$0xff] %v3337_v15  ;;  %v3343_v42 = vmax.f32 %v3247_v18, 0.0  ;;  %v3061_v45 = vadd.f32 %v5394_v31, %v2550_v11  ;;  %v3154_v53 = vmul.f32 0.2, %v3058_v32  ;;  %v3156_v50 = vmul.f32 0.2, %v3060_v36 }
 0x25b   : > { %3436 = vst [vmem:[%s5290_s14 + $0x1c0] sm:$0xff] %v3340_v21  ;;  %3438 = vst [vmem:[%s5290_s14 + $0x1d0] sm:$0xff] %v3342_v24  ;;  %v3064_v51 = vadd.f32 %v5385_v28, %v2326_v23  ;;  %v3066_v52 = vadd.f32 %v5388_v25, %v2552_v49  ;;  %v2554_v55 = vpop.f32.mrb[55].mxu0  ;;  %v3155_v56 = vmul.f32 0.2, %v3059_v46  ;;  %v3065_v61 = vadd.f32 %v5391_v26, %v2328_v59  ;;  %v2848_v13 = vld [vmem:[%s4914_s26 + $0x260] sm:$0xff] }
 0x25c   : > { %3437 = vst [vmem:[%s5290_s14 + $0x1c8] sm:$0xff] %v3341_v39  ;;  %3439 = vst [vmem:[%s5290_s14 + $0x1d8] sm:$0xff] %v3343_v42  ;;  %v3157_v57 = vmul.f32 0.2, %v3061_v45  ;;  %v3067_v48 = vadd.f32 %v5394_v31, %v2554_v55  ;;  %v3250_v9 = vadd.f32 %v3154_v53, %v2834_v34  ;;  %v3252_v62 = vadd.f32 %v3156_v50, %v2836_v33  ;;  %v2847_v22 = vld [vmem:[%s4914_s26 + $0x258] sm:$0xff]  ;;  %v2849_v21 = vld [vmem:[%s4914_s26 + $0x268] sm:$0xff] }
 0x25d   : > { %v3160_v63 = vmul.f32 0.2, %v3064_v51  ;;  %v3162_v0 = vmul.f32 0.2, %v3066_v52  ;;  %v3251_v3 = vadd.f32 %v3155_v56, %v2835_v43  ;;  %v3161_v7 = vmul.f32 0.2, %v3065_v61 }
 0x25e   : > { %v3253_v6 = vadd.f32 %v3157_v57, %v2837_v44  ;;  %v3163_v10 = vmul.f32 0.2, %v3067_v48  ;;  %v3346_v8 = vmax.f32 %v3250_v9, 0.0  ;;  %v3348_v5 = vmax.f32 %v3252_v62, 0.0  ;;  %v2332_v12 = vpop.f32.mrb[56].mxu1  ;;  %v2852_v44 = vld [vmem:[%s4914_s26 + $0x280] sm:$0xff] }
 0x25f   : > { %v3256_v17 = vadd.f32 %v3160_v63, %v2840_v1  ;;  %v3258_v29 = vadd.f32 %v3162_v0, %v2842_v58  ;;  %v3347_v41 = vmax.f32 %v3251_v3, 0.0  ;;  %v3257_v60 = vadd.f32 %v3161_v7, %v2841_v4  ;;  %v2558_v20 = vpop.f32.mrb[56].mxu0  ;;  %v2334_v16 = vpop.f32.mrb[57].mxu1  ;;  %v2854_v45 = vld [vmem:[%s4914_s26 + $0x290] sm:$0xff]  ;;  %v2853_v59 = vld [vmem:[%s4914_s26 + $0x288] sm:$0xff]  ;;  %v2855_v55 = vld [vmem:[%s4914_s26 + $0x298] sm:$0xff] }
 0x260   : > { %v3349_v47 = vmax.f32 %v3253_v6, 0.0  ;;  %v3259_v2 = vadd.f32 %v3163_v10, %v2843_v19  ;;  %3442 = vst [vmem:[%s5290_s14 + $0x1f0] sm:$0xff] %v3346_v8  ;;  %3444 = vst [vmem:[%s5290_s14 + $0x200] sm:$0xff] %v3348_v5  ;;  %v3070_v38 = vadd.f32 %v5385_v28, %v2332_v12  ;;  %v3072_v14 = vadd.f32 %v5388_v25, %v2558_v20  ;;  %v2560_v15 = vpop.f32.mrb[57].mxu0  ;;  %v2336_v34 = vpop.f32.mrb[58].mxu1  ;;  %v2858_v6 = vld [vmem:[%s4914_s26 + $0x2b0] sm:$0xff] }
 0x261   : > { %v3352_v27 = vmax.f32 %v3256_v17, 0.0  ;;  %v3354_v30 = vmax.f32 %v3258_v29, 0.0  ;;  %3443 = vst [vmem:[%s5290_s14 + $0x1f8] sm:$0xff] %v3347_v41  ;;  %v3353_v35 = vmax.f32 %v3257_v60, 0.0  ;;  %v3071_v54 = vadd.f32 %v5391_v26, %v2334_v16  ;;  %v2562_v32 = vpop.f32.mrb[58].mxu0  ;;  %v2338_v39 = vpop.f32.mrb[59].mxu1 }
 0x262   : > { %3445 = vst [vmem:[%s5290_s14 + $0x208] sm:$0xff] %v3349_v47  ;;  %v3355_v18 = vmax.f32 %v3259_v2, 0.0  ;;  %v3073_v24 = vadd.f32 %v5394_v31, %v2560_v15  ;;  %v3166_v33 = vmul.f32 0.2, %v3070_v38  ;;  %v3168_v36 = vmul.f32 0.2, %v3072_v14 }
 0x263   : > { %3448 = vst [vmem:[%s5290_s14 + $0x220] sm:$0xff] %v3352_v27  ;;  %3450 = vst [vmem:[%s5290_s14 + $0x230] sm:$0xff] %v3354_v30  ;;  %v3076_v40 = vadd.f32 %v5385_v28, %v2336_v34  ;;  %v3078_v11 = vadd.f32 %v5388_v25, %v2562_v32  ;;  %v2564_v42 = vpop.f32.mrb[59].mxu0  ;;  %v3167_v43 = vmul.f32 0.2, %v3071_v54  ;;  %v3077_v23 = vadd.f32 %v5391_v26, %v2338_v39  ;;  %v2860_v17 = vld [vmem:[%s4914_s26 + $0x2c0] sm:$0xff] }
 0x264   : > { %3449 = vst [vmem:[%s5290_s14 + $0x228] sm:$0xff] %v3353_v35  ;;  %3451 = vst [vmem:[%s5290_s14 + $0x238] sm:$0xff] %v3355_v18  ;;  %v3169_v46 = vmul.f32 0.2, %v3073_v24  ;;  %v3079_v49 = vadd.f32 %v5394_v31, %v2564_v42  ;;  %v3262_v53 = vadd.f32 %v3166_v33, %v2846_v37  ;;  %v3264_v50 = vadd.f32 %v3168_v36, %v2848_v13  ;;  %v2859_v47 = vld [vmem:[%s4914_s26 + $0x2b8] sm:$0xff]  ;;  %v2861_v27 = vld [vmem:[%s4914_s26 + $0x2c8] sm:$0xff] }
 0x265   : > { %v3172_v51 = vmul.f32 0.2, %v3076_v40  ;;  %v3174_v52 = vmul.f32 0.2, %v3078_v11  ;;  %v3263_v56 = vadd.f32 %v3167_v43, %v2847_v22  ;;  %v3173_v1 = vmul.f32 0.2, %v3077_v23 }
 0x266   : > { %v3265_v57 = vadd.f32 %v3169_v46, %v2849_v21  ;;  %v3175_v58 = vmul.f32 0.2, %v3079_v49  ;;  %v3358_v61 = vmax.f32 %v3262_v53, 0.0  ;;  %v3360_v48 = vmax.f32 %v3264_v50, 0.0  ;;  %v2342_v3 = vpop.f32.mrb[60].mxu1  ;;  %v2864_v38 = vld [vmem:[%s4914_s26 + $0x2e0] sm:$0xff] }
 0x267   : > { %v3268_v9 = vadd.f32 %v3172_v51, %v2852_v44  ;;  %v3270_v62 = vadd.f32 %v3174_v52, %v2854_v45  ;;  %v3359_v63 = vmax.f32 %v3263_v56, 0.0  ;;  %v3269_v4 = vadd.f32 %v3173_v1, %v2853_v59  ;;  %v2568_v7 = vpop.f32.mrb[60].mxu0  ;;  %v2344_v41 = vpop.f32.mrb[61].mxu1  ;;  %v2866_v24 = vld [vmem:[%s4914_s26 + $0x2f0] sm:$0xff]  ;;  %v2865_v11 = vld [vmem:[%s4914_s26 + $0x2e8] sm:$0xff] }
 0x268   : > { %v3361_v0 = vmax.f32 %v3265_v57, 0.0  ;;  %v3271_v19 = vadd.f32 %v3175_v58, %v2855_v55  ;;  %3454 = vst [vmem:[%s5290_s14 + $0x250] sm:$0xff] %v3358_v61  ;;  %3456 = vst [vmem:[%s5290_s14 + $0x260] sm:$0xff] %v3360_v48  ;;  %v3082_v5 = vadd.f32 %v5385_v28, %v2342_v3  ;;  %v3084_v29 = vadd.f32 %v5388_v25, %v2568_v7  ;;  %v2570_v60 = vpop.f32.mrb[61].mxu0  ;;  %v2346_v37 = vpop.f32.mrb[62].mxu1 }
 0x269   : > { %v3364_v10 = vmax.f32 %v3268_v9, 0.0  ;;  %v3366_v8 = vmax.f32 %v3270_v62, 0.0  ;;  %3455 = vst [vmem:[%s5290_s14 + $0x258] sm:$0xff] %v3359_v63  ;;  %v3365_v2 = vmax.f32 %v3269_v4, 0.0  ;;  %v3083_v20 = vadd.f32 %v5391_v26, %v2344_v41  ;;  %v2572_v13 = vpop.f32.mrb[62].mxu0  ;;  %v2348_v18 = vpop.f32.mrb[63].mxu1 }
 0x26a   : > { %3457 = vst [vmem:[%s5290_s14 + $0x268] sm:$0xff] %v3361_v0  ;;  %v3367_v12 = vmax.f32 %v3271_v19, 0.0  ;;  %v3085_v30 = vadd.f32 %v5394_v31, %v2570_v60  ;;  %v3178_v14 = vmul.f32 0.2, %v3082_v5  ;;  %v3180_v16 = vmul.f32 0.2, %v3084_v29 }
 0x26b   : > { %3460 = vst [vmem:[%s5290_s14 + $0x280] sm:$0xff] %v3364_v10  ;;  %3462 = vst [vmem:[%s5290_s14 + $0x290] sm:$0xff] %v3366_v8  ;;  %v3088_v15 = vadd.f32 %v5385_v28, %v2346_v37  ;;  %v3090_v35 = vadd.f32 %v5388_v25, %v2572_v13  ;;  %v2574_v22 = vpop.f32.mrb[63].mxu0  ;;  %v3179_v54 = vmul.f32 0.2, %v3083_v20  ;;  %v3089_v34 = vadd.f32 %v5391_v26, %v2348_v18  ;;  %v2867_v25 = vld [vmem:[%s4914_s26 + $0x2f8] sm:$0xff] }
 0x26c   : > { %3461 = vst [vmem:[%s5290_s14 + $0x288] sm:$0xff] %v3365_v2  ;;  %3463 = vst [vmem:[%s5290_s14 + $0x298] sm:$0xff] %v3367_v12  ;;  %v3181_v21 = vmul.f32 0.2, %v3085_v30  ;;  %v3091_v32 = vadd.f32 %v5394_v31, %v2574_v22  ;;  %v3274_v33 = vadd.f32 %v3178_v14, %v2858_v6  ;;  %v3276_v36 = vadd.f32 %v3180_v16, %v2860_v17 }
 0x26d   : > { %v3184_v28 = vmul.f32 0.2, %v3088_v15  ;;  %v3186_v40 = vmul.f32 0.2, %v3090_v35  ;;  %v3275_v39 = vadd.f32 %v3179_v54, %v2859_v47  ;;  %v3185_v43 = vmul.f32 0.2, %v3089_v34 }
 0x26e   : > { %v3277_v42 = vadd.f32 %v3181_v21, %v2861_v27  ;;  %v3187_v46 = vmul.f32 0.2, %v3091_v32  ;;  %v3370_v44 = vmax.f32 %v3274_v33, 0.0  ;;  %v3372_v26 = vmax.f32 %v3276_v36, 0.0 }
 0x26f   : > { %v3280_v45 = vadd.f32 %v3184_v28, %v2864_v38  ;;  %v3282_v31 = vadd.f32 %v3186_v40, %v2866_v24  ;;  %v3371_v23 = vmax.f32 %v3275_v39, 0.0  ;;  %v3281_v53 = vadd.f32 %v3185_v43, %v2865_v11 }
 0x270   : > { %v3373_v49 = vmax.f32 %v3277_v42, 0.0  ;;  %v3283_v50 = vadd.f32 %v3187_v46, %v2867_v25  ;;  %3466 = vst [vmem:[%s5290_s14 + $0x2b0] sm:$0xff] %v3370_v44  ;;  %3468 = vst [vmem:[%s5290_s14 + $0x2c0] sm:$0xff] %v3372_v26 }
 0x271   : > { %v3376_v51 = vmax.f32 %v3280_v45, 0.0  ;;  %v3378_v52 = vmax.f32 %v3282_v31, 0.0  ;;  %3467 = vst [vmem:[%s5290_s14 + $0x2b8] sm:$0xff] %v3371_v23  ;;  %v3377_v59 = vmax.f32 %v3281_v53, 0.0 }
 0x272   : > { %3469 = vst [vmem:[%s5290_s14 + $0x2c8] sm:$0xff] %v3373_v49  ;;  %v3379_v55 = vmax.f32 %v3283_v50, 0.0 }
 0x273   : > { %3472 = vst [vmem:[%s5290_s14 + $0x2e0] sm:$0xff] %v3376_v51  ;;  %3474 = vst [vmem:[%s5290_s14 + $0x2f0] sm:$0xff] %v3378_v52 }
 0x274   : > { %3473 = vst [vmem:[%s5290_s14 + $0x2e8] sm:$0xff] %v3377_v59  ;;  %3475 = vst [vmem:[%s5290_s14 + $0x2f8] sm:$0xff] %v3379_v55 }
 0x275   : > { %4551 = shalt.err (!%p4548_p11)
}
 0x276   : > { %s4552_s24 = scalar_lea.hbm %s5585_s21, 12288  ;;  %s4556_s6 = scalar_lea.hbm %s5647_s4, 36864 }
 0x277   : > { %p4553_p0 = scmp.ne.s32.totalorder %s5585_s21, %s4552_s24  ;;  %p4557_p1 = scmp.lt.u32.totalorder %s5585_s21, %s5647_s4 }
 0x278   : > { %p4558_p13 = scmp.lt.u32.totalorder %s4556_s6, %s4552_s24  ;;  %p4560_p4 = scmp.lt.u32.totalorder %s4552_s24, %s5585_s21 }
 0x279   : > { %p4554_p3 = pnand %p4553_p0, %p5680_p9 }
 0x27a   : > { %p4559_p6 = por %p4558_p13, %p4557_p1 }
 0x27b   : > { %p4555_p7 = pneg %p4554_p3 }
 0x27c   : > { %p4561_p12 = por %p4560_p4, %p4559_p6 }
 0x27e   : > { %p4562_p10 = pnand %p4561_p12, %p4555_p7 }
 0x280   : > { %4565 = shalt.err (!%p4562_p10)
}
 0x281   : > { %s4643_s23 = smov 768   ;;  %s4644_s12 = smov 2304  }
 0x282   : > { %s4645_s7 = smov 48  }
 0x283   : > { %3999 = dma.vmem_to_hbm [thread:$0]  (%p5680_p9), %s5589_s29, 12288, %s5585_s21, %s3477_s27, %s4643_s23, %s4644_s12, %s4645_s7  }
 0x284 PF: > { %s5681_s26 = sld [smem:[#allocation19_spill]]  ;;  %p4022_p2 = scmp.ge.s32.totalorder %s4628_s20, 2 }
 0x285   : > { %s3508_s14 = sand.u32 1, %s4608_s15  }
 0x286   : > { %s3509_s10 = scalar_lea.sflag [#allocation5], %s3508_s14 }
 0x28a   : > { %p5682_p8 = scmp.ne.s32.totalorder %s5681_s26, 0 }
 0x28c   : > { %p4016_p5 = pnand %p4022_p2, %p5682_p8 }
 0x28e   : > { %4603 = dma.done.wait (!%p4016_p5), %s3509_s10, 12288  }
 0x28f   : > { %4605 = vsyncadd (!%p4016_p5), %s3509_s10, 4294955008  ;;  %s24_s20 = sadd.s32 1, %s4628_s20   ;;  %s5683_s18 = sld [smem:[#allocation16_spill]] }
 0x290   : > { %p21_p11 = scmp.ge.s32.totalorder %s24_s20, 5   ;;  %s5684_s17 = sld [smem:[#allocation18_spill]] }
 0x291   : > { %s5685_s5 = sld [smem:[#allocation17_spill]]  ;;  %s5686_s15 = smov %s4612_s16 }
 0x292   :  { %23 = sbr.rel (!%p21_p11) target bundleno = 11 (0xb), region = 119 }
 0x295   : > { %s5687_s16 = smov %s5683_s18  ;;  %s5688_s18 = smov %s4624_s19 }
 0x297   : > { %s5689_s19 = smov %s5685_s5 }
 0x299   :  { %3514 = vsyncpa [#allocation4], 1 }
 0x29a   :  { %3516 = vsyncpa [#allocation4 + $0x1], 1 }
 0x29b   :  { %3517 = vsyncpa [#allocation7], 1 }
 0x29c   :  { %3519 = vsyncpa [#allocation7 + $0x1], 1 }
 0x29d   :  { %3520 = vsyncpa [#allocation10], 1 }
 0x29e   :  { %3522 = vsyncpa [#allocation10 + $0x1], 1 }
 0x29f   :  { %3523 = vsyncpa [#allocation5], 1 }
 0x2a0   :  { %3525 = vsyncpa [#allocation5 + $0x1], 1 }

</bundles_post_ra>
